<compile_context>
chip_gen: v7x
topology: tpu7x:2x2x1
jax: 0.10.0
libtpu: 0.0.40
codegen_flags: <defaults>
</compile_context>

<pallas_src>
import jax
import jax.numpy as jnp
from jax.experimental import pallas as pl
from jax.experimental.pallas import tpu as pltpu

LANE = 128          # lane width; every im2col tap slot is padded to this
FC_TK_CAP = 8192    # fc1 reduction tile (multiple of 128); 2 MiB int8 block
FC_N_SPLIT = 2      # fc1 output-dim split ("parallel" axis -> v7x second TC)


def _fc_k_tiling(K):
    """Return (tk, nk, K_pad): tk multiple of 128, K zero-padded to nk*tk."""
    tk = min(FC_TK_CAP, ((K + LANE - 1) // LANE) * LANE)
    nk = (K + tk - 1) // tk
    return tk, nk, tk * nk


# ---------------------------------------------------------------------------
# Kernel 1: fused conv stack (conv1 -> relu -> conv2 -> relu -> conv3 -> relu)
# one image per grid step, all activations resident in VMEM
# ---------------------------------------------------------------------------
def fused_conv_kernel(xc_ref, w1_ref, b1_ref, w2_ref, b2_ref, w3_ref, b3_ref,
                      o_ref, pad_ref, cols_ref):
    """
    xc_ref  : (H*W, 9)            conv1 im2col rows (cin = 1), this image
    w1_ref  : (9, 32)             b1_ref: (1, 32)
    w2_ref  : (9*128, 64)         b2_ref: (1, 64)   (zero rows for lanes >= cin)
    w3_ref  : (9*128, 64)         b3_ref: (1, 64)
    o_ref   : (H*W, 64) bf16      rows ordered h*W + w (NHWC)
    pad_ref : (H+2, W+2, 128)     zero-padded activation scratch (128 lanes)
    cols_ref: (H*W, 9*128)        lane-aligned im2col scratch (tap t at lanes t*128..)
    """
    Hp, Wp, CP = pad_ref.shape
    H, W = Hp - 2, Wp - 2
    n = H * W
    c1 = w1_ref.shape[1]
    c2 = w2_ref.shape[1]

    # Zero the padded scratch every step: the 1-pixel border AND the unused channel
    # lanes (>= cin) stay exactly 0, so the zero weight rows never touch garbage.
    pad_ref[...] = jnp.zeros_like(pad_ref)

    # conv1 (cin = 1): one tiny K=9 matmul on the XLA-built im2col rows.
    a1 = jnp.dot(xc_ref[...], w1_ref[...], preferred_element_type=jnp.float32)
    a1 = jnp.maximum(a1 + b1_ref[...], 0.0)                       # (n, c1)

    def conv3x3(act, cin, w_ref, b_ref):
        # Activation into the padded interior (lanes cin..127 stay zero).
        pad_ref[1:H + 1, 1:W + 1, 0:cin] = act.reshape(H, W, cin)
        # Lane-aligned im2col: tap t lives at lanes [t*128, (t+1)*128), so every
        # store below is an unmasked, 128-aligned vst and every source slice is
        # lane-dense (full 128 channels).
        for t in range(9):
            dh, dw = t // 3, t % 3
            cols_ref[:, t * CP:(t + 1) * CP] = (
                pad_ref[dh:dh + H, dw:dw + W, :].reshape(n, CP))
        y = jnp.dot(cols_ref[...], w_ref[...],
                    preferred_element_type=jnp.float32)           # K = 9*128
        return jnp.maximum(y + b_ref[...], 0.0)

    a2 = conv3x3(a1, c1, w2_ref, b2_ref)                          # (n, c2)
    a3 = conv3x3(a2, c2, w3_ref, b3_ref)                          # (n, 64)
    o_ref[...] = a3.astype(o_ref.dtype)                           # bf16 store


def fused_conv_stack(xcols, w1, b1, w2, b2, w3, b3, *, B, H, W):
    HW = H * W
    c1, c2, c3 = w1.shape[1], w2.shape[1], w3.shape[1]
    return pl.pallas_call(
        fused_conv_kernel,
        out_shape=jax.ShapeDtypeStruct((B * HW, c3), jnp.bfloat16),
        grid=(B,),                                   # one image per step
        in_specs=[
            pl.BlockSpec((HW, 9), lambda i: (i, 0)),
            pl.BlockSpec((9, c1), lambda i: (0, 0)),
            pl.BlockSpec((1, c1), lambda i: (0, 0)),
            pl.BlockSpec((9 * LANE, c2), lambda i: (0, 0)),
            pl.BlockSpec((1, c2), lambda i: (0, 0)),
            pl.BlockSpec((9 * LANE, c3), lambda i: (0, 0)),
            pl.BlockSpec((1, c3), lambda i: (0, 0)),
        ],
        out_specs=pl.BlockSpec((HW, c3), lambda i: (i, 0)),
        scratch_shapes=[
            pltpu.VMEM((H + 2, W + 2, LANE), jnp.float32),  # padded activations
            pltpu.VMEM((HW, 9 * LANE), jnp.float32),        # lane-aligned im2col
        ],
        compiler_params=pltpu.CompilerParams(
            dimension_semantics=("parallel",)),             # megacore on v7x
    )(xcols, w1, b1, w2, b2, w3, b3)


# ---------------------------------------------------------------------------
# Kernel 2: fused fc1 (K-tiled, int8 weights, f32 accumulation) + fc2 epilogue
# grid = (N1-split "parallel", K-tiles "arbitrary")
# ---------------------------------------------------------------------------
def fc_fused_kernel(h_ref, w1_ref, s1_ref, b1_ref, w2_ref, o_ref, acc_ref):
    """Per N1-slice j: o[j] = relu((h @ W1q[:, j]) * s1[j] + b1[j]) @ W2[j]."""
    k = pl.program_id(1)

    @pl.when(k == 0)
    def _init():
        acc_ref[...] = jnp.zeros_like(acc_ref)

    # int8 weights hold raw quantized integers (|w| <= 127): exactly representable
    # in bf16, so dot(h_bf16, wq_bf16) with f32 accumulation is exact; the per-output
    # channel scale is applied once in the epilogue.
    w_blk = w1_ref[...].astype(jnp.float32).astype(jnp.bfloat16)
    acc_ref[...] += jnp.dot(h_ref[...], w_blk, preferred_element_type=jnp.float32)

    @pl.when(k == pl.num_programs(1) - 1)
    def _epilogue():
        h1 = jnp.maximum(acc_ref[...] * s1_ref[...] + b1_ref[...], 0.0)  # (B, N1h)
        y = jnp.dot(h1, w2_ref[...], preferred_element_type=jnp.float32)  # partial fc2
        o_ref[...] = y.astype(o_ref.dtype)


def fc1_fc2_partial(h, w1q, w1s, b1, w2):
    """Returns partial fc2 products per N1 slice: (FC_N_SPLIT, B, A).
    Final q-values = partials.sum(0) + fc2_bias (tiny XLA glue in the caller)."""
    B, Kp = h.shape
    Kw, N1 = w1q.shape
    assert Kp == Kw and N1 % FC_N_SPLIT == 0
    A = w2.shape[1]
    n1h = N1 // FC_N_SPLIT
    tk, nk, K_pad = _fc_k_tiling(Kp)
    assert K_pad == Kp                       # caller pads h to the padded weight rows
    return pl.pallas_call(
        fc_fused_kernel,
        out_shape=jax.ShapeDtypeStruct((FC_N_SPLIT, B, A), jnp.float32),
        grid=(FC_N_SPLIT, nk),
        in_specs=[
            pl.BlockSpec((B, tk), lambda j, k: (0, k)),        # activations (bf16)
            pl.BlockSpec((tk, n1h), lambda j, k: (k, j)),      # int8 weight stream
            pl.BlockSpec((1, n1h), lambda j, k: (0, j)),       # dequant scale
            pl.BlockSpec((1, n1h), lambda j, k: (0, j)),       # fc1 bias
            pl.BlockSpec((n1h, A), lambda j, k: (j, 0)),       # fc2 weight slice
        ],
        out_specs=pl.BlockSpec((None, B, A), lambda j, k: (j, 0, 0)),
        scratch_shapes=[pltpu.VMEM((B, n1h), jnp.float32)],    # fc1 accumulator
        compiler_params=pltpu.CompilerParams(
            dimension_semantics=("parallel", "arbitrary")),
    )(h, w1q, w1s, b1, w2)


# ---------------------------------------------------------------------------
# DQN parameters and forward pass
# ---------------------------------------------------------------------------
def init_dqn_params(key, state_shape, num_actions):
    H, W = state_shape
    K = 64 * H * W                                  # NHWC flatten: (h*W + w)*64 + c
    _, _, K_pad = _fc_k_tiling(K)
    ks = jax.random.split(key, 10)

    def conv_w_im2col(k, cin, cout, lane_pad):
        # im2col layout: row = tap*lane_pad + cin_channel; rows >= cin per tap are 0.
        scale = 1.0 / jnp.sqrt(9.0 * cin)
        w = jax.random.normal(k, (9, cin, cout), jnp.float32) * scale
        if lane_pad == cin:
            return w.reshape(9 * cin, cout)
        wp = jnp.zeros((9, lane_pad, cout), jnp.float32).at[:, :cin, :].set(w)
        return wp.reshape(9 * lane_pad, cout)

    def fc_w(k, fin, fout):
        return jax.random.normal(k, (fin, fout), jnp.float32) / jnp.sqrt(float(fin))

    # fc1: symmetric per-output-channel int8 quantization (the 16K-wide weight is
    # the dominant HBM stream; kernel 2 is bandwidth-bound).  Zero rows pad K to a
    # multiple of the K tile so the grid never needs a remainder tile.
    w1f = fc_w(ks[6], K, 512)
    w1s = jnp.max(jnp.abs(w1f), axis=0, keepdims=True) / 127.0          # (1, 512)
    w1q = jnp.clip(jnp.round(w1f / w1s), -127, 127).astype(jnp.int8)
    w1q = jnp.pad(w1q, ((0, K_pad - K), (0, 0)))

    return {
        "conv1_w": conv_w_im2col(ks[0], 1, 32, 1),        # (9, 32)
        "conv1_b": jax.random.normal(ks[1], (1, 32), jnp.float32) * 0.01,
        "conv2_w": conv_w_im2col(ks[2], 32, 64, LANE),    # (9*128, 64)
        "conv2_b": jax.random.normal(ks[3], (1, 64), jnp.float32) * 0.01,
        "conv3_w": conv_w_im2col(ks[4], 64, 64, LANE),    # (9*128, 64)
        "conv3_b": jax.random.normal(ks[5], (1, 64), jnp.float32) * 0.01,
        "fc1_wq": w1q,                                    # (K_pad, 512) int8
        "fc1_ws": w1s,                                    # (1, 512) f32
        "fc1_b": jax.random.normal(ks[7], (1, 512), jnp.float32) * 0.01,
        "fc2_w": fc_w(ks[8], 512, num_actions),
        "fc2_b": jax.random.normal(ks[9], (1, num_actions), jnp.float32) * 0.01,
    }


@jax.jit
def dqn_forward(x, params):
    """x: (B, H, W) float32  ->  (B, num_actions) float32."""
    B, H, W = x.shape
    HW = H * W
    # conv1 im2col rows (B*HW, 9): ~18 KB built in XLA.  Doing this in-kernel would
    # need a lanes->sublanes relayout for a cin=1 operand; deliberately left here.
    xp = jnp.pad(x, ((0, 0), (1, 1), (1, 1)))
    xcols = jnp.stack([xp[:, dh:dh + H, dw:dw + W]
                       for dh in range(3) for dw in range(3)],
                      axis=-1).reshape(B * HW, 9)
    a3 = fused_conv_stack(xcols,
                          params["conv1_w"], params["conv1_b"],
                          params["conv2_w"], params["conv2_b"],
                          params["conv3_w"], params["conv3_b"],
                          B=B, H=H, W=W)                          # (B*HW, 64) bf16
    # Row-major NHWC flatten: pure metadata reshape (fc1 rows laid out to match).
    h = a3.reshape(B, HW * a3.shape[-1])                          # (B, 64*H*W) bf16
    K = h.shape[1]
    K_pad = params["fc1_wq"].shape[0]
    if K_pad != K:                                                # remainder-safe K tiling
        h = jnp.pad(h, ((0, 0), (0, K_pad - K)))
    partials = fc1_fc2_partial(h, params["fc1_wq"], params["fc1_ws"],
                               params["fc1_b"], params["fc2_w"])  # (2, B, A)
    return partials.sum(axis=0) + params["fc2_b"]


if __name__ == "__main__":
    state_shape = (16, 16)
    num_actions = 4
    batch = 2

    key = jax.random.PRNGKey(0)
    pkey, xkey = jax.random.split(key)
    params = init_dqn_params(pkey, state_shape, num_actions)
    x = jax.random.normal(xkey, (batch, *state_shape), jnp.float32)

    out = dqn_forward(x, params)
    jax.block_until_ready(out)
    assert out.shape == (batch, num_actions), out.shape
    print("KERNEL_OK")
</pallas_src>

<mosaic_0001>
module attributes {stable_mosaic.version = 11 : i64} {
  func.func @fused_conv_kernel(%arg0: i32, %arg1: memref<256x9xf32, #tpu.memory_space<vmem>>, %arg2: memref<9x32xf32, #tpu.memory_space<vmem>>, %arg3: memref<1x32xf32, #tpu.memory_space<vmem>>, %arg4: memref<1152x64xf32, #tpu.memory_space<vmem>>, %arg5: memref<1x64xf32, #tpu.memory_space<vmem>>, %arg6: memref<1152x64xf32, #tpu.memory_space<vmem>>, %arg7: memref<1x64xf32, #tpu.memory_space<vmem>>, %arg8: memref<256x64xbf16, #tpu.memory_space<vmem>>, %arg9: memref<18x18x128xf32, #tpu.memory_space<vmem>>, %arg10: memref<256x1152xf32, #tpu.memory_space<vmem>>) attributes {dimension_semantics = [#tpu.dimension_semantics<parallel>], iteration_bounds = array<i64: 2>, scalar_prefetch = 0 : i64, scratch_operands = 2 : i64, tpu.core_type = #tpu.core_type<tc>, window_params = [{transform_indices = @transform_0, window_bounds = array<i64: 256, 9>}, {pipeline_mode = #tpu.pipeline_mode<synchronous>, transform_indices = @transform_1, window_bounds = array<i64: 9, 32>}, {pipeline_mode = #tpu.pipeline_mode<synchronous>, transform_indices = @transform_2, window_bounds = array<i64: 1, 32>}, {pipeline_mode = #tpu.pipeline_mode<synchronous>, transform_indices = @transform_3, window_bounds = array<i64: 1152, 64>}, {pipeline_mode = #tpu.pipeline_mode<synchronous>, transform_indices = @transform_4, window_bounds = array<i64: 1, 64>}, {pipeline_mode = #tpu.pipeline_mode<synchronous>, transform_indices = @transform_5, window_bounds = array<i64: 1152, 64>}, {pipeline_mode = #tpu.pipeline_mode<synchronous>, transform_indices = @transform_6, window_bounds = array<i64: 1, 64>}, {transform_indices = @transform_7, window_bounds = array<i64: 256, 64>}]} {
    %cst = arith.constant 0.000000e+00 : f32
    %0 = vector.broadcast %cst : f32 to vector<18x18x128xf32>
    %c0 = arith.constant 0 : index
    %c0_0 = arith.constant 0 : index
    %c0_1 = arith.constant 0 : index
    %1 = vector.load %arg9[%c0, %c0_0, %c0_1] : memref<18x18x128xf32, #tpu.memory_space<vmem>>, vector<18x18x128xf32>
    tpu.vector_store %arg9[%c0, %c0_0, %c0_1], %0 {strides = array<i32>} : memref<18x18x128xf32, #tpu.memory_space<vmem>>, vector<18x18x128xf32>,
    %c0_2 = arith.constant 0 : index
    %c0_3 = arith.constant 0 : index
    %2 = vector.load %arg1[%c0_2, %c0_3] : memref<256x9xf32, #tpu.memory_space<vmem>>, vector<256x9xf32>
    %c0_4 = arith.constant 0 : index
    %c0_5 = arith.constant 0 : index
    %3 = vector.load %arg2[%c0_4, %c0_5] : memref<9x32xf32, #tpu.memory_space<vmem>>, vector<9x32xf32>
    %cst_6 = arith.constant dense<0.000000e+00> : vector<256x32xf32>
    %4 = tpu.matmul %2, %3, %cst_6 {dimension_numbers = #tpu.dot_dimension_numbers<[1], [0], [0], [1], [0, 0, 1, 1], [], []>} : vector<256x9xf32>, vector<9x32xf32>, vector<256x32xf32> -> vector<256x32xf32>
    %c0_7 = arith.constant 0 : index
    %c0_8 = arith.constant 0 : index
    %5 = vector.load %arg3[%c0_7, %c0_8] : memref<1x32xf32, #tpu.memory_space<vmem>>, vector<1x32xf32>
    %6 = vector.broadcast %5 : vector<1x32xf32> to vector<256x32xf32>
    %7 = arith.addf %4, %6 : vector<256x32xf32>
    %cst_9 = arith.constant 0.000000e+00 : f32
    %8 = vector.broadcast %cst_9 : f32 to vector<256x32xf32>
    %9 = arith.maximumf %7, %8 : vector<256x32xf32>
    %10 = vector.shape_cast %9 : vector<256x32xf32> to vector<16x16x32xf32>
    %c1 = arith.constant 1 : index
    %c1_10 = arith.constant 1 : index
    %c0_11 = arith.constant 0 : index
    %11 = vector.load %arg9[%c1, %c1_10, %c0_11] : memref<18x18x128xf32, #tpu.memory_space<vmem>>, vector<16x16x32xf32>
    tpu.vector_store %arg9[%c1, %c1_10, %c0_11], %10 {strides = array<i32>} : memref<18x18x128xf32, #tpu.memory_space<vmem>>, vector<16x16x32xf32>,
    %c0_12 = arith.constant 0 : index
    %c0_13 = arith.constant 0 : index
    %c0_14 = arith.constant 0 : index
    %12 = vector.load %arg9[%c0_12, %c0_13, %c0_14] : memref<18x18x128xf32, #tpu.memory_space<vmem>>, vector<16x16x128xf32>
    %13 = vector.shape_cast %12 : vector<16x16x128xf32> to vector<256x128xf32>
    %c0_15 = arith.constant 0 : index
    %c0_16 = arith.constant 0 : index
    %14 = vector.load %arg10[%c0_15, %c0_16] : memref<256x1152xf32, #tpu.memory_space<vmem>>, vector<256x128xf32>
    tpu.vector_store %arg10[%c0_15, %c0_16], %13 {strides = array<i32>} : memref<256x1152xf32, #tpu.memory_space<vmem>>, vector<256x128xf32>,
    %c0_17 = arith.constant 0 : index
    %c1_18 = arith.constant 1 : index
    %c0_19 = arith.constant 0 : index
    %15 = vector.load %arg9[%c0_17, %c1_18, %c0_19] : memref<18x18x128xf32, #tpu.memory_space<vmem>>, vector<16x16x128xf32>
    %16 = vector.shape_cast %15 : vector<16x16x128xf32> to vector<256x128xf32>
    %c0_20 = arith.constant 0 : index
    %c128 = arith.constant 128 : index
    %17 = vector.load %arg10[%c0_20, %c128] : memref<256x1152xf32, #tpu.memory_space<vmem>>, vector<256x128xf32>
    tpu.vector_store %arg10[%c0_20, %c128], %16 {strides = array<i32>} : memref<256x1152xf32, #tpu.memory_space<vmem>>, vector<256x128xf32>,
    %c0_21 = arith.constant 0 : index
    %c2 = arith.constant 2 : index
    %c0_22 = arith.constant 0 : index
    %18 = vector.load %arg9[%c0_21, %c2, %c0_22] : memref<18x18x128xf32, #tpu.memory_space<vmem>>, vector<16x16x128xf32>
    %19 = vector.shape_cast %18 : vector<16x16x128xf32> to vector<256x128xf32>
    %c0_23 = arith.constant 0 : index
    %c256 = arith.constant 256 : index
    %20 = vector.load %arg10[%c0_23, %c256] : memref<256x1152xf32, #tpu.memory_space<vmem>>, vector<256x128xf32>
    tpu.vector_store %arg10[%c0_23, %c256], %19 {strides = array<i32>} : memref<256x1152xf32, #tpu.memory_space<vmem>>, vector<256x128xf32>,
    %c1_24 = arith.constant 1 : index
    %c0_25 = arith.constant 0 : index
    %c0_26 = arith.constant 0 : index
    %21 = vector.load %arg9[%c1_24, %c0_25, %c0_26] : memref<18x18x128xf32, #tpu.memory_space<vmem>>, vector<16x16x128xf32>
    %22 = vector.shape_cast %21 : vector<16x16x128xf32> to vector<256x128xf32>
    %c0_27 = arith.constant 0 : index
    %c384 = arith.constant 384 : index
    %23 = vector.load %arg10[%c0_27, %c384] : memref<256x1152xf32, #tpu.memory_space<vmem>>, vector<256x128xf32>
    tpu.vector_store %arg10[%c0_27, %c384], %22 {strides = array<i32>} : memref<256x1152xf32, #tpu.memory_space<vmem>>, vector<256x128xf32>,
    %c1_28 = arith.constant 1 : index
    %c1_29 = arith.constant 1 : index
    %c0_30 = arith.constant 0 : index
    %24 = vector.load %arg9[%c1_28, %c1_29, %c0_30] : memref<18x18x128xf32, #tpu.memory_space<vmem>>, vector<16x16x128xf32>
    %25 = vector.shape_cast %24 : vector<16x16x128xf32> to vector<256x128xf32>
    %c0_31 = arith.constant 0 : index
    %c512 = arith.constant 512 : index
    %26 = vector.load %arg10[%c0_31, %c512] : memref<256x1152xf32, #tpu.memory_space<vmem>>, vector<256x128xf32>
    tpu.vector_store %arg10[%c0_31, %c512], %25 {strides = array<i32>} : memref<256x1152xf32, #tpu.memory_space<vmem>>, vector<256x128xf32>,
    %c1_32 = arith.constant 1 : index
    %c2_33 = arith.constant 2 : index
    %c0_34 = arith.constant 0 : index
    %27 = vector.load %arg9[%c1_32, %c2_33, %c0_34] : memref<18x18x128xf32, #tpu.memory_space<vmem>>, vector<16x16x128xf32>
    %28 = vector.shape_cast %27 : vector<16x16x128xf32> to vector<256x128xf32>
    %c0_35 = arith.constant 0 : index
    %c640 = arith.constant 640 : index
    %29 = vector.load %arg10[%c0_35, %c640] : memref<256x1152xf32, #tpu.memory_space<vmem>>, vector<256x128xf32>
    tpu.vector_store %arg10[%c0_35, %c640], %28 {strides = array<i32>} : memref<256x1152xf32, #tpu.memory_space<vmem>>, vector<256x128xf32>,
    %c2_36 = arith.constant 2 : index
    %c0_37 = arith.constant 0 : index
    %c0_38 = arith.constant 0 : index
    %30 = vector.load %arg9[%c2_36, %c0_37, %c0_38] : memref<18x18x128xf32, #tpu.memory_space<vmem>>, vector<16x16x128xf32>
    %31 = vector.shape_cast %30 : vector<16x16x128xf32> to vector<256x128xf32>
    %c0_39 = arith.constant 0 : index
    %c768 = arith.constant 768 : index
    %32 = vector.load %arg10[%c0_39, %c768] : memref<256x1152xf32, #tpu.memory_space<vmem>>, vector<256x128xf32>
    tpu.vector_store %arg10[%c0_39, %c768], %31 {strides = array<i32>} : memref<256x1152xf32, #tpu.memory_space<vmem>>, vector<256x128xf32>,
    %c2_40 = arith.constant 2 : index
    %c1_41 = arith.constant 1 : index
    %c0_42 = arith.constant 0 : index
    %33 = vector.load %arg9[%c2_40, %c1_41, %c0_42] : memref<18x18x128xf32, #tpu.memory_space<vmem>>, vector<16x16x128xf32>
    %34 = vector.shape_cast %33 : vector<16x16x128xf32> to vector<256x128xf32>
    %c0_43 = arith.constant 0 : index
    %c896 = arith.constant 896 : index
    %35 = vector.load %arg10[%c0_43, %c896] : memref<256x1152xf32, #tpu.memory_space<vmem>>, vector<256x128xf32>
    tpu.vector_store %arg10[%c0_43, %c896], %34 {strides = array<i32>} : memref<256x1152xf32, #tpu.memory_space<vmem>>, vector<256x128xf32>,
    %c2_44 = arith.constant 2 : index
    %c2_45 = arith.constant 2 : index
    %c0_46 = arith.constant 0 : index
    %36 = vector.load %arg9[%c2_44, %c2_45, %c0_46] : memref<18x18x128xf32, #tpu.memory_space<vmem>>, vector<16x16x128xf32>
    %37 = vector.shape_cast %36 : vector<16x16x128xf32> to vector<256x128xf32>
    %c0_47 = arith.constant 0 : index
    %c1024 = arith.constant 1024 : index
    %38 = vector.load %arg10[%c0_47, %c1024] : memref<256x1152xf32, #tpu.memory_space<vmem>>, vector<256x128xf32>
    tpu.vector_store %arg10[%c0_47, %c1024], %37 {strides = array<i32>} : memref<256x1152xf32, #tpu.memory_space<vmem>>, vector<256x128xf32>,
    %c0_48 = arith.constant 0 : index
    %c0_49 = arith.constant 0 : index
    %39 = vector.load %arg10[%c0_48, %c0_49] : memref<256x1152xf32, #tpu.memory_space<vmem>>, vector<256x1152xf32>
    %c0_50 = arith.constant 0 : index
    %c0_51 = arith.constant 0 : index
    %40 = vector.load %arg4[%c0_50, %c0_51] : memref<1152x64xf32, #tpu.memory_space<vmem>>, vector<1152x64xf32>
    %cst_52 = arith.constant dense<0.000000e+00> : vector<256x64xf32>
    %41 = tpu.matmul %39, %40, %cst_52 {dimension_numbers = #tpu.dot_dimension_numbers<[1], [0], [0], [1], [0, 0, 1, 1], [], []>} : vector<256x1152xf32>, vector<1152x64xf32>, vector<256x64xf32> -> vector<256x64xf32>
    %c0_53 = arith.constant 0 : index
    %c0_54 = arith.constant 0 : index
    %42 = vector.load %arg5[%c0_53, %c0_54] : memref<1x64xf32, #tpu.memory_space<vmem>>, vector<1x64xf32>
    %43 = vector.broadcast %42 : vector<1x64xf32> to vector<256x64xf32>
    %44 = arith.addf %41, %43 : vector<256x64xf32>
    %cst_55 = arith.constant 0.000000e+00 : f32
    %45 = vector.broadcast %cst_55 : f32 to vector<256x64xf32>
    %46 = arith.maximumf %44, %45 : vector<256x64xf32>
    %47 = vector.shape_cast %46 : vector<256x64xf32> to vector<16x16x64xf32>
    %c1_56 = arith.constant 1 : index
    %c1_57 = arith.constant 1 : index
    %c0_58 = arith.constant 0 : index
    %48 = vector.load %arg9[%c1_56, %c1_57, %c0_58] : memref<18x18x128xf32, #tpu.memory_space<vmem>>, vector<16x16x64xf32>
    tpu.vector_store %arg9[%c1_56, %c1_57, %c0_58], %47 {strides = array<i32>} : memref<18x18x128xf32, #tpu.memory_space<vmem>>, vector<16x16x64xf32>,
    %c0_59 = arith.constant 0 : index
    %c0_60 = arith.constant 0 : index
    %c0_61 = arith.constant 0 : index
    %49 = vector.load %arg9[%c0_59, %c0_60, %c0_61] : memref<18x18x128xf32, #tpu.memory_space<vmem>>, vector<16x16x128xf32>
    %50 = vector.shape_cast %49 : vector<16x16x128xf32> to vector<256x128xf32>
    %c0_62 = arith.constant 0 : index
    %c0_63 = arith.constant 0 : index
    %51 = vector.load %arg10[%c0_62, %c0_63] : memref<256x1152xf32, #tpu.memory_space<vmem>>, vector<256x128xf32>
    tpu.vector_store %arg10[%c0_62, %c0_63], %50 {strides = array<i32>} : memref<256x1152xf32, #tpu.memory_space<vmem>>, vector<256x128xf32>,
    %c0_64 = arith.constant 0 : index
    %c1_65 = arith.constant 1 : index
    %c0_66 = arith.constant 0 : index
    %52 = vector.load %arg9[%c0_64, %c1_65, %c0_66] : memref<18x18x128xf32, #tpu.memory_space<vmem>>, vector<16x16x128xf32>
    %53 = vector.shape_cast %52 : vector<16x16x128xf32> to vector<256x128xf32>
    %c0_67 = arith.constant 0 : index
    %c128_68 = arith.constant 128 : index
    %54 = vector.load %arg10[%c0_67, %c128_68] : memref<256x1152xf32, #tpu.memory_space<vmem>>, vector<256x128xf32>
    tpu.vector_store %arg10[%c0_67, %c128_68], %53 {strides = array<i32>} : memref<256x1152xf32, #tpu.memory_space<vmem>>, vector<256x128xf32>,
    %c0_69 = arith.constant 0 : index
    %c2_70 = arith.constant 2 : index
    %c0_71 = arith.constant 0 : index
    %55 = vector.load %arg9[%c0_69, %c2_70, %c0_71] : memref<18x18x128xf32, #tpu.memory_space<vmem>>, vector<16x16x128xf32>
    %56 = vector.shape_cast %55 : vector<16x16x128xf32> to vector<256x128xf32>
    %c0_72 = arith.constant 0 : index
    %c256_73 = arith.constant 256 : index
    %57 = vector.load %arg10[%c0_72, %c256_73] : memref<256x1152xf32, #tpu.memory_space<vmem>>, vector<256x128xf32>
    tpu.vector_store %arg10[%c0_72, %c256_73], %56 {strides = array<i32>} : memref<256x1152xf32, #tpu.memory_space<vmem>>, vector<256x128xf32>,
    %c1_74 = arith.constant 1 : index
    %c0_75 = arith.constant 0 : index
    %c0_76 = arith.constant 0 : index
    %58 = vector.load %arg9[%c1_74, %c0_75, %c0_76] : memref<18x18x128xf32, #tpu.memory_space<vmem>>, vector<16x16x128xf32>
    %59 = vector.shape_cast %58 : vector<16x16x128xf32> to vector<256x128xf32>
    %c0_77 = arith.constant 0 : index
    %c384_78 = arith.constant 384 : index
    %60 = vector.load %arg10[%c0_77, %c384_78] : memref<256x1152xf32, #tpu.memory_space<vmem>>, vector<256x128xf32>
    tpu.vector_store %arg10[%c0_77, %c384_78], %59 {strides = array<i32>} : memref<256x1152xf32, #tpu.memory_space<vmem>>, vector<256x128xf32>,
    %c1_79 = arith.constant 1 : index
    %c1_80 = arith.constant 1 : index
    %c0_81 = arith.constant 0 : index
    %61 = vector.load %arg9[%c1_79, %c1_80, %c0_81] : memref<18x18x128xf32, #tpu.memory_space<vmem>>, vector<16x16x128xf32>
    %62 = vector.shape_cast %61 : vector<16x16x128xf32> to vector<256x128xf32>
    %c0_82 = arith.constant 0 : index
    %c512_83 = arith.constant 512 : index
    %63 = vector.load %arg10[%c0_82, %c512_83] : memref<256x1152xf32, #tpu.memory_space<vmem>>, vector<256x128xf32>
    tpu.vector_store %arg10[%c0_82, %c512_83], %62 {strides = array<i32>} : memref<256x1152xf32, #tpu.memory_space<vmem>>, vector<256x128xf32>,
    %c1_84 = arith.constant 1 : index
    %c2_85 = arith.constant 2 : index
    %c0_86 = arith.constant 0 : index
    %64 = vector.load %arg9[%c1_84, %c2_85, %c0_86] : memref<18x18x128xf32, #tpu.memory_space<vmem>>, vector<16x16x128xf32>
    %65 = vector.shape_cast %64 : vector<16x16x128xf32> to vector<256x128xf32>
    %c0_87 = arith.constant 0 : index
    %c640_88 = arith.constant 640 : index
    %66 = vector.load %arg10[%c0_87, %c640_88] : memref<256x1152xf32, #tpu.memory_space<vmem>>, vector<256x128xf32>
    tpu.vector_store %arg10[%c0_87, %c640_88], %65 {strides = array<i32>} : memref<256x1152xf32, #tpu.memory_space<vmem>>, vector<256x128xf32>,
    %c2_89 = arith.constant 2 : index
    %c0_90 = arith.constant 0 : index
    %c0_91 = arith.constant 0 : index
    %67 = vector.load %arg9[%c2_89, %c0_90, %c0_91] : memref<18x18x128xf32, #tpu.memory_space<vmem>>, vector<16x16x128xf32>
    %68 = vector.shape_cast %67 : vector<16x16x128xf32> to vector<256x128xf32>
    %c0_92 = arith.constant 0 : index
    %c768_93 = arith.constant 768 : index
    %69 = vector.load %arg10[%c0_92, %c768_93] : memref<256x1152xf32, #tpu.memory_space<vmem>>, vector<256x128xf32>
    tpu.vector_store %arg10[%c0_92, %c768_93], %68 {strides = array<i32>} : memref<256x1152xf32, #tpu.memory_space<vmem>>, vector<256x128xf32>,
    %c2_94 = arith.constant 2 : index
    %c1_95 = arith.constant 1 : index
    %c0_96 = arith.constant 0 : index
    %70 = vector.load %arg9[%c2_94, %c1_95, %c0_96] : memref<18x18x128xf32, #tpu.memory_space<vmem>>, vector<16x16x128xf32>
    %71 = vector.shape_cast %70 : vector<16x16x128xf32> to vector<256x128xf32>
    %c0_97 = arith.constant 0 : index
    %c896_98 = arith.constant 896 : index
    %72 = vector.load %arg10[%c0_97, %c896_98] : memref<256x1152xf32, #tpu.memory_space<vmem>>, vector<256x128xf32>
    tpu.vector_store %arg10[%c0_97, %c896_98], %71 {strides = array<i32>} : memref<256x1152xf32, #tpu.memory_space<vmem>>, vector<256x128xf32>,
    %c2_99 = arith.constant 2 : index
    %c2_100 = arith.constant 2 : index
    %c0_101 = arith.constant 0 : index
    %73 = vector.load %arg9[%c2_99, %c2_100, %c0_101] : memref<18x18x128xf32, #tpu.memory_space<vmem>>, vector<16x16x128xf32>
    %74 = vector.shape_cast %73 : vector<16x16x128xf32> to vector<256x128xf32>
    %c0_102 = arith.constant 0 : index
    %c1024_103 = arith.constant 1024 : index
    %75 = vector.load %arg10[%c0_102, %c1024_103] : memref<256x1152xf32, #tpu.memory_space<vmem>>, vector<256x128xf32>
    tpu.vector_store %arg10[%c0_102, %c1024_103], %74 {strides = array<i32>} : memref<256x1152xf32, #tpu.memory_space<vmem>>, vector<256x128xf32>,
    %c0_104 = arith.constant 0 : index
    %c0_105 = arith.constant 0 : index
    %76 = vector.load %arg10[%c0_104, %c0_105] : memref<256x1152xf32, #tpu.memory_space<vmem>>, vector<256x1152xf32>
    %c0_106 = arith.constant 0 : index
    %c0_107 = arith.constant 0 : index
    %77 = vector.load %arg6[%c0_106, %c0_107] : memref<1152x64xf32, #tpu.memory_space<vmem>>, vector<1152x64xf32>
    %cst_108 = arith.constant dense<0.000000e+00> : vector<256x64xf32>
    %78 = tpu.matmul %76, %77, %cst_108 {dimension_numbers = #tpu.dot_dimension_numbers<[1], [0], [0], [1], [0, 0, 1, 1], [], []>} : vector<256x1152xf32>, vector<1152x64xf32>, vector<256x64xf32> -> vector<256x64xf32>
    %c0_109 = arith.constant 0 : index
    %c0_110 = arith.constant 0 : index
    %79 = vector.load %arg7[%c0_109, %c0_110] : memref<1x64xf32, #tpu.memory_space<vmem>>, vector<1x64xf32>
    %80 = vector.broadcast %79 : vector<1x64xf32> to vector<256x64xf32>
    %81 = arith.addf %78, %80 : vector<256x64xf32>
    %cst_111 = arith.constant 0.000000e+00 : f32
    %82 = vector.broadcast %cst_111 : f32 to vector<256x64xf32>
    %83 = arith.maximumf %81, %82 : vector<256x64xf32>
    %84 = arith.truncf %83 : vector<256x64xf32> to vector<256x64xbf16>
    %c0_112 = arith.constant 0 : index
    %c0_113 = arith.constant 0 : index
    %85 = vector.load %arg8[%c0_112, %c0_113] : memref<256x64xbf16, #tpu.memory_space<vmem>>, vector<256x64xbf16>
    tpu.vector_store %arg8[%c0_112, %c0_113], %84 {strides = array<i32>} : memref<256x64xbf16, #tpu.memory_space<vmem>>, vector<256x64xbf16>,
    return
  }
  func.func @transform_0(%arg0: i32) -> (i32, i32) {
    %c0_i32 = arith.constant 0 : i32
    %c0_i32_0 = arith.constant 0 : i32
    return %arg0, %c0_i32 : i32, i32
  }
  func.func @transform_1(%arg0: i32) -> (i32, i32) {
    %c0_i32 = arith.constant 0 : i32
    %c0_i32_0 = arith.constant 0 : i32
    %c0_i32_1 = arith.constant 0 : i32
    return %c0_i32, %c0_i32_0 : i32, i32
  }
  func.func @transform_2(%arg0: i32) -> (i32, i32) {
    %c0_i32 = arith.constant 0 : i32
    %c0_i32_0 = arith.constant 0 : i32
    %c0_i32_1 = arith.constant 0 : i32
    return %c0_i32, %c0_i32_0 : i32, i32
  }
  func.func @transform_3(%arg0: i32) -> (i32, i32) {
    %c0_i32 = arith.constant 0 : i32
    %c0_i32_0 = arith.constant 0 : i32
    %c0_i32_1 = arith.constant 0 : i32
    return %c0_i32, %c0_i32_0 : i32, i32
  }
  func.func @transform_4(%arg0: i32) -> (i32, i32) {
    %c0_i32 = arith.constant 0 : i32
    %c0_i32_0 = arith.constant 0 : i32
    %c0_i32_1 = arith.constant 0 : i32
    return %c0_i32, %c0_i32_0 : i32, i32
  }
  func.func @transform_5(%arg0: i32) -> (i32, i32) {
    %c0_i32 = arith.constant 0 : i32
    %c0_i32_0 = arith.constant 0 : i32
    %c0_i32_1 = arith.constant 0 : i32
    return %c0_i32, %c0_i32_0 : i32, i32
  }
  func.func @transform_6(%arg0: i32) -> (i32, i32) {
    %c0_i32 = arith.constant 0 : i32
    %c0_i32_0 = arith.constant 0 : i32
    %c0_i32_1 = arith.constant 0 : i32
    return %c0_i32, %c0_i32_0 : i32, i32
  }
  func.func @transform_7(%arg0: i32) -> (i32, i32) {
    %c0_i32 = arith.constant 0 : i32
    %c0_i32_0 = arith.constant 0 : i32
    return %arg0, %c0_i32 : i32, i32
  }
}

module attributes {stable_mosaic.version = 11 : i64} {
  func.func @fc_fused_kernel(%arg0: i32, %arg1: i32, %arg2: memref<2x8192xbf16, #tpu.memory_space<vmem>>, %arg3: memref<8192x256xi8, #tpu.memory_space<vmem>>, %arg4: memref<1x256xf32, #tpu.memory_space<vmem>>, %arg5: memref<1x256xf32, #tpu.memory_space<vmem>>, %arg6: memref<256x4xf32, #tpu.memory_space<vmem>>, %arg7: memref<1x2x4xf32, #tpu.memory_space<vmem>>, %arg8: memref<2x256xf32, #tpu.memory_space<vmem>>) attributes {dimension_semantics = [#tpu.dimension_semantics<parallel>, #tpu.dimension_semantics<arbitrary>], iteration_bounds = array<i64: 2, 2>, scalar_prefetch = 0 : i64, scratch_operands = 1 : i64, tpu.core_type = #tpu.core_type<tc>, window_params = [{transform_indices = @transform_0, window_bounds = array<i64: 2, 8192>}, {transform_indices = @transform_1, window_bounds = array<i64: 8192, 256>}, {transform_indices = @transform_2, window_bounds = array<i64: 1, 256>}, {transform_indices = @transform_3, window_bounds = array<i64: 1, 256>}, {transform_indices = @transform_4, window_bounds = array<i64: 256, 4>}, {transform_indices = @transform_5, window_bounds = array<i64: 1, 2, 4>}]} {
    %c0_i32 = arith.constant 0 : i32
    %0 = arith.cmpi eq, %arg1, %c0_i32 : i32
    %1 = arith.extui %0 : i1 to i32
    %c0_i32_0 = arith.constant 0 : i32
    %2 = arith.cmpi ne, %1, %c0_i32_0 : i32
    scf.if %2 {
      %cst_9 = arith.constant 0.000000e+00 : f32
      %14 = vector.broadcast %cst_9 : f32 to vector<2x256xf32>
      %c0_10 = arith.constant 0 : index
      %c0_11 = arith.constant 0 : index
      %15 = vector.load %arg8[%c0_10, %c0_11] : memref<2x256xf32, #tpu.memory_space<vmem>>, vector<2x256xf32>
      tpu.vector_store %arg8[%c0_10, %c0_11], %14 {strides = array<i32>} : memref<2x256xf32, #tpu.memory_space<vmem>>, vector<2x256xf32>,
    } else {
    }
    %c0 = arith.constant 0 : index
    %c0_1 = arith.constant 0 : index
    %3 = vector.load %arg3[%c0, %c0_1] : memref<8192x256xi8, #tpu.memory_space<vmem>>, vector<8192x256xi8>
    %4 = arith.sitofp %3 : vector<8192x256xi8> to vector<8192x256xf32>
    %5 = arith.truncf %4 : vector<8192x256xf32> to vector<8192x256xbf16>
    %c0_2 = arith.constant 0 : index
    %c0_3 = arith.constant 0 : index
    %6 = vector.load %arg8[%c0_2, %c0_3] : memref<2x256xf32, #tpu.memory_space<vmem>>, vector<2x256xf32>
    %c0_4 = arith.constant 0 : index
    %c0_5 = arith.constant 0 : index
    %7 = vector.load %arg2[%c0_4, %c0_5] : memref<2x8192xbf16, #tpu.memory_space<vmem>>, vector<2x8192xbf16>
    %cst = arith.constant dense<0.000000e+00> : vector<2x256xf32>
    %8 = tpu.matmul %7, %5, %cst {dimension_numbers = #tpu.dot_dimension_numbers<[1], [0], [0], [1], [0, 0, 1, 1], [], []>} : vector<2x8192xbf16>, vector<8192x256xbf16>, vector<2x256xf32> -> vector<2x256xf32>
    %9 = arith.addf %6, %8 : vector<2x256xf32>
    %c0_6 = arith.constant 0 : index
    %c0_7 = arith.constant 0 : index
    %10 = vector.load %arg8[%c0_6, %c0_7] : memref<2x256xf32, #tpu.memory_space<vmem>>, vector<2x256xf32>
    tpu.vector_store %arg8[%c0_6, %c0_7], %9 {strides = array<i32>} : memref<2x256xf32, #tpu.memory_space<vmem>>, vector<2x256xf32>,
    %c1_i32 = arith.constant 1 : i32
    %11 = arith.cmpi eq, %arg1, %c1_i32 : i32
    %12 = arith.extui %11 : i1 to i32
    %c0_i32_8 = arith.constant 0 : i32
    %13 = arith.cmpi ne, %12, %c0_i32_8 : i32
    scf.if %13 {
      %c0_9 = arith.constant 0 : index
      %c0_10 = arith.constant 0 : index
      %14 = vector.load %arg8[%c0_9, %c0_10] : memref<2x256xf32, #tpu.memory_space<vmem>>, vector<2x256xf32>
      %c0_11 = arith.constant 0 : index
      %c0_12 = arith.constant 0 : index
      %15 = vector.load %arg4[%c0_11, %c0_12] : memref<1x256xf32, #tpu.memory_space<vmem>>, vector<1x256xf32>
      %16 = vector.broadcast %15 : vector<1x256xf32> to vector<2x256xf32>
      %17 = arith.mulf %14, %16 : vector<2x256xf32>
      %c0_13 = arith.constant 0 : index
      %c0_14 = arith.constant 0 : index
      %18 = vector.load %arg5[%c0_13, %c0_14] : memref<1x256xf32, #tpu.memory_space<vmem>>, vector<1x256xf32>
      %19 = vector.broadcast %18 : vector<1x256xf32> to vector<2x256xf32>
      %20 = arith.addf %17, %19 : vector<2x256xf32>
      %cst_15 = arith.constant 0.000000e+00 : f32
      %21 = vector.broadcast %cst_15 : f32 to vector<2x256xf32>
      %22 = arith.maximumf %20, %21 : vector<2x256xf32>
      %c0_16 = arith.constant 0 : index
      %c0_17 = arith.constant 0 : index
      %23 = vector.load %arg6[%c0_16, %c0_17] : memref<256x4xf32, #tpu.memory_space<vmem>>, vector<256x4xf32>
      %cst_18 = arith.constant dense<0.000000e+00> : vector<2x4xf32>
      %24 = tpu.matmul %22, %23, %cst_18 {dimension_numbers = #tpu.dot_dimension_numbers<[1], [0], [0], [1], [0, 0, 1, 1], [], []>} : vector<2x256xf32>, vector<256x4xf32>, vector<2x4xf32> -> vector<2x4xf32>
      %c0_19 = arith.constant 0 : index
      %c0_20 = arith.constant 0 : index
      %c0_21 = arith.constant 0 : index
      %25 = vector.load %arg7[%c0_19, %c0_20, %c0_21] : memref<1x2x4xf32, #tpu.memory_space<vmem>>, vector<1x2x4xf32>
      %26 = vector.shape_cast %25 : vector<1x2x4xf32> to vector<2x4xf32>
      %27 = vector.shape_cast %24 : vector<2x4xf32> to vector<1x2x4xf32>
      tpu.vector_store %arg7[%c0_19, %c0_20, %c0_21], %27 {strides = array<i32>} : memref<1x2x4xf32, #tpu.memory_space<vmem>>, vector<1x2x4xf32>,
    } else {
    }
    return
  }
  func.func @transform_0(%arg0: i32, %arg1: i32) -> (i32, i32) {
    %c0_i32 = arith.constant 0 : i32
    %c0_i32_0 = arith.constant 0 : i32
    return %c0_i32, %arg1 : i32, i32
  }
  func.func @transform_1(%arg0: i32, %arg1: i32) -> (i32, i32) {
    %c0_i32 = arith.constant 0 : i32
    return %arg1, %arg0 : i32, i32
  }
  func.func @transform_2(%arg0: i32, %arg1: i32) -> (i32, i32) {
    %c0_i32 = arith.constant 0 : i32
    %c0_i32_0 = arith.constant 0 : i32
    return %c0_i32, %arg0 : i32, i32
  }
  func.func @transform_3(%arg0: i32, %arg1: i32) -> (i32, i32) {
    %c0_i32 = arith.constant 0 : i32
    %c0_i32_0 = arith.constant 0 : i32
    return %c0_i32, %arg0 : i32, i32
  }
  func.func @transform_4(%arg0: i32, %arg1: i32) -> (i32, i32) {
    %c0_i32 = arith.constant 0 : i32
    %c0_i32_0 = arith.constant 0 : i32
    return %arg0, %c0_i32 : i32, i32
  }
  func.func @transform_5(%arg0: i32, %arg1: i32) -> (i32, i32, i32) {
    %c0_i32 = arith.constant 0 : i32
    %c0_i32_0 = arith.constant 0 : i32
    %c0_i32_1 = arith.constant 0 : i32
    return %arg0, %c0_i32, %c0_i32_0 : i32, i32, i32
  }
}

</mosaic_0001>

<bundles_post_ra>
// kernel: dqn_forward.3
= control target key start
LH: loop header
LB: loop body
LE: loop exit
PB: predicated region body
PF: predicated region fallthrough
CT: control target
= control target key end

     0   :  { %s5794_s0 = inlined_call_operand.vmem [shape: bf16[2,16384], index: 0, kind: input, shape index: {}]   ;;  %s5795_s1 = inlined_call_operand.hbm [shape: s8[16384,512], index: 1, kind: input, shape index: {}]   ;;  %s5796_s2 = inlined_call_operand.hbm [shape: f32[1,512], index: 2, kind: input, shape index: {}]   ;;  %s5797_s3 = inlined_call_operand.hbm [shape: f32[1,512], index: 3, kind: input, shape index: {}]   ;;  %s5798_s4 = inlined_call_operand.vmem [shape: f32[512,4], index: 4, kind: input, shape index: {}]   ;;  %s5799_s5 = inlined_call_operand.vmem [shape: f32[2,2,4], index: 5, kind: output, shape index: {}]  }
   0x1   :  { %5808 = sst [smem:[#allocation16_spill]] %s5795_s1 }
   0x2   :  { %5809 = sst [smem:[#allocation17_spill]] %s5796_s2 }
   0x3   :  { %5810 = sst [smem:[#allocation18_spill]] %s5798_s4 }
   0x4   :  { %5811 = sst [smem:[#allocation19_spill]] %s5799_s5 }
   0x5   :  { %10 = vsyncpa [#allocation4], 0 }
   0x6   :  { %12 = vsyncpa [#allocation4 + $0x1], 0 }
   0x7   :  { %13 = vsyncpa [#allocation6], 0 }
   0x8   :  { %15 = vsyncpa [#allocation6 + $0x1], 0  ;;  %s4584_s18 = smov 0   ;;  %s4586_s19 = smov 0  }
   0x9   :  { %s4588_s20 = smov 0   ;;  %s4590_s21 = smov 0  }
   0xa   :  { %s4592_s22 = smov 0   ;;  %s4594_s23 = smov 0  }
   0xb   :  { %s4596_s24 = smov 0   ;;  %s4598_s25 = smov 0  }
   0xc   :  { %s4600_s26 = smov 0   ;;  %s4602_s27 = smov 0  }
   0xd   :  { %s4604_s28 = smov 0  }
   0xe LB: > { %5812 = sst [smem:[#allocation10_spill]] %s4511_s20  ;;  %s5800_s29 = sadd.s32 4294967295, %s4543_s28   ;;  %s4543_s28 = sphi %s4604_s28, %s21_s28   ;;  %s4539_s27 = sphi %s4602_s27, %s5842_s27   ;;  %s4535_s26 = sphi %s4600_s26, %s5850_s26   ;;  %s4531_s25 = sphi %s4598_s25, %s5849_s25   ;;  %s4527_s24 = sphi %s4596_s24, %s5848_s24   ;;  %s4523_s23 = sphi %s4594_s23, %s5847_s23   ;;  %s4519_s22 = sphi %s4592_s22, %s5846_s22   ;;  %s4515_s21 = sphi %s4590_s21, %s5845_s21   ;;  %s4511_s20 = sphi %s4588_s20, %s5838_s20   ;;  %s4507_s19 = sphi %s4586_s19, %s5844_s19   ;;  %s4503_s18 = sphi %s4584_s18, %s5843_s18  }
   0xf   : > { %5813 = sst [smem:[#allocation11_spill]] %s4539_s27  ;;  %s30_s30 = sadd.s32 1, %s4535_s26 }
  0x10   : > { %p31_p0 = scmp.ge.s32.totalorder %s30_s30, 2  ;;  %s33_s6 = sadd.s32 1, %s4539_s27 }
  0x11   : > { %s68_s7 = sadd.s32 1, %s4523_s23  ;;  %p75_p1 = scmp.ne.s32.totalorder %s4523_s23, %s4519_s22 }
  0x12   : > { %s5852_s30 = smov (%p31_p0, %s30_s30), 0  ;;  %s5854_s6 = smov (!%p31_p0, %s33_s6), %s4539_s27 }
  0x13   : > { %5814 = sst [smem:[#allocation12_spill]] %s5852_s30  ;;  %s63_s8 = ssub.s32 %s4535_s26, %s5852_s30 }
  0x14   : > { %p76_p2 = scmp.eq.s32.totalorder %s4543_s28, 0  ;;  %p35_p3 = scmp.ge.s32.totalorder %s5854_s6, 2 }
  0x15   : > { %p81_p4 = scmp.ne.s32.totalorder %s4519_s22, %s4515_s21  ;;  %p4658_p6 = scmp.eq.s32.totalorder %s5800_s29, 0 }
  0x16   : > { %p4652_p5 = por %p76_p2, %p75_p1  ;;  %s5856_s6 = smov (%p35_p3, %s5854_s6), 0 }
  0x17   : > { %5817 = sst [smem:[#allocation13_spill]] %s5856_s6  ;;  %p4666_p7 = por %p4658_p6, %p81_p4 }
  0x18   : > { %s94_s12 = sadd.s32 1, %s4511_s20  ;;  %s64_s13 = ssub.s32 %s4539_s27, %s5856_s6 }
  0x19   : > { %s5818_s11 = scalar_select %p4666_p7, 1, 0 }
  0x1a   : > { %p101_p8 = scmp.ne.s32.totalorder %s4511_s20, %s4507_s19  ;;  %s65_s14 = sor.u32 %s64_s13, %s63_s8 }
  0x1b   : > { %p92_p9 = scmp.eq.s32.totalorder %s64_s13, 0  ;;  %p66_p10 = scmp.eq.s32.totalorder %s65_s14, 0 }
  0x1c   : > { %p4677_p11 = por %p101_p8, %p76_p2  ;;  %p107_p12 = scmp.ne.s32.totalorder %s4507_s19, %s4503_s18 }
  0x1d   : > { %s4682_s16 = scalar_select %p92_p9, %s4511_s20, %s94_s12  }
  0x1e   : > { %s4685_s17 = scalar_select %p66_p10, %s4523_s23, %s68_s7  }
  0x1f   : > { %5820 = sst [smem:[#allocation14_spill]] %s4682_s16  ;;  %p4256_p13 = scmp.lt.s32.totalorder %s4543_s28, 4 }
  0x20   : > { %5821 = sst [smem:[#allocation15_spill]] %s4685_s17  ;;  %s241_s21 = sand.u32 1, %s4543_s28  }
  0x21   : > { %p4693_p0 = por %p107_p12, %p4658_p6  ;;  %p4699_p1 = pnand %p4256_p13, %p4652_p5 }
  0x22   : > { %s243_s13 = sand.u32 1, %s4511_s20   ;;  %s4049_s12 = sshll.u32 %s4539_s27, 5 }
  0x23   : > { %s5822_s29 = scalar_select %p4693_p0, 1, 0 }
  0x24   : > { %s4704_s14 = sshll.u32 %s243_s13, 1  ;;  %s5824_s2 = sld [smem:[#allocation17_spill]] }
  0x25   : > { %s245_s10 = scalar_lea.vmem [#allocation5], %s4704_s14  ;;  %p4717_p2 = pnand %p4256_p13, %p4677_p11 }
  0x26   : > { %s253_s9 = sshll.u32 %s245_s10, 4  ;;  %s4724_s6 = scalar_lea.hbm %s5797_s3, %s4049_s12  ;;  %s4713_s9 = int_to_ptr.vmem [resolvable:$true] %s253_s9 }
  0x27   : > { %s4727_s7 = scalar_lea.sflag [#allocation6], %s241_s21  ;;  %p5807_p5 = pneg %p4717_p2 }
  0x2a   : > { %s4710_s18 = scalar_lea.hbm %s5824_s2, %s4049_s12  ;;  %s4364_s20 = scalar_lea.hbm %s5824_s2, 64 }
  0x2b   : > { %s4359_s16 = scalar_lea.hbm %s4710_s18, 32  ;;  %p4365_p9 = scmp.lt.u32.totalorder %s4710_s18, %s5824_s2 }
  0x2c   : > { %p4360_p4 = scmp.ne.s32.totalorder %s4710_s18, %s4359_s16  ;;  %p4366_p10 = scmp.lt.u32.totalorder %s4364_s20, %s4359_s16 }
  0x2d   : > { %p4368_p12 = scmp.lt.u32.totalorder %s4359_s16, %s4710_s18 }
  0x2e   : > { %p4362_p6 = pnand %p5807_p5, %p4360_p4  ;;  %p4367_p11 = por %p4366_p10, %p4365_p9 }
  0x30   : > { %p4363_p8 = pneg %p4362_p6  ;;  %p4369_p13 = por %p4368_p12, %p4367_p11 }
  0x32   : > { %p4370_p3 = pnand %p4369_p13, %p4363_p8 }
  0x34   : > { %4373 = shalt.err (!%p4370_p3)
}
  0x35   : > { %s4374_s21 = scalar_lea.vmem %s4713_s9, 32  ;;  %s4545_s12 = smov [#allocation5]  }
  0x36   : > { %p4375_p4 = scmp.ne.s32.totalorder %s4713_s9, %s4374_s21  ;;  %s4379_s15 = sshll.u32 %s4545_s12, 4  ;;  %s4380_s15 = int_to_ptr.vmem [resolvable:$false] %s4379_s15 }
  0x37   : > { %s4381_s10 = scalar_lea.vmem %s4380_s15, 64  ;;  %p4382_p7 = scmp.lt.s32.totalorder %s4713_s9, %s4380_s15 }
  0x38   : > { %p4377_p6 = pnand %p4375_p4, %p5807_p5  ;;  %p4383_p9 = scmp.lt.s32.totalorder %s4381_s10, %s4374_s21 }
  0x3a   : > { %p4378_p0 = pneg %p4377_p6  ;;  %p4384_p10 = por %p4383_p9, %p4382_p7 }
  0x3c   : > { %p4385_p11 = pnand %p4384_p10, %p4378_p0 }
  0x3e   : > { %4388 = shalt.err (!%p4385_p11)
}
  0x3f   : > { %4252 = dma.hbm_to_vmem [thread:$0]  (!%p4717_p2), %s4710_s18, 32, %s4713_s9, %s4727_s7  }
  0x40   : > { %p286_p3 = scmp.lt.s32.totalorder %s4543_s28, 5  ;;  %p5826_p8 = scmp.ge.s32.totalorder %s4543_s28, 1 }
  0x41   : > { %s217_s16 = sand.u32 1, %s4523_s23   ;;  %s4027_s17 = sshll.u32 %s4539_s27, 1 }
  0x42   : > { %p4758_p12 = pnand %p5826_p8, %p286_p3  ;;  %s4025_s13 = sshll.u32 %s217_s16, 12 }
  0x43   : > { %s4048_s21 = sshll.u32 %s4535_s26, 10  ;;  %s221_s15 = scalar_lea.vmem [#allocation3], %s4025_s13 }
  0x44   : > { %s5827_s20 = scalar_select %p4758_p12, 1, 0 }
  0x45   : > { %s228_s12 = sadd.s32 %s4048_s21, %s4027_s17  ;;  %s231_s10 = sshll.u32 %s221_s15, 4  ;;  %s4765_s10 = int_to_ptr.vmem [resolvable:$true] %s231_s10 }
  0x46   : > { %s4029_s2 = sshll.u32 %s228_s12, 7  ;;  %s5828_s1 = sld [smem:[#allocation16_spill]] }
  0x47   : > { %s4772_s4 = scalar_lea.sflag [#allocation4], %s217_s16  ;;  %p4391_p0 = pneg %p4699_p1 }
  0x4c   : > { %s4770_s9 = scalar_lea.hbm %s5828_s1, %s4029_s2  ;;  %s4394_s5 = scalar_lea.hbm %s5828_s1, 262144 }
  0x4d   : > { %s4389_s27 = scalar_lea.hbm %s4770_s9, 65536  ;;  %p4395_p6 = scmp.lt.u32.totalorder %s4770_s9, %s5828_s1 }
  0x4e   : > { %p4390_p7 = scmp.ne.s32.totalorder %s4770_s9, %s4389_s27  ;;  %p4396_p9 = scmp.lt.u32.totalorder %s4394_s5, %s4389_s27 }
  0x4f   : > { %p4398_p11 = scmp.lt.u32.totalorder %s4389_s27, %s4770_s9 }
  0x50   : > { %p4392_p13 = pnand %p4391_p0, %p4390_p7  ;;  %p4397_p10 = por %p4396_p9, %p4395_p6 }
  0x52   : > { %p4393_p4 = pneg %p4392_p13  ;;  %p4399_p3 = por %p4398_p11, %p4397_p10 }
  0x54   : > { %p4400_p8 = pnand %p4399_p3, %p4393_p4 }
  0x56   : > { %4403 = shalt.err (!%p4400_p8)
}
  0x57   : > { %s4404_s16 = scalar_lea.vmem %s4765_s10, 65536  ;;  %s4546_s12 = smov [#allocation3]  }
  0x58   : > { %p4405_p7 = scmp.ne.s32.totalorder %s4765_s10, %s4404_s16  ;;  %s4409_s15 = sshll.u32 %s4546_s12, 4  ;;  %s4410_s15 = int_to_ptr.vmem [resolvable:$false] %s4409_s15 }
  0x59   : > { %s4411_s18 = scalar_lea.vmem %s4410_s15, 131072  ;;  %p4412_p12 = scmp.lt.s32.totalorder %s4765_s10, %s4410_s15 }
  0x5a   : > { %p4407_p13 = pnand %p4405_p7, %p4391_p0  ;;  %p4413_p6 = scmp.lt.s32.totalorder %s4411_s18, %s4404_s16 }
  0x5c   : > { %p4408_p5 = pneg %p4407_p13  ;;  %p4414_p9 = por %p4413_p6, %p4412_p12 }
  0x5e   : > { %p4415_p10 = pnand %p4414_p9, %p4408_p5 }
  0x60   : > { %4418 = shalt.err (!%p4415_p10)
}
  0x61   : > { %s4547_s27 = smov 512   ;;  %s4548_s17 = smov 256  }
  0x62   : > { %s4549_s13 = smov 16   ;;  %s264_s5 = scalar_lea.vmem [#allocation7], %s4704_s14 }
  0x63   : > { %4249 = dma.hbm_to_vmem [thread:$0]  (!%p4699_p1), %s4770_s9, 65536, %s4765_s10, %s4772_s4, %s4547_s27, %s4548_s17, %s4549_s13  }
  0x64   : > { %s272_s2 = sshll.u32 %s264_s5, 4  ;;  %s4419_s21 = scalar_lea.hbm %s4724_s6, 32  ;;  %s273_s2 = int_to_ptr.vmem [resolvable:$true] %s272_s2 }
  0x65   : > { %p4420_p5 = scmp.ne.s32.totalorder %s4724_s6, %s4419_s21  ;;  %p5829_p12 = pneg %p4717_p2 }
  0x66   : > { %s4424_s15 = scalar_lea.hbm %s5797_s3, 64  ;;  %p4425_p11 = scmp.lt.u32.totalorder %s4724_s6, %s5797_s3 }
  0x67   : > { %p4422_p0 = pnand %p4420_p5, %p5829_p12  ;;  %p4426_p3 = scmp.lt.u32.totalorder %s4424_s15, %s4419_s21 }
  0x68   : > { %p4428_p1 = scmp.lt.u32.totalorder %s4419_s21, %s4724_s6 }
  0x69   : > { %p4423_p4 = pneg %p4422_p0  ;;  %p4427_p8 = por %p4426_p3, %p4425_p11 }
  0x6b   : > { %p4429_p7 = por %p4428_p1, %p4427_p8 }
  0x6d   : > { %p4430_p13 = pnand %p4429_p7, %p4423_p4 }
  0x6f   : > { %4433 = shalt.err (!%p4430_p13)
}
  0x70   : > { %s4434_s4 = scalar_lea.vmem %s273_s2, 32  ;;  %p5830_p9 = pmov %p5829_p12 }
  0x71   : > { %p4435_p6 = scmp.ne.s32.totalorder %s273_s2, %s4434_s4  ;;  %s4550_s8 = smov [#allocation7]  }
  0x72   : > { %s4439_s14 = sshll.u32 %s4550_s8, 4  ;;  %s4440_s14 = int_to_ptr.vmem [resolvable:$false] %s4439_s14 }
  0x73   : > { %p4437_p10 = pnand %p4435_p6, %p5830_p9  ;;  %s4441_s10 = scalar_lea.vmem %s4440_s14, 64 }
  0x74   : > { %p4442_p12 = scmp.lt.s32.totalorder %s273_s2, %s4440_s14  ;;  %p4443_p0 = scmp.lt.s32.totalorder %s4441_s10, %s4434_s4 }
  0x75   : > { %p4438_p5 = pneg %p4437_p10 }
  0x76   : > { %p4444_p3 = por %p4443_p0, %p4442_p12 }
  0x78   : > { %p4445_p11 = pnand %p4444_p3, %p4438_p5 }
  0x7a   : > { %4448 = shalt.err (!%p4445_p11)
}
  0x7b   : > { %4255 = dma.hbm_to_vmem [thread:$0]  (!%p4717_p2), %s4724_s6, 32, %s273_s2, %s4727_s7  }
  0x7c   : > { %p5831_p4 = scmp.ne.s32.totalorder %s5827_s20, 0 }
  0x7d   : > { %s292_s1 = sand.u32 (!%p5831_p4), 1, %s4519_s22   ;;  %p5832_p8 = scmp.ne.s32.totalorder (!%p5831_p4), %s5818_s11, 0 }
  0x7e   : > { %290 = sbr.rel (%p5831_p4) target bundleno = 1640 (0x668), region = 40  ;;  %s4037_s9 = sshll.u32 (!%p5831_p4), %s292_s1, 12 }
  0x7f   : > { %s293_s27 = scalar_lea.sflag (!%p5831_p4), [#allocation4], %s292_s1  ;;  %s4824_s17 = scalar_lea.vmem (!%p5831_p4), [#allocation3], %s4037_s9 }
  0x85   : > { %4494 = dma.done.wait (%p5832_p8), %s293_s27, 65536  }
  0x86   : > { %4496 = vsyncadd (%p5832_p8), %s293_s27, 4294901760  ;;  %s5833_s30 = sadd.s32 4294967295, %s4543_s28   ;;  %s303_s7 = sand.u32 1, %s4507_s19  }
  0x87   : > { %s301_s6 = sand.u32 1, %s5833_s30   ;;  %s4833_s20 = sshll.u32 %s303_s7, 1 }
  0x88   : > { %s302_s13 = scalar_lea.sflag [#allocation6], %s301_s6  ;;  %s305_s5 = scalar_lea.vmem [#allocation5], %s4833_s20 }
  0x89   : > { %p5834_p2 = scmp.ne.s32.totalorder %s5822_s29, 0 }
  0x8b   : > { %4498 = dma.done.wait (%p5834_p2), %s302_s13, 64  }
  0x8c   : > { %4500 = vsyncadd (%p5834_p2), %s302_s13, 4294967232  ;;  %s4040_s11 = sshll.u32 %s4527_s24, 6  ;;  %s4041_s2 = sshll.u32 %s4531_s25, 5 }
  0x8d   : > { %p360_p1 = scmp.lt.s32.totalorder %s4040_s11, 127  ;;  %p369_p7 = scmp.lt.s32.totalorder %s4041_s2, 63 }
  0x8e   : > { %p374_p13 = scmp.lt.s32.totalorder %s4531_s25, 1  ;;  %s5835_s4 = sld [smem:[#allocation18_spill]] }
  0x8f   : > { %s5858_s11 = smov (!%p360_p1, %s4040_s11), 127  ;;  %s5860_s2 = smov (!%p369_p7, %s4041_s2), 63 }
  0x90   : > { %s4846_s12 = scalar_lea.vmem %s5794_s0, %s5858_s11  ;;  %s4042_s15 = sshll.u32 %s5860_s2, 3 }
  0x91   : > { %s5862_s25 = smov (!%p374_p13, %s4531_s25), 1  ;;  %s5836_s9 = sld [smem:[#allocation19_spill]] }
  0x92   : > { %s4043_s14 = sshll.u32 %s5862_s25, 1  ;;  %s314_s30 = scalar_lea.vmem [#allocation7], %s4833_s20 }
  0x93   : > { %p4044_p6 = scmp.ne.s32.totalorder %s4527_s24, 0 }
  0x94   : > { %s4851_s8 = scalar_lea.vmem %s5835_s4, %s4042_s15  ;;  %v4551_v0 = vmov (!%p4044_p6), 0.0  }
  0x95   : > { %381 = sbr.rel (%p4044_p6) target bundleno = 156 (0x9c), region = 56  ;;  %382 = vst [vmem:[#allocation2] sm:$0xf] (!%p4044_p6), %v4551_v0 }
  0x97   : > { %s4857_s27 = scalar_lea.vmem %s5836_s9, %s4043_s14 }
  0x9c PF: > { %v384_v1 = vld [vmem:[%s4824_s17 + $0x8] sm:$0xff]  ;;  %v383_v3 = vld [vmem:[%s4824_s17] sm:$0xff]  ;;  %v386_v11 = vld [vmem:[%s4824_s17 + $0x18] sm:$0xff]  ;;  %v1940_v31 = vlaneseq  ;;  %v4552_v36 = vmov 1966171168   ;;  %p4045_p9 = scmp.ne.s32.totalorder %s4527_s24, 1 }
  0x9d   : > { %v640_v2 = vld [vmem:[%s4824_s17 + $0x808] sm:$0xff]  ;;  %v896_v4 = vunpack.c.l.s8.bf16 %v384_v1  ;;  %v898_v5 = vunpack.c.h.s8.bf16 %v384_v1  ;;  %v639_v8 = vld [vmem:[%s4824_s17 + $0x800] sm:$0xff]  ;;  %v895_v9 = vunpack.c.l.s8.bf16 %v383_v3  ;;  %v642_v12 = vld [vmem:[%s4824_s17 + $0x818] sm:$0xff]  ;;  %v897_v13 = vunpack.c.h.s8.bf16 %v383_v3 }
  0x9e   : > { %v1408_v6 = vunpack.c.l.s8.bf16 %v640_v2  ;;  %v1410_v7 = vunpack.c.h.s8.bf16 %v640_v2  ;;  %v1407_v10 = vunpack.c.l.s8.bf16 %v639_v8  ;;  %v1409_v14 = vunpack.c.h.s8.bf16 %v639_v8  ;;  %v385_v17 = vld [vmem:[%s4824_s17 + $0x10] sm:$0xff]  ;;  %v388_v23 = vld [vmem:[%s4824_s17 + $0x28] sm:$0xff]  ;;  %v387_v29 = vld [vmem:[%s4824_s17 + $0x20] sm:$0xff] }
  0x9f   : > { %2392 = vmatprep.subr.bf16.mxu1 %v896_v4  ;;  %v900_v15 = vunpack.c.l.s8.bf16 %v386_v11  ;;  %v1412_v16 = vunpack.c.l.s8.bf16 %v642_v12  ;;  %v641_v18 = vld [vmem:[%s4824_s17 + $0x810] sm:$0xff]  ;;  %v899_v19 = vunpack.c.l.s8.bf16 %v385_v17  ;;  %v902_v21 = vunpack.c.h.s8.bf16 %v386_v11  ;;  %v644_v24 = vld [vmem:[%s4824_s17 + $0x828] sm:$0xff]  ;;  %v643_v30 = vld [vmem:[%s4824_s17 + $0x820] sm:$0xff] }
  0xa0   : > { %3048 = vmatprep.subr.bf16.mxu0 %v1408_v6  ;;  %2393 = vmatpush1.bf16.msra.mxu1 %v895_v9  ;;  %v1411_v20 = vunpack.c.l.s8.bf16 %v641_v18  ;;  %v1414_v22 = vunpack.c.h.s8.bf16 %v642_v12  ;;  %v901_v25 = vunpack.c.h.s8.bf16 %v385_v17  ;;  %v1413_v26 = vunpack.c.h.s8.bf16 %v641_v18  ;;  %v390_v39 = vld [vmem:[%s4824_s17 + $0x38] sm:$0xff]  ;;  %v389_v48 = vld [vmem:[%s4824_s17 + $0x30] sm:$0xff]  ;;  %v392_v59 = vld [vmem:[%s4824_s17 + $0x48] sm:$0xff] }
  0xa1   : > { %3049 = vmatpush1.bf16.msra.mxu0 %v1407_v10  ;;  %2394 = vmatprep.subr.bf16.mxu1 %v898_v5  ;;  %v904_v27 = vunpack.c.l.s8.bf16 %v388_v23  ;;  %v1416_v28 = vunpack.c.l.s8.bf16 %v644_v24  ;;  %v903_v32 = vunpack.c.l.s8.bf16 %v387_v29  ;;  %v1415_v33 = vunpack.c.l.s8.bf16 %v643_v30  ;;  %v646_v40 = vld [vmem:[%s4824_s17 + $0x838] sm:$0xff]  ;;  %v645_v49 = vld [vmem:[%s4824_s17 + $0x830] sm:$0xff]  ;;  %v648_v60 = vld [vmem:[%s4824_s17 + $0x848] sm:$0xff] }
  0xa2   : > { %3050 = vmatprep.subr.bf16.mxu0 %v1410_v7  ;;  %v906_v34 = vunpack.c.h.s8.bf16 %v388_v23  ;;  %v1418_v35 = vunpack.c.h.s8.bf16 %v644_v24  ;;  %v1938_v37 = vunpack.c.l.s4 %v4552_v36  ;;  %v4873_v38 = vshrl.u32 %v1940_v31, 7  ;;  %v4878_v44 = vld [vmem:[%s4846_s12] sm:$0xff] }
  0xa3   : > { %v905_v42 = vunpack.c.h.s8.bf16 %v387_v29  ;;  %v1417_v43 = vunpack.c.h.s8.bf16 %v643_v30  ;;  %v4881_v45 = vld [vmem:[%s4846_s12 + $0x20] sm:$0xff]  ;;  %v908_v46 = vunpack.c.l.s8.bf16 %v390_v39  ;;  %v1420_v47 = vunpack.c.l.s8.bf16 %v646_v40 }
  0xa4   : > { %2395 = vmatpush1.bf16.msra.mxu1 %v897_v13  ;;  %v1939_v41 = vunpack.c.0.s8 %v1938_v37  ;;  %v907_v53 = vunpack.c.l.s8.bf16 %v389_v48  ;;  %v1419_v54 = vunpack.c.l.s8.bf16 %v645_v49  ;;  %v910_v55 = vunpack.c.h.s8.bf16 %v390_v39  ;;  %v391_v3 = vld [vmem:[%s4824_s17 + $0x40] sm:$0xff]  ;;  %v394_v9 = vld [vmem:[%s4824_s17 + $0x58] sm:$0xff] }
  0xa5   : > { %3051 = vmatpush1.bf16.msra.mxu0 %v1409_v14  ;;  %2396 = vmatprep.subr.bf16.mxu1 %v900_v15  ;;  %v1422_v56 = vunpack.c.h.s8.bf16 %v646_v40  ;;  %v909_v63 = vunpack.c.h.s8.bf16 %v389_v48  ;;  %v1421_v0 = vunpack.c.h.s8.bf16 %v645_v49  ;;  %v912_v1 = vunpack.c.l.s8.bf16 %v392_v59  ;;  %v647_v4 = vld [vmem:[%s4824_s17 + $0x840] sm:$0xff]  ;;  %v650_v10 = vld [vmem:[%s4824_s17 + $0x858] sm:$0xff]  ;;  %v393_v15 = vld [vmem:[%s4824_s17 + $0x50] sm:$0xff] }
  0xa6   : > { %3052 = vmatprep.subr.bf16.mxu0 %v1412_v16  ;;  %v4886_v50 = vsub.s32 %v1939_v41, %v4873_v38  ;;  %v1424_v2 = vunpack.c.l.s8.bf16 %v648_v60  ;;  %v911_v5 = vunpack.c.l.s8.bf16 %v391_v3  ;;  %v1423_v6 = vunpack.c.l.s8.bf16 %v647_v4  ;;  %v649_v16 = vld [vmem:[%s4824_s17 + $0x850] sm:$0xff]  ;;  %v400_v48 = vld [vmem:[%s4824_s17 + $0x88] sm:$0xff] }
  0xa7   : > { %v914_v7 = vunpack.c.h.s8.bf16 %v392_v59  ;;  %v1426_v8 = vunpack.c.h.s8.bf16 %v648_v60  ;;  %v913_v11 = vunpack.c.h.s8.bf16 %v391_v3  ;;  %v1425_v12 = vunpack.c.h.s8.bf16 %v647_v4  ;;  %v397_v40 = vld [vmem:[%s4824_s17 + $0x70] sm:$0xff]  ;;  %v656_v49 = vld [vmem:[%s4824_s17 + $0x888] sm:$0xff]  ;;  %v402_v4 = vld [vmem:[%s4824_s17 + $0x98] sm:$0xff] }
  0xa8   : > { %2397 = vmatpush1.bf16.msra.mxu1 %v899_v19  ;;  %v4890_v51 = vrot.slane %v4878_v44, %v4886_v50  ;;  %v4894_v52 = vrot.slane %v4881_v45, %v4886_v50  ;;  %v916_v13 = vunpack.c.l.s8.bf16 %v394_v9  ;;  %v1428_v14 = vunpack.c.l.s8.bf16 %v650_v10  ;;  %v653_v41 = vld [vmem:[%s4824_s17 + $0x870] sm:$0xff] }
  0xa9   : > { %3053 = vmatpush1.bf16.msra.mxu0 %v1411_v20  ;;  %2398 = vmatprep.subr.bf16.mxu1 %v902_v21  ;;  %v915_v17 = vunpack.c.l.s8.bf16 %v393_v15  ;;  %v1427_v18 = vunpack.c.l.s8.bf16 %v649_v16  ;;  %v918_v19 = vunpack.c.h.s8.bf16 %v394_v9  ;;  %v1430_v20 = vunpack.c.h.s8.bf16 %v650_v10  ;;  %v396_v21 = vld [vmem:[%s4824_s17 + $0x68] sm:$0xff]  ;;  %v657_v9 = vld [vmem:[%s4824_s17 + $0x890] sm:$0xff] }
  0xaa   : > { %3054 = vmatprep.subr.bf16.mxu0 %v1414_v22  ;;  %v1951_v57 = vcombine.high %v4890_v51, %v4890_v51  ;;  %v2147_v58 = vcombine.high %v4894_v52, %v4894_v52  ;;  %v652_v22 = vld [vmem:[%s4824_s17 + $0x868] sm:$0xff]  ;;  %v917_v23 = vunpack.c.h.s8.bf16 %v393_v15  ;;  %v1429_v24 = vunpack.c.h.s8.bf16 %v649_v16 }
  0xab   : > { %v922_v31 = vunpack.c.h.s8.bf16 %v396_v21  ;;  %v4930_v59 = vrot.slane %v4890_v51, %v4886_v50  ;;  %v4934_v60 = vrot.slane %v4894_v52, %v4886_v50  ;;  %v1443_v10 = vunpack.c.l.s8.bf16 %v657_v9 }
  0xac   : > { %2399 = vmatpush1.bf16.msra.mxu1 %v901_v25  ;;  %v4903_v61 = vrot.slane %v1951_v57, %v4886_v50  ;;  %v4906_v62 = vrot.slane %v2147_v58, %v4886_v50  ;;  %v920_v25 = vunpack.c.l.s8.bf16 %v396_v21  ;;  %v399_v57 = vld [vmem:[%s4824_s17 + $0x80] sm:$0xff]  ;;  %v1445_v16 = vunpack.c.h.s8.bf16 %v657_v9 }
  0xad   : > { %3055 = vmatpush1.bf16.msra.mxu0 %v1413_v26  ;;  %2400 = vmatprep.subr.bf16.mxu1 %v904_v27  ;;  %v1432_v26 = vunpack.c.l.s8.bf16 %v652_v22  ;;  %v395_v27 = vld [vmem:[%s4824_s17 + $0x60] sm:$0xff]  ;;  %v929_v52 = vunpack.c.h.s8.bf16 %v399_v57  ;;  %vm3876_vm0 = vcmask (!%p4045_p9), 25600  }
  0xae   : > { %3056 = vmatprep.subr.bf16.mxu0 %v1416_v28  ;;  %2424 = vmatprep.mubr.bf16.mxu1 %v4903_v61  ;;  %v651_v28 = vld [vmem:[%s4824_s17 + $0x860] sm:$0xff]  ;;  %v919_v29 = vunpack.c.l.s8.bf16 %v395_v27  ;;  %v1983_v3 = vcombine.high %v4903_v61, %v4903_v61  ;;  %v2179_v51 = vcombine.high %v4906_v62, %v4906_v62  ;;  %v401_v61 = vld [vmem:[%s4824_s17 + $0x90] sm:$0xff] }
  0xaf   : > { %3080 = vmatprep.mubr.bf16.mxu0 %v4906_v62  ;;  %v1431_v30 = vunpack.c.l.s8.bf16 %v651_v28  ;;  %v1433_v36 = vunpack.c.h.s8.bf16 %v651_v28  ;;  %v655_v58 = vld [vmem:[%s4824_s17 + $0x880] sm:$0xff]  ;;  %v931_v62 = vunpack.c.l.s8.bf16 %v401_v61  ;;  %v933_v15 = vunpack.c.h.s8.bf16 %v401_v61 }
  0xb0   : > { %2401 = vmatpush1.bf16.msra.mxu1 %v903_v32  ;;  %v1434_v32 = vunpack.c.h.s8.bf16 %v652_v22 }
  0xb1   : > { %3057 = vmatpush1.bf16.msra.mxu0 %v1415_v33  ;;  %2402 = vmatprep.subr.bf16.mxu1 %v906_v34  ;;  %v398_v33 = vld [vmem:[%s4824_s17 + $0x78] sm:$0xff] }
  0xb2   : > { %3058 = vmatprep.subr.bf16.mxu0 %v1418_v35  ;;  %v654_v34 = vld [vmem:[%s4824_s17 + $0x878] sm:$0xff]  ;;  %v921_v35 = vunpack.c.h.s8.bf16 %v395_v27  ;;  %v924_v37 = vunpack.c.l.s8.bf16 %v398_v33 }
  0xb3   : > { %v1436_v39 = vunpack.c.l.s8.bf16 %v654_v34 }
  0xb4   : > { %2403 = vmatpush1.bf16.msra.mxu1 %v905_v42  ;;  %v923_v42 = vunpack.c.l.s8.bf16 %v397_v40 }
  0xb5   : > { %3059 = vmatpush1.bf16.msra.mxu0 %v1417_v43  ;;  %2404 = vmatprep.subr.bf16.mxu1 %v908_v46  ;;  %v1435_v43 = vunpack.c.l.s8.bf16 %v653_v41  ;;  %v926_v46 = vunpack.c.h.s8.bf16 %v398_v33 }
  0xb6   : > { %3060 = vmatprep.subr.bf16.mxu0 %v1420_v47  ;;  %v1438_v47 = vunpack.c.h.s8.bf16 %v654_v34 }
  0xb8   : > { %2405 = vmatpush1.bf16.msra.mxu1 %v907_v53  ;;  %v925_v53 = vunpack.c.h.s8.bf16 %v397_v40 }
  0xb9   : > { %3061 = vmatpush1.bf16.msra.mxu0 %v1419_v54  ;;  %2406 = vmatprep.subr.bf16.mxu1 %v910_v55  ;;  %v1437_v54 = vunpack.c.h.s8.bf16 %v653_v41  ;;  %v928_v55 = vunpack.c.l.s8.bf16 %v400_v48 }
  0xba   : > { %3062 = vmatprep.subr.bf16.mxu0 %v1422_v56  ;;  %v1440_v56 = vunpack.c.l.s8.bf16 %v656_v49 }
  0xbc   : > { %2407 = vmatpush1.bf16.msra.mxu1 %v909_v63  ;;  %v927_v63 = vunpack.c.l.s8.bf16 %v399_v57 }
  0xbd   : > { %3063 = vmatpush1.bf16.msra.mxu0 %v1421_v0  ;;  %2408 = vmatprep.subr.bf16.mxu1 %v912_v1  ;;  %v1439_v0 = vunpack.c.l.s8.bf16 %v655_v58  ;;  %v930_v1 = vunpack.c.h.s8.bf16 %v400_v48 }
  0xbe   : > { %3064 = vmatprep.subr.bf16.mxu0 %v1424_v2  ;;  %v1442_v2 = vunpack.c.h.s8.bf16 %v656_v49 }
  0xc0   : > { %2409 = vmatpush1.bf16.msra.mxu1 %v911_v5  ;;  %v658_v5 = vld [vmem:[%s4824_s17 + $0x898] sm:$0xff] }
  0xc1   : > { %3065 = vmatpush1.bf16.msra.mxu0 %v1423_v6  ;;  %2410 = vmatprep.subr.bf16.mxu1 %v914_v7  ;;  %v1441_v6 = vunpack.c.h.s8.bf16 %v655_v58  ;;  %v932_v7 = vunpack.c.l.s8.bf16 %v402_v4 }
  0xc2   : > { %3066 = vmatprep.subr.bf16.mxu0 %v1426_v8  ;;  %v1444_v8 = vunpack.c.l.s8.bf16 %v658_v5 }
  0xc4   : > { %2411 = vmatpush1.bf16.msra.mxu1 %v913_v11  ;;  %v934_v11 = vunpack.c.h.s8.bf16 %v402_v4 }
  0xc5   : > { %3067 = vmatpush1.bf16.msra.mxu0 %v1425_v12  ;;  %2412 = vmatprep.subr.bf16.mxu1 %v916_v13  ;;  %v1446_v12 = vunpack.c.h.s8.bf16 %v658_v5  ;;  %v404_v13 = vld [vmem:[%s4824_s17 + $0xa8] sm:$0xff] }
  0xc6   : > { %3068 = vmatprep.subr.bf16.mxu0 %v1428_v14  ;;  %v660_v14 = vld [vmem:[%s4824_s17 + $0x8a8] sm:$0xff] }
  0xc8   : > { %2413 = vmatpush1.bf16.msra.mxu1 %v915_v17  ;;  %v936_v17 = vunpack.c.l.s8.bf16 %v404_v13 }
  0xc9   : > { %3069 = vmatpush1.bf16.msra.mxu0 %v1427_v18  ;;  %2414 = vmatprep.subr.bf16.mxu1 %v918_v19  ;;  %v1448_v18 = vunpack.c.l.s8.bf16 %v660_v14  ;;  %v403_v19 = vld [vmem:[%s4824_s17 + $0xa0] sm:$0xff] }
  0xca   : > { %3070 = vmatprep.subr.bf16.mxu0 %v1430_v20  ;;  %v659_v20 = vld [vmem:[%s4824_s17 + $0x8a0] sm:$0xff]  ;;  %v935_v21 = vunpack.c.l.s8.bf16 %v403_v19  ;;  %v937_v27 = vunpack.c.h.s8.bf16 %v403_v19 }
  0xcb   : > { %v1447_v22 = vunpack.c.l.s8.bf16 %v659_v20  ;;  %v1449_v28 = vunpack.c.h.s8.bf16 %v659_v20 }
  0xcc   : > { %2415 = vmatpush1.bf16.msra.mxu1 %v917_v23  ;;  %v938_v23 = vunpack.c.h.s8.bf16 %v404_v13 }
  0xcd   : > { %3071 = vmatpush1.bf16.msra.mxu0 %v1429_v24  ;;  %2416 = vmatprep.subr.bf16.mxu1 %v920_v25  ;;  %v1450_v24 = vunpack.c.h.s8.bf16 %v660_v14  ;;  %v406_v25 = vld [vmem:[%s4824_s17 + $0xb8] sm:$0xff] }
  0xce   : > { %3072 = vmatprep.subr.bf16.mxu0 %v1432_v26  ;;  %v662_v26 = vld [vmem:[%s4824_s17 + $0x8b8] sm:$0xff] }
  0xd0   : > { %2417 = vmatpush1.bf16.msra.mxu1 %v919_v29  ;;  %v940_v29 = vunpack.c.l.s8.bf16 %v406_v25 }
  0xd1   : > { %3073 = vmatpush1.bf16.msra.mxu0 %v1431_v30  ;;  %2418 = vmatprep.subr.bf16.mxu1 %v922_v31  ;;  %v1452_v30 = vunpack.c.l.s8.bf16 %v662_v26  ;;  %v405_v31 = vld [vmem:[%s4824_s17 + $0xb0] sm:$0xff] }
  0xd2   : > { %3074 = vmatprep.subr.bf16.mxu0 %v1434_v32  ;;  %v661_v32 = vld [vmem:[%s4824_s17 + $0x8b0] sm:$0xff]  ;;  %v939_v33 = vunpack.c.l.s8.bf16 %v405_v31  ;;  %v941_v40 = vunpack.c.h.s8.bf16 %v405_v31 }
  0xd3   : > { %v1451_v34 = vunpack.c.l.s8.bf16 %v661_v32  ;;  %v1453_v41 = vunpack.c.h.s8.bf16 %v661_v32 }
  0xd4   : > { %2419 = vmatpush1.bf16.msra.mxu1 %v921_v35  ;;  %v942_v35 = vunpack.c.h.s8.bf16 %v406_v25 }
  0xd5   : > { %3075 = vmatpush1.bf16.msra.mxu0 %v1433_v36  ;;  %2420 = vmatprep.subr.bf16.mxu1 %v924_v37  ;;  %v1454_v36 = vunpack.c.h.s8.bf16 %v662_v26  ;;  %v408_v37 = vld [vmem:[%s4824_s17 + $0xc8] sm:$0xff] }
  0xd6   : > { %3076 = vmatprep.subr.bf16.mxu0 %v1436_v39  ;;  %v664_v39 = vld [vmem:[%s4824_s17 + $0x8c8] sm:$0xff] }
  0xd8   : > { %2421 = vmatpush1.bf16.msra.mxu1 %v923_v42  ;;  %v944_v42 = vunpack.c.l.s8.bf16 %v408_v37 }
  0xd9   : > { %3077 = vmatpush1.bf16.msra.mxu0 %v1435_v43  ;;  %2422 = vmatprep.subr.bf16.mxu1 %v926_v46  ;;  %v1456_v43 = vunpack.c.l.s8.bf16 %v664_v39  ;;  %v407_v46 = vld [vmem:[%s4824_s17 + $0xc0] sm:$0xff] }
  0xda   : > { %3078 = vmatprep.subr.bf16.mxu0 %v1438_v47  ;;  %v663_v47 = vld [vmem:[%s4824_s17 + $0x8c0] sm:$0xff]  ;;  %v943_v48 = vunpack.c.l.s8.bf16 %v407_v46  ;;  %v945_v57 = vunpack.c.h.s8.bf16 %v407_v46 }
  0xdb   : > { %v1455_v49 = vunpack.c.l.s8.bf16 %v663_v47  ;;  %v1457_v58 = vunpack.c.h.s8.bf16 %v663_v47 }
  0xdc   : > { %2423 = vmatpush1.bf16.msra.mxu1 %v925_v53  ;;  %v946_v53 = vunpack.c.h.s8.bf16 %v408_v37 }
  0xdd   : > { %3079 = vmatpush1.bf16.msra.mxu0 %v1437_v54  ;;  %2433 = vmatprep.subr.bf16.mxu1 %v928_v55  ;;  %v1458_v54 = vunpack.c.h.s8.bf16 %v664_v39  ;;  %v410_v55 = vld [vmem:[%s4824_s17 + $0xd8] sm:$0xff] }
  0xde   : > { %3089 = vmatprep.subr.bf16.mxu0 %v1440_v56  ;;  %v666_v56 = vld [vmem:[%s4824_s17 + $0x8d8] sm:$0xff]  ;;  %v950_v4 = vunpack.c.h.s8.bf16 %v410_v55 }
  0xdf   : > { %2425 = vmatmul.mubr.bf16.vlgmr.msra.gmra.mrb[0].mxu1 %v4930_v59  ;;  %v1462_v5 = vunpack.c.h.s8.bf16 %v666_v56 }
  0xe0   : > { %3081 = vmatmul.mubr.bf16.vlgmr.msra.gmra.mrb[0].mxu0 %v4934_v60  ;;  %2434 = vmatpush1.bf16.msra.mxu1 %v927_v63  ;;  %v948_v63 = vunpack.c.l.s8.bf16 %v410_v55 }
  0xe1   : > { %3090 = vmatpush1.bf16.msra.mxu0 %v1439_v0  ;;  %2435 = vmatprep.subr.bf16.mxu1 %v930_v1  ;;  %v1460_v0 = vunpack.c.l.s8.bf16 %v666_v56  ;;  %v409_v1 = vld [vmem:[%s4824_s17 + $0xd0] sm:$0xff] }
  0xe2   : > { %3091 = vmatprep.subr.bf16.mxu0 %v1442_v2  ;;  %2465 = vmatprep.mubr.bf16.mxu1 %v1983_v3  ;;  %v665_v2 = vld [vmem:[%s4824_s17 + $0x8d0] sm:$0xff]  ;;  %v947_v3 = vunpack.c.l.s8.bf16 %v409_v1 }
  0xe3   : > { %3121 = vmatprep.mubr.bf16.mxu0 %v2179_v51  ;;  %v1459_v51 = vunpack.c.l.s8.bf16 %v665_v2 }
  0xe4   : > { %2436 = vmatpush1.bf16.msra.mxu1 %v929_v52  ;;  %v412_v52 = vld [vmem:[%s4824_s17 + $0xe8] sm:$0xff] }
  0xe5   : > { %3092 = vmatpush1.bf16.msra.mxu0 %v1441_v6  ;;  %2437 = vmatprep.subr.bf16.mxu1 %v932_v7  ;;  %v668_v6 = vld [vmem:[%s4824_s17 + $0x8e8] sm:$0xff]  ;;  %v949_v7 = vunpack.c.h.s8.bf16 %v409_v1  ;;  %v952_v61 = vunpack.c.l.s8.bf16 %v412_v52  ;;  %v954_v13 = vunpack.c.h.s8.bf16 %v412_v52 }
  0xe6   : > { %3093 = vmatprep.subr.bf16.mxu0 %v1444_v8  ;;  %v1461_v8 = vunpack.c.h.s8.bf16 %v665_v2  ;;  %v1464_v9 = vunpack.c.l.s8.bf16 %v668_v6  ;;  %v1466_v14 = vunpack.c.h.s8.bf16 %v668_v6 }
  0xe8   : > { %2438 = vmatpush1.bf16.msra.mxu1 %v931_v62  ;;  %v411_v62 = vld [vmem:[%s4824_s17 + $0xe0] sm:$0xff] }
  0xe9   : > { %3094 = vmatpush1.bf16.msra.mxu0 %v1443_v10  ;;  %2439 = vmatprep.subr.bf16.mxu1 %v934_v11  ;;  %v667_v10 = vld [vmem:[%s4824_s17 + $0x8e0] sm:$0xff]  ;;  %v951_v11 = vunpack.c.l.s8.bf16 %v411_v62 }
  0xea   : > { %3095 = vmatprep.subr.bf16.mxu0 %v1446_v12  ;;  %v1463_v12 = vunpack.c.l.s8.bf16 %v667_v10 }
  0xec   : > { %2440 = vmatpush1.bf16.msra.mxu1 %v933_v15  ;;  %v414_v15 = vld [vmem:[%s4824_s17 + $0xf8] sm:$0xff] }
  0xed   : > { %3096 = vmatpush1.bf16.msra.mxu0 %v1445_v16  ;;  %2441 = vmatprep.subr.bf16.mxu1 %v936_v17  ;;  %v670_v16 = vld [vmem:[%s4824_s17 + $0x8f8] sm:$0xff]  ;;  %v953_v17 = vunpack.c.h.s8.bf16 %v411_v62  ;;  %v956_v19 = vunpack.c.l.s8.bf16 %v414_v15 }
  0xee   : > { %3097 = vmatprep.subr.bf16.mxu0 %v1448_v18  ;;  %v1465_v18 = vunpack.c.h.s8.bf16 %v667_v10  ;;  %v1468_v20 = vunpack.c.l.s8.bf16 %v670_v16 }
  0xf0   : > { %2442 = vmatpush1.bf16.msra.mxu1 %v935_v21  ;;  %v413_v21 = vld [vmem:[%s4824_s17 + $0xf0] sm:$0xff] }
  0xf1   : > { %3098 = vmatpush1.bf16.msra.mxu0 %v1447_v22  ;;  %2443 = vmatprep.subr.bf16.mxu1 %v938_v23  ;;  %v669_v22 = vld [vmem:[%s4824_s17 + $0x8f0] sm:$0xff]  ;;  %v1936_v23 = vcombine.high %v4878_v44, %v4878_v44  ;;  %v955_v25 = vunpack.c.l.s8.bf16 %v413_v21 }
  0xf2   : > { %3099 = vmatprep.subr.bf16.mxu0 %v1450_v24  ;;  %v2132_v24 = vcombine.high %v4881_v45, %v4881_v45  ;;  %v1467_v26 = vunpack.c.l.s8.bf16 %v669_v22  ;;  %v957_v45 = vunpack.c.h.s8.bf16 %v413_v21  ;;  %v1469_v32 = vunpack.c.h.s8.bf16 %v669_v22 }
  0xf3   : > { %v4977_v31 = vrot.slane %v1936_v23, %v4886_v50  ;;  %v424_v23 = vld [vmem:[%s4824_s17 + $0x148] sm:$0xff] }
  0xf4   : > { %2444 = vmatpush1.bf16.msra.mxu1 %v937_v27  ;;  %v958_v27 = vunpack.c.h.s8.bf16 %v414_v15  ;;  %v4980_v44 = vrot.slane %v2132_v24, %v4886_v50  ;;  %v680_v24 = vld [vmem:[%s4824_s17 + $0x948] sm:$0xff] }
  0xf5   : > { %3100 = vmatpush1.bf16.msra.mxu0 %v1449_v28  ;;  %2445 = vmatprep.subr.bf16.mxu1 %v940_v29  ;;  %v1470_v28 = vunpack.c.h.s8.bf16 %v670_v16  ;;  %v416_v29 = vld [vmem:[%s4824_s17 + $0x108] sm:$0xff]  ;;  %v1952_v37 = vcombine.high %v4977_v31, %v4977_v31 }
  0xf6   : > { %3101 = vmatprep.subr.bf16.mxu0 %v1452_v30  ;;  %v672_v30 = vld [vmem:[%s4824_s17 + $0x908] sm:$0xff]  ;;  %v2148_v39 = vcombine.high %v4980_v44, %v4980_v44  ;;  %v962_v46 = vunpack.c.h.s8.bf16 %v416_v29 }
  0xf7   : > { %v1474_v47 = vunpack.c.h.s8.bf16 %v672_v30 }
  0xf8   : > { %2446 = vmatpush1.bf16.msra.mxu1 %v939_v33  ;;  %v960_v33 = vunpack.c.l.s8.bf16 %v416_v29  ;;  %v423_v29 = vld [vmem:[%s4824_s17 + $0x140] sm:$0xff] }
  0xf9   : > { %3102 = vmatpush1.bf16.msra.mxu0 %v1451_v34  ;;  %2447 = vmatprep.subr.bf16.mxu1 %v942_v35  ;;  %v1472_v34 = vunpack.c.l.s8.bf16 %v672_v30  ;;  %v415_v35 = vld [vmem:[%s4824_s17 + $0x100] sm:$0xff] }
  0xfa   : > { %3103 = vmatprep.subr.bf16.mxu0 %v1454_v36  ;;  %v671_v36 = vld [vmem:[%s4824_s17 + $0x900] sm:$0xff] }
  0xfb   : > { %v679_v30 = vld [vmem:[%s4824_s17 + $0x940] sm:$0xff] }
  0xfc   : > { %2448 = vmatpush1.bf16.msra.mxu1 %v941_v40  ;;  %v1981_v40 = vcombine.high %v4930_v59, %v4930_v59  ;;  %v4998_v59 = vrot.slane %v2148_v39, %v4886_v50  ;;  %v1489_v39 = vunpack.c.h.s8.bf16 %v679_v30 }
  0xfd   : > { %3104 = vmatpush1.bf16.msra.mxu0 %v1453_v41  ;;  %2449 = vmatprep.subr.bf16.mxu1 %v944_v42  ;;  %v2177_v41 = vcombine.high %v4934_v60, %v4934_v60  ;;  %v959_v42 = vunpack.c.l.s8.bf16 %v415_v35  ;;  %v961_v60 = vunpack.c.h.s8.bf16 %v415_v35  ;;  %v426_v35 = vld [vmem:[%s4824_s17 + $0x158] sm:$0xff] }
  0xfe   : > { %3105 = vmatprep.subr.bf16.mxu0 %v1456_v43  ;;  %v1471_v43 = vunpack.c.l.s8.bf16 %v671_v36 }
 0x100   : > { %2450 = vmatpush1.bf16.msra.mxu1 %v943_v48  ;;  %v418_v48 = vld [vmem:[%s4824_s17 + $0x118] sm:$0xff] }
 0x101   : > { %3106 = vmatpush1.bf16.msra.mxu0 %v1455_v49  ;;  %2451 = vmatprep.subr.bf16.mxu1 %v946_v53  ;;  %v674_v49 = vld [vmem:[%s4824_s17 + $0x918] sm:$0xff]  ;;  %v4995_v53 = vrot.slane %v1952_v37, %v4886_v50  ;;  %v964_v55 = vunpack.c.l.s8.bf16 %v418_v48  ;;  %v966_v1 = vunpack.c.h.s8.bf16 %v418_v48  ;;  %v977_v37 = vunpack.c.h.s8.bf16 %v423_v29 }
 0x102   : > { %3107 = vmatprep.subr.bf16.mxu0 %v1458_v54  ;;  %v1473_v54 = vunpack.c.h.s8.bf16 %v671_v36  ;;  %v1476_v56 = vunpack.c.l.s8.bf16 %v674_v49  ;;  %v1478_v2 = vunpack.c.h.s8.bf16 %v674_v49  ;;  %v682_v36 = vld [vmem:[%s4824_s17 + $0x958] sm:$0xff]  ;;  %v982_v48 = vunpack.c.h.s8.bf16 %v426_v35 }
 0x103   : > { %v1494_v49 = vunpack.c.h.s8.bf16 %v682_v36 }
 0x104   : > { %2452 = vmatpush1.bf16.msra.mxu1 %v945_v57  ;;  %v417_v57 = vld [vmem:[%s4824_s17 + $0x110] sm:$0xff] }
 0x105   : > { %3108 = vmatpush1.bf16.msra.mxu0 %v1457_v58  ;;  %2453 = vmatprep.subr.bf16.mxu1 %v948_v63  ;;  %v673_v58 = vld [vmem:[%s4824_s17 + $0x910] sm:$0xff]  ;;  %v963_v63 = vunpack.c.l.s8.bf16 %v417_v57 }
 0x106   : > { %3109 = vmatprep.subr.bf16.mxu0 %v1460_v0  ;;  %v1475_v0 = vunpack.c.l.s8.bf16 %v673_v58 }
 0x108   : > { %2454 = vmatpush1.bf16.msra.mxu1 %v947_v3  ;;  %v420_v3 = vld [vmem:[%s4824_s17 + $0x128] sm:$0xff] }
 0x109   : > { %3110 = vmatpush1.bf16.msra.mxu0 %v1459_v51  ;;  %2455 = vmatprep.subr.bf16.mxu1 %v950_v4  ;;  %v676_v51 = vld [vmem:[%s4824_s17 + $0x928] sm:$0xff]  ;;  %v965_v4 = vunpack.c.h.s8.bf16 %v417_v57  ;;  %v968_v52 = vunpack.c.l.s8.bf16 %v420_v3  ;;  %v970_v62 = vunpack.c.h.s8.bf16 %v420_v3 }
 0x10a   : > { %3111 = vmatprep.subr.bf16.mxu0 %v1462_v5  ;;  %v1477_v5 = vunpack.c.h.s8.bf16 %v673_v58  ;;  %v1480_v6 = vunpack.c.l.s8.bf16 %v676_v51  ;;  %v1482_v10 = vunpack.c.h.s8.bf16 %v676_v51 }
 0x10c   : > { %2456 = vmatpush1.bf16.msra.mxu1 %v949_v7  ;;  %v419_v7 = vld [vmem:[%s4824_s17 + $0x120] sm:$0xff] }
 0x10d   : > { %3112 = vmatpush1.bf16.msra.mxu0 %v1461_v8  ;;  %2457 = vmatprep.subr.bf16.mxu1 %v952_v61  ;;  %v675_v8 = vld [vmem:[%s4824_s17 + $0x920] sm:$0xff]  ;;  %v967_v61 = vunpack.c.l.s8.bf16 %v419_v7 }
 0x10e   : > { %3113 = vmatprep.subr.bf16.mxu0 %v1464_v9  ;;  %v1479_v9 = vunpack.c.l.s8.bf16 %v675_v8 }
 0x110   : > { %2458 = vmatpush1.bf16.msra.mxu1 %v951_v11  ;;  %v422_v11 = vld [vmem:[%s4824_s17 + $0x138] sm:$0xff] }
 0x111   : > { %3114 = vmatpush1.bf16.msra.mxu0 %v1463_v12  ;;  %2459 = vmatprep.subr.bf16.mxu1 %v954_v13  ;;  %v678_v12 = vld [vmem:[%s4824_s17 + $0x938] sm:$0xff]  ;;  %v969_v13 = vunpack.c.h.s8.bf16 %v419_v7  ;;  %v972_v15 = vunpack.c.l.s8.bf16 %v422_v11  ;;  %v974_v21 = vunpack.c.h.s8.bf16 %v422_v11 }
 0x112   : > { %3115 = vmatprep.subr.bf16.mxu0 %v1466_v14  ;;  %v1481_v14 = vunpack.c.h.s8.bf16 %v675_v8  ;;  %v1484_v16 = vunpack.c.l.s8.bf16 %v678_v12  ;;  %v1486_v22 = vunpack.c.h.s8.bf16 %v678_v12 }
 0x114   : > { %2460 = vmatpush1.bf16.msra.mxu1 %v953_v17  ;;  %v421_v17 = vld [vmem:[%s4824_s17 + $0x130] sm:$0xff] }
 0x115   : > { %3116 = vmatpush1.bf16.msra.mxu0 %v1465_v18  ;;  %2461 = vmatprep.subr.bf16.mxu1 %v956_v19  ;;  %v677_v18 = vld [vmem:[%s4824_s17 + $0x930] sm:$0xff]  ;;  %v971_v19 = vunpack.c.l.s8.bf16 %v421_v17 }
 0x116   : > { %3117 = vmatprep.subr.bf16.mxu0 %v1468_v20  ;;  %v1483_v20 = vunpack.c.l.s8.bf16 %v677_v18 }
 0x118   : > { %2462 = vmatpush1.bf16.msra.mxu1 %v955_v25  ;;  %v973_v25 = vunpack.c.h.s8.bf16 %v421_v17 }
 0x119   : > { %3118 = vmatpush1.bf16.msra.mxu0 %v1467_v26  ;;  %2463 = vmatprep.subr.bf16.mxu1 %v958_v27  ;;  %v1485_v26 = vunpack.c.h.s8.bf16 %v677_v18  ;;  %v976_v27 = vunpack.c.l.s8.bf16 %v424_v23 }
 0x11a   : > { %3119 = vmatprep.subr.bf16.mxu0 %v1470_v28  ;;  %v1488_v28 = vunpack.c.l.s8.bf16 %v680_v24 }
 0x11c   : > { %2464 = vmatpush1.bf16.msra.mxu1 %v957_v45  ;;  %v975_v45 = vunpack.c.l.s8.bf16 %v423_v29  ;;  %v2180_v29 = vcombine.high %v4998_v59, %v4998_v59 }
 0x11d   : > { %3120 = vmatpush1.bf16.msra.mxu0 %v1469_v32  ;;  %2474 = vmatprep.subr.bf16.mxu1 %v960_v33  ;;  %v1487_v32 = vunpack.c.l.s8.bf16 %v679_v30  ;;  %v978_v33 = vunpack.c.h.s8.bf16 %v424_v23 }
 0x11e   : > { %3130 = vmatprep.subr.bf16.mxu0 %v1472_v34  ;;  %v1490_v34 = vunpack.c.h.s8.bf16 %v680_v24 }
 0x11f   : > { %2466 = vmatmul.mubr.bf16.vlgmr.msra.gmra.mrb[0].mxu1 %v1981_v40  ;;  %v980_v40 = vunpack.c.l.s8.bf16 %v426_v35 }
 0x120   : > { %3122 = vmatmul.mubr.bf16.vlgmr.msra.gmra.mrb[0].mxu0 %v2177_v41  ;;  %2475 = vmatpush1.bf16.msra.mxu1 %v959_v42  ;;  %v1492_v41 = vunpack.c.l.s8.bf16 %v682_v36  ;;  %v425_v42 = vld [vmem:[%s4824_s17 + $0x150] sm:$0xff] }
 0x121   : > { %3131 = vmatpush1.bf16.msra.mxu0 %v1471_v43  ;;  %2476 = vmatprep.subr.bf16.mxu1 %v962_v46  ;;  %v681_v43 = vld [vmem:[%s4824_s17 + $0x950] sm:$0xff]  ;;  %v979_v46 = vunpack.c.l.s8.bf16 %v425_v42 }
 0x122   : > { %3132 = vmatprep.subr.bf16.mxu0 %v1474_v47  ;;  %2506 = vmatprep.mubr.bf16.mxu1 %v4995_v53  ;;  %v1491_v47 = vunpack.c.l.s8.bf16 %v681_v43 }
 0x123   : > { %3162 = vmatprep.mubr.bf16.mxu0 %v4998_v59 }
 0x124   : > { %2477 = vmatpush1.bf16.msra.mxu1 %v961_v60  ;;  %v428_v60 = vld [vmem:[%s4824_s17 + $0x168] sm:$0xff] }
 0x125   : > { %3133 = vmatpush1.bf16.msra.mxu0 %v1473_v54  ;;  %2478 = vmatprep.subr.bf16.mxu1 %v964_v55  ;;  %v684_v54 = vld [vmem:[%s4824_s17 + $0x968] sm:$0xff]  ;;  %v981_v55 = vunpack.c.h.s8.bf16 %v425_v42  ;;  %v984_v57 = vunpack.c.l.s8.bf16 %v428_v60  ;;  %v986_v3 = vunpack.c.h.s8.bf16 %v428_v60 }
 0x126   : > { %3134 = vmatprep.subr.bf16.mxu0 %v1476_v56  ;;  %v1493_v56 = vunpack.c.h.s8.bf16 %v681_v43  ;;  %v1496_v58 = vunpack.c.l.s8.bf16 %v684_v54  ;;  %v1498_v51 = vunpack.c.h.s8.bf16 %v684_v54 }
 0x128   : > { %2479 = vmatpush1.bf16.msra.mxu1 %v963_v63  ;;  %v427_v63 = vld [vmem:[%s4824_s17 + $0x160] sm:$0xff] }
 0x129   : > { %3135 = vmatpush1.bf16.msra.mxu0 %v1475_v0  ;;  %2480 = vmatprep.subr.bf16.mxu1 %v966_v1  ;;  %v683_v0 = vld [vmem:[%s4824_s17 + $0x960] sm:$0xff]  ;;  %v983_v1 = vunpack.c.l.s8.bf16 %v427_v63 }
 0x12a   : > { %3136 = vmatprep.subr.bf16.mxu0 %v1478_v2  ;;  %v1495_v2 = vunpack.c.l.s8.bf16 %v683_v0 }
 0x12c   : > { %2481 = vmatpush1.bf16.msra.mxu1 %v965_v4  ;;  %v430_v4 = vld [vmem:[%s4824_s17 + $0x178] sm:$0xff] }
 0x12d   : > { %3137 = vmatpush1.bf16.msra.mxu0 %v1477_v5  ;;  %2482 = vmatprep.subr.bf16.mxu1 %v968_v52  ;;  %v686_v5 = vld [vmem:[%s4824_s17 + $0x978] sm:$0xff]  ;;  %v985_v52 = vunpack.c.h.s8.bf16 %v427_v63  ;;  %v988_v7 = vunpack.c.l.s8.bf16 %v430_v4  ;;  %v990_v11 = vunpack.c.h.s8.bf16 %v430_v4 }
 0x12e   : > { %3138 = vmatprep.subr.bf16.mxu0 %v1480_v6  ;;  %v1497_v6 = vunpack.c.h.s8.bf16 %v683_v0  ;;  %v1500_v8 = vunpack.c.l.s8.bf16 %v686_v5  ;;  %v1502_v12 = vunpack.c.h.s8.bf16 %v686_v5 }
 0x130   : > { %2483 = vmatpush1.bf16.msra.mxu1 %v967_v61  ;;  %v429_v61 = vld [vmem:[%s4824_s17 + $0x170] sm:$0xff] }
 0x131   : > { %3139 = vmatpush1.bf16.msra.mxu0 %v1479_v9  ;;  %2484 = vmatprep.subr.bf16.mxu1 %v970_v62  ;;  %v685_v9 = vld [vmem:[%s4824_s17 + $0x970] sm:$0xff]  ;;  %v987_v62 = vunpack.c.l.s8.bf16 %v429_v61 }
 0x132   : > { %3140 = vmatprep.subr.bf16.mxu0 %v1482_v10  ;;  %v1499_v10 = vunpack.c.l.s8.bf16 %v685_v9 }
 0x134   : > { %2485 = vmatpush1.bf16.msra.mxu1 %v969_v13  ;;  %v432_v13 = vld [vmem:[%s4824_s17 + $0x188] sm:$0xff] }
 0x135   : > { %3141 = vmatpush1.bf16.msra.mxu0 %v1481_v14  ;;  %2486 = vmatprep.subr.bf16.mxu1 %v972_v15  ;;  %v688_v14 = vld [vmem:[%s4824_s17 + $0x988] sm:$0xff]  ;;  %v989_v15 = vunpack.c.h.s8.bf16 %v429_v61  ;;  %v992_v17 = vunpack.c.l.s8.bf16 %v432_v13 }
 0x136   : > { %3142 = vmatprep.subr.bf16.mxu0 %v1484_v16  ;;  %v1501_v16 = vunpack.c.h.s8.bf16 %v685_v9  ;;  %v1504_v18 = vunpack.c.l.s8.bf16 %v688_v14 }
 0x138   : > { %2487 = vmatpush1.bf16.msra.mxu1 %v971_v19  ;;  %v431_v19 = vld [vmem:[%s4824_s17 + $0x180] sm:$0xff] }
 0x139   : > { %3143 = vmatpush1.bf16.msra.mxu0 %v1483_v20  ;;  %2488 = vmatprep.subr.bf16.mxu1 %v974_v21  ;;  %v687_v20 = vld [vmem:[%s4824_s17 + $0x980] sm:$0xff]  ;;  %v5034_v21 = vrot.slane %v4977_v31, %v4886_v50  ;;  %v991_v23 = vunpack.c.l.s8.bf16 %v431_v19  ;;  %v1984_v31 = vcombine.high %v4995_v53, %v4995_v53 }
 0x13a   : > { %3144 = vmatprep.subr.bf16.mxu0 %v1486_v22  ;;  %v5038_v22 = vrot.slane %v4980_v44, %v4886_v50  ;;  %v1503_v24 = vunpack.c.l.s8.bf16 %v687_v20  ;;  %v993_v44 = vunpack.c.h.s8.bf16 %v431_v19  ;;  %v1505_v30 = vunpack.c.h.s8.bf16 %v687_v20 }
 0x13c   : > { %2489 = vmatpush1.bf16.msra.mxu1 %v973_v25  ;;  %v994_v25 = vunpack.c.h.s8.bf16 %v432_v13 }
 0x13d   : > { %3145 = vmatpush1.bf16.msra.mxu0 %v1485_v26  ;;  %2490 = vmatprep.subr.bf16.mxu1 %v976_v27  ;;  %v1506_v26 = vunpack.c.h.s8.bf16 %v688_v14  ;;  %v434_v27 = vld [vmem:[%s4824_s17 + $0x198] sm:$0xff] }
 0x13e   : > { %3146 = vmatprep.subr.bf16.mxu0 %v1488_v28  ;;  %v690_v28 = vld [vmem:[%s4824_s17 + $0x998] sm:$0xff]  ;;  %v998_v35 = vunpack.c.h.s8.bf16 %v434_v27 }
 0x13f   : > { %v1510_v36 = vunpack.c.h.s8.bf16 %v690_v28 }
 0x140   : > { %2491 = vmatpush1.bf16.msra.mxu1 %v975_v45  ;;  %v996_v45 = vunpack.c.l.s8.bf16 %v434_v27 }
 0x141   : > { %3147 = vmatpush1.bf16.msra.mxu0 %v1487_v32  ;;  %2492 = vmatprep.subr.bf16.mxu1 %v978_v33  ;;  %v1508_v32 = vunpack.c.l.s8.bf16 %v690_v28  ;;  %v433_v33 = vld [vmem:[%s4824_s17 + $0x190] sm:$0xff] }
 0x142   : > { %3148 = vmatprep.subr.bf16.mxu0 %v1490_v34  ;;  %v689_v34 = vld [vmem:[%s4824_s17 + $0x990] sm:$0xff]  ;;  %v995_v53 = vunpack.c.l.s8.bf16 %v433_v33 }
 0x143   : > { %v1507_v59 = vunpack.c.l.s8.bf16 %v689_v34 }
 0x144   : > { %2493 = vmatpush1.bf16.msra.mxu1 %v977_v37  ;;  %v436_v37 = vld [vmem:[%s4824_s17 + $0x1a8] sm:$0xff] }
 0x145   : > { %3149 = vmatpush1.bf16.msra.mxu0 %v1489_v39  ;;  %2494 = vmatprep.subr.bf16.mxu1 %v980_v40  ;;  %v692_v39 = vld [vmem:[%s4824_s17 + $0x9a8] sm:$0xff]  ;;  %v997_v40 = vunpack.c.h.s8.bf16 %v433_v33  ;;  %v1000_v42 = vunpack.c.l.s8.bf16 %v436_v37  ;;  %v1002_v60 = vunpack.c.h.s8.bf16 %v436_v37  ;;  %v443_v33 = vld [vmem:[%s4824_s17 + $0x1e0] sm:$0xff]  ;;  %v446_v37 = vld [vmem:[%s4824_s17 + $0x1f8] sm:$0xff] }
 0x146   : > { %3150 = vmatprep.subr.bf16.mxu0 %v1492_v41  ;;  %v1509_v41 = vunpack.c.h.s8.bf16 %v689_v34  ;;  %v1512_v43 = vunpack.c.l.s8.bf16 %v692_v39  ;;  %v1514_v54 = vunpack.c.h.s8.bf16 %v692_v39  ;;  %v699_v34 = vld [vmem:[%s4824_s17 + $0x9e0] sm:$0xff]  ;;  %v702_v39 = vld [vmem:[%s4824_s17 + $0x9f8] sm:$0xff] }
 0x148   : > { %2495 = vmatpush1.bf16.msra.mxu1 %v979_v46  ;;  %v435_v46 = vld [vmem:[%s4824_s17 + $0x1a0] sm:$0xff] }
 0x149   : > { %3151 = vmatpush1.bf16.msra.mxu0 %v1491_v47  ;;  %2496 = vmatprep.subr.bf16.mxu1 %v982_v48  ;;  %v691_v47 = vld [vmem:[%s4824_s17 + $0x9a0] sm:$0xff]  ;;  %v999_v48 = vunpack.c.l.s8.bf16 %v435_v46 }
 0x14a   : > { %3152 = vmatprep.subr.bf16.mxu0 %v1494_v49  ;;  %v1511_v49 = vunpack.c.l.s8.bf16 %v691_v47 }
 0x14c   : > { %2497 = vmatpush1.bf16.msra.mxu1 %v981_v55  ;;  %v438_v55 = vld [vmem:[%s4824_s17 + $0x1b8] sm:$0xff] }
 0x14d   : > { %3153 = vmatpush1.bf16.msra.mxu0 %v1493_v56  ;;  %2498 = vmatprep.subr.bf16.mxu1 %v984_v57  ;;  %v694_v56 = vld [vmem:[%s4824_s17 + $0x9b8] sm:$0xff]  ;;  %v1001_v57 = vunpack.c.h.s8.bf16 %v435_v46  ;;  %v1004_v63 = vunpack.c.l.s8.bf16 %v438_v55  ;;  %v1006_v4 = vunpack.c.h.s8.bf16 %v438_v55  ;;  %v445_v46 = vld [vmem:[%s4824_s17 + $0x1f0] sm:$0xff]  ;;  %v1022_v55 = vunpack.c.h.s8.bf16 %v446_v37 }
 0x14e   : > { %3154 = vmatprep.subr.bf16.mxu0 %v1496_v58  ;;  %v1513_v58 = vunpack.c.h.s8.bf16 %v691_v47  ;;  %v1516_v0 = vunpack.c.l.s8.bf16 %v694_v56  ;;  %v1518_v5 = vunpack.c.h.s8.bf16 %v694_v56  ;;  %v701_v47 = vld [vmem:[%s4824_s17 + $0x9f0] sm:$0xff]  ;;  %v1534_v56 = vunpack.c.h.s8.bf16 %v702_v39 }
 0x150   : > { %2499 = vmatpush1.bf16.msra.mxu1 %v983_v1  ;;  %v437_v1 = vld [vmem:[%s4824_s17 + $0x1b0] sm:$0xff] }
 0x151   : > { %3155 = vmatpush1.bf16.msra.mxu0 %v1495_v2  ;;  %2500 = vmatprep.subr.bf16.mxu1 %v986_v3  ;;  %v693_v2 = vld [vmem:[%s4824_s17 + $0x9b0] sm:$0xff]  ;;  %v1003_v3 = vunpack.c.l.s8.bf16 %v437_v1 }
 0x152   : > { %3156 = vmatprep.subr.bf16.mxu0 %v1498_v51  ;;  %v1515_v51 = vunpack.c.l.s8.bf16 %v693_v2 }
 0x154   : > { %2501 = vmatpush1.bf16.msra.mxu1 %v985_v52  ;;  %v440_v52 = vld [vmem:[%s4824_s17 + $0x1c8] sm:$0xff] }
 0x155   : > { %3157 = vmatpush1.bf16.msra.mxu0 %v1497_v6  ;;  %2502 = vmatprep.subr.bf16.mxu1 %v988_v7  ;;  %v696_v6 = vld [vmem:[%s4824_s17 + $0x9c8] sm:$0xff]  ;;  %v1005_v7 = vunpack.c.h.s8.bf16 %v437_v1  ;;  %v1008_v61 = vunpack.c.l.s8.bf16 %v440_v52  ;;  %v1010_v13 = vunpack.c.h.s8.bf16 %v440_v52  ;;  %v1021_v1 = vunpack.c.h.s8.bf16 %v445_v46 }
 0x156   : > { %3158 = vmatprep.subr.bf16.mxu0 %v1500_v8  ;;  %v1517_v8 = vunpack.c.h.s8.bf16 %v693_v2  ;;  %v1520_v9 = vunpack.c.l.s8.bf16 %v696_v6  ;;  %v1522_v14 = vunpack.c.h.s8.bf16 %v696_v6  ;;  %v1533_v2 = vunpack.c.h.s8.bf16 %v701_v47 }
 0x158   : > { %2503 = vmatpush1.bf16.msra.mxu1 %v987_v62  ;;  %v439_v62 = vld [vmem:[%s4824_s17 + $0x1c0] sm:$0xff] }
 0x159   : > { %3159 = vmatpush1.bf16.msra.mxu0 %v1499_v10  ;;  %2504 = vmatprep.subr.bf16.mxu1 %v990_v11  ;;  %v695_v10 = vld [vmem:[%s4824_s17 + $0x9c0] sm:$0xff]  ;;  %v1007_v11 = vunpack.c.l.s8.bf16 %v439_v62 }
 0x15a   : > { %3160 = vmatprep.subr.bf16.mxu0 %v1502_v12  ;;  %v1519_v12 = vunpack.c.l.s8.bf16 %v695_v10 }
 0x15c   : > { %2505 = vmatpush1.bf16.msra.mxu1 %v989_v15  ;;  %v442_v15 = vld [vmem:[%s4824_s17 + $0x1d8] sm:$0xff] }
 0x15d   : > { %3161 = vmatpush1.bf16.msra.mxu0 %v1501_v16  ;;  %2515 = vmatprep.subr.bf16.mxu1 %v992_v17  ;;  %v698_v16 = vld [vmem:[%s4824_s17 + $0x9d8] sm:$0xff]  ;;  %v1009_v17 = vunpack.c.h.s8.bf16 %v439_v62  ;;  %v1012_v19 = vunpack.c.l.s8.bf16 %v442_v15  ;;  %v1014_v27 = vunpack.c.h.s8.bf16 %v442_v15 }
 0x15e   : > { %3171 = vmatprep.subr.bf16.mxu0 %v1504_v18  ;;  %v1521_v18 = vunpack.c.h.s8.bf16 %v695_v10  ;;  %v1524_v20 = vunpack.c.l.s8.bf16 %v698_v16  ;;  %v1526_v28 = vunpack.c.h.s8.bf16 %v698_v16 }
 0x15f   : > { %2507 = vmatmul.mubr.bf16.vlgmr.msra.gmra.mrb[0].mxu1 %v5034_v21 }
 0x160   : > { %3163 = vmatmul.mubr.bf16.vlgmr.msra.gmra.mrb[0].mxu0 %v5038_v22  ;;  %2516 = vmatpush1.bf16.msra.mxu1 %v991_v23  ;;  %v441_v23 = vld [vmem:[%s4824_s17 + $0x1d0] sm:$0xff] }
 0x161   : > { %3172 = vmatpush1.bf16.msra.mxu0 %v1503_v24  ;;  %2517 = vmatprep.subr.bf16.mxu1 %v994_v25  ;;  %v697_v24 = vld [vmem:[%s4824_s17 + $0x9d0] sm:$0xff]  ;;  %v1011_v25 = vunpack.c.l.s8.bf16 %v441_v23 }
 0x162   : > { %3173 = vmatprep.subr.bf16.mxu0 %v1506_v26  ;;  %2547 = vmatprep.mubr.bf16.mxu1 %v1984_v31  ;;  %v1523_v26 = vunpack.c.l.s8.bf16 %v697_v24  ;;  %v444_v31 = vld [vmem:[%s4824_s17 + $0x1e8] sm:$0xff] }
 0x163   : > { %3203 = vmatprep.mubr.bf16.mxu0 %v2180_v29  ;;  %v700_v29 = vld [vmem:[%s4824_s17 + $0x9e8] sm:$0xff] }
 0x164   : > { %2518 = vmatpush1.bf16.msra.mxu1 %v993_v44  ;;  %v1013_v44 = vunpack.c.h.s8.bf16 %v441_v23 }
 0x165   : > { %3174 = vmatpush1.bf16.msra.mxu0 %v1505_v30  ;;  %2519 = vmatprep.subr.bf16.mxu1 %v996_v45  ;;  %v1525_v30 = vunpack.c.h.s8.bf16 %v697_v24  ;;  %v1016_v45 = vunpack.c.l.s8.bf16 %v444_v31 }
 0x166   : > { %3175 = vmatprep.subr.bf16.mxu0 %v1508_v32  ;;  %v1528_v32 = vunpack.c.l.s8.bf16 %v700_v29 }
 0x168   : > { %2520 = vmatpush1.bf16.msra.mxu1 %v995_v53  ;;  %v1015_v53 = vunpack.c.l.s8.bf16 %v443_v33 }
 0x169   : > { %3176 = vmatpush1.bf16.msra.mxu0 %v1507_v59  ;;  %2521 = vmatprep.subr.bf16.mxu1 %v998_v35  ;;  %v1527_v59 = vunpack.c.l.s8.bf16 %v699_v34  ;;  %v1018_v35 = vunpack.c.h.s8.bf16 %v444_v31 }
 0x16a   : > { %3177 = vmatprep.subr.bf16.mxu0 %v1510_v36  ;;  %v1530_v36 = vunpack.c.h.s8.bf16 %v700_v29 }
 0x16c   : > { %2522 = vmatpush1.bf16.msra.mxu1 %v997_v40  ;;  %v1017_v40 = vunpack.c.h.s8.bf16 %v443_v33 }
 0x16d   : > { %3178 = vmatpush1.bf16.msra.mxu0 %v1509_v41  ;;  %2523 = vmatprep.subr.bf16.mxu1 %v1000_v42  ;;  %v1529_v41 = vunpack.c.h.s8.bf16 %v699_v34  ;;  %v1020_v42 = vunpack.c.l.s8.bf16 %v446_v37 }
 0x16e   : > { %3179 = vmatprep.subr.bf16.mxu0 %v1512_v43  ;;  %v1532_v43 = vunpack.c.l.s8.bf16 %v702_v39 }
 0x170   : > { %2524 = vmatpush1.bf16.msra.mxu1 %v999_v48  ;;  %v5075_v48 = vld [vmem:[%s4846_s12 + $0x8] sm:$0xff] }
 0x171   : > { %3180 = vmatpush1.bf16.msra.mxu0 %v1511_v49  ;;  %2525 = vmatprep.subr.bf16.mxu1 %v1002_v60  ;;  %v5078_v49 = vld [vmem:[%s4846_s12 + $0x28] sm:$0xff]  ;;  %v1019_v60 = vunpack.c.l.s8.bf16 %v445_v46 }
 0x172   : > { %3181 = vmatprep.subr.bf16.mxu0 %v1514_v54  ;;  %v1531_v54 = vunpack.c.l.s8.bf16 %v701_v47 }
 0x174   : > { %2526 = vmatpush1.bf16.msra.mxu1 %v1001_v57  ;;  %v448_v57 = vld [vmem:[%s4824_s17 + $0x208] sm:$0xff] }
 0x175   : > { %3182 = vmatpush1.bf16.msra.mxu0 %v1513_v58  ;;  %2527 = vmatprep.subr.bf16.mxu1 %v1004_v63  ;;  %v704_v58 = vld [vmem:[%s4824_s17 + $0xa08] sm:$0xff]  ;;  %v5084_v63 = vrot.slane %v5075_v48, %v4886_v50  ;;  %v1026_v62 = vunpack.c.h.s8.bf16 %v448_v57 }
 0x176   : > { %3183 = vmatprep.subr.bf16.mxu0 %v1516_v0  ;;  %v5088_v0 = vrot.slane %v5078_v49, %v4886_v50  ;;  %v1538_v10 = vunpack.c.h.s8.bf16 %v704_v58 }
 0x177   : > { %v2000_v52 = vcombine.high %v5084_v63, %v5084_v63 }
 0x178   : > { %2528 = vmatpush1.bf16.msra.mxu1 %v1003_v3  ;;  %v1024_v3 = vunpack.c.l.s8.bf16 %v448_v57  ;;  %v2196_v6 = vcombine.high %v5088_v0, %v5088_v0 }
 0x179   : > { %3184 = vmatpush1.bf16.msra.mxu0 %v1515_v51  ;;  %2529 = vmatprep.subr.bf16.mxu1 %v1006_v4  ;;  %v1536_v51 = vunpack.c.l.s8.bf16 %v704_v58  ;;  %v447_v4 = vld [vmem:[%s4824_s17 + $0x200] sm:$0xff] }
 0x17a   : > { %3185 = vmatprep.subr.bf16.mxu0 %v1518_v5  ;;  %v703_v5 = vld [vmem:[%s4824_s17 + $0xa00] sm:$0xff] }
 0x17c   : > { %2530 = vmatpush1.bf16.msra.mxu1 %v1005_v7  ;;  %v1982_v7 = vcombine.high %v5034_v21, %v5034_v21  ;;  %v5106_v21 = vrot.slane %v2196_v6, %v4886_v50  ;;  %v714_v6 = vld [vmem:[%s4824_s17 + $0xa58] sm:$0xff] }
 0x17d   : > { %3186 = vmatpush1.bf16.msra.mxu0 %v1517_v8  ;;  %2531 = vmatprep.subr.bf16.mxu1 %v1008_v61  ;;  %v2178_v8 = vcombine.high %v5038_v22, %v5038_v22  ;;  %v1023_v61 = vunpack.c.l.s8.bf16 %v447_v4  ;;  %v1025_v22 = vunpack.c.h.s8.bf16 %v447_v4 }
 0x17e   : > { %3187 = vmatprep.subr.bf16.mxu0 %v1520_v9  ;;  %v1535_v9 = vunpack.c.l.s8.bf16 %v703_v5 }
 0x180   : > { %2532 = vmatpush1.bf16.msra.mxu1 %v1007_v11  ;;  %v450_v11 = vld [vmem:[%s4824_s17 + $0x218] sm:$0xff] }
 0x181   : > { %3188 = vmatpush1.bf16.msra.mxu0 %v1519_v12  ;;  %2533 = vmatprep.subr.bf16.mxu1 %v1010_v13  ;;  %v706_v12 = vld [vmem:[%s4824_s17 + $0xa18] sm:$0xff]  ;;  %v5103_v13 = vrot.slane %v2000_v52, %v4886_v50  ;;  %v1028_v15 = vunpack.c.l.s8.bf16 %v450_v11  ;;  %v1030_v23 = vunpack.c.h.s8.bf16 %v450_v11 }
 0x182   : > { %3189 = vmatprep.subr.bf16.mxu0 %v1522_v14  ;;  %v1537_v14 = vunpack.c.h.s8.bf16 %v703_v5  ;;  %v1540_v16 = vunpack.c.l.s8.bf16 %v706_v12  ;;  %v1542_v24 = vunpack.c.h.s8.bf16 %v706_v12  ;;  %v458_v52 = vld [vmem:[%s4824_s17 + $0x258] sm:$0xff] }
 0x184   : > { %2534 = vmatpush1.bf16.msra.mxu1 %v1009_v17  ;;  %v449_v17 = vld [vmem:[%s4824_s17 + $0x210] sm:$0xff] }
 0x185   : > { %3190 = vmatpush1.bf16.msra.mxu0 %v1521_v18  ;;  %2535 = vmatprep.subr.bf16.mxu1 %v1012_v19  ;;  %v705_v18 = vld [vmem:[%s4824_s17 + $0xa10] sm:$0xff]  ;;  %v1027_v19 = vunpack.c.l.s8.bf16 %v449_v17 }
 0x186   : > { %3191 = vmatprep.subr.bf16.mxu0 %v1524_v20  ;;  %v1539_v20 = vunpack.c.l.s8.bf16 %v705_v18 }
 0x188   : > { %2536 = vmatpush1.bf16.msra.mxu1 %v1011_v25  ;;  %v452_v25 = vld [vmem:[%s4824_s17 + $0x228] sm:$0xff] }
 0x189   : > { %3192 = vmatpush1.bf16.msra.mxu0 %v1523_v26  ;;  %2537 = vmatprep.subr.bf16.mxu1 %v1014_v27  ;;  %v708_v26 = vld [vmem:[%s4824_s17 + $0xa28] sm:$0xff]  ;;  %v1029_v27 = vunpack.c.h.s8.bf16 %v449_v17  ;;  %v1032_v31 = vunpack.c.l.s8.bf16 %v452_v25  ;;  %v1034_v33 = vunpack.c.h.s8.bf16 %v452_v25 }
 0x18a   : > { %3193 = vmatprep.subr.bf16.mxu0 %v1526_v28  ;;  %v1541_v28 = vunpack.c.h.s8.bf16 %v705_v18  ;;  %v1544_v29 = vunpack.c.l.s8.bf16 %v708_v26  ;;  %v1546_v34 = vunpack.c.h.s8.bf16 %v708_v26 }
 0x18c   : > { %2538 = vmatpush1.bf16.msra.mxu1 %v1013_v44  ;;  %v451_v44 = vld [vmem:[%s4824_s17 + $0x220] sm:$0xff] }
 0x18d   : > { %3194 = vmatpush1.bf16.msra.mxu0 %v1525_v30  ;;  %2539 = vmatprep.subr.bf16.mxu1 %v1016_v45  ;;  %v707_v30 = vld [vmem:[%s4824_s17 + $0xa20] sm:$0xff]  ;;  %v1031_v45 = vunpack.c.l.s8.bf16 %v451_v44 }
 0x18e   : > { %3195 = vmatprep.subr.bf16.mxu0 %v1528_v32  ;;  %v1543_v32 = vunpack.c.l.s8.bf16 %v707_v30 }
 0x190   : > { %2540 = vmatpush1.bf16.msra.mxu1 %v1015_v53  ;;  %v454_v53 = vld [vmem:[%s4824_s17 + $0x238] sm:$0xff] }
 0x191   : > { %3196 = vmatpush1.bf16.msra.mxu0 %v1527_v59  ;;  %2541 = vmatprep.subr.bf16.mxu1 %v1018_v35  ;;  %v710_v59 = vld [vmem:[%s4824_s17 + $0xa38] sm:$0xff]  ;;  %v1033_v35 = vunpack.c.h.s8.bf16 %v451_v44  ;;  %v1036_v37 = vunpack.c.l.s8.bf16 %v454_v53  ;;  %v1038_v46 = vunpack.c.h.s8.bf16 %v454_v53 }
 0x192   : > { %3197 = vmatprep.subr.bf16.mxu0 %v1530_v36  ;;  %v1545_v36 = vunpack.c.h.s8.bf16 %v707_v30  ;;  %v1548_v39 = vunpack.c.l.s8.bf16 %v710_v59  ;;  %v1550_v47 = vunpack.c.h.s8.bf16 %v710_v59 }
 0x194   : > { %2542 = vmatpush1.bf16.msra.mxu1 %v1017_v40  ;;  %v453_v40 = vld [vmem:[%s4824_s17 + $0x230] sm:$0xff] }
 0x195   : > { %3198 = vmatpush1.bf16.msra.mxu0 %v1529_v41  ;;  %2543 = vmatprep.subr.bf16.mxu1 %v1020_v42  ;;  %v709_v41 = vld [vmem:[%s4824_s17 + $0xa30] sm:$0xff]  ;;  %v1035_v42 = vunpack.c.l.s8.bf16 %v453_v40 }
 0x196   : > { %3199 = vmatprep.subr.bf16.mxu0 %v1532_v43  ;;  %v1547_v43 = vunpack.c.l.s8.bf16 %v709_v41 }
 0x198   : > { %2544 = vmatpush1.bf16.msra.mxu1 %v1019_v60  ;;  %v456_v60 = vld [vmem:[%s4824_s17 + $0x248] sm:$0xff] }
 0x199   : > { %3200 = vmatpush1.bf16.msra.mxu0 %v1531_v54  ;;  %2545 = vmatprep.subr.bf16.mxu1 %v1022_v55  ;;  %v712_v54 = vld [vmem:[%s4824_s17 + $0xa48] sm:$0xff]  ;;  %v1037_v55 = vunpack.c.h.s8.bf16 %v453_v40  ;;  %v1040_v57 = vunpack.c.l.s8.bf16 %v456_v60  ;;  %v1042_v4 = vunpack.c.h.s8.bf16 %v456_v60  ;;  %v5142_v60 = vrot.slane %v5084_v63, %v4886_v50 }
 0x19a   : > { %3201 = vmatprep.subr.bf16.mxu0 %v1534_v56  ;;  %v1549_v56 = vunpack.c.h.s8.bf16 %v709_v41  ;;  %v1552_v58 = vunpack.c.l.s8.bf16 %v712_v54  ;;  %v1554_v5 = vunpack.c.h.s8.bf16 %v712_v54  ;;  %v5146_v54 = vrot.slane %v5088_v0, %v4886_v50 }
 0x19b   : > { %v2032_v63 = vcombine.high %v5103_v13, %v5103_v13 }
 0x19c   : > { %2546 = vmatpush1.bf16.msra.mxu1 %v1021_v1  ;;  %v455_v1 = vld [vmem:[%s4824_s17 + $0x240] sm:$0xff] }
 0x19d   : > { %3202 = vmatpush1.bf16.msra.mxu0 %v1533_v2  ;;  %2556 = vmatprep.subr.bf16.mxu1 %v1024_v3  ;;  %v711_v2 = vld [vmem:[%s4824_s17 + $0xa40] sm:$0xff]  ;;  %v1039_v3 = vunpack.c.l.s8.bf16 %v455_v1 }
 0x19e   : > { %3212 = vmatprep.subr.bf16.mxu0 %v1536_v51  ;;  %v1551_v51 = vunpack.c.l.s8.bf16 %v711_v2 }
 0x19f   : > { %2548 = vmatmul.mubr.bf16.vlgmr.msra.gmra.mrb[0].mxu1 %v1982_v7  ;;  %v1041_v7 = vunpack.c.h.s8.bf16 %v455_v1  ;;  %v466_v1 = vld [vmem:[%s4824_s17 + $0x298] sm:$0xff] }
 0x1a0   : > { %3204 = vmatmul.mubr.bf16.vlgmr.msra.gmra.mrb[0].mxu0 %v2178_v8  ;;  %2557 = vmatpush1.bf16.msra.mxu1 %v1023_v61  ;;  %v1553_v8 = vunpack.c.h.s8.bf16 %v711_v2  ;;  %v1044_v61 = vunpack.c.l.s8.bf16 %v458_v52  ;;  %v722_v2 = vld [vmem:[%s4824_s17 + $0xa98] sm:$0xff] }
 0x1a1   : > { %3213 = vmatpush1.bf16.msra.mxu0 %v1535_v9  ;;  %2558 = vmatprep.subr.bf16.mxu1 %v1026_v62  ;;  %v1556_v9 = vunpack.c.l.s8.bf16 %v714_v6  ;;  %v457_v62 = vld [vmem:[%s4824_s17 + $0x250] sm:$0xff] }
 0x1a2   : > { %3214 = vmatprep.subr.bf16.mxu0 %v1538_v10  ;;  %2588 = vmatprep.mubr.bf16.mxu1 %v5103_v13  ;;  %v713_v10 = vld [vmem:[%s4824_s17 + $0xa50] sm:$0xff]  ;;  %v1043_v11 = vunpack.c.l.s8.bf16 %v457_v62  ;;  %v1045_v17 = vunpack.c.h.s8.bf16 %v457_v62 }
 0x1a3   : > { %3244 = vmatprep.mubr.bf16.mxu0 %v5106_v21  ;;  %v1555_v12 = vunpack.c.l.s8.bf16 %v713_v10  ;;  %v1557_v18 = vunpack.c.h.s8.bf16 %v713_v10 }
 0x1a4   : > { %2559 = vmatpush1.bf16.msra.mxu1 %v1025_v22  ;;  %v1046_v22 = vunpack.c.h.s8.bf16 %v458_v52  ;;  %v465_v52 = vld [vmem:[%s4824_s17 + $0x290] sm:$0xff] }
 0x1a5   : > { %3215 = vmatpush1.bf16.msra.mxu0 %v1537_v14  ;;  %2560 = vmatprep.subr.bf16.mxu1 %v1028_v15  ;;  %v1558_v14 = vunpack.c.h.s8.bf16 %v714_v6  ;;  %v460_v15 = vld [vmem:[%s4824_s17 + $0x268] sm:$0xff]  ;;  %v721_v6 = vld [vmem:[%s4824_s17 + $0xa90] sm:$0xff]  ;;  %v1059_v13 = vunpack.c.l.s8.bf16 %v465_v52  ;;  %v1061_v62 = vunpack.c.h.s8.bf16 %v465_v52 }
 0x1a6   : > { %3216 = vmatprep.subr.bf16.mxu0 %v1540_v16  ;;  %v716_v16 = vld [vmem:[%s4824_s17 + $0xa68] sm:$0xff]  ;;  %v1573_v10 = vunpack.c.h.s8.bf16 %v721_v6 }
 0x1a8   : > { %2561 = vmatpush1.bf16.msra.mxu1 %v1027_v19  ;;  %v1048_v19 = vunpack.c.l.s8.bf16 %v460_v15 }
 0x1a9   : > { %3217 = vmatpush1.bf16.msra.mxu0 %v1539_v20  ;;  %2562 = vmatprep.subr.bf16.mxu1 %v1030_v23  ;;  %v1560_v20 = vunpack.c.l.s8.bf16 %v716_v16  ;;  %v459_v23 = vld [vmem:[%s4824_s17 + $0x260] sm:$0xff] }
 0x1aa   : > { %3218 = vmatprep.subr.bf16.mxu0 %v1542_v24  ;;  %v715_v24 = vld [vmem:[%s4824_s17 + $0xa60] sm:$0xff]  ;;  %v1047_v25 = vunpack.c.l.s8.bf16 %v459_v23  ;;  %v1049_v44 = vunpack.c.h.s8.bf16 %v459_v23 }
 0x1ab   : > { %v1559_v26 = vunpack.c.l.s8.bf16 %v715_v24  ;;  %v1561_v30 = vunpack.c.h.s8.bf16 %v715_v24 }
 0x1ac   : > { %2563 = vmatpush1.bf16.msra.mxu1 %v1029_v27  ;;  %v1050_v27 = vunpack.c.h.s8.bf16 %v460_v15 }
 0x1ad   : > { %3219 = vmatpush1.bf16.msra.mxu0 %v1541_v28  ;;  %2564 = vmatprep.subr.bf16.mxu1 %v1032_v31  ;;  %v1562_v28 = vunpack.c.h.s8.bf16 %v716_v16  ;;  %v462_v31 = vld [vmem:[%s4824_s17 + $0x278] sm:$0xff] }
 0x1ae   : > { %3220 = vmatprep.subr.bf16.mxu0 %v1544_v29  ;;  %v718_v29 = vld [vmem:[%s4824_s17 + $0xa78] sm:$0xff] }
 0x1b0   : > { %2565 = vmatpush1.bf16.msra.mxu1 %v1031_v45  ;;  %v1052_v45 = vunpack.c.l.s8.bf16 %v462_v31 }
 0x1b1   : > { %3221 = vmatpush1.bf16.msra.mxu0 %v1543_v32  ;;  %2566 = vmatprep.subr.bf16.mxu1 %v1034_v33  ;;  %v1564_v32 = vunpack.c.l.s8.bf16 %v718_v29  ;;  %v461_v33 = vld [vmem:[%s4824_s17 + $0x270] sm:$0xff] }
 0x1b2   : > { %3222 = vmatprep.subr.bf16.mxu0 %v1546_v34  ;;  %v717_v34 = vld [vmem:[%s4824_s17 + $0xa70] sm:$0xff]  ;;  %v1051_v53 = vunpack.c.l.s8.bf16 %v461_v33  ;;  %v1053_v40 = vunpack.c.h.s8.bf16 %v461_v33 }
 0x1b3   : > { %v1563_v59 = vunpack.c.l.s8.bf16 %v717_v34  ;;  %v1565_v41 = vunpack.c.h.s8.bf16 %v717_v34 }
 0x1b4   : > { %2567 = vmatpush1.bf16.msra.mxu1 %v1033_v35  ;;  %v1054_v35 = vunpack.c.h.s8.bf16 %v462_v31 }
 0x1b5   : > { %3223 = vmatpush1.bf16.msra.mxu0 %v1545_v36  ;;  %2568 = vmatprep.subr.bf16.mxu1 %v1036_v37  ;;  %v1566_v36 = vunpack.c.h.s8.bf16 %v718_v29  ;;  %v464_v37 = vld [vmem:[%s4824_s17 + $0x288] sm:$0xff] }
 0x1b6   : > { %3224 = vmatprep.subr.bf16.mxu0 %v1548_v39  ;;  %v720_v39 = vld [vmem:[%s4824_s17 + $0xa88] sm:$0xff] }
 0x1b8   : > { %2569 = vmatpush1.bf16.msra.mxu1 %v1035_v42  ;;  %v1056_v42 = vunpack.c.l.s8.bf16 %v464_v37 }
 0x1b9   : > { %3225 = vmatpush1.bf16.msra.mxu0 %v1547_v43  ;;  %2570 = vmatprep.subr.bf16.mxu1 %v1038_v46  ;;  %v1568_v43 = vunpack.c.l.s8.bf16 %v720_v39  ;;  %v463_v46 = vld [vmem:[%s4824_s17 + $0x280] sm:$0xff] }
 0x1ba   : > { %3226 = vmatprep.subr.bf16.mxu0 %v1550_v47  ;;  %v719_v47 = vld [vmem:[%s4824_s17 + $0xa80] sm:$0xff]  ;;  %v1057_v0 = vunpack.c.h.s8.bf16 %v463_v46 }
 0x1bc   : > { %2571 = vmatpush1.bf16.msra.mxu1 %v1037_v55  ;;  %v1055_v55 = vunpack.c.l.s8.bf16 %v463_v46 }
 0x1bd   : > { %3227 = vmatpush1.bf16.msra.mxu0 %v1549_v56  ;;  %2572 = vmatprep.subr.bf16.mxu1 %v1040_v57  ;;  %v1567_v56 = vunpack.c.l.s8.bf16 %v719_v47  ;;  %v1058_v57 = vunpack.c.h.s8.bf16 %v464_v37 }
 0x1be   : > { %3228 = vmatprep.subr.bf16.mxu0 %v1552_v58  ;;  %v1570_v58 = vunpack.c.h.s8.bf16 %v720_v39 }
 0x1c0   : > { %2573 = vmatpush1.bf16.msra.mxu1 %v1039_v3  ;;  %v2228_v3 = vcombine.high %v5106_v21, %v5106_v21  ;;  %v1571_v21 = vunpack.c.l.s8.bf16 %v721_v6 }
 0x1c1   : > { %3229 = vmatpush1.bf16.msra.mxu0 %v1551_v51  ;;  %2574 = vmatprep.subr.bf16.mxu1 %v1042_v4  ;;  %v1569_v51 = vunpack.c.h.s8.bf16 %v719_v47  ;;  %v1060_v4 = vunpack.c.l.s8.bf16 %v466_v1 }
 0x1c2   : > { %3230 = vmatprep.subr.bf16.mxu0 %v1554_v5  ;;  %v1572_v5 = vunpack.c.l.s8.bf16 %v722_v2 }
 0x1c4   : > { %2575 = vmatpush1.bf16.msra.mxu1 %v1041_v7  ;;  %v1062_v7 = vunpack.c.h.s8.bf16 %v466_v1 }
 0x1c5   : > { %3231 = vmatpush1.bf16.msra.mxu0 %v1553_v8  ;;  %2576 = vmatprep.subr.bf16.mxu1 %v1044_v61  ;;  %v1574_v8 = vunpack.c.h.s8.bf16 %v722_v2  ;;  %v468_v61 = vld [vmem:[%s4824_s17 + $0x2a8] sm:$0xff] }
 0x1c6   : > { %3232 = vmatprep.subr.bf16.mxu0 %v1556_v9  ;;  %v724_v9 = vld [vmem:[%s4824_s17 + $0xaa8] sm:$0xff] }
 0x1c8   : > { %2577 = vmatpush1.bf16.msra.mxu1 %v1043_v11  ;;  %v1064_v11 = vunpack.c.l.s8.bf16 %v468_v61 }
 0x1c9   : > { %3233 = vmatpush1.bf16.msra.mxu0 %v1555_v12  ;;  %2578 = vmatprep.subr.bf16.mxu1 %v1046_v22  ;;  %v1576_v12 = vunpack.c.l.s8.bf16 %v724_v9  ;;  %v467_v22 = vld [vmem:[%s4824_s17 + $0x2a0] sm:$0xff] }
 0x1ca   : > { %3234 = vmatprep.subr.bf16.mxu0 %v1558_v14  ;;  %v723_v14 = vld [vmem:[%s4824_s17 + $0xaa0] sm:$0xff]  ;;  %v1063_v15 = vunpack.c.l.s8.bf16 %v467_v22  ;;  %v1065_v23 = vunpack.c.h.s8.bf16 %v467_v22 }
 0x1cb   : > { %v1575_v16 = vunpack.c.l.s8.bf16 %v723_v14  ;;  %v1577_v24 = vunpack.c.h.s8.bf16 %v723_v14 }
 0x1cc   : > { %2579 = vmatpush1.bf16.msra.mxu1 %v1045_v17  ;;  %v1066_v17 = vunpack.c.h.s8.bf16 %v468_v61 }
 0x1cd   : > { %3235 = vmatpush1.bf16.msra.mxu0 %v1557_v18  ;;  %2580 = vmatprep.subr.bf16.mxu1 %v1048_v19  ;;  %v1578_v18 = vunpack.c.h.s8.bf16 %v724_v9  ;;  %v470_v19 = vld [vmem:[%s4824_s17 + $0x2b8] sm:$0xff] }
 0x1ce   : > { %3236 = vmatprep.subr.bf16.mxu0 %v1560_v20  ;;  %v726_v20 = vld [vmem:[%s4824_s17 + $0xab8] sm:$0xff] }
 0x1d0   : > { %2581 = vmatpush1.bf16.msra.mxu1 %v1047_v25  ;;  %v1068_v25 = vunpack.c.l.s8.bf16 %v470_v19 }
 0x1d1   : > { %3237 = vmatpush1.bf16.msra.mxu0 %v1559_v26  ;;  %2582 = vmatprep.subr.bf16.mxu1 %v1050_v27  ;;  %v1580_v26 = vunpack.c.l.s8.bf16 %v726_v20  ;;  %v469_v27 = vld [vmem:[%s4824_s17 + $0x2b0] sm:$0xff] }
 0x1d2   : > { %3238 = vmatprep.subr.bf16.mxu0 %v1562_v28  ;;  %v725_v28 = vld [vmem:[%s4824_s17 + $0xab0] sm:$0xff]  ;;  %v1067_v31 = vunpack.c.l.s8.bf16 %v469_v27  ;;  %v1069_v33 = vunpack.c.h.s8.bf16 %v469_v27 }
 0x1d3   : > { %v1579_v29 = vunpack.c.l.s8.bf16 %v725_v28  ;;  %v1581_v34 = vunpack.c.h.s8.bf16 %v725_v28 }
 0x1d4   : > { %2583 = vmatpush1.bf16.msra.mxu1 %v1049_v44  ;;  %v1070_v44 = vunpack.c.h.s8.bf16 %v470_v19 }
 0x1d5   : > { %3239 = vmatpush1.bf16.msra.mxu0 %v1561_v30  ;;  %2584 = vmatprep.subr.bf16.mxu1 %v1052_v45  ;;  %v1582_v30 = vunpack.c.h.s8.bf16 %v726_v20  ;;  %v472_v45 = vld [vmem:[%s4824_s17 + $0x2c8] sm:$0xff] }
 0x1d6   : > { %3240 = vmatprep.subr.bf16.mxu0 %v1564_v32  ;;  %v728_v32 = vld [vmem:[%s4824_s17 + $0xac8] sm:$0xff] }
 0x1d8   : > { %2585 = vmatpush1.bf16.msra.mxu1 %v1051_v53  ;;  %v1072_v53 = vunpack.c.l.s8.bf16 %v472_v45 }
 0x1d9   : > { %3241 = vmatpush1.bf16.msra.mxu0 %v1563_v59  ;;  %2586 = vmatprep.subr.bf16.mxu1 %v1054_v35  ;;  %v1584_v59 = vunpack.c.l.s8.bf16 %v728_v32  ;;  %v471_v35 = vld [vmem:[%s4824_s17 + $0x2c0] sm:$0xff] }
 0x1da   : > { %3242 = vmatprep.subr.bf16.mxu0 %v1566_v36  ;;  %v727_v36 = vld [vmem:[%s4824_s17 + $0xac0] sm:$0xff]  ;;  %v1071_v37 = vunpack.c.l.s8.bf16 %v471_v35  ;;  %v1073_v46 = vunpack.c.h.s8.bf16 %v471_v35 }
 0x1db   : > { %v1583_v39 = vunpack.c.l.s8.bf16 %v727_v36  ;;  %v1585_v47 = vunpack.c.h.s8.bf16 %v727_v36 }
 0x1dc   : > { %2587 = vmatpush1.bf16.msra.mxu1 %v1053_v40  ;;  %v1074_v40 = vunpack.c.h.s8.bf16 %v472_v45 }
 0x1dd   : > { %3243 = vmatpush1.bf16.msra.mxu0 %v1565_v41  ;;  %2597 = vmatprep.subr.bf16.mxu1 %v1056_v42  ;;  %v1586_v41 = vunpack.c.h.s8.bf16 %v728_v32  ;;  %v474_v42 = vld [vmem:[%s4824_s17 + $0x2d8] sm:$0xff] }
 0x1de   : > { %3253 = vmatprep.subr.bf16.mxu0 %v1568_v43  ;;  %v730_v43 = vld [vmem:[%s4824_s17 + $0xad8] sm:$0xff] }
 0x1df   : > { %2589 = vmatmul.mubr.bf16.vlgmr.msra.gmra.mrb[0].mxu1 %v5142_v60 }
 0x1e0   : > { %3245 = vmatmul.mubr.bf16.vlgmr.msra.gmra.mrb[0].mxu0 %v5146_v54  ;;  %2598 = vmatpush1.bf16.msra.mxu1 %v1055_v55  ;;  %v1076_v55 = vunpack.c.l.s8.bf16 %v474_v42 }
 0x1e1   : > { %3254 = vmatpush1.bf16.msra.mxu0 %v1567_v56  ;;  %2599 = vmatprep.subr.bf16.mxu1 %v1058_v57  ;;  %v1588_v56 = vunpack.c.l.s8.bf16 %v730_v43  ;;  %v473_v57 = vld [vmem:[%s4824_s17 + $0x2d0] sm:$0xff] }
 0x1e2   : > { %3255 = vmatprep.subr.bf16.mxu0 %v1570_v58  ;;  %2629 = vmatprep.mubr.bf16.mxu1 %v2032_v63  ;;  %v729_v58 = vld [vmem:[%s4824_s17 + $0xad0] sm:$0xff]  ;;  %v1075_v1 = vunpack.c.l.s8.bf16 %v473_v57  ;;  %v1078_v63 = vunpack.c.h.s8.bf16 %v474_v42 }
 0x1e3   : > { %3285 = vmatprep.mubr.bf16.mxu0 %v2228_v3  ;;  %v1587_v2 = vunpack.c.l.s8.bf16 %v729_v58  ;;  %v1590_v3 = vunpack.c.h.s8.bf16 %v730_v43 }
 0x1e4   : > { %2600 = vmatpush1.bf16.msra.mxu1 %v1057_v0  ;;  %v476_v0 = vld [vmem:[%s4824_s17 + $0x2e8] sm:$0xff] }
 0x1e5   : > { %3256 = vmatpush1.bf16.msra.mxu0 %v1569_v51  ;;  %2601 = vmatprep.subr.bf16.mxu1 %v1060_v4  ;;  %v732_v51 = vld [vmem:[%s4824_s17 + $0xae8] sm:$0xff]  ;;  %v1077_v4 = vunpack.c.h.s8.bf16 %v473_v57  ;;  %v1080_v52 = vunpack.c.l.s8.bf16 %v476_v0  ;;  %v1082_v61 = vunpack.c.h.s8.bf16 %v476_v0 }
 0x1e6   : > { %3257 = vmatprep.subr.bf16.mxu0 %v1572_v5  ;;  %v1589_v5 = vunpack.c.h.s8.bf16 %v729_v58  ;;  %v1592_v6 = vunpack.c.l.s8.bf16 %v732_v51  ;;  %v1594_v9 = vunpack.c.h.s8.bf16 %v732_v51 }
 0x1e8   : > { %2602 = vmatpush1.bf16.msra.mxu1 %v1059_v13  ;;  %v475_v13 = vld [vmem:[%s4824_s17 + $0x2e0] sm:$0xff] }
 0x1e9   : > { %3258 = vmatpush1.bf16.msra.mxu0 %v1571_v21  ;;  %2603 = vmatprep.subr.bf16.mxu1 %v1062_v7  ;;  %v731_v21 = vld [vmem:[%s4824_s17 + $0xae0] sm:$0xff]  ;;  %v1079_v7 = vunpack.c.l.s8.bf16 %v475_v13 }
 0x1ea   : > { %3259 = vmatprep.subr.bf16.mxu0 %v1574_v8  ;;  %v1591_v8 = vunpack.c.l.s8.bf16 %v731_v21 }
 0x1ec   : > { %2604 = vmatpush1.bf16.msra.mxu1 %v1061_v62  ;;  %v478_v62 = vld [vmem:[%s4824_s17 + $0x2f8] sm:$0xff] }
 0x1ed   : > { %3260 = vmatpush1.bf16.msra.mxu0 %v1573_v10  ;;  %2605 = vmatprep.subr.bf16.mxu1 %v1064_v11  ;;  %v734_v10 = vld [vmem:[%s4824_s17 + $0xaf8] sm:$0xff]  ;;  %v1081_v11 = vunpack.c.h.s8.bf16 %v475_v13  ;;  %v1084_v22 = vunpack.c.l.s8.bf16 %v478_v62 }
 0x1ee   : > { %3261 = vmatprep.subr.bf16.mxu0 %v1576_v12  ;;  %v1593_v12 = vunpack.c.h.s8.bf16 %v731_v21  ;;  %v1596_v14 = vunpack.c.l.s8.bf16 %v734_v10 }
 0x1f0   : > { %2606 = vmatpush1.bf16.msra.mxu1 %v1063_v15  ;;  %v477_v15 = vld [vmem:[%s4824_s17 + $0x2f0] sm:$0xff] }
 0x1f1   : > { %3262 = vmatpush1.bf16.msra.mxu0 %v1575_v16  ;;  %2607 = vmatprep.subr.bf16.mxu1 %v1066_v17  ;;  %v733_v16 = vld [vmem:[%s4824_s17 + $0xaf0] sm:$0xff]  ;;  %v1985_v17 = vcombine.high %v5075_v48, %v5075_v48  ;;  %v1083_v19 = vunpack.c.l.s8.bf16 %v477_v15 }
 0x1f2   : > { %3263 = vmatprep.subr.bf16.mxu0 %v1578_v18  ;;  %v2181_v18 = vcombine.high %v5078_v49, %v5078_v49  ;;  %v1595_v20 = vunpack.c.l.s8.bf16 %v733_v16  ;;  %v1085_v49 = vunpack.c.h.s8.bf16 %v477_v15  ;;  %v1597_v28 = vunpack.c.h.s8.bf16 %v733_v16 }
 0x1f3   : > { %v5189_v27 = vrot.slane %v1985_v17, %v4886_v50  ;;  %v488_v17 = vld [vmem:[%s4824_s17 + $0x348] sm:$0xff] }
 0x1f4   : > { %2608 = vmatpush1.bf16.msra.mxu1 %v1065_v23  ;;  %v1086_v23 = vunpack.c.h.s8.bf16 %v478_v62  ;;  %v5192_v48 = vrot.slane %v2181_v18, %v4886_v50  ;;  %v744_v18 = vld [vmem:[%s4824_s17 + $0xb48] sm:$0xff] }
 0x1f5   : > { %3264 = vmatpush1.bf16.msra.mxu0 %v1577_v24  ;;  %2609 = vmatprep.subr.bf16.mxu1 %v1068_v25  ;;  %v1598_v24 = vunpack.c.h.s8.bf16 %v734_v10  ;;  %v480_v25 = vld [vmem:[%s4824_s17 + $0x308] sm:$0xff]  ;;  %v2001_v45 = vcombine.high %v5189_v27, %v5189_v27 }
 0x1f6   : > { %3265 = vmatprep.subr.bf16.mxu0 %v1580_v26  ;;  %v736_v26 = vld [vmem:[%s4824_s17 + $0xb08] sm:$0xff]  ;;  %v2197_v32 = vcombine.high %v5192_v48, %v5192_v48  ;;  %v1090_v35 = vunpack.c.h.s8.bf16 %v480_v25 }
 0x1f7   : > { %v1602_v36 = vunpack.c.h.s8.bf16 %v736_v26 }
 0x1f8   : > { %2610 = vmatpush1.bf16.msra.mxu1 %v1067_v31  ;;  %v1088_v31 = vunpack.c.l.s8.bf16 %v480_v25  ;;  %v487_v25 = vld [vmem:[%s4824_s17 + $0x340] sm:$0xff] }
 0x1f9   : > { %3266 = vmatpush1.bf16.msra.mxu0 %v1579_v29  ;;  %2611 = vmatprep.subr.bf16.mxu1 %v1070_v44  ;;  %v1600_v29 = vunpack.c.l.s8.bf16 %v736_v26  ;;  %v479_v44 = vld [vmem:[%s4824_s17 + $0x300] sm:$0xff] }
 0x1fa   : > { %3267 = vmatprep.subr.bf16.mxu0 %v1582_v30  ;;  %v735_v30 = vld [vmem:[%s4824_s17 + $0xb00] sm:$0xff] }
 0x1fb   : > { %v743_v26 = vld [vmem:[%s4824_s17 + $0xb40] sm:$0xff] }
 0x1fc   : > { %2612 = vmatpush1.bf16.msra.mxu1 %v1069_v33  ;;  %v2030_v33 = vcombine.high %v5142_v60, %v5142_v60  ;;  %v5210_v60 = vrot.slane %v2197_v32, %v4886_v50  ;;  %v1617_v32 = vunpack.c.h.s8.bf16 %v743_v26 }
 0x1fd   : > { %3268 = vmatpush1.bf16.msra.mxu0 %v1581_v34  ;;  %2613 = vmatprep.subr.bf16.mxu1 %v1072_v53  ;;  %v2226_v34 = vcombine.high %v5146_v54, %v5146_v54  ;;  %v1087_v53 = vunpack.c.l.s8.bf16 %v479_v44  ;;  %v1089_v54 = vunpack.c.h.s8.bf16 %v479_v44  ;;  %v490_v44 = vld [vmem:[%s4824_s17 + $0x358] sm:$0xff] }
 0x1fe   : > { %3269 = vmatprep.subr.bf16.mxu0 %v1584_v59  ;;  %v1599_v59 = vunpack.c.l.s8.bf16 %v735_v30 }
 0x200   : > { %2614 = vmatpush1.bf16.msra.mxu1 %v1071_v37  ;;  %v482_v37 = vld [vmem:[%s4824_s17 + $0x318] sm:$0xff] }
 0x201   : > { %3270 = vmatpush1.bf16.msra.mxu0 %v1583_v39  ;;  %2615 = vmatprep.subr.bf16.mxu1 %v1074_v40  ;;  %v738_v39 = vld [vmem:[%s4824_s17 + $0xb18] sm:$0xff]  ;;  %v5207_v40 = vrot.slane %v2001_v45, %v4886_v50  ;;  %v1092_v42 = vunpack.c.l.s8.bf16 %v482_v37  ;;  %v1094_v57 = vunpack.c.h.s8.bf16 %v482_v37  ;;  %v1105_v45 = vunpack.c.h.s8.bf16 %v487_v25 }
 0x202   : > { %3271 = vmatprep.subr.bf16.mxu0 %v1586_v41  ;;  %v1601_v41 = vunpack.c.h.s8.bf16 %v735_v30  ;;  %v1604_v43 = vunpack.c.l.s8.bf16 %v738_v39  ;;  %v1606_v58 = vunpack.c.h.s8.bf16 %v738_v39  ;;  %v746_v30 = vld [vmem:[%s4824_s17 + $0xb58] sm:$0xff]  ;;  %v1110_v37 = vunpack.c.h.s8.bf16 %v490_v44 }
 0x203   : > { %v1622_v39 = vunpack.c.h.s8.bf16 %v746_v30 }
 0x204   : > { %2616 = vmatpush1.bf16.msra.mxu1 %v1073_v46  ;;  %v481_v46 = vld [vmem:[%s4824_s17 + $0x310] sm:$0xff] }
 0x205   : > { %3272 = vmatpush1.bf16.msra.mxu0 %v1585_v47  ;;  %2617 = vmatprep.subr.bf16.mxu1 %v1076_v55  ;;  %v737_v47 = vld [vmem:[%s4824_s17 + $0xb10] sm:$0xff]  ;;  %v1091_v55 = vunpack.c.l.s8.bf16 %v481_v46 }
 0x206   : > { %3273 = vmatprep.subr.bf16.mxu0 %v1588_v56  ;;  %v1603_v56 = vunpack.c.l.s8.bf16 %v737_v47 }
 0x208   : > { %2618 = vmatpush1.bf16.msra.mxu1 %v1075_v1  ;;  %v484_v1 = vld [vmem:[%s4824_s17 + $0x328] sm:$0xff] }
 0x209   : > { %3274 = vmatpush1.bf16.msra.mxu0 %v1587_v2  ;;  %2619 = vmatprep.subr.bf16.mxu1 %v1078_v63  ;;  %v740_v2 = vld [vmem:[%s4824_s17 + $0xb28] sm:$0xff]  ;;  %v1093_v63 = vunpack.c.h.s8.bf16 %v481_v46  ;;  %v1096_v0 = vunpack.c.l.s8.bf16 %v484_v1  ;;  %v1098_v13 = vunpack.c.h.s8.bf16 %v484_v1 }
 0x20a   : > { %3275 = vmatprep.subr.bf16.mxu0 %v1590_v3  ;;  %v1605_v3 = vunpack.c.h.s8.bf16 %v737_v47  ;;  %v1608_v51 = vunpack.c.l.s8.bf16 %v740_v2  ;;  %v1610_v21 = vunpack.c.h.s8.bf16 %v740_v2 }
 0x20c   : > { %2620 = vmatpush1.bf16.msra.mxu1 %v1077_v4  ;;  %v483_v4 = vld [vmem:[%s4824_s17 + $0x320] sm:$0xff] }
 0x20d   : > { %3276 = vmatpush1.bf16.msra.mxu0 %v1589_v5  ;;  %2621 = vmatprep.subr.bf16.mxu1 %v1080_v52  ;;  %v739_v5 = vld [vmem:[%s4824_s17 + $0xb20] sm:$0xff]  ;;  %v1095_v52 = vunpack.c.l.s8.bf16 %v483_v4 }
 0x20e   : > { %3277 = vmatprep.subr.bf16.mxu0 %v1592_v6  ;;  %v1607_v6 = vunpack.c.l.s8.bf16 %v739_v5 }
 0x210   : > { %2622 = vmatpush1.bf16.msra.mxu1 %v1079_v7  ;;  %v486_v7 = vld [vmem:[%s4824_s17 + $0x338] sm:$0xff] }
 0x211   : > { %3278 = vmatpush1.bf16.msra.mxu0 %v1591_v8  ;;  %2623 = vmatprep.subr.bf16.mxu1 %v1082_v61  ;;  %v742_v8 = vld [vmem:[%s4824_s17 + $0xb38] sm:$0xff]  ;;  %v1097_v61 = vunpack.c.h.s8.bf16 %v483_v4  ;;  %v1100_v62 = vunpack.c.l.s8.bf16 %v486_v7  ;;  %v1102_v15 = vunpack.c.h.s8.bf16 %v486_v7 }
 0x212   : > { %3279 = vmatprep.subr.bf16.mxu0 %v1594_v9  ;;  %v1609_v9 = vunpack.c.h.s8.bf16 %v739_v5  ;;  %v1612_v10 = vunpack.c.l.s8.bf16 %v742_v8  ;;  %v1614_v16 = vunpack.c.h.s8.bf16 %v742_v8 }
 0x214   : > { %2624 = vmatpush1.bf16.msra.mxu1 %v1081_v11  ;;  %v485_v11 = vld [vmem:[%s4824_s17 + $0x330] sm:$0xff] }
 0x215   : > { %3280 = vmatpush1.bf16.msra.mxu0 %v1593_v12  ;;  %2625 = vmatprep.subr.bf16.mxu1 %v1084_v22  ;;  %v741_v12 = vld [vmem:[%s4824_s17 + $0xb30] sm:$0xff]  ;;  %v1099_v22 = vunpack.c.l.s8.bf16 %v485_v11 }
 0x216   : > { %3281 = vmatprep.subr.bf16.mxu0 %v1596_v14  ;;  %v1611_v14 = vunpack.c.l.s8.bf16 %v741_v12 }
 0x218   : > { %2626 = vmatpush1.bf16.msra.mxu1 %v1083_v19  ;;  %v1101_v19 = vunpack.c.h.s8.bf16 %v485_v11 }
 0x219   : > { %3282 = vmatpush1.bf16.msra.mxu0 %v1595_v20  ;;  %2627 = vmatprep.subr.bf16.mxu1 %v1086_v23  ;;  %v1613_v20 = vunpack.c.h.s8.bf16 %v741_v12  ;;  %v1104_v23 = vunpack.c.l.s8.bf16 %v488_v17 }
 0x21a   : > { %3283 = vmatprep.subr.bf16.mxu0 %v1598_v24  ;;  %v1616_v24 = vunpack.c.l.s8.bf16 %v744_v18 }
 0x21c   : > { %2628 = vmatpush1.bf16.msra.mxu1 %v1085_v49  ;;  %v1103_v49 = vunpack.c.l.s8.bf16 %v487_v25  ;;  %v2229_v25 = vcombine.high %v5210_v60, %v5210_v60 }
 0x21d   : > { %3284 = vmatpush1.bf16.msra.mxu0 %v1597_v28  ;;  %2638 = vmatprep.subr.bf16.mxu1 %v1088_v31  ;;  %v1615_v28 = vunpack.c.l.s8.bf16 %v743_v26  ;;  %v1106_v31 = vunpack.c.h.s8.bf16 %v488_v17 }
 0x21e   : > { %3294 = vmatprep.subr.bf16.mxu0 %v1600_v29  ;;  %v1618_v29 = vunpack.c.h.s8.bf16 %v744_v18 }
 0x21f   : > { %2630 = vmatmul.mubr.bf16.vlgmr.msra.gmra.mrb[0].mxu1 %v2030_v33  ;;  %v1108_v33 = vunpack.c.l.s8.bf16 %v490_v44 }
 0x220   : > { %3286 = vmatmul.mubr.bf16.vlgmr.msra.gmra.mrb[0].mxu0 %v2226_v34  ;;  %2639 = vmatpush1.bf16.msra.mxu1 %v1087_v53  ;;  %v1620_v34 = vunpack.c.l.s8.bf16 %v746_v30  ;;  %v489_v53 = vld [vmem:[%s4824_s17 + $0x350] sm:$0xff] }
 0x221   : > { %3295 = vmatpush1.bf16.msra.mxu0 %v1599_v59  ;;  %2640 = vmatprep.subr.bf16.mxu1 %v1090_v35  ;;  %v745_v59 = vld [vmem:[%s4824_s17 + $0xb50] sm:$0xff]  ;;  %v1107_v35 = vunpack.c.l.s8.bf16 %v489_v53 }
 0x222   : > { %3296 = vmatprep.subr.bf16.mxu0 %v1602_v36  ;;  %2670 = vmatprep.mubr.bf16.mxu1 %v5207_v40  ;;  %v1619_v36 = vunpack.c.l.s8.bf16 %v745_v59 }
 0x223   : > { %3326 = vmatprep.mubr.bf16.mxu0 %v5210_v60 }
 0x224   : > { %2641 = vmatpush1.bf16.msra.mxu1 %v1089_v54  ;;  %v492_v54 = vld [vmem:[%s4824_s17 + $0x368] sm:$0xff] }
 0x225   : > { %3297 = vmatpush1.bf16.msra.mxu0 %v1601_v41  ;;  %2642 = vmatprep.subr.bf16.mxu1 %v1092_v42  ;;  %v748_v41 = vld [vmem:[%s4824_s17 + $0xb68] sm:$0xff]  ;;  %v1109_v42 = vunpack.c.h.s8.bf16 %v489_v53  ;;  %v1112_v46 = vunpack.c.l.s8.bf16 %v492_v54  ;;  %v1114_v1 = vunpack.c.h.s8.bf16 %v492_v54 }
 0x226   : > { %3298 = vmatprep.subr.bf16.mxu0 %v1604_v43  ;;  %v1621_v43 = vunpack.c.h.s8.bf16 %v745_v59  ;;  %v1624_v47 = vunpack.c.l.s8.bf16 %v748_v41  ;;  %v1626_v2 = vunpack.c.h.s8.bf16 %v748_v41 }
 0x228   : > { %2643 = vmatpush1.bf16.msra.mxu1 %v1091_v55  ;;  %v491_v55 = vld [vmem:[%s4824_s17 + $0x360] sm:$0xff] }
 0x229   : > { %3299 = vmatpush1.bf16.msra.mxu0 %v1603_v56  ;;  %2644 = vmatprep.subr.bf16.mxu1 %v1094_v57  ;;  %v747_v56 = vld [vmem:[%s4824_s17 + $0xb60] sm:$0xff]  ;;  %v1111_v57 = vunpack.c.l.s8.bf16 %v491_v55 }
 0x22a   : > { %3300 = vmatprep.subr.bf16.mxu0 %v1606_v58  ;;  %v1623_v58 = vunpack.c.l.s8.bf16 %v747_v56 }
 0x22c   : > { %2645 = vmatpush1.bf16.msra.mxu1 %v1093_v63  ;;  %v494_v63 = vld [vmem:[%s4824_s17 + $0x378] sm:$0xff] }
 0x22d   : > { %3301 = vmatpush1.bf16.msra.mxu0 %v1605_v3  ;;  %2646 = vmatprep.subr.bf16.mxu1 %v1096_v0  ;;  %v750_v3 = vld [vmem:[%s4824_s17 + $0xb78] sm:$0xff]  ;;  %v1113_v0 = vunpack.c.h.s8.bf16 %v491_v55  ;;  %v1116_v4 = vunpack.c.l.s8.bf16 %v494_v63  ;;  %v1118_v7 = vunpack.c.h.s8.bf16 %v494_v63 }
 0x22e   : > { %3302 = vmatprep.subr.bf16.mxu0 %v1608_v51  ;;  %v1625_v51 = vunpack.c.h.s8.bf16 %v747_v56  ;;  %v1628_v5 = vunpack.c.l.s8.bf16 %v750_v3  ;;  %v1630_v8 = vunpack.c.h.s8.bf16 %v750_v3 }
 0x230   : > { %2647 = vmatpush1.bf16.msra.mxu1 %v1095_v52  ;;  %v493_v52 = vld [vmem:[%s4824_s17 + $0x370] sm:$0xff] }
 0x231   : > { %3303 = vmatpush1.bf16.msra.mxu0 %v1607_v6  ;;  %2648 = vmatprep.subr.bf16.mxu1 %v1098_v13  ;;  %v749_v6 = vld [vmem:[%s4824_s17 + $0xb70] sm:$0xff]  ;;  %v1115_v13 = vunpack.c.l.s8.bf16 %v493_v52 }
 0x232   : > { %3304 = vmatprep.subr.bf16.mxu0 %v1610_v21  ;;  %v1627_v21 = vunpack.c.l.s8.bf16 %v749_v6 }
 0x234   : > { %2649 = vmatpush1.bf16.msra.mxu1 %v1097_v61  ;;  %v496_v61 = vld [vmem:[%s4824_s17 + $0x388] sm:$0xff] }
 0x235   : > { %3305 = vmatpush1.bf16.msra.mxu0 %v1609_v9  ;;  %2650 = vmatprep.subr.bf16.mxu1 %v1100_v62  ;;  %v752_v9 = vld [vmem:[%s4824_s17 + $0xb88] sm:$0xff]  ;;  %v1117_v62 = vunpack.c.h.s8.bf16 %v493_v52  ;;  %v1120_v11 = vunpack.c.l.s8.bf16 %v496_v61 }
 0x236   : > { %3306 = vmatprep.subr.bf16.mxu0 %v1612_v10  ;;  %v1629_v10 = vunpack.c.h.s8.bf16 %v749_v6  ;;  %v1632_v12 = vunpack.c.l.s8.bf16 %v752_v9 }
 0x238   : > { %2651 = vmatpush1.bf16.msra.mxu1 %v1099_v22  ;;  %v495_v22 = vld [vmem:[%s4824_s17 + $0x380] sm:$0xff] }
 0x239   : > { %3307 = vmatpush1.bf16.msra.mxu0 %v1611_v14  ;;  %2652 = vmatprep.subr.bf16.mxu1 %v1102_v15  ;;  %v751_v14 = vld [vmem:[%s4824_s17 + $0xb80] sm:$0xff]  ;;  %v5246_v15 = vrot.slane %v5189_v27, %v4886_v50  ;;  %v1119_v17 = vunpack.c.l.s8.bf16 %v495_v22  ;;  %v2033_v27 = vcombine.high %v5207_v40, %v5207_v40 }
 0x23a   : > { %3308 = vmatprep.subr.bf16.mxu0 %v1614_v16  ;;  %v5250_v16 = vrot.slane %v5192_v48, %v4886_v50  ;;  %v1631_v18 = vunpack.c.l.s8.bf16 %v751_v14  ;;  %v1121_v48 = vunpack.c.h.s8.bf16 %v495_v22  ;;  %v1633_v26 = vunpack.c.h.s8.bf16 %v751_v14 }
 0x23c   : > { %2653 = vmatpush1.bf16.msra.mxu1 %v1101_v19  ;;  %v1122_v19 = vunpack.c.h.s8.bf16 %v496_v61 }
 0x23d   : > { %3309 = vmatpush1.bf16.msra.mxu0 %v1613_v20  ;;  %2654 = vmatprep.subr.bf16.mxu1 %v1104_v23  ;;  %v1634_v20 = vunpack.c.h.s8.bf16 %v752_v9  ;;  %v498_v23 = vld [vmem:[%s4824_s17 + $0x398] sm:$0xff] }
 0x23e   : > { %3310 = vmatprep.subr.bf16.mxu0 %v1616_v24  ;;  %v754_v24 = vld [vmem:[%s4824_s17 + $0xb98] sm:$0xff]  ;;  %v1126_v44 = vunpack.c.h.s8.bf16 %v498_v23 }
 0x23f   : > { %v1638_v30 = vunpack.c.h.s8.bf16 %v754_v24 }
 0x240   : > { %2655 = vmatpush1.bf16.msra.mxu1 %v1103_v49  ;;  %v1124_v49 = vunpack.c.l.s8.bf16 %v498_v23 }
 0x241   : > { %3311 = vmatpush1.bf16.msra.mxu0 %v1615_v28  ;;  %2656 = vmatprep.subr.bf16.mxu1 %v1106_v31  ;;  %v1636_v28 = vunpack.c.l.s8.bf16 %v754_v24  ;;  %v497_v31 = vld [vmem:[%s4824_s17 + $0x390] sm:$0xff] }
 0x242   : > { %3312 = vmatprep.subr.bf16.mxu0 %v1618_v29  ;;  %v753_v29 = vld [vmem:[%s4824_s17 + $0xb90] sm:$0xff]  ;;  %v1123_v40 = vunpack.c.l.s8.bf16 %v497_v31 }
 0x243   : > { %v1635_v60 = vunpack.c.l.s8.bf16 %v753_v29 }
 0x244   : > { %2657 = vmatpush1.bf16.msra.mxu1 %v1105_v45  ;;  %v500_v45 = vld [vmem:[%s4824_s17 + $0x3a8] sm:$0xff] }
 0x245   : > { %3313 = vmatpush1.bf16.msra.mxu0 %v1617_v32  ;;  %2658 = vmatprep.subr.bf16.mxu1 %v1108_v33  ;;  %v756_v32 = vld [vmem:[%s4824_s17 + $0xba8] sm:$0xff]  ;;  %v1125_v33 = vunpack.c.h.s8.bf16 %v497_v31  ;;  %v1128_v53 = vunpack.c.l.s8.bf16 %v500_v45  ;;  %v1130_v54 = vunpack.c.h.s8.bf16 %v500_v45  ;;  %v507_v31 = vld [vmem:[%s4824_s17 + $0x3e0] sm:$0xff]  ;;  %v510_v45 = vld [vmem:[%s4824_s17 + $0x3f8] sm:$0xff] }
 0x246   : > { %3314 = vmatprep.subr.bf16.mxu0 %v1620_v34  ;;  %v1637_v34 = vunpack.c.h.s8.bf16 %v753_v29  ;;  %v1640_v59 = vunpack.c.l.s8.bf16 %v756_v32  ;;  %v1642_v41 = vunpack.c.h.s8.bf16 %v756_v32  ;;  %v763_v29 = vld [vmem:[%s4824_s17 + $0xbe0] sm:$0xff]  ;;  %v766_v32 = vld [vmem:[%s4824_s17 + $0xbf8] sm:$0xff] }
 0x248   : > { %2659 = vmatpush1.bf16.msra.mxu1 %v1107_v35  ;;  %v499_v35 = vld [vmem:[%s4824_s17 + $0x3a0] sm:$0xff] }
 0x249   : > { %3315 = vmatpush1.bf16.msra.mxu0 %v1619_v36  ;;  %2660 = vmatprep.subr.bf16.mxu1 %v1110_v37  ;;  %v755_v36 = vld [vmem:[%s4824_s17 + $0xba0] sm:$0xff]  ;;  %v1127_v37 = vunpack.c.l.s8.bf16 %v499_v35 }
 0x24a   : > { %3316 = vmatprep.subr.bf16.mxu0 %v1622_v39  ;;  %v1639_v39 = vunpack.c.l.s8.bf16 %v755_v36 }
 0x24c   : > { %2661 = vmatpush1.bf16.msra.mxu1 %v1109_v42  ;;  %v502_v42 = vld [vmem:[%s4824_s17 + $0x3b8] sm:$0xff] }
 0x24d   : > { %3317 = vmatpush1.bf16.msra.mxu0 %v1621_v43  ;;  %2662 = vmatprep.subr.bf16.mxu1 %v1112_v46  ;;  %v758_v43 = vld [vmem:[%s4824_s17 + $0xbb8] sm:$0xff]  ;;  %v1129_v46 = vunpack.c.h.s8.bf16 %v499_v35  ;;  %v1132_v55 = vunpack.c.l.s8.bf16 %v502_v42  ;;  %v1134_v63 = vunpack.c.h.s8.bf16 %v502_v42  ;;  %v509_v35 = vld [vmem:[%s4824_s17 + $0x3f0] sm:$0xff]  ;;  %v1150_v42 = vunpack.c.h.s8.bf16 %v510_v45 }
 0x24e   : > { %3318 = vmatprep.subr.bf16.mxu0 %v1624_v47  ;;  %v1641_v47 = vunpack.c.h.s8.bf16 %v755_v36  ;;  %v1644_v56 = vunpack.c.l.s8.bf16 %v758_v43  ;;  %v1646_v3 = vunpack.c.h.s8.bf16 %v758_v43  ;;  %v765_v36 = vld [vmem:[%s4824_s17 + $0xbf0] sm:$0xff]  ;;  %v1662_v43 = vunpack.c.h.s8.bf16 %v766_v32 }
 0x250   : > { %2663 = vmatpush1.bf16.msra.mxu1 %v1111_v57  ;;  %v501_v57 = vld [vmem:[%s4824_s17 + $0x3b0] sm:$0xff] }
 0x251   : > { %3319 = vmatpush1.bf16.msra.mxu0 %v1623_v58  ;;  %2664 = vmatprep.subr.bf16.mxu1 %v1114_v1  ;;  %v757_v58 = vld [vmem:[%s4824_s17 + $0xbb0] sm:$0xff]  ;;  %v1131_v1 = vunpack.c.l.s8.bf16 %v501_v57 }
 0x252   : > { %3320 = vmatprep.subr.bf16.mxu0 %v1626_v2  ;;  %v1643_v2 = vunpack.c.l.s8.bf16 %v757_v58 }
 0x254   : > { %2665 = vmatpush1.bf16.msra.mxu1 %v1113_v0  ;;  %v504_v0 = vld [vmem:[%s4824_s17 + $0x3c8] sm:$0xff] }
 0x255   : > { %3321 = vmatpush1.bf16.msra.mxu0 %v1625_v51  ;;  %2666 = vmatprep.subr.bf16.mxu1 %v1116_v4  ;;  %v760_v51 = vld [vmem:[%s4824_s17 + $0xbc8] sm:$0xff]  ;;  %v1133_v4 = vunpack.c.h.s8.bf16 %v501_v57  ;;  %v1136_v52 = vunpack.c.l.s8.bf16 %v504_v0  ;;  %v1138_v61 = vunpack.c.h.s8.bf16 %v504_v0  ;;  %v1149_v57 = vunpack.c.h.s8.bf16 %v509_v35 }
 0x256   : > { %3322 = vmatprep.subr.bf16.mxu0 %v1628_v5  ;;  %v1645_v5 = vunpack.c.h.s8.bf16 %v757_v58  ;;  %v1648_v6 = vunpack.c.l.s8.bf16 %v760_v51  ;;  %v1650_v9 = vunpack.c.h.s8.bf16 %v760_v51  ;;  %v1661_v58 = vunpack.c.h.s8.bf16 %v765_v36 }
 0x258   : > { %2667 = vmatpush1.bf16.msra.mxu1 %v1115_v13  ;;  %v503_v13 = vld [vmem:[%s4824_s17 + $0x3c0] sm:$0xff] }
 0x259   : > { %3323 = vmatpush1.bf16.msra.mxu0 %v1627_v21  ;;  %2668 = vmatprep.subr.bf16.mxu1 %v1118_v7  ;;  %v759_v21 = vld [vmem:[%s4824_s17 + $0xbc0] sm:$0xff]  ;;  %v1135_v7 = vunpack.c.l.s8.bf16 %v503_v13 }
 0x25a   : > { %3324 = vmatprep.subr.bf16.mxu0 %v1630_v8  ;;  %v1647_v8 = vunpack.c.l.s8.bf16 %v759_v21 }
 0x25c   : > { %2669 = vmatpush1.bf16.msra.mxu1 %v1117_v62  ;;  %v506_v62 = vld [vmem:[%s4824_s17 + $0x3d8] sm:$0xff] }
 0x25d   : > { %3325 = vmatpush1.bf16.msra.mxu0 %v1629_v10  ;;  %2679 = vmatprep.subr.bf16.mxu1 %v1120_v11  ;;  %v762_v10 = vld [vmem:[%s4824_s17 + $0xbd8] sm:$0xff]  ;;  %v1137_v11 = vunpack.c.h.s8.bf16 %v503_v13  ;;  %v1140_v22 = vunpack.c.l.s8.bf16 %v506_v62  ;;  %v1142_v23 = vunpack.c.h.s8.bf16 %v506_v62 }
 0x25e   : > { %3335 = vmatprep.subr.bf16.mxu0 %v1632_v12  ;;  %v1649_v12 = vunpack.c.h.s8.bf16 %v759_v21  ;;  %v1652_v14 = vunpack.c.l.s8.bf16 %v762_v10  ;;  %v1654_v24 = vunpack.c.h.s8.bf16 %v762_v10 }
 0x25f   : > { %2671 = vmatmul.mubr.bf16.vlgmr.msra.gmra.mrb[0].mxu1 %v5246_v15 }
 0x260   : > { %3327 = vmatmul.mubr.bf16.vlgmr.msra.gmra.mrb[0].mxu0 %v5250_v16  ;;  %2680 = vmatpush1.bf16.msra.mxu1 %v1119_v17  ;;  %v505_v17 = vld [vmem:[%s4824_s17 + $0x3d0] sm:$0xff] }
 0x261   : > { %3336 = vmatpush1.bf16.msra.mxu0 %v1631_v18  ;;  %2681 = vmatprep.subr.bf16.mxu1 %v1122_v19  ;;  %v761_v18 = vld [vmem:[%s4824_s17 + $0xbd0] sm:$0xff]  ;;  %v1139_v19 = vunpack.c.l.s8.bf16 %v505_v17 }
 0x262   : > { %3337 = vmatprep.subr.bf16.mxu0 %v1634_v20  ;;  %2711 = vmatprep.mubr.bf16.mxu1 %v2033_v27  ;;  %v1651_v20 = vunpack.c.l.s8.bf16 %v761_v18  ;;  %v508_v27 = vld [vmem:[%s4824_s17 + $0x3e8] sm:$0xff] }
 0x263   : > { %3367 = vmatprep.mubr.bf16.mxu0 %v2229_v25  ;;  %v764_v25 = vld [vmem:[%s4824_s17 + $0xbe8] sm:$0xff] }
 0x264   : > { %2682 = vmatpush1.bf16.msra.mxu1 %v1121_v48  ;;  %v1141_v48 = vunpack.c.h.s8.bf16 %v505_v17 }
 0x265   : > { %3338 = vmatpush1.bf16.msra.mxu0 %v1633_v26  ;;  %2683 = vmatprep.subr.bf16.mxu1 %v1124_v49  ;;  %v1653_v26 = vunpack.c.h.s8.bf16 %v761_v18  ;;  %v1144_v49 = vunpack.c.l.s8.bf16 %v508_v27 }
 0x266   : > { %3339 = vmatprep.subr.bf16.mxu0 %v1636_v28  ;;  %v1656_v28 = vunpack.c.l.s8.bf16 %v764_v25 }
 0x268   : > { %2684 = vmatpush1.bf16.msra.mxu1 %v1123_v40  ;;  %v1143_v40 = vunpack.c.l.s8.bf16 %v507_v31 }
 0x269   : > { %3340 = vmatpush1.bf16.msra.mxu0 %v1635_v60  ;;  %2685 = vmatprep.subr.bf16.mxu1 %v1126_v44  ;;  %v1655_v60 = vunpack.c.l.s8.bf16 %v763_v29  ;;  %v1146_v44 = vunpack.c.h.s8.bf16 %v508_v27 }
 0x26a   : > { %3341 = vmatprep.subr.bf16.mxu0 %v1638_v30  ;;  %v1658_v30 = vunpack.c.h.s8.bf16 %v764_v25 }
 0x26c   : > { %2686 = vmatpush1.bf16.msra.mxu1 %v1125_v33  ;;  %v1145_v33 = vunpack.c.h.s8.bf16 %v507_v31 }
 0x26d   : > { %3342 = vmatpush1.bf16.msra.mxu0 %v1637_v34  ;;  %2687 = vmatprep.subr.bf16.mxu1 %v1128_v53  ;;  %v1657_v34 = vunpack.c.h.s8.bf16 %v763_v29  ;;  %v1148_v53 = vunpack.c.l.s8.bf16 %v510_v45 }
 0x26e   : > { %3343 = vmatprep.subr.bf16.mxu0 %v1640_v59  ;;  %v1660_v59 = vunpack.c.l.s8.bf16 %v766_v32 }
 0x270   : > { %2688 = vmatpush1.bf16.msra.mxu1 %v1127_v37  ;;  %v5287_v37 = vld [vmem:[%s4846_s12 + $0x10] sm:$0xff] }
 0x271   : > { %3344 = vmatpush1.bf16.msra.mxu0 %v1639_v39  ;;  %2689 = vmatprep.subr.bf16.mxu1 %v1130_v54  ;;  %v5290_v39 = vld [vmem:[%s4846_s12 + $0x30] sm:$0xff]  ;;  %v1147_v54 = vunpack.c.l.s8.bf16 %v509_v35 }
 0x272   : > { %3345 = vmatprep.subr.bf16.mxu0 %v1642_v41  ;;  %v1659_v41 = vunpack.c.l.s8.bf16 %v765_v36 }
 0x274   : > { %2690 = vmatpush1.bf16.msra.mxu1 %v1129_v46  ;;  %v512_v46 = vld [vmem:[%s4824_s17 + $0x408] sm:$0xff] }
 0x275   : > { %3346 = vmatpush1.bf16.msra.mxu0 %v1641_v47  ;;  %2691 = vmatprep.subr.bf16.mxu1 %v1132_v55  ;;  %v768_v47 = vld [vmem:[%s4824_s17 + $0xc08] sm:$0xff]  ;;  %v5296_v55 = vrot.slane %v5287_v37, %v4886_v50  ;;  %v1154_v13 = vunpack.c.h.s8.bf16 %v512_v46 }
 0x276   : > { %3347 = vmatprep.subr.bf16.mxu0 %v1644_v56  ;;  %v5300_v56 = vrot.slane %v5290_v39, %v4886_v50  ;;  %v1666_v21 = vunpack.c.h.s8.bf16 %v768_v47 }
 0x277   : > { %v2049_v0 = vcombine.high %v5296_v55, %v5296_v55 }
 0x278   : > { %2692 = vmatpush1.bf16.msra.mxu1 %v1131_v1  ;;  %v1152_v1 = vunpack.c.l.s8.bf16 %v512_v46  ;;  %v2245_v51 = vcombine.high %v5300_v56, %v5300_v56 }
 0x279   : > { %3348 = vmatpush1.bf16.msra.mxu0 %v1643_v2  ;;  %2693 = vmatprep.subr.bf16.mxu1 %v1134_v63  ;;  %v1664_v2 = vunpack.c.l.s8.bf16 %v768_v47  ;;  %v511_v63 = vld [vmem:[%s4824_s17 + $0x400] sm:$0xff] }
 0x27a   : > { %3349 = vmatprep.subr.bf16.mxu0 %v1646_v3  ;;  %v767_v3 = vld [vmem:[%s4824_s17 + $0xc00] sm:$0xff] }
 0x27c   : > { %2694 = vmatpush1.bf16.msra.mxu1 %v1133_v4  ;;  %v2031_v4 = vcombine.high %v5246_v15, %v5246_v15  ;;  %v5318_v15 = vrot.slane %v2245_v51, %v4886_v50  ;;  %v778_v51 = vld [vmem:[%s4824_s17 + $0xc58] sm:$0xff] }
 0x27d   : > { %3350 = vmatpush1.bf16.msra.mxu0 %v1645_v5  ;;  %2695 = vmatprep.subr.bf16.mxu1 %v1136_v52  ;;  %v2227_v5 = vcombine.high %v5250_v16, %v5250_v16  ;;  %v1151_v52 = vunpack.c.l.s8.bf16 %v511_v63  ;;  %v1153_v16 = vunpack.c.h.s8.bf16 %v511_v63 }
 0x27e   : > { %3351 = vmatprep.subr.bf16.mxu0 %v1648_v6  ;;  %v1663_v6 = vunpack.c.l.s8.bf16 %v767_v3 }
 0x280   : > { %2696 = vmatpush1.bf16.msra.mxu1 %v1135_v7  ;;  %v514_v7 = vld [vmem:[%s4824_s17 + $0x418] sm:$0xff] }
 0x281   : > { %3352 = vmatpush1.bf16.msra.mxu0 %v1647_v8  ;;  %2697 = vmatprep.subr.bf16.mxu1 %v1138_v61  ;;  %v770_v8 = vld [vmem:[%s4824_s17 + $0xc18] sm:$0xff]  ;;  %v5315_v61 = vrot.slane %v2049_v0, %v4886_v50  ;;  %v1156_v62 = vunpack.c.l.s8.bf16 %v514_v7  ;;  %v1158_v17 = vunpack.c.h.s8.bf16 %v514_v7 }
 0x282   : > { %3353 = vmatprep.subr.bf16.mxu0 %v1650_v9  ;;  %v1665_v9 = vunpack.c.h.s8.bf16 %v767_v3  ;;  %v1668_v10 = vunpack.c.l.s8.bf16 %v770_v8  ;;  %v1670_v18 = vunpack.c.h.s8.bf16 %v770_v8  ;;  %v522_v0 = vld [vmem:[%s4824_s17 + $0x458] sm:$0xff] }
 0x284   : > { %2698 = vmatpush1.bf16.msra.mxu1 %v1137_v11  ;;  %v513_v11 = vld [vmem:[%s4824_s17 + $0x410] sm:$0xff] }
 0x285   : > { %3354 = vmatpush1.bf16.msra.mxu0 %v1649_v12  ;;  %2699 = vmatprep.subr.bf16.mxu1 %v1140_v22  ;;  %v769_v12 = vld [vmem:[%s4824_s17 + $0xc10] sm:$0xff]  ;;  %v1155_v22 = vunpack.c.l.s8.bf16 %v513_v11 }
 0x286   : > { %3355 = vmatprep.subr.bf16.mxu0 %v1652_v14  ;;  %v1667_v14 = vunpack.c.l.s8.bf16 %v769_v12 }
 0x288   : > { %2700 = vmatpush1.bf16.msra.mxu1 %v1139_v19  ;;  %v516_v19 = vld [vmem:[%s4824_s17 + $0x428] sm:$0xff] }
 0x289   : > { %3356 = vmatpush1.bf16.msra.mxu0 %v1651_v20  ;;  %2701 = vmatprep.subr.bf16.mxu1 %v1142_v23  ;;  %v772_v20 = vld [vmem:[%s4824_s17 + $0xc28] sm:$0xff]  ;;  %v1157_v23 = vunpack.c.h.s8.bf16 %v513_v11  ;;  %v1160_v27 = vunpack.c.l.s8.bf16 %v516_v19  ;;  %v1162_v31 = vunpack.c.h.s8.bf16 %v516_v19 }
 0x28a   : > { %3357 = vmatprep.subr.bf16.mxu0 %v1654_v24  ;;  %v1669_v24 = vunpack.c.h.s8.bf16 %v769_v12  ;;  %v1672_v25 = vunpack.c.l.s8.bf16 %v772_v20  ;;  %v1674_v29 = vunpack.c.h.s8.bf16 %v772_v20 }
 0x28c   : > { %2702 = vmatpush1.bf16.msra.mxu1 %v1141_v48  ;;  %v515_v48 = vld [vmem:[%s4824_s17 + $0x420] sm:$0xff] }
 0x28d   : > { %3358 = vmatpush1.bf16.msra.mxu0 %v1653_v26  ;;  %2703 = vmatprep.subr.bf16.mxu1 %v1144_v49  ;;  %v771_v26 = vld [vmem:[%s4824_s17 + $0xc20] sm:$0xff]  ;;  %v1159_v49 = vunpack.c.l.s8.bf16 %v515_v48 }
 0x28e   : > { %3359 = vmatprep.subr.bf16.mxu0 %v1656_v28  ;;  %v1671_v28 = vunpack.c.l.s8.bf16 %v771_v26 }
 0x290   : > { %2704 = vmatpush1.bf16.msra.mxu1 %v1143_v40  ;;  %v518_v40 = vld [vmem:[%s4824_s17 + $0x438] sm:$0xff] }
 0x291   : > { %3360 = vmatpush1.bf16.msra.mxu0 %v1655_v60  ;;  %2705 = vmatprep.subr.bf16.mxu1 %v1146_v44  ;;  %v774_v60 = vld [vmem:[%s4824_s17 + $0xc38] sm:$0xff]  ;;  %v1161_v44 = vunpack.c.h.s8.bf16 %v515_v48  ;;  %v1164_v45 = vunpack.c.l.s8.bf16 %v518_v40  ;;  %v1166_v35 = vunpack.c.h.s8.bf16 %v518_v40 }
 0x292   : > { %3361 = vmatprep.subr.bf16.mxu0 %v1658_v30  ;;  %v1673_v30 = vunpack.c.h.s8.bf16 %v771_v26  ;;  %v1676_v32 = vunpack.c.l.s8.bf16 %v774_v60  ;;  %v1678_v36 = vunpack.c.h.s8.bf16 %v774_v60 }
 0x294   : > { %2706 = vmatpush1.bf16.msra.mxu1 %v1145_v33  ;;  %v517_v33 = vld [vmem:[%s4824_s17 + $0x430] sm:$0xff] }
 0x295   : > { %3362 = vmatpush1.bf16.msra.mxu0 %v1657_v34  ;;  %2707 = vmatprep.subr.bf16.mxu1 %v1148_v53  ;;  %v773_v34 = vld [vmem:[%s4824_s17 + $0xc30] sm:$0xff]  ;;  %v1163_v53 = vunpack.c.l.s8.bf16 %v517_v33 }
 0x296   : > { %3363 = vmatprep.subr.bf16.mxu0 %v1660_v59  ;;  %v1675_v59 = vunpack.c.l.s8.bf16 %v773_v34 }
 0x298   : > { %2708 = vmatpush1.bf16.msra.mxu1 %v1147_v54  ;;  %v520_v54 = vld [vmem:[%s4824_s17 + $0x448] sm:$0xff] }
 0x299   : > { %3364 = vmatpush1.bf16.msra.mxu0 %v1659_v41  ;;  %2709 = vmatprep.subr.bf16.mxu1 %v1150_v42  ;;  %v776_v41 = vld [vmem:[%s4824_s17 + $0xc48] sm:$0xff]  ;;  %v1165_v42 = vunpack.c.h.s8.bf16 %v517_v33  ;;  %v1168_v46 = vunpack.c.l.s8.bf16 %v520_v54  ;;  %v1170_v63 = vunpack.c.h.s8.bf16 %v520_v54  ;;  %v5354_v54 = vrot.slane %v5296_v55, %v4886_v50 }
 0x29a   : > { %3365 = vmatprep.subr.bf16.mxu0 %v1662_v43  ;;  %v1677_v43 = vunpack.c.h.s8.bf16 %v773_v34  ;;  %v1680_v47 = vunpack.c.l.s8.bf16 %v776_v41  ;;  %v1682_v3 = vunpack.c.h.s8.bf16 %v776_v41  ;;  %v5358_v41 = vrot.slane %v5300_v56, %v4886_v50 }
 0x29b   : > { %v2081_v55 = vcombine.high %v5315_v61, %v5315_v61 }
 0x29c   : > { %2710 = vmatpush1.bf16.msra.mxu1 %v1149_v57  ;;  %v519_v57 = vld [vmem:[%s4824_s17 + $0x440] sm:$0xff] }
 0x29d   : > { %3366 = vmatpush1.bf16.msra.mxu0 %v1661_v58  ;;  %2720 = vmatprep.subr.bf16.mxu1 %v1152_v1  ;;  %v775_v58 = vld [vmem:[%s4824_s17 + $0xc40] sm:$0xff]  ;;  %v1167_v1 = vunpack.c.l.s8.bf16 %v519_v57 }
 0x29e   : > { %3376 = vmatprep.subr.bf16.mxu0 %v1664_v2  ;;  %v1679_v2 = vunpack.c.l.s8.bf16 %v775_v58 }
 0x29f   : > { %2712 = vmatmul.mubr.bf16.vlgmr.msra.gmra.mrb[0].mxu1 %v2031_v4  ;;  %v1169_v4 = vunpack.c.h.s8.bf16 %v519_v57  ;;  %v530_v57 = vld [vmem:[%s4824_s17 + $0x498] sm:$0xff] }
 0x2a0   : > { %3368 = vmatmul.mubr.bf16.vlgmr.msra.gmra.mrb[0].mxu0 %v2227_v5  ;;  %2721 = vmatpush1.bf16.msra.mxu1 %v1151_v52  ;;  %v1681_v5 = vunpack.c.h.s8.bf16 %v775_v58  ;;  %v1172_v52 = vunpack.c.l.s8.bf16 %v522_v0  ;;  %v786_v58 = vld [vmem:[%s4824_s17 + $0xc98] sm:$0xff] }
 0x2a1   : > { %3377 = vmatpush1.bf16.msra.mxu0 %v1663_v6  ;;  %2722 = vmatprep.subr.bf16.mxu1 %v1154_v13  ;;  %v1684_v6 = vunpack.c.l.s8.bf16 %v778_v51  ;;  %v521_v13 = vld [vmem:[%s4824_s17 + $0x450] sm:$0xff] }
 0x2a2   : > { %3378 = vmatprep.subr.bf16.mxu0 %v1666_v21  ;;  %2752 = vmatprep.mubr.bf16.mxu1 %v5315_v61  ;;  %v777_v21 = vld [vmem:[%s4824_s17 + $0xc50] sm:$0xff]  ;;  %v1171_v7 = vunpack.c.l.s8.bf16 %v521_v13  ;;  %v1173_v11 = vunpack.c.h.s8.bf16 %v521_v13 }
 0x2a3   : > { %3408 = vmatprep.mubr.bf16.mxu0 %v5318_v15  ;;  %v1683_v8 = vunpack.c.l.s8.bf16 %v777_v21  ;;  %v1685_v12 = vunpack.c.h.s8.bf16 %v777_v21 }
 0x2a4   : > { %2723 = vmatpush1.bf16.msra.mxu1 %v1153_v16  ;;  %v1174_v16 = vunpack.c.h.s8.bf16 %v522_v0  ;;  %v529_v0 = vld [vmem:[%s4824_s17 + $0x490] sm:$0xff] }
 0x2a5   : > { %3379 = vmatpush1.bf16.msra.mxu0 %v1665_v9  ;;  %2724 = vmatprep.subr.bf16.mxu1 %v1156_v62  ;;  %v1686_v9 = vunpack.c.h.s8.bf16 %v778_v51  ;;  %v524_v62 = vld [vmem:[%s4824_s17 + $0x468] sm:$0xff]  ;;  %v785_v51 = vld [vmem:[%s4824_s17 + $0xc90] sm:$0xff]  ;;  %v1187_v61 = vunpack.c.l.s8.bf16 %v529_v0  ;;  %v1189_v13 = vunpack.c.h.s8.bf16 %v529_v0 }
 0x2a6   : > { %3380 = vmatprep.subr.bf16.mxu0 %v1668_v10  ;;  %v780_v10 = vld [vmem:[%s4824_s17 + $0xc68] sm:$0xff]  ;;  %v1701_v21 = vunpack.c.h.s8.bf16 %v785_v51 }
 0x2a8   : > { %2725 = vmatpush1.bf16.msra.mxu1 %v1155_v22  ;;  %v1176_v22 = vunpack.c.l.s8.bf16 %v524_v62 }
 0x2a9   : > { %3381 = vmatpush1.bf16.msra.mxu0 %v1667_v14  ;;  %2726 = vmatprep.subr.bf16.mxu1 %v1158_v17  ;;  %v1688_v14 = vunpack.c.l.s8.bf16 %v780_v10  ;;  %v523_v17 = vld [vmem:[%s4824_s17 + $0x460] sm:$0xff] }
 0x2aa   : > { %3382 = vmatprep.subr.bf16.mxu0 %v1670_v18  ;;  %v779_v18 = vld [vmem:[%s4824_s17 + $0xc60] sm:$0xff]  ;;  %v1175_v19 = vunpack.c.l.s8.bf16 %v523_v17  ;;  %v1177_v48 = vunpack.c.h.s8.bf16 %v523_v17 }
 0x2ab   : > { %v1687_v20 = vunpack.c.l.s8.bf16 %v779_v18  ;;  %v1689_v26 = vunpack.c.h.s8.bf16 %v779_v18 }
 0x2ac   : > { %2727 = vmatpush1.bf16.msra.mxu1 %v1157_v23  ;;  %v1178_v23 = vunpack.c.h.s8.bf16 %v524_v62 }
 0x2ad   : > { %3383 = vmatpush1.bf16.msra.mxu0 %v1669_v24  ;;  %2728 = vmatprep.subr.bf16.mxu1 %v1160_v27  ;;  %v1690_v24 = vunpack.c.h.s8.bf16 %v780_v10  ;;  %v526_v27 = vld [vmem:[%s4824_s17 + $0x478] sm:$0xff] }
 0x2ae   : > { %3384 = vmatprep.subr.bf16.mxu0 %v1672_v25  ;;  %v782_v25 = vld [vmem:[%s4824_s17 + $0xc78] sm:$0xff] }
 0x2b0   : > { %2729 = vmatpush1.bf16.msra.mxu1 %v1159_v49  ;;  %v1180_v49 = vunpack.c.l.s8.bf16 %v526_v27 }
 0x2b1   : > { %3385 = vmatpush1.bf16.msra.mxu0 %v1671_v28  ;;  %2730 = vmatprep.subr.bf16.mxu1 %v1162_v31  ;;  %v1692_v28 = vunpack.c.l.s8.bf16 %v782_v25  ;;  %v525_v31 = vld [vmem:[%s4824_s17 + $0x470] sm:$0xff] }
 0x2b2   : > { %3386 = vmatprep.subr.bf16.mxu0 %v1674_v29  ;;  %v781_v29 = vld [vmem:[%s4824_s17 + $0xc70] sm:$0xff]  ;;  %v1179_v40 = vunpack.c.l.s8.bf16 %v525_v31  ;;  %v1181_v33 = vunpack.c.h.s8.bf16 %v525_v31 }
 0x2b3   : > { %v1691_v60 = vunpack.c.l.s8.bf16 %v781_v29  ;;  %v1693_v34 = vunpack.c.h.s8.bf16 %v781_v29 }
 0x2b4   : > { %2731 = vmatpush1.bf16.msra.mxu1 %v1161_v44  ;;  %v1182_v44 = vunpack.c.h.s8.bf16 %v526_v27 }
 0x2b5   : > { %3387 = vmatpush1.bf16.msra.mxu0 %v1673_v30  ;;  %2732 = vmatprep.subr.bf16.mxu1 %v1164_v45  ;;  %v1694_v30 = vunpack.c.h.s8.bf16 %v782_v25  ;;  %v528_v45 = vld [vmem:[%s4824_s17 + $0x488] sm:$0xff] }
 0x2b6   : > { %3388 = vmatprep.subr.bf16.mxu0 %v1676_v32  ;;  %v784_v32 = vld [vmem:[%s4824_s17 + $0xc88] sm:$0xff] }
 0x2b8   : > { %2733 = vmatpush1.bf16.msra.mxu1 %v1163_v53  ;;  %v1184_v53 = vunpack.c.l.s8.bf16 %v528_v45 }
 0x2b9   : > { %3389 = vmatpush1.bf16.msra.mxu0 %v1675_v59  ;;  %2734 = vmatprep.subr.bf16.mxu1 %v1166_v35  ;;  %v1696_v59 = vunpack.c.l.s8.bf16 %v784_v32  ;;  %v527_v35 = vld [vmem:[%s4824_s17 + $0x480] sm:$0xff] }
 0x2ba   : > { %3390 = vmatprep.subr.bf16.mxu0 %v1678_v36  ;;  %v783_v36 = vld [vmem:[%s4824_s17 + $0xc80] sm:$0xff]  ;;  %v1185_v56 = vunpack.c.h.s8.bf16 %v527_v35 }
 0x2bc   : > { %2735 = vmatpush1.bf16.msra.mxu1 %v1165_v42  ;;  %v1183_v42 = vunpack.c.l.s8.bf16 %v527_v35 }
 0x2bd   : > { %3391 = vmatpush1.bf16.msra.mxu0 %v1677_v43  ;;  %2736 = vmatprep.subr.bf16.mxu1 %v1168_v46  ;;  %v1695_v43 = vunpack.c.l.s8.bf16 %v783_v36  ;;  %v1186_v46 = vunpack.c.h.s8.bf16 %v528_v45 }
 0x2be   : > { %3392 = vmatprep.subr.bf16.mxu0 %v1680_v47  ;;  %v1698_v47 = vunpack.c.h.s8.bf16 %v784_v32 }
 0x2c0   : > { %2737 = vmatpush1.bf16.msra.mxu1 %v1167_v1  ;;  %v2277_v1 = vcombine.high %v5318_v15, %v5318_v15  ;;  %v1699_v15 = vunpack.c.l.s8.bf16 %v785_v51 }
 0x2c1   : > { %3393 = vmatpush1.bf16.msra.mxu0 %v1679_v2  ;;  %2738 = vmatprep.subr.bf16.mxu1 %v1170_v63  ;;  %v1697_v2 = vunpack.c.h.s8.bf16 %v783_v36  ;;  %v1188_v63 = vunpack.c.l.s8.bf16 %v530_v57 }
 0x2c2   : > { %3394 = vmatprep.subr.bf16.mxu0 %v1682_v3  ;;  %v1700_v3 = vunpack.c.l.s8.bf16 %v786_v58 }
 0x2c4   : > { %2739 = vmatpush1.bf16.msra.mxu1 %v1169_v4  ;;  %v1190_v4 = vunpack.c.h.s8.bf16 %v530_v57 }
 0x2c5   : > { %3395 = vmatpush1.bf16.msra.mxu0 %v1681_v5  ;;  %2740 = vmatprep.subr.bf16.mxu1 %v1172_v52  ;;  %v1702_v5 = vunpack.c.h.s8.bf16 %v786_v58  ;;  %v532_v52 = vld [vmem:[%s4824_s17 + $0x4a8] sm:$0xff] }
 0x2c6   : > { %3396 = vmatprep.subr.bf16.mxu0 %v1684_v6  ;;  %v788_v6 = vld [vmem:[%s4824_s17 + $0xca8] sm:$0xff] }
 0x2c8   : > { %2741 = vmatpush1.bf16.msra.mxu1 %v1171_v7  ;;  %v1192_v7 = vunpack.c.l.s8.bf16 %v532_v52 }
 0x2c9   : > { %3397 = vmatpush1.bf16.msra.mxu0 %v1683_v8  ;;  %2742 = vmatprep.subr.bf16.mxu1 %v1174_v16  ;;  %v1704_v8 = vunpack.c.l.s8.bf16 %v788_v6  ;;  %v531_v16 = vld [vmem:[%s4824_s17 + $0x4a0] sm:$0xff] }
 0x2ca   : > { %3398 = vmatprep.subr.bf16.mxu0 %v1686_v9  ;;  %v787_v9 = vld [vmem:[%s4824_s17 + $0xca0] sm:$0xff]  ;;  %v1191_v62 = vunpack.c.l.s8.bf16 %v531_v16  ;;  %v1193_v17 = vunpack.c.h.s8.bf16 %v531_v16 }
 0x2cb   : > { %v1703_v10 = vunpack.c.l.s8.bf16 %v787_v9  ;;  %v1705_v18 = vunpack.c.h.s8.bf16 %v787_v9 }
 0x2cc   : > { %2743 = vmatpush1.bf16.msra.mxu1 %v1173_v11  ;;  %v1194_v11 = vunpack.c.h.s8.bf16 %v532_v52 }
 0x2cd   : > { %3399 = vmatpush1.bf16.msra.mxu0 %v1685_v12  ;;  %2744 = vmatprep.subr.bf16.mxu1 %v1176_v22  ;;  %v1706_v12 = vunpack.c.h.s8.bf16 %v788_v6  ;;  %v534_v22 = vld [vmem:[%s4824_s17 + $0x4b8] sm:$0xff] }
 0x2ce   : > { %3400 = vmatprep.subr.bf16.mxu0 %v1688_v14  ;;  %v790_v14 = vld [vmem:[%s4824_s17 + $0xcb8] sm:$0xff] }
 0x2d0   : > { %2745 = vmatpush1.bf16.msra.mxu1 %v1175_v19  ;;  %v1196_v19 = vunpack.c.l.s8.bf16 %v534_v22 }
 0x2d1   : > { %3401 = vmatpush1.bf16.msra.mxu0 %v1687_v20  ;;  %2746 = vmatprep.subr.bf16.mxu1 %v1178_v23  ;;  %v1708_v20 = vunpack.c.l.s8.bf16 %v790_v14  ;;  %v533_v23 = vld [vmem:[%s4824_s17 + $0x4b0] sm:$0xff] }
 0x2d2   : > { %3402 = vmatprep.subr.bf16.mxu0 %v1690_v24  ;;  %v789_v24 = vld [vmem:[%s4824_s17 + $0xcb0] sm:$0xff]  ;;  %v1195_v27 = vunpack.c.l.s8.bf16 %v533_v23  ;;  %v1197_v31 = vunpack.c.h.s8.bf16 %v533_v23 }
 0x2d3   : > { %v1707_v25 = vunpack.c.l.s8.bf16 %v789_v24  ;;  %v1709_v29 = vunpack.c.h.s8.bf16 %v789_v24 }
 0x2d4   : > { %2747 = vmatpush1.bf16.msra.mxu1 %v1177_v48  ;;  %v1198_v48 = vunpack.c.h.s8.bf16 %v534_v22 }
 0x2d5   : > { %3403 = vmatpush1.bf16.msra.mxu0 %v1689_v26  ;;  %2748 = vmatprep.subr.bf16.mxu1 %v1180_v49  ;;  %v1710_v26 = vunpack.c.h.s8.bf16 %v790_v14  ;;  %v536_v49 = vld [vmem:[%s4824_s17 + $0x4c8] sm:$0xff] }
 0x2d6   : > { %3404 = vmatprep.subr.bf16.mxu0 %v1692_v28  ;;  %v792_v28 = vld [vmem:[%s4824_s17 + $0xcc8] sm:$0xff] }
 0x2d8   : > { %2749 = vmatpush1.bf16.msra.mxu1 %v1179_v40  ;;  %v1200_v40 = vunpack.c.l.s8.bf16 %v536_v49 }
 0x2d9   : > { %3405 = vmatpush1.bf16.msra.mxu0 %v1691_v60  ;;  %2750 = vmatprep.subr.bf16.mxu1 %v1182_v44  ;;  %v1712_v60 = vunpack.c.l.s8.bf16 %v792_v28  ;;  %v535_v44 = vld [vmem:[%s4824_s17 + $0x4c0] sm:$0xff] }
 0x2da   : > { %3406 = vmatprep.subr.bf16.mxu0 %v1694_v30  ;;  %v791_v30 = vld [vmem:[%s4824_s17 + $0xcc0] sm:$0xff]  ;;  %v1199_v45 = vunpack.c.l.s8.bf16 %v535_v44  ;;  %v1201_v35 = vunpack.c.h.s8.bf16 %v535_v44 }
 0x2db   : > { %v1711_v32 = vunpack.c.l.s8.bf16 %v791_v30  ;;  %v1713_v36 = vunpack.c.h.s8.bf16 %v791_v30 }
 0x2dc   : > { %2751 = vmatpush1.bf16.msra.mxu1 %v1181_v33  ;;  %v1202_v33 = vunpack.c.h.s8.bf16 %v536_v49 }
 0x2dd   : > { %3407 = vmatpush1.bf16.msra.mxu0 %v1693_v34  ;;  %2761 = vmatprep.subr.bf16.mxu1 %v1184_v53  ;;  %v1714_v34 = vunpack.c.h.s8.bf16 %v792_v28  ;;  %v538_v53 = vld [vmem:[%s4824_s17 + $0x4d8] sm:$0xff] }
 0x2de   : > { %3417 = vmatprep.subr.bf16.mxu0 %v1696_v59  ;;  %v794_v59 = vld [vmem:[%s4824_s17 + $0xcd8] sm:$0xff] }
 0x2df   : > { %2753 = vmatmul.mubr.bf16.vlgmr.msra.gmra.mrb[0].mxu1 %v5354_v54 }
 0x2e0   : > { %3409 = vmatmul.mubr.bf16.vlgmr.msra.gmra.mrb[0].mxu0 %v5358_v41  ;;  %2762 = vmatpush1.bf16.msra.mxu1 %v1183_v42  ;;  %v1204_v42 = vunpack.c.l.s8.bf16 %v538_v53 }
 0x2e1   : > { %3418 = vmatpush1.bf16.msra.mxu0 %v1695_v43  ;;  %2763 = vmatprep.subr.bf16.mxu1 %v1186_v46  ;;  %v1716_v43 = vunpack.c.l.s8.bf16 %v794_v59  ;;  %v537_v46 = vld [vmem:[%s4824_s17 + $0x4d0] sm:$0xff] }
 0x2e2   : > { %3419 = vmatprep.subr.bf16.mxu0 %v1698_v47  ;;  %2793 = vmatprep.mubr.bf16.mxu1 %v2081_v55  ;;  %v793_v47 = vld [vmem:[%s4824_s17 + $0xcd0] sm:$0xff]  ;;  %v1203_v57 = vunpack.c.l.s8.bf16 %v537_v46  ;;  %v1206_v55 = vunpack.c.h.s8.bf16 %v538_v53 }
 0x2e3   : > { %3449 = vmatprep.mubr.bf16.mxu0 %v2277_v1  ;;  %v1715_v58 = vunpack.c.l.s8.bf16 %v793_v47  ;;  %v1718_v1 = vunpack.c.h.s8.bf16 %v794_v59 }
 0x2e4   : > { %2764 = vmatpush1.bf16.msra.mxu1 %v1185_v56  ;;  %v540_v56 = vld [vmem:[%s4824_s17 + $0x4e8] sm:$0xff] }
 0x2e5   : > { %3420 = vmatpush1.bf16.msra.mxu0 %v1697_v2  ;;  %2765 = vmatprep.subr.bf16.mxu1 %v1188_v63  ;;  %v796_v2 = vld [vmem:[%s4824_s17 + $0xce8] sm:$0xff]  ;;  %v1205_v63 = vunpack.c.h.s8.bf16 %v537_v46  ;;  %v1208_v0 = vunpack.c.l.s8.bf16 %v540_v56  ;;  %v1210_v52 = vunpack.c.h.s8.bf16 %v540_v56 }
 0x2e6   : > { %3421 = vmatprep.subr.bf16.mxu0 %v1700_v3  ;;  %v1717_v3 = vunpack.c.h.s8.bf16 %v793_v47  ;;  %v1720_v51 = vunpack.c.l.s8.bf16 %v796_v2  ;;  %v1722_v6 = vunpack.c.h.s8.bf16 %v796_v2 }
 0x2e8   : > { %2766 = vmatpush1.bf16.msra.mxu1 %v1187_v61  ;;  %v539_v61 = vld [vmem:[%s4824_s17 + $0x4e0] sm:$0xff] }
 0x2e9   : > { %3422 = vmatpush1.bf16.msra.mxu0 %v1699_v15  ;;  %2767 = vmatprep.subr.bf16.mxu1 %v1190_v4  ;;  %v795_v15 = vld [vmem:[%s4824_s17 + $0xce0] sm:$0xff]  ;;  %v1207_v4 = vunpack.c.l.s8.bf16 %v539_v61 }
 0x2ea   : > { %3423 = vmatprep.subr.bf16.mxu0 %v1702_v5  ;;  %v1719_v5 = vunpack.c.l.s8.bf16 %v795_v15 }
 0x2ec   : > { %2768 = vmatpush1.bf16.msra.mxu1 %v1189_v13  ;;  %v542_v13 = vld [vmem:[%s4824_s17 + $0x4f8] sm:$0xff] }
 0x2ed   : > { %3424 = vmatpush1.bf16.msra.mxu0 %v1701_v21  ;;  %2769 = vmatprep.subr.bf16.mxu1 %v1192_v7  ;;  %v798_v21 = vld [vmem:[%s4824_s17 + $0xcf8] sm:$0xff]  ;;  %v1209_v7 = vunpack.c.h.s8.bf16 %v539_v61  ;;  %v1212_v16 = vunpack.c.l.s8.bf16 %v542_v13 }
 0x2ee   : > { %3425 = vmatprep.subr.bf16.mxu0 %v1704_v8  ;;  %v1721_v8 = vunpack.c.h.s8.bf16 %v795_v15  ;;  %v1724_v9 = vunpack.c.l.s8.bf16 %v798_v21 }
 0x2f0   : > { %2770 = vmatpush1.bf16.msra.mxu1 %v1191_v62  ;;  %v541_v62 = vld [vmem:[%s4824_s17 + $0x4f0] sm:$0xff] }
 0x2f1   : > { %3426 = vmatpush1.bf16.msra.mxu0 %v1703_v10  ;;  %2771 = vmatprep.subr.bf16.mxu1 %v1194_v11  ;;  %v797_v10 = vld [vmem:[%s4824_s17 + $0xcf0] sm:$0xff]  ;;  %v2034_v11 = vcombine.high %v5287_v37, %v5287_v37  ;;  %v1211_v22 = vunpack.c.l.s8.bf16 %v541_v62 }
 0x2f2   : > { %3427 = vmatprep.subr.bf16.mxu0 %v1706_v12  ;;  %v2230_v12 = vcombine.high %v5290_v39, %v5290_v39  ;;  %v1723_v14 = vunpack.c.l.s8.bf16 %v797_v10  ;;  %v1213_v39 = vunpack.c.h.s8.bf16 %v541_v62  ;;  %v1725_v24 = vunpack.c.h.s8.bf16 %v797_v10 }
 0x2f3   : > { %v5401_v23 = vrot.slane %v2034_v11, %v4886_v50  ;;  %v552_v11 = vld [vmem:[%s4824_s17 + $0x548] sm:$0xff] }
 0x2f4   : > { %2772 = vmatpush1.bf16.msra.mxu1 %v1193_v17  ;;  %v1214_v17 = vunpack.c.h.s8.bf16 %v542_v13  ;;  %v5404_v37 = vrot.slane %v2230_v12, %v4886_v50  ;;  %v808_v12 = vld [vmem:[%s4824_s17 + $0xd48] sm:$0xff] }
 0x2f5   : > { %3428 = vmatpush1.bf16.msra.mxu0 %v1705_v18  ;;  %2773 = vmatprep.subr.bf16.mxu1 %v1196_v19  ;;  %v1726_v18 = vunpack.c.h.s8.bf16 %v798_v21  ;;  %v544_v19 = vld [vmem:[%s4824_s17 + $0x508] sm:$0xff]  ;;  %v2050_v49 = vcombine.high %v5401_v23, %v5401_v23 }
 0x2f6   : > { %3429 = vmatprep.subr.bf16.mxu0 %v1708_v20  ;;  %v800_v20 = vld [vmem:[%s4824_s17 + $0xd08] sm:$0xff]  ;;  %v2246_v28 = vcombine.high %v5404_v37, %v5404_v37  ;;  %v1218_v44 = vunpack.c.h.s8.bf16 %v544_v19 }
 0x2f7   : > { %v1730_v30 = vunpack.c.h.s8.bf16 %v800_v20 }
 0x2f8   : > { %2774 = vmatpush1.bf16.msra.mxu1 %v1195_v27  ;;  %v1216_v27 = vunpack.c.l.s8.bf16 %v544_v19  ;;  %v551_v19 = vld [vmem:[%s4824_s17 + $0x540] sm:$0xff] }
 0x2f9   : > { %3430 = vmatpush1.bf16.msra.mxu0 %v1707_v25  ;;  %2775 = vmatprep.subr.bf16.mxu1 %v1198_v48  ;;  %v1728_v25 = vunpack.c.l.s8.bf16 %v800_v20  ;;  %v543_v48 = vld [vmem:[%s4824_s17 + $0x500] sm:$0xff] }
 0x2fa   : > { %3431 = vmatprep.subr.bf16.mxu0 %v1710_v26  ;;  %v799_v26 = vld [vmem:[%s4824_s17 + $0xd00] sm:$0xff] }
 0x2fb   : > { %v807_v20 = vld [vmem:[%s4824_s17 + $0xd40] sm:$0xff] }
 0x2fc   : > { %2776 = vmatpush1.bf16.msra.mxu1 %v1197_v31  ;;  %v2079_v31 = vcombine.high %v5354_v54, %v5354_v54  ;;  %v5422_v54 = vrot.slane %v2246_v28, %v4886_v50  ;;  %v1745_v28 = vunpack.c.h.s8.bf16 %v807_v20 }
 0x2fd   : > { %3432 = vmatpush1.bf16.msra.mxu0 %v1709_v29  ;;  %2777 = vmatprep.subr.bf16.mxu1 %v1200_v40  ;;  %v2275_v29 = vcombine.high %v5358_v41, %v5358_v41  ;;  %v1215_v40 = vunpack.c.l.s8.bf16 %v543_v48  ;;  %v1217_v41 = vunpack.c.h.s8.bf16 %v543_v48  ;;  %v554_v48 = vld [vmem:[%s4824_s17 + $0x558] sm:$0xff] }
 0x2fe   : > { %3433 = vmatprep.subr.bf16.mxu0 %v1712_v60  ;;  %v1727_v60 = vunpack.c.l.s8.bf16 %v799_v26 }
 0x300   : > { %2778 = vmatpush1.bf16.msra.mxu1 %v1199_v45  ;;  %v546_v45 = vld [vmem:[%s4824_s17 + $0x518] sm:$0xff] }
 0x301   : > { %3434 = vmatpush1.bf16.msra.mxu0 %v1711_v32  ;;  %2779 = vmatprep.subr.bf16.mxu1 %v1202_v33  ;;  %v802_v32 = vld [vmem:[%s4824_s17 + $0xd18] sm:$0xff]  ;;  %v5419_v33 = vrot.slane %v2050_v49, %v4886_v50  ;;  %v1220_v53 = vunpack.c.l.s8.bf16 %v546_v45  ;;  %v1222_v46 = vunpack.c.h.s8.bf16 %v546_v45  ;;  %v1233_v49 = vunpack.c.h.s8.bf16 %v551_v19 }
 0x302   : > { %3435 = vmatprep.subr.bf16.mxu0 %v1714_v34  ;;  %v1729_v34 = vunpack.c.h.s8.bf16 %v799_v26  ;;  %v1732_v59 = vunpack.c.l.s8.bf16 %v802_v32  ;;  %v1734_v47 = vunpack.c.h.s8.bf16 %v802_v32  ;;  %v810_v26 = vld [vmem:[%s4824_s17 + $0xd58] sm:$0xff]  ;;  %v1238_v45 = vunpack.c.h.s8.bf16 %v554_v48 }
 0x303   : > { %v1750_v32 = vunpack.c.h.s8.bf16 %v810_v26 }
 0x304   : > { %2780 = vmatpush1.bf16.msra.mxu1 %v1201_v35  ;;  %v545_v35 = vld [vmem:[%s4824_s17 + $0x510] sm:$0xff] }
 0x305   : > { %3436 = vmatpush1.bf16.msra.mxu0 %v1713_v36  ;;  %2781 = vmatprep.subr.bf16.mxu1 %v1204_v42  ;;  %v801_v36 = vld [vmem:[%s4824_s17 + $0xd10] sm:$0xff]  ;;  %v1219_v42 = vunpack.c.l.s8.bf16 %v545_v35 }
 0x306   : > { %3437 = vmatprep.subr.bf16.mxu0 %v1716_v43  ;;  %v1731_v43 = vunpack.c.l.s8.bf16 %v801_v36 }
 0x308   : > { %2782 = vmatpush1.bf16.msra.mxu1 %v1203_v57  ;;  %v548_v57 = vld [vmem:[%s4824_s17 + $0x528] sm:$0xff] }
 0x309   : > { %3438 = vmatpush1.bf16.msra.mxu0 %v1715_v58  ;;  %2783 = vmatprep.subr.bf16.mxu1 %v1206_v55  ;;  %v804_v58 = vld [vmem:[%s4824_s17 + $0xd28] sm:$0xff]  ;;  %v1221_v55 = vunpack.c.h.s8.bf16 %v545_v35  ;;  %v1224_v56 = vunpack.c.l.s8.bf16 %v548_v57  ;;  %v1226_v61 = vunpack.c.h.s8.bf16 %v548_v57 }
 0x30a   : > { %3439 = vmatprep.subr.bf16.mxu0 %v1718_v1  ;;  %v1733_v1 = vunpack.c.h.s8.bf16 %v801_v36  ;;  %v1736_v2 = vunpack.c.l.s8.bf16 %v804_v58  ;;  %v1738_v15 = vunpack.c.h.s8.bf16 %v804_v58 }
 0x30c   : > { %2784 = vmatpush1.bf16.msra.mxu1 %v1205_v63  ;;  %v547_v63 = vld [vmem:[%s4824_s17 + $0x520] sm:$0xff] }
 0x30d   : > { %3440 = vmatpush1.bf16.msra.mxu0 %v1717_v3  ;;  %2785 = vmatprep.subr.bf16.mxu1 %v1208_v0  ;;  %v803_v3 = vld [vmem:[%s4824_s17 + $0xd20] sm:$0xff]  ;;  %v1223_v0 = vunpack.c.l.s8.bf16 %v547_v63 }
 0x30e   : > { %3441 = vmatprep.subr.bf16.mxu0 %v1720_v51  ;;  %v1735_v51 = vunpack.c.l.s8.bf16 %v803_v3 }
 0x310   : > { %2786 = vmatpush1.bf16.msra.mxu1 %v1207_v4  ;;  %v550_v4 = vld [vmem:[%s4824_s17 + $0x538] sm:$0xff] }
 0x311   : > { %3442 = vmatpush1.bf16.msra.mxu0 %v1719_v5  ;;  %2787 = vmatprep.subr.bf16.mxu1 %v1210_v52  ;;  %v806_v5 = vld [vmem:[%s4824_s17 + $0xd38] sm:$0xff]  ;;  %v1225_v52 = vunpack.c.h.s8.bf16 %v547_v63  ;;  %v1228_v13 = vunpack.c.l.s8.bf16 %v550_v4  ;;  %v1230_v62 = vunpack.c.h.s8.bf16 %v550_v4 }
 0x312   : > { %3443 = vmatprep.subr.bf16.mxu0 %v1722_v6  ;;  %v1737_v6 = vunpack.c.h.s8.bf16 %v803_v3  ;;  %v1740_v21 = vunpack.c.l.s8.bf16 %v806_v5  ;;  %v1742_v10 = vunpack.c.h.s8.bf16 %v806_v5 }
 0x314   : > { %2788 = vmatpush1.bf16.msra.mxu1 %v1209_v7  ;;  %v549_v7 = vld [vmem:[%s4824_s17 + $0x530] sm:$0xff] }
 0x315   : > { %3444 = vmatpush1.bf16.msra.mxu0 %v1721_v8  ;;  %2789 = vmatprep.subr.bf16.mxu1 %v1212_v16  ;;  %v805_v8 = vld [vmem:[%s4824_s17 + $0xd30] sm:$0xff]  ;;  %v1227_v16 = vunpack.c.l.s8.bf16 %v549_v7 }
 0x316   : > { %3445 = vmatprep.subr.bf16.mxu0 %v1724_v9  ;;  %v1739_v9 = vunpack.c.l.s8.bf16 %v805_v8 }
 0x318   : > { %2790 = vmatpush1.bf16.msra.mxu1 %v1211_v22  ;;  %v1229_v22 = vunpack.c.h.s8.bf16 %v549_v7 }
 0x319   : > { %3446 = vmatpush1.bf16.msra.mxu0 %v1723_v14  ;;  %2791 = vmatprep.subr.bf16.mxu1 %v1214_v17  ;;  %v1741_v14 = vunpack.c.h.s8.bf16 %v805_v8  ;;  %v1232_v17 = vunpack.c.l.s8.bf16 %v552_v11 }
 0x31a   : > { %3447 = vmatprep.subr.bf16.mxu0 %v1726_v18  ;;  %v1744_v18 = vunpack.c.l.s8.bf16 %v808_v12 }
 0x31c   : > { %2792 = vmatpush1.bf16.msra.mxu1 %v1213_v39  ;;  %v1231_v39 = vunpack.c.l.s8.bf16 %v551_v19  ;;  %v2278_v19 = vcombine.high %v5422_v54, %v5422_v54 }
 0x31d   : > { %3448 = vmatpush1.bf16.msra.mxu0 %v1725_v24  ;;  %2802 = vmatprep.subr.bf16.mxu1 %v1216_v27  ;;  %v1743_v24 = vunpack.c.l.s8.bf16 %v807_v20  ;;  %v1234_v27 = vunpack.c.h.s8.bf16 %v552_v11 }
 0x31e   : > { %3458 = vmatprep.subr.bf16.mxu0 %v1728_v25  ;;  %v1746_v25 = vunpack.c.h.s8.bf16 %v808_v12 }
 0x31f   : > { %2794 = vmatmul.mubr.bf16.vlgmr.msra.gmra.mrb[0].mxu1 %v2079_v31  ;;  %v1236_v31 = vunpack.c.l.s8.bf16 %v554_v48 }
 0x320   : > { %3450 = vmatmul.mubr.bf16.vlgmr.msra.gmra.mrb[0].mxu0 %v2275_v29  ;;  %2803 = vmatpush1.bf16.msra.mxu1 %v1215_v40  ;;  %v1748_v29 = vunpack.c.l.s8.bf16 %v810_v26  ;;  %v553_v40 = vld [vmem:[%s4824_s17 + $0x550] sm:$0xff] }
 0x321   : > { %3459 = vmatpush1.bf16.msra.mxu0 %v1727_v60  ;;  %2804 = vmatprep.subr.bf16.mxu1 %v1218_v44  ;;  %v809_v60 = vld [vmem:[%s4824_s17 + $0xd50] sm:$0xff]  ;;  %v1235_v44 = vunpack.c.l.s8.bf16 %v553_v40 }
 0x322   : > { %3460 = vmatprep.subr.bf16.mxu0 %v1730_v30  ;;  %2834 = vmatprep.mubr.bf16.mxu1 %v5419_v33  ;;  %v1747_v30 = vunpack.c.l.s8.bf16 %v809_v60 }
 0x323   : > { %3490 = vmatprep.mubr.bf16.mxu0 %v5422_v54 }
 0x324   : > { %2805 = vmatpush1.bf16.msra.mxu1 %v1217_v41  ;;  %v556_v41 = vld [vmem:[%s4824_s17 + $0x568] sm:$0xff] }
 0x325   : > { %3461 = vmatpush1.bf16.msra.mxu0 %v1729_v34  ;;  %2806 = vmatprep.subr.bf16.mxu1 %v1220_v53  ;;  %v812_v34 = vld [vmem:[%s4824_s17 + $0xd68] sm:$0xff]  ;;  %v1237_v53 = vunpack.c.h.s8.bf16 %v553_v40  ;;  %v1240_v35 = vunpack.c.l.s8.bf16 %v556_v41  ;;  %v1242_v57 = vunpack.c.h.s8.bf16 %v556_v41 }
 0x326   : > { %3462 = vmatprep.subr.bf16.mxu0 %v1732_v59  ;;  %v1749_v59 = vunpack.c.h.s8.bf16 %v809_v60  ;;  %v1752_v36 = vunpack.c.l.s8.bf16 %v812_v34  ;;  %v1754_v58 = vunpack.c.h.s8.bf16 %v812_v34 }
 0x328   : > { %2807 = vmatpush1.bf16.msra.mxu1 %v1219_v42  ;;  %v555_v42 = vld [vmem:[%s4824_s17 + $0x560] sm:$0xff] }
 0x329   : > { %3463 = vmatpush1.bf16.msra.mxu0 %v1731_v43  ;;  %2808 = vmatprep.subr.bf16.mxu1 %v1222_v46  ;;  %v811_v43 = vld [vmem:[%s4824_s17 + $0xd60] sm:$0xff]  ;;  %v1239_v46 = vunpack.c.l.s8.bf16 %v555_v42 }
 0x32a   : > { %3464 = vmatprep.subr.bf16.mxu0 %v1734_v47  ;;  %v1751_v47 = vunpack.c.l.s8.bf16 %v811_v43 }
 0x32c   : > { %2809 = vmatpush1.bf16.msra.mxu1 %v1221_v55  ;;  %v558_v55 = vld [vmem:[%s4824_s17 + $0x578] sm:$0xff] }
 0x32d   : > { %3465 = vmatpush1.bf16.msra.mxu0 %v1733_v1  ;;  %2810 = vmatprep.subr.bf16.mxu1 %v1224_v56  ;;  %v814_v1 = vld [vmem:[%s4824_s17 + $0xd78] sm:$0xff]  ;;  %v1241_v56 = vunpack.c.h.s8.bf16 %v555_v42  ;;  %v1244_v63 = vunpack.c.l.s8.bf16 %v558_v55  ;;  %v1246_v4 = vunpack.c.h.s8.bf16 %v558_v55 }
 0x32e   : > { %3466 = vmatprep.subr.bf16.mxu0 %v1736_v2  ;;  %v1753_v2 = vunpack.c.h.s8.bf16 %v811_v43  ;;  %v1756_v3 = vunpack.c.l.s8.bf16 %v814_v1  ;;  %v1758_v5 = vunpack.c.h.s8.bf16 %v814_v1 }
 0x330   : > { %2811 = vmatpush1.bf16.msra.mxu1 %v1223_v0  ;;  %v557_v0 = vld [vmem:[%s4824_s17 + $0x570] sm:$0xff] }
 0x331   : > { %3467 = vmatpush1.bf16.msra.mxu0 %v1735_v51  ;;  %2812 = vmatprep.subr.bf16.mxu1 %v1226_v61  ;;  %v813_v51 = vld [vmem:[%s4824_s17 + $0xd70] sm:$0xff]  ;;  %v1243_v61 = vunpack.c.l.s8.bf16 %v557_v0 }
 0x332   : > { %3468 = vmatprep.subr.bf16.mxu0 %v1738_v15  ;;  %v1755_v15 = vunpack.c.l.s8.bf16 %v813_v51 }
 0x334   : > { %2813 = vmatpush1.bf16.msra.mxu1 %v1225_v52  ;;  %v560_v52 = vld [vmem:[%s4824_s17 + $0x588] sm:$0xff] }
 0x335   : > { %3469 = vmatpush1.bf16.msra.mxu0 %v1737_v6  ;;  %2814 = vmatprep.subr.bf16.mxu1 %v1228_v13  ;;  %v816_v6 = vld [vmem:[%s4824_s17 + $0xd88] sm:$0xff]  ;;  %v1245_v13 = vunpack.c.h.s8.bf16 %v557_v0  ;;  %v1248_v7 = vunpack.c.l.s8.bf16 %v560_v52 }
 0x336   : > { %3470 = vmatprep.subr.bf16.mxu0 %v1740_v21  ;;  %v1757_v21 = vunpack.c.h.s8.bf16 %v813_v51  ;;  %v1760_v8 = vunpack.c.l.s8.bf16 %v816_v6 }
 0x338   : > { %2815 = vmatpush1.bf16.msra.mxu1 %v1227_v16  ;;  %v559_v16 = vld [vmem:[%s4824_s17 + $0x580] sm:$0xff] }
 0x339   : > { %3471 = vmatpush1.bf16.msra.mxu0 %v1739_v9  ;;  %2816 = vmatprep.subr.bf16.mxu1 %v1230_v62  ;;  %v815_v9 = vld [vmem:[%s4824_s17 + $0xd80] sm:$0xff]  ;;  %v5458_v62 = vrot.slane %v5401_v23, %v4886_v50  ;;  %v1247_v11 = vunpack.c.l.s8.bf16 %v559_v16  ;;  %v2082_v23 = vcombine.high %v5419_v33, %v5419_v33 }
 0x33a   : > { %3472 = vmatprep.subr.bf16.mxu0 %v1742_v10  ;;  %v5462_v10 = vrot.slane %v5404_v37, %v4886_v50  ;;  %v1759_v12 = vunpack.c.l.s8.bf16 %v815_v9  ;;  %v1249_v37 = vunpack.c.h.s8.bf16 %v559_v16  ;;  %v1761_v20 = vunpack.c.h.s8.bf16 %v815_v9 }
 0x33c   : > { %2817 = vmatpush1.bf16.msra.mxu1 %v1229_v22  ;;  %v1250_v22 = vunpack.c.h.s8.bf16 %v560_v52 }
 0x33d   : > { %3473 = vmatpush1.bf16.msra.mxu0 %v1741_v14  ;;  %2818 = vmatprep.subr.bf16.mxu1 %v1232_v17  ;;  %v1762_v14 = vunpack.c.h.s8.bf16 %v816_v6  ;;  %v562_v17 = vld [vmem:[%s4824_s17 + $0x598] sm:$0xff] }
 0x33e   : > { %3474 = vmatprep.subr.bf16.mxu0 %v1744_v18  ;;  %v818_v18 = vld [vmem:[%s4824_s17 + $0xd98] sm:$0xff]  ;;  %v1254_v48 = vunpack.c.h.s8.bf16 %v562_v17 }
 0x33f   : > { %v1766_v26 = vunpack.c.h.s8.bf16 %v818_v18 }
 0x340   : > { %2819 = vmatpush1.bf16.msra.mxu1 %v1231_v39  ;;  %v1252_v39 = vunpack.c.l.s8.bf16 %v562_v17 }
 0x341   : > { %3475 = vmatpush1.bf16.msra.mxu0 %v1743_v24  ;;  %2820 = vmatprep.subr.bf16.mxu1 %v1234_v27  ;;  %v1764_v24 = vunpack.c.l.s8.bf16 %v818_v18  ;;  %v561_v27 = vld [vmem:[%s4824_s17 + $0x590] sm:$0xff] }
 0x342   : > { %3476 = vmatprep.subr.bf16.mxu0 %v1746_v25  ;;  %v817_v25 = vld [vmem:[%s4824_s17 + $0xd90] sm:$0xff]  ;;  %v1251_v33 = vunpack.c.l.s8.bf16 %v561_v27 }
 0x343   : > { %v1763_v54 = vunpack.c.l.s8.bf16 %v817_v25 }
 0x344   : > { %2821 = vmatpush1.bf16.msra.mxu1 %v1233_v49  ;;  %v564_v49 = vld [vmem:[%s4824_s17 + $0x5a8] sm:$0xff] }
 0x345   : > { %3477 = vmatpush1.bf16.msra.mxu0 %v1745_v28  ;;  %2822 = vmatprep.subr.bf16.mxu1 %v1236_v31  ;;  %v820_v28 = vld [vmem:[%s4824_s17 + $0xda8] sm:$0xff]  ;;  %v1253_v31 = vunpack.c.h.s8.bf16 %v561_v27  ;;  %v1256_v40 = vunpack.c.l.s8.bf16 %v564_v49  ;;  %v1258_v41 = vunpack.c.h.s8.bf16 %v564_v49  ;;  %v571_v27 = vld [vmem:[%s4824_s17 + $0x5e0] sm:$0xff]  ;;  %v574_v49 = vld [vmem:[%s4824_s17 + $0x5f8] sm:$0xff] }
 0x346   : > { %3478 = vmatprep.subr.bf16.mxu0 %v1748_v29  ;;  %v1765_v29 = vunpack.c.h.s8.bf16 %v817_v25  ;;  %v1768_v60 = vunpack.c.l.s8.bf16 %v820_v28  ;;  %v1770_v34 = vunpack.c.h.s8.bf16 %v820_v28  ;;  %v827_v25 = vld [vmem:[%s4824_s17 + $0xde0] sm:$0xff]  ;;  %v830_v28 = vld [vmem:[%s4824_s17 + $0xdf8] sm:$0xff] }
 0x348   : > { %2823 = vmatpush1.bf16.msra.mxu1 %v1235_v44  ;;  %v563_v44 = vld [vmem:[%s4824_s17 + $0x5a0] sm:$0xff] }
 0x349   : > { %3479 = vmatpush1.bf16.msra.mxu0 %v1747_v30  ;;  %2824 = vmatprep.subr.bf16.mxu1 %v1238_v45  ;;  %v819_v30 = vld [vmem:[%s4824_s17 + $0xda0] sm:$0xff]  ;;  %v1255_v45 = vunpack.c.l.s8.bf16 %v563_v44 }
 0x34a   : > { %3480 = vmatprep.subr.bf16.mxu0 %v1750_v32  ;;  %v1767_v32 = vunpack.c.l.s8.bf16 %v819_v30 }
 0x34c   : > { %2825 = vmatpush1.bf16.msra.mxu1 %v1237_v53  ;;  %v566_v53 = vld [vmem:[%s4824_s17 + $0x5b8] sm:$0xff] }
 0x34d   : > { %3481 = vmatpush1.bf16.msra.mxu0 %v1749_v59  ;;  %2826 = vmatprep.subr.bf16.mxu1 %v1240_v35  ;;  %v822_v59 = vld [vmem:[%s4824_s17 + $0xdb8] sm:$0xff]  ;;  %v1257_v35 = vunpack.c.h.s8.bf16 %v563_v44  ;;  %v1260_v42 = vunpack.c.l.s8.bf16 %v566_v53  ;;  %v1262_v55 = vunpack.c.h.s8.bf16 %v566_v53  ;;  %v573_v44 = vld [vmem:[%s4824_s17 + $0x5f0] sm:$0xff]  ;;  %v1278_v53 = vunpack.c.h.s8.bf16 %v574_v49 }
 0x34e   : > { %3482 = vmatprep.subr.bf16.mxu0 %v1752_v36  ;;  %v1769_v36 = vunpack.c.h.s8.bf16 %v819_v30  ;;  %v1772_v43 = vunpack.c.l.s8.bf16 %v822_v59  ;;  %v1774_v1 = vunpack.c.h.s8.bf16 %v822_v59  ;;  %v829_v30 = vld [vmem:[%s4824_s17 + $0xdf0] sm:$0xff]  ;;  %v1790_v59 = vunpack.c.h.s8.bf16 %v830_v28 }
 0x350   : > { %2827 = vmatpush1.bf16.msra.mxu1 %v1239_v46  ;;  %v565_v46 = vld [vmem:[%s4824_s17 + $0x5b0] sm:$0xff] }
 0x351   : > { %3483 = vmatpush1.bf16.msra.mxu0 %v1751_v47  ;;  %2828 = vmatprep.subr.bf16.mxu1 %v1242_v57  ;;  %v821_v47 = vld [vmem:[%s4824_s17 + $0xdb0] sm:$0xff]  ;;  %v1259_v57 = vunpack.c.l.s8.bf16 %v565_v46 }
 0x352   : > { %3484 = vmatprep.subr.bf16.mxu0 %v1754_v58  ;;  %v1771_v58 = vunpack.c.l.s8.bf16 %v821_v47 }
 0x354   : > { %2829 = vmatpush1.bf16.msra.mxu1 %v1241_v56  ;;  %v568_v56 = vld [vmem:[%s4824_s17 + $0x5c8] sm:$0xff] }
 0x355   : > { %3485 = vmatpush1.bf16.msra.mxu0 %v1753_v2  ;;  %2830 = vmatprep.subr.bf16.mxu1 %v1244_v63  ;;  %v824_v2 = vld [vmem:[%s4824_s17 + $0xdc8] sm:$0xff]  ;;  %v1261_v63 = vunpack.c.h.s8.bf16 %v565_v46  ;;  %v1264_v0 = vunpack.c.l.s8.bf16 %v568_v56  ;;  %v1266_v52 = vunpack.c.h.s8.bf16 %v568_v56  ;;  %v1277_v46 = vunpack.c.h.s8.bf16 %v573_v44 }
 0x356   : > { %3486 = vmatprep.subr.bf16.mxu0 %v1756_v3  ;;  %v1773_v3 = vunpack.c.h.s8.bf16 %v821_v47  ;;  %v1776_v51 = vunpack.c.l.s8.bf16 %v824_v2  ;;  %v1778_v6 = vunpack.c.h.s8.bf16 %v824_v2  ;;  %v1789_v47 = vunpack.c.h.s8.bf16 %v829_v30 }
 0x358   : > { %2831 = vmatpush1.bf16.msra.mxu1 %v1243_v61  ;;  %v567_v61 = vld [vmem:[%s4824_s17 + $0x5c0] sm:$0xff] }
 0x359   : > { %3487 = vmatpush1.bf16.msra.mxu0 %v1755_v15  ;;  %2832 = vmatprep.subr.bf16.mxu1 %v1246_v4  ;;  %v823_v15 = vld [vmem:[%s4824_s17 + $0xdc0] sm:$0xff]  ;;  %v1263_v4 = vunpack.c.l.s8.bf16 %v567_v61 }
 0x35a   : > { %3488 = vmatprep.subr.bf16.mxu0 %v1758_v5  ;;  %v1775_v5 = vunpack.c.l.s8.bf16 %v823_v15 }
 0x35c   : > { %2833 = vmatpush1.bf16.msra.mxu1 %v1245_v13  ;;  %v570_v13 = vld [vmem:[%s4824_s17 + $0x5d8] sm:$0xff] }
 0x35d   : > { %3489 = vmatpush1.bf16.msra.mxu0 %v1757_v21  ;;  %2843 = vmatprep.subr.bf16.mxu1 %v1248_v7  ;;  %v826_v21 = vld [vmem:[%s4824_s17 + $0xdd8] sm:$0xff]  ;;  %v1265_v7 = vunpack.c.h.s8.bf16 %v567_v61  ;;  %v1268_v16 = vunpack.c.l.s8.bf16 %v570_v13  ;;  %v1270_v17 = vunpack.c.h.s8.bf16 %v570_v13 }
 0x35e   : > { %3499 = vmatprep.subr.bf16.mxu0 %v1760_v8  ;;  %v1777_v8 = vunpack.c.h.s8.bf16 %v823_v15  ;;  %v1780_v9 = vunpack.c.l.s8.bf16 %v826_v21  ;;  %v1782_v18 = vunpack.c.h.s8.bf16 %v826_v21 }
 0x35f   : > { %2835 = vmatmul.mubr.bf16.vlgmr.msra.gmra.mrb[0].mxu1 %v5458_v62 }
 0x360   : > { %3491 = vmatmul.mubr.bf16.vlgmr.msra.gmra.mrb[0].mxu0 %v5462_v10  ;;  %2844 = vmatpush1.bf16.msra.mxu1 %v1247_v11  ;;  %v569_v11 = vld [vmem:[%s4824_s17 + $0x5d0] sm:$0xff] }
 0x361   : > { %3500 = vmatpush1.bf16.msra.mxu0 %v1759_v12  ;;  %2845 = vmatprep.subr.bf16.mxu1 %v1250_v22  ;;  %v825_v12 = vld [vmem:[%s4824_s17 + $0xdd0] sm:$0xff]  ;;  %v1267_v22 = vunpack.c.l.s8.bf16 %v569_v11 }
 0x362   : > { %3501 = vmatprep.subr.bf16.mxu0 %v1762_v14  ;;  %2875 = vmatprep.mubr.bf16.mxu1 %v2082_v23  ;;  %v1779_v14 = vunpack.c.l.s8.bf16 %v825_v12  ;;  %v572_v23 = vld [vmem:[%s4824_s17 + $0x5e8] sm:$0xff] }
 0x363   : > { %3531 = vmatprep.mubr.bf16.mxu0 %v2278_v19  ;;  %v828_v19 = vld [vmem:[%s4824_s17 + $0xde8] sm:$0xff] }
 0x364   : > { %2846 = vmatpush1.bf16.msra.mxu1 %v1249_v37  ;;  %v1269_v37 = vunpack.c.h.s8.bf16 %v569_v11 }
 0x365   : > { %3502 = vmatpush1.bf16.msra.mxu0 %v1761_v20  ;;  %2847 = vmatprep.subr.bf16.mxu1 %v1252_v39  ;;  %v1781_v20 = vunpack.c.h.s8.bf16 %v825_v12  ;;  %v1272_v39 = vunpack.c.l.s8.bf16 %v572_v23 }
 0x366   : > { %3503 = vmatprep.subr.bf16.mxu0 %v1764_v24  ;;  %v1784_v24 = vunpack.c.l.s8.bf16 %v828_v19 }
 0x368   : > { %2848 = vmatpush1.bf16.msra.mxu1 %v1251_v33  ;;  %v1271_v33 = vunpack.c.l.s8.bf16 %v571_v27 }
 0x369   : > { %3504 = vmatpush1.bf16.msra.mxu0 %v1763_v54  ;;  %2849 = vmatprep.subr.bf16.mxu1 %v1254_v48  ;;  %v1783_v54 = vunpack.c.l.s8.bf16 %v827_v25  ;;  %v1274_v48 = vunpack.c.h.s8.bf16 %v572_v23 }
 0x36a   : > { %3505 = vmatprep.subr.bf16.mxu0 %v1766_v26  ;;  %v1786_v26 = vunpack.c.h.s8.bf16 %v828_v19 }
 0x36c   : > { %2850 = vmatpush1.bf16.msra.mxu1 %v1253_v31  ;;  %v1273_v31 = vunpack.c.h.s8.bf16 %v571_v27 }
 0x36d   : > { %3506 = vmatpush1.bf16.msra.mxu0 %v1765_v29  ;;  %2851 = vmatprep.subr.bf16.mxu1 %v1256_v40  ;;  %v1785_v29 = vunpack.c.h.s8.bf16 %v827_v25  ;;  %v1276_v40 = vunpack.c.l.s8.bf16 %v574_v49 }
 0x36e   : > { %3507 = vmatprep.subr.bf16.mxu0 %v1768_v60  ;;  %v1788_v60 = vunpack.c.l.s8.bf16 %v830_v28 }
 0x370   : > { %2852 = vmatpush1.bf16.msra.mxu1 %v1255_v45  ;;  %v5499_v45 = vld [vmem:[%s4846_s12 + $0x18] sm:$0xff] }
 0x371   : > { %3508 = vmatpush1.bf16.msra.mxu0 %v1767_v32  ;;  %2853 = vmatprep.subr.bf16.mxu1 %v1258_v41  ;;  %v5502_v32 = vld [vmem:[%s4846_s12 + $0x38] sm:$0xff]  ;;  %v1275_v41 = vunpack.c.l.s8.bf16 %v573_v44 }
 0x372   : > { %3509 = vmatprep.subr.bf16.mxu0 %v1770_v34  ;;  %v1787_v34 = vunpack.c.l.s8.bf16 %v829_v30 }
 0x374   : > { %2854 = vmatpush1.bf16.msra.mxu1 %v1257_v35  ;;  %v576_v35 = vld [vmem:[%s4824_s17 + $0x608] sm:$0xff] }
 0x375   : > { %3510 = vmatpush1.bf16.msra.mxu0 %v1769_v36  ;;  %2855 = vmatprep.subr.bf16.mxu1 %v1260_v42  ;;  %v832_v36 = vld [vmem:[%s4824_s17 + $0xe08] sm:$0xff]  ;;  %v5508_v42 = vrot.slane %v5499_v45, %v4886_v50  ;;  %v1282_v61 = vunpack.c.h.s8.bf16 %v576_v35 }
 0x376   : > { %3511 = vmatprep.subr.bf16.mxu0 %v1772_v43  ;;  %v5512_v43 = vrot.slane %v5502_v32, %v4886_v50  ;;  %v1794_v15 = vunpack.c.h.s8.bf16 %v832_v36 }
 0x377   : > { %v2098_v56 = vcombine.high %v5508_v42, %v5508_v42 }
 0x378   : > { %2856 = vmatpush1.bf16.msra.mxu1 %v1259_v57  ;;  %v1280_v57 = vunpack.c.l.s8.bf16 %v576_v35  ;;  %v2294_v2 = vcombine.high %v5512_v43, %v5512_v43 }
 0x379   : > { %3512 = vmatpush1.bf16.msra.mxu0 %v1771_v58  ;;  %2857 = vmatprep.subr.bf16.mxu1 %v1262_v55  ;;  %v1792_v58 = vunpack.c.l.s8.bf16 %v832_v36  ;;  %v575_v55 = vld [vmem:[%s4824_s17 + $0x600] sm:$0xff] }
 0x37a   : > { %3513 = vmatprep.subr.bf16.mxu0 %v1774_v1  ;;  %v831_v1 = vld [vmem:[%s4824_s17 + $0xe00] sm:$0xff] }
 0x37c   : > { %2858 = vmatpush1.bf16.msra.mxu1 %v1261_v63  ;;  %v2080_v63 = vcombine.high %v5458_v62, %v5458_v62  ;;  %v5530_v62 = vrot.slane %v2294_v2, %v4886_v50  ;;  %v842_v2 = vld [vmem:[%s4824_s17 + $0xe58] sm:$0xff] }
 0x37d   : > { %3514 = vmatpush1.bf16.msra.mxu0 %v1773_v3  ;;  %2859 = vmatprep.subr.bf16.mxu1 %v1264_v0  ;;  %v2276_v3 = vcombine.high %v5462_v10, %v5462_v10  ;;  %v1279_v0 = vunpack.c.l.s8.bf16 %v575_v55  ;;  %v1281_v10 = vunpack.c.h.s8.bf16 %v575_v55 }
 0x37e   : > { %3515 = vmatprep.subr.bf16.mxu0 %v1776_v51  ;;  %v1791_v51 = vunpack.c.l.s8.bf16 %v831_v1 }
 0x380   : > { %2860 = vmatpush1.bf16.msra.mxu1 %v1263_v4  ;;  %v578_v4 = vld [vmem:[%s4824_s17 + $0x618] sm:$0xff] }
 0x381   : > { %3516 = vmatpush1.bf16.msra.mxu0 %v1775_v5  ;;  %2861 = vmatprep.subr.bf16.mxu1 %v1266_v52  ;;  %v834_v5 = vld [vmem:[%s4824_s17 + $0xe18] sm:$0xff]  ;;  %v5527_v52 = vrot.slane %v2098_v56, %v4886_v50  ;;  %v1284_v13 = vunpack.c.l.s8.bf16 %v578_v4  ;;  %v1286_v11 = vunpack.c.h.s8.bf16 %v578_v4 }
 0x382   : > { %3517 = vmatprep.subr.bf16.mxu0 %v1778_v6  ;;  %v1793_v6 = vunpack.c.h.s8.bf16 %v831_v1  ;;  %v1796_v21 = vunpack.c.l.s8.bf16 %v834_v5  ;;  %v1798_v12 = vunpack.c.h.s8.bf16 %v834_v5  ;;  %v586_v56 = vld [vmem:[%s4824_s17 + $0x658] sm:$0xff] }
 0x384   : > { %2862 = vmatpush1.bf16.msra.mxu1 %v1265_v7  ;;  %v577_v7 = vld [vmem:[%s4824_s17 + $0x610] sm:$0xff] }
 0x385   : > { %3518 = vmatpush1.bf16.msra.mxu0 %v1777_v8  ;;  %2863 = vmatprep.subr.bf16.mxu1 %v1268_v16  ;;  %v833_v8 = vld [vmem:[%s4824_s17 + $0xe10] sm:$0xff]  ;;  %v1283_v16 = vunpack.c.l.s8.bf16 %v577_v7 }
 0x386   : > { %3519 = vmatprep.subr.bf16.mxu0 %v1780_v9  ;;  %v1795_v9 = vunpack.c.l.s8.bf16 %v833_v8 }
 0x388   : > { %2864 = vmatpush1.bf16.msra.mxu1 %v1267_v22  ;;  %v580_v22 = vld [vmem:[%s4824_s17 + $0x628] sm:$0xff] }
 0x389   : > { %3520 = vmatpush1.bf16.msra.mxu0 %v1779_v14  ;;  %2865 = vmatprep.subr.bf16.mxu1 %v1270_v17  ;;  %v836_v14 = vld [vmem:[%s4824_s17 + $0xe28] sm:$0xff]  ;;  %v1285_v17 = vunpack.c.h.s8.bf16 %v577_v7  ;;  %v1288_v23 = vunpack.c.l.s8.bf16 %v580_v22  ;;  %v1290_v27 = vunpack.c.h.s8.bf16 %v580_v22 }
 0x38a   : > { %3521 = vmatprep.subr.bf16.mxu0 %v1782_v18  ;;  %v1797_v18 = vunpack.c.h.s8.bf16 %v833_v8  ;;  %v1800_v19 = vunpack.c.l.s8.bf16 %v836_v14  ;;  %v1802_v25 = vunpack.c.h.s8.bf16 %v836_v14 }
 0x38c   : > { %2866 = vmatpush1.bf16.msra.mxu1 %v1269_v37  ;;  %v579_v37 = vld [vmem:[%s4824_s17 + $0x620] sm:$0xff] }
 0x38d   : > { %3522 = vmatpush1.bf16.msra.mxu0 %v1781_v20  ;;  %2867 = vmatprep.subr.bf16.mxu1 %v1272_v39  ;;  %v835_v20 = vld [vmem:[%s4824_s17 + $0xe20] sm:$0xff]  ;;  %v1287_v39 = vunpack.c.l.s8.bf16 %v579_v37 }
 0x38e   : > { %3523 = vmatprep.subr.bf16.mxu0 %v1784_v24  ;;  %v1799_v24 = vunpack.c.l.s8.bf16 %v835_v20 }
 0x390   : > { %2868 = vmatpush1.bf16.msra.mxu1 %v1271_v33  ;;  %v582_v33 = vld [vmem:[%s4824_s17 + $0x638] sm:$0xff] }
 0x391   : > { %3524 = vmatpush1.bf16.msra.mxu0 %v1783_v54  ;;  %2869 = vmatprep.subr.bf16.mxu1 %v1274_v48  ;;  %v838_v54 = vld [vmem:[%s4824_s17 + $0xe38] sm:$0xff]  ;;  %v1289_v48 = vunpack.c.h.s8.bf16 %v579_v37  ;;  %v1292_v49 = vunpack.c.l.s8.bf16 %v582_v33  ;;  %v1294_v44 = vunpack.c.h.s8.bf16 %v582_v33 }
 0x392   : > { %3525 = vmatprep.subr.bf16.mxu0 %v1786_v26  ;;  %v1801_v26 = vunpack.c.h.s8.bf16 %v835_v20  ;;  %v1804_v28 = vunpack.c.l.s8.bf16 %v838_v54  ;;  %v1806_v30 = vunpack.c.h.s8.bf16 %v838_v54 }
 0x394   : > { %2870 = vmatpush1.bf16.msra.mxu1 %v1273_v31  ;;  %v581_v31 = vld [vmem:[%s4824_s17 + $0x630] sm:$0xff] }
 0x395   : > { %3526 = vmatpush1.bf16.msra.mxu0 %v1785_v29  ;;  %2871 = vmatprep.subr.bf16.mxu1 %v1276_v40  ;;  %v837_v29 = vld [vmem:[%s4824_s17 + $0xe30] sm:$0xff]  ;;  %v1291_v40 = vunpack.c.l.s8.bf16 %v581_v31 }
 0x396   : > { %3527 = vmatprep.subr.bf16.mxu0 %v1788_v60  ;;  %v1803_v60 = vunpack.c.l.s8.bf16 %v837_v29 }
 0x398   : > { %2872 = vmatpush1.bf16.msra.mxu1 %v1275_v41  ;;  %v584_v41 = vld [vmem:[%s4824_s17 + $0x648] sm:$0xff] }
 0x399   : > { %3528 = vmatpush1.bf16.msra.mxu0 %v1787_v34  ;;  %2873 = vmatprep.subr.bf16.mxu1 %v1278_v53  ;;  %v840_v34 = vld [vmem:[%s4824_s17 + $0xe48] sm:$0xff]  ;;  %v1293_v53 = vunpack.c.h.s8.bf16 %v581_v31  ;;  %v1296_v35 = vunpack.c.l.s8.bf16 %v584_v41  ;;  %v1298_v55 = vunpack.c.h.s8.bf16 %v584_v41  ;;  %v5566_v41 = vrot.slane %v5508_v42, %v4886_v50 }
 0x39a   : > { %3529 = vmatprep.subr.bf16.mxu0 %v1790_v59  ;;  %v1805_v59 = vunpack.c.h.s8.bf16 %v837_v29  ;;  %v1808_v36 = vunpack.c.l.s8.bf16 %v840_v34  ;;  %v1810_v1 = vunpack.c.h.s8.bf16 %v840_v34  ;;  %v5570_v34 = vrot.slane %v5512_v43, %v4886_v50 }
 0x39b   : > { %v2130_v42 = vcombine.high %v5527_v52, %v5527_v52 }
 0x39c   : > { %2874 = vmatpush1.bf16.msra.mxu1 %v1277_v46  ;;  %v583_v46 = vld [vmem:[%s4824_s17 + $0x640] sm:$0xff] }
 0x39d   : > { %3530 = vmatpush1.bf16.msra.mxu0 %v1789_v47  ;;  %2884 = vmatprep.subr.bf16.mxu1 %v1280_v57  ;;  %v839_v47 = vld [vmem:[%s4824_s17 + $0xe40] sm:$0xff]  ;;  %v1295_v57 = vunpack.c.l.s8.bf16 %v583_v46 }
 0x39e   : > { %3540 = vmatprep.subr.bf16.mxu0 %v1792_v58  ;;  %v1807_v58 = vunpack.c.l.s8.bf16 %v839_v47 }
 0x39f   : > { %2876 = vmatmul.mubr.bf16.vlgmr.msra.gmra.mrb[0].mxu1 %v2080_v63  ;;  %v1297_v63 = vunpack.c.h.s8.bf16 %v583_v46  ;;  %v594_v46 = vld [vmem:[%s4824_s17 + $0x698] sm:$0xff] }
 0x3a0   : > { %3532 = vmatmul.mubr.bf16.vlgmr.msra.gmra.mrb[0].mxu0 %v2276_v3  ;;  %2885 = vmatpush1.bf16.msra.mxu1 %v1279_v0  ;;  %v1809_v3 = vunpack.c.h.s8.bf16 %v839_v47  ;;  %v1300_v0 = vunpack.c.l.s8.bf16 %v586_v56  ;;  %v850_v47 = vld [vmem:[%s4824_s17 + $0xe98] sm:$0xff] }
 0x3a1   : > { %3541 = vmatpush1.bf16.msra.mxu0 %v1791_v51  ;;  %2886 = vmatprep.subr.bf16.mxu1 %v1282_v61  ;;  %v1812_v51 = vunpack.c.l.s8.bf16 %v842_v2  ;;  %v585_v61 = vld [vmem:[%s4824_s17 + $0x650] sm:$0xff] }
 0x3a2   : > { %3542 = vmatprep.subr.bf16.mxu0 %v1794_v15  ;;  %2916 = vmatprep.mubr.bf16.mxu1 %v5527_v52  ;;  %v841_v15 = vld [vmem:[%s4824_s17 + $0xe50] sm:$0xff]  ;;  %v1299_v4 = vunpack.c.l.s8.bf16 %v585_v61  ;;  %v1301_v7 = vunpack.c.h.s8.bf16 %v585_v61 }
 0x3a3   : > { %3572 = vmatprep.mubr.bf16.mxu0 %v5530_v62  ;;  %v1811_v5 = vunpack.c.l.s8.bf16 %v841_v15  ;;  %v1813_v8 = vunpack.c.h.s8.bf16 %v841_v15 }
 0x3a4   : > { %2887 = vmatpush1.bf16.msra.mxu1 %v1281_v10  ;;  %v1302_v10 = vunpack.c.h.s8.bf16 %v586_v56  ;;  %v593_v56 = vld [vmem:[%s4824_s17 + $0x690] sm:$0xff] }
 0x3a5   : > { %3543 = vmatpush1.bf16.msra.mxu0 %v1793_v6  ;;  %2888 = vmatprep.subr.bf16.mxu1 %v1284_v13  ;;  %v1814_v6 = vunpack.c.h.s8.bf16 %v842_v2  ;;  %v588_v13 = vld [vmem:[%s4824_s17 + $0x668] sm:$0xff]  ;;  %v849_v2 = vld [vmem:[%s4824_s17 + $0xe90] sm:$0xff]  ;;  %v1315_v52 = vunpack.c.l.s8.bf16 %v593_v56  ;;  %v1317_v61 = vunpack.c.h.s8.bf16 %v593_v56 }
 0x3a6   : > { %3544 = vmatprep.subr.bf16.mxu0 %v1796_v21  ;;  %v844_v21 = vld [vmem:[%s4824_s17 + $0xe68] sm:$0xff]  ;;  %v1829_v15 = vunpack.c.h.s8.bf16 %v849_v2 }
 0x3a8   : > { %2889 = vmatpush1.bf16.msra.mxu1 %v1283_v16  ;;  %v1304_v16 = vunpack.c.l.s8.bf16 %v588_v13 }
 0x3a9   : > { %3545 = vmatpush1.bf16.msra.mxu0 %v1795_v9  ;;  %2890 = vmatprep.subr.bf16.mxu1 %v1286_v11  ;;  %v1816_v9 = vunpack.c.l.s8.bf16 %v844_v21  ;;  %v587_v11 = vld [vmem:[%s4824_s17 + $0x660] sm:$0xff] }
 0x3aa   : > { %3546 = vmatprep.subr.bf16.mxu0 %v1798_v12  ;;  %v843_v12 = vld [vmem:[%s4824_s17 + $0xe60] sm:$0xff]  ;;  %v1303_v22 = vunpack.c.l.s8.bf16 %v587_v11  ;;  %v1305_v37 = vunpack.c.h.s8.bf16 %v587_v11 }
 0x3ab   : > { %v1815_v14 = vunpack.c.l.s8.bf16 %v843_v12  ;;  %v1817_v20 = vunpack.c.h.s8.bf16 %v843_v12 }
 0x3ac   : > { %2891 = vmatpush1.bf16.msra.mxu1 %v1285_v17  ;;  %v1306_v17 = vunpack.c.h.s8.bf16 %v588_v13 }
 0x3ad   : > { %3547 = vmatpush1.bf16.msra.mxu0 %v1797_v18  ;;  %2892 = vmatprep.subr.bf16.mxu1 %v1288_v23  ;;  %v1818_v18 = vunpack.c.h.s8.bf16 %v844_v21  ;;  %v590_v23 = vld [vmem:[%s4824_s17 + $0x678] sm:$0xff] }
 0x3ae   : > { %3548 = vmatprep.subr.bf16.mxu0 %v1800_v19  ;;  %v846_v19 = vld [vmem:[%s4824_s17 + $0xe78] sm:$0xff] }
 0x3b0   : > { %2893 = vmatpush1.bf16.msra.mxu1 %v1287_v39  ;;  %v1308_v39 = vunpack.c.l.s8.bf16 %v590_v23 }
 0x3b1   : > { %3549 = vmatpush1.bf16.msra.mxu0 %v1799_v24  ;;  %2894 = vmatprep.subr.bf16.mxu1 %v1290_v27  ;;  %v1820_v24 = vunpack.c.l.s8.bf16 %v846_v19  ;;  %v589_v27 = vld [vmem:[%s4824_s17 + $0x670] sm:$0xff] }
 0x3b2   : > { %3550 = vmatprep.subr.bf16.mxu0 %v1802_v25  ;;  %v845_v25 = vld [vmem:[%s4824_s17 + $0xe70] sm:$0xff]  ;;  %v1307_v33 = vunpack.c.l.s8.bf16 %v589_v27  ;;  %v1309_v31 = vunpack.c.h.s8.bf16 %v589_v27 }
 0x3b3   : > { %v1819_v54 = vunpack.c.l.s8.bf16 %v845_v25  ;;  %v1821_v29 = vunpack.c.h.s8.bf16 %v845_v25 }
 0x3b4   : > { %2895 = vmatpush1.bf16.msra.mxu1 %v1289_v48  ;;  %v1310_v48 = vunpack.c.h.s8.bf16 %v590_v23 }
 0x3b5   : > { %3551 = vmatpush1.bf16.msra.mxu0 %v1801_v26  ;;  %2896 = vmatprep.subr.bf16.mxu1 %v1292_v49  ;;  %v1822_v26 = vunpack.c.h.s8.bf16 %v846_v19  ;;  %v592_v49 = vld [vmem:[%s4824_s17 + $0x688] sm:$0xff] }
 0x3b6   : > { %3552 = vmatprep.subr.bf16.mxu0 %v1804_v28  ;;  %v848_v28 = vld [vmem:[%s4824_s17 + $0xe88] sm:$0xff] }
 0x3b8   : > { %2897 = vmatpush1.bf16.msra.mxu1 %v1291_v40  ;;  %v1312_v40 = vunpack.c.l.s8.bf16 %v592_v49 }
 0x3b9   : > { %3553 = vmatpush1.bf16.msra.mxu0 %v1803_v60  ;;  %2898 = vmatprep.subr.bf16.mxu1 %v1294_v44  ;;  %v1824_v60 = vunpack.c.l.s8.bf16 %v848_v28  ;;  %v591_v44 = vld [vmem:[%s4824_s17 + $0x680] sm:$0xff] }
 0x3ba   : > { %3554 = vmatprep.subr.bf16.mxu0 %v1806_v30  ;;  %v847_v30 = vld [vmem:[%s4824_s17 + $0xe80] sm:$0xff]  ;;  %v1313_v43 = vunpack.c.h.s8.bf16 %v591_v44 }
 0x3bc   : > { %2899 = vmatpush1.bf16.msra.mxu1 %v1293_v53  ;;  %v1311_v53 = vunpack.c.l.s8.bf16 %v591_v44 }
 0x3bd   : > { %3555 = vmatpush1.bf16.msra.mxu0 %v1805_v59  ;;  %2900 = vmatprep.subr.bf16.mxu1 %v1296_v35  ;;  %v1823_v59 = vunpack.c.l.s8.bf16 %v847_v30  ;;  %v1314_v35 = vunpack.c.h.s8.bf16 %v592_v49 }
 0x3be   : > { %3556 = vmatprep.subr.bf16.mxu0 %v1808_v36  ;;  %v1826_v36 = vunpack.c.h.s8.bf16 %v848_v28 }
 0x3c0   : > { %2901 = vmatpush1.bf16.msra.mxu1 %v1295_v57  ;;  %v2326_v57 = vcombine.high %v5530_v62, %v5530_v62  ;;  %v1827_v62 = vunpack.c.l.s8.bf16 %v849_v2 }
 0x3c1   : > { %3557 = vmatpush1.bf16.msra.mxu0 %v1807_v58  ;;  %2902 = vmatprep.subr.bf16.mxu1 %v1298_v55  ;;  %v1825_v58 = vunpack.c.h.s8.bf16 %v847_v30  ;;  %v1316_v55 = vunpack.c.l.s8.bf16 %v594_v46 }
 0x3c2   : > { %3558 = vmatprep.subr.bf16.mxu0 %v1810_v1  ;;  %v1828_v1 = vunpack.c.l.s8.bf16 %v850_v47 }
 0x3c4   : > { %2903 = vmatpush1.bf16.msra.mxu1 %v1297_v63  ;;  %v1318_v63 = vunpack.c.h.s8.bf16 %v594_v46 }
 0x3c5   : > { %3559 = vmatpush1.bf16.msra.mxu0 %v1809_v3  ;;  %2904 = vmatprep.subr.bf16.mxu1 %v1300_v0  ;;  %v1830_v3 = vunpack.c.h.s8.bf16 %v850_v47  ;;  %v596_v0 = vld [vmem:[%s4824_s17 + $0x6a8] sm:$0xff] }
 0x3c6   : > { %3560 = vmatprep.subr.bf16.mxu0 %v1812_v51  ;;  %v852_v51 = vld [vmem:[%s4824_s17 + $0xea8] sm:$0xff] }
 0x3c8   : > { %2905 = vmatpush1.bf16.msra.mxu1 %v1299_v4  ;;  %v1320_v4 = vunpack.c.l.s8.bf16 %v596_v0 }
 0x3c9   : > { %3561 = vmatpush1.bf16.msra.mxu0 %v1811_v5  ;;  %2906 = vmatprep.subr.bf16.mxu1 %v1302_v10  ;;  %v1832_v5 = vunpack.c.l.s8.bf16 %v852_v51  ;;  %v595_v10 = vld [vmem:[%s4824_s17 + $0x6a0] sm:$0xff] }
 0x3ca   : > { %3562 = vmatprep.subr.bf16.mxu0 %v1814_v6  ;;  %v851_v6 = vld [vmem:[%s4824_s17 + $0xea0] sm:$0xff]  ;;  %v1319_v13 = vunpack.c.l.s8.bf16 %v595_v10  ;;  %v1321_v11 = vunpack.c.h.s8.bf16 %v595_v10 }
 0x3cb   : > { %v1831_v21 = vunpack.c.l.s8.bf16 %v851_v6  ;;  %v1833_v12 = vunpack.c.h.s8.bf16 %v851_v6 }
 0x3cc   : > { %2907 = vmatpush1.bf16.msra.mxu1 %v1301_v7  ;;  %v1322_v7 = vunpack.c.h.s8.bf16 %v596_v0 }
 0x3cd   : > { %3563 = vmatpush1.bf16.msra.mxu0 %v1813_v8  ;;  %2908 = vmatprep.subr.bf16.mxu1 %v1304_v16  ;;  %v1834_v8 = vunpack.c.h.s8.bf16 %v852_v51  ;;  %v598_v16 = vld [vmem:[%s4824_s17 + $0x6b8] sm:$0xff] }
 0x3ce   : > { %3564 = vmatprep.subr.bf16.mxu0 %v1816_v9  ;;  %v854_v9 = vld [vmem:[%s4824_s17 + $0xeb8] sm:$0xff] }
 0x3d0   : > { %2909 = vmatpush1.bf16.msra.mxu1 %v1303_v22  ;;  %v1324_v22 = vunpack.c.l.s8.bf16 %v598_v16 }
 0x3d1   : > { %3565 = vmatpush1.bf16.msra.mxu0 %v1815_v14  ;;  %2910 = vmatprep.subr.bf16.mxu1 %v1306_v17  ;;  %v1836_v14 = vunpack.c.l.s8.bf16 %v854_v9  ;;  %v597_v17 = vld [vmem:[%s4824_s17 + $0x6b0] sm:$0xff] }
 0x3d2   : > { %3566 = vmatprep.subr.bf16.mxu0 %v1818_v18  ;;  %v853_v18 = vld [vmem:[%s4824_s17 + $0xeb0] sm:$0xff]  ;;  %v1323_v23 = vunpack.c.l.s8.bf16 %v597_v17  ;;  %v1325_v27 = vunpack.c.h.s8.bf16 %v597_v17 }
 0x3d3   : > { %v1835_v19 = vunpack.c.l.s8.bf16 %v853_v18  ;;  %v1837_v25 = vunpack.c.h.s8.bf16 %v853_v18 }
 0x3d4   : > { %2911 = vmatpush1.bf16.msra.mxu1 %v1305_v37  ;;  %v1326_v37 = vunpack.c.h.s8.bf16 %v598_v16 }
 0x3d5   : > { %3567 = vmatpush1.bf16.msra.mxu0 %v1817_v20  ;;  %2912 = vmatprep.subr.bf16.mxu1 %v1308_v39  ;;  %v1838_v20 = vunpack.c.h.s8.bf16 %v854_v9  ;;  %v600_v39 = vld [vmem:[%s4824_s17 + $0x6c8] sm:$0xff] }
 0x3d6   : > { %3568 = vmatprep.subr.bf16.mxu0 %v1820_v24  ;;  %v856_v24 = vld [vmem:[%s4824_s17 + $0xec8] sm:$0xff] }
 0x3d8   : > { %2913 = vmatpush1.bf16.msra.mxu1 %v1307_v33  ;;  %v1328_v33 = vunpack.c.l.s8.bf16 %v600_v39 }
 0x3d9   : > { %3569 = vmatpush1.bf16.msra.mxu0 %v1819_v54  ;;  %2914 = vmatprep.subr.bf16.mxu1 %v1310_v48  ;;  %v1840_v54 = vunpack.c.l.s8.bf16 %v856_v24  ;;  %v599_v48 = vld [vmem:[%s4824_s17 + $0x6c0] sm:$0xff] }
 0x3da   : > { %3570 = vmatprep.subr.bf16.mxu0 %v1822_v26  ;;  %v855_v26 = vld [vmem:[%s4824_s17 + $0xec0] sm:$0xff]  ;;  %v1327_v49 = vunpack.c.l.s8.bf16 %v599_v48  ;;  %v1329_v44 = vunpack.c.h.s8.bf16 %v599_v48 }
 0x3db   : > { %v1839_v28 = vunpack.c.l.s8.bf16 %v855_v26  ;;  %v1841_v30 = vunpack.c.h.s8.bf16 %v855_v26 }
 0x3dc   : > { %2915 = vmatpush1.bf16.msra.mxu1 %v1309_v31  ;;  %v1330_v31 = vunpack.c.h.s8.bf16 %v600_v39 }
 0x3dd   : > { %3571 = vmatpush1.bf16.msra.mxu0 %v1821_v29  ;;  %2925 = vmatprep.subr.bf16.mxu1 %v1312_v40  ;;  %v1842_v29 = vunpack.c.h.s8.bf16 %v856_v24  ;;  %v602_v40 = vld [vmem:[%s4824_s17 + $0x6d8] sm:$0xff] }
 0x3de   : > { %3581 = vmatprep.subr.bf16.mxu0 %v1824_v60  ;;  %v858_v60 = vld [vmem:[%s4824_s17 + $0xed8] sm:$0xff] }
 0x3df   : > { %2917 = vmatmul.mubr.bf16.vlgmr.msra.gmra.mrb[0].mxu1 %v5566_v41 }
 0x3e0   : > { %3573 = vmatmul.mubr.bf16.vlgmr.msra.gmra.mrb[0].mxu0 %v5570_v34  ;;  %2926 = vmatpush1.bf16.msra.mxu1 %v1311_v53  ;;  %v1332_v53 = vunpack.c.l.s8.bf16 %v602_v40 }
 0x3e1   : > { %3582 = vmatpush1.bf16.msra.mxu0 %v1823_v59  ;;  %2927 = vmatprep.subr.bf16.mxu1 %v1314_v35  ;;  %v1844_v59 = vunpack.c.l.s8.bf16 %v858_v60  ;;  %v601_v35 = vld [vmem:[%s4824_s17 + $0x6d0] sm:$0xff] }
 0x3e2   : > { %3583 = vmatprep.subr.bf16.mxu0 %v1826_v36  ;;  %2957 = vmatprep.mubr.bf16.mxu1 %v2130_v42  ;;  %v857_v36 = vld [vmem:[%s4824_s17 + $0xed0] sm:$0xff]  ;;  %v1331_v46 = vunpack.c.l.s8.bf16 %v601_v35  ;;  %v1334_v42 = vunpack.c.h.s8.bf16 %v602_v40 }
 0x3e3   : > { %3613 = vmatprep.mubr.bf16.mxu0 %v2326_v57  ;;  %v1843_v47 = vunpack.c.l.s8.bf16 %v857_v36  ;;  %v1846_v57 = vunpack.c.h.s8.bf16 %v858_v60 }
 0x3e4   : > { %2928 = vmatpush1.bf16.msra.mxu1 %v1313_v43  ;;  %v604_v43 = vld [vmem:[%s4824_s17 + $0x6e8] sm:$0xff] }
 0x3e5   : > { %3584 = vmatpush1.bf16.msra.mxu0 %v1825_v58  ;;  %2929 = vmatprep.subr.bf16.mxu1 %v1316_v55  ;;  %v860_v58 = vld [vmem:[%s4824_s17 + $0xee8] sm:$0xff]  ;;  %v1333_v55 = vunpack.c.h.s8.bf16 %v601_v35  ;;  %v1336_v56 = vunpack.c.l.s8.bf16 %v604_v43  ;;  %v1338_v0 = vunpack.c.h.s8.bf16 %v604_v43 }
 0x3e6   : > { %3585 = vmatprep.subr.bf16.mxu0 %v1828_v1  ;;  %v1845_v1 = vunpack.c.h.s8.bf16 %v857_v36  ;;  %v1848_v2 = vunpack.c.l.s8.bf16 %v860_v58  ;;  %v1850_v51 = vunpack.c.h.s8.bf16 %v860_v58 }
 0x3e8   : > { %2930 = vmatpush1.bf16.msra.mxu1 %v1315_v52  ;;  %v603_v52 = vld [vmem:[%s4824_s17 + $0x6e0] sm:$0xff] }
 0x3e9   : > { %3586 = vmatpush1.bf16.msra.mxu0 %v1827_v62  ;;  %2931 = vmatprep.subr.bf16.mxu1 %v1318_v63  ;;  %v859_v62 = vld [vmem:[%s4824_s17 + $0xee0] sm:$0xff]  ;;  %v1335_v63 = vunpack.c.l.s8.bf16 %v603_v52 }
 0x3ea   : > { %3587 = vmatprep.subr.bf16.mxu0 %v1830_v3  ;;  %v1847_v3 = vunpack.c.l.s8.bf16 %v859_v62 }
 0x3ec   : > { %2932 = vmatpush1.bf16.msra.mxu1 %v1317_v61  ;;  %v606_v61 = vld [vmem:[%s4824_s17 + $0x6f8] sm:$0xff] }
 0x3ed   : > { %3588 = vmatpush1.bf16.msra.mxu0 %v1829_v15  ;;  %2933 = vmatprep.subr.bf16.mxu1 %v1320_v4  ;;  %v862_v15 = vld [vmem:[%s4824_s17 + $0xef8] sm:$0xff]  ;;  %v1337_v4 = vunpack.c.h.s8.bf16 %v603_v52  ;;  %v1340_v10 = vunpack.c.l.s8.bf16 %v606_v61 }
 0x3ee   : > { %3589 = vmatprep.subr.bf16.mxu0 %v1832_v5  ;;  %v1849_v5 = vunpack.c.h.s8.bf16 %v859_v62  ;;  %v1852_v6 = vunpack.c.l.s8.bf16 %v862_v15 }
 0x3f0   : > { %2934 = vmatpush1.bf16.msra.mxu1 %v1319_v13  ;;  %v605_v13 = vld [vmem:[%s4824_s17 + $0x6f0] sm:$0xff] }
 0x3f1   : > { %3590 = vmatpush1.bf16.msra.mxu0 %v1831_v21  ;;  %2935 = vmatprep.subr.bf16.mxu1 %v1322_v7  ;;  %v861_v21 = vld [vmem:[%s4824_s17 + $0xef0] sm:$0xff]  ;;  %v2083_v7 = vcombine.high %v5499_v45, %v5499_v45  ;;  %v1339_v16 = vunpack.c.l.s8.bf16 %v605_v13 }
 0x3f2   : > { %3591 = vmatprep.subr.bf16.mxu0 %v1834_v8  ;;  %v2279_v8 = vcombine.high %v5502_v32, %v5502_v32  ;;  %v1851_v9 = vunpack.c.l.s8.bf16 %v861_v21  ;;  %v1341_v32 = vunpack.c.h.s8.bf16 %v605_v13  ;;  %v1853_v18 = vunpack.c.h.s8.bf16 %v861_v21 }
 0x3f3   : > { %v5613_v17 = vrot.slane %v2083_v7, %v4886_v50  ;;  %v616_v7 = vld [vmem:[%s4824_s17 + $0x748] sm:$0xff] }
 0x3f4   : > { %2936 = vmatpush1.bf16.msra.mxu1 %v1321_v11  ;;  %v1342_v11 = vunpack.c.h.s8.bf16 %v606_v61  ;;  %v5616_v45 = vrot.slane %v2279_v8, %v4886_v50  ;;  %v872_v8 = vld [vmem:[%s4824_s17 + $0xf48] sm:$0xff] }
 0x3f5   : > { %3592 = vmatpush1.bf16.msra.mxu0 %v1833_v12  ;;  %2937 = vmatprep.subr.bf16.mxu1 %v1324_v22  ;;  %v1854_v12 = vunpack.c.h.s8.bf16 %v862_v15  ;;  %v608_v22 = vld [vmem:[%s4824_s17 + $0x708] sm:$0xff]  ;;  %v2099_v39 = vcombine.high %v5613_v17, %v5613_v17 }
 0x3f6   : > { %3593 = vmatprep.subr.bf16.mxu0 %v1836_v14  ;;  %v864_v14 = vld [vmem:[%s4824_s17 + $0xf08] sm:$0xff]  ;;  %v2295_v24 = vcombine.high %v5616_v45, %v5616_v45  ;;  %v1346_v48 = vunpack.c.h.s8.bf16 %v608_v22 }
 0x3f7   : > { %v1858_v26 = vunpack.c.h.s8.bf16 %v864_v14 }
 0x3f8   : > { %2938 = vmatpush1.bf16.msra.mxu1 %v1323_v23  ;;  %v1344_v23 = vunpack.c.l.s8.bf16 %v608_v22  ;;  %v615_v22 = vld [vmem:[%s4824_s17 + $0x740] sm:$0xff] }
 0x3f9   : > { %3594 = vmatpush1.bf16.msra.mxu0 %v1835_v19  ;;  %2939 = vmatprep.subr.bf16.mxu1 %v1326_v37  ;;  %v1856_v19 = vunpack.c.l.s8.bf16 %v864_v14  ;;  %v607_v37 = vld [vmem:[%s4824_s17 + $0x700] sm:$0xff] }
 0x3fa   : > { %3595 = vmatprep.subr.bf16.mxu0 %v1838_v20  ;;  %v863_v20 = vld [vmem:[%s4824_s17 + $0xf00] sm:$0xff] }
 0x3fb   : > { %v871_v14 = vld [vmem:[%s4824_s17 + $0xf40] sm:$0xff] }
 0x3fc   : > { %2940 = vmatpush1.bf16.msra.mxu1 %v1325_v27  ;;  %v2128_v27 = vcombine.high %v5566_v41, %v5566_v41  ;;  %v5634_v41 = vrot.slane %v2295_v24, %v4886_v50  ;;  %v1873_v24 = vunpack.c.h.s8.bf16 %v871_v14 }
 0x3fd   : > { %3596 = vmatpush1.bf16.msra.mxu0 %v1837_v25  ;;  %2941 = vmatprep.subr.bf16.mxu1 %v1328_v33  ;;  %v2324_v25 = vcombine.high %v5570_v34, %v5570_v34  ;;  %v1343_v33 = vunpack.c.l.s8.bf16 %v607_v37  ;;  %v1345_v34 = vunpack.c.h.s8.bf16 %v607_v37  ;;  %v618_v37 = vld [vmem:[%s4824_s17 + $0x758] sm:$0xff] }
 0x3fe   : > { %3597 = vmatprep.subr.bf16.mxu0 %v1840_v54  ;;  %v1855_v54 = vunpack.c.l.s8.bf16 %v863_v20 }
 0x400   : > { %2942 = vmatpush1.bf16.msra.mxu1 %v1327_v49  ;;  %v610_v49 = vld [vmem:[%s4824_s17 + $0x718] sm:$0xff] }
 0x401   : > { %3598 = vmatpush1.bf16.msra.mxu0 %v1839_v28  ;;  %2943 = vmatprep.subr.bf16.mxu1 %v1330_v31  ;;  %v866_v28 = vld [vmem:[%s4824_s17 + $0xf18] sm:$0xff]  ;;  %v5631_v31 = vrot.slane %v2099_v39, %v4886_v50  ;;  %v1348_v40 = vunpack.c.l.s8.bf16 %v610_v49  ;;  %v1350_v35 = vunpack.c.h.s8.bf16 %v610_v49  ;;  %v1361_v39 = vunpack.c.h.s8.bf16 %v615_v22 }
 0x402   : > { %3599 = vmatprep.subr.bf16.mxu0 %v1842_v29  ;;  %v1857_v29 = vunpack.c.h.s8.bf16 %v863_v20  ;;  %v1860_v60 = vunpack.c.l.s8.bf16 %v866_v28  ;;  %v1862_v36 = vunpack.c.h.s8.bf16 %v866_v28  ;;  %v874_v20 = vld [vmem:[%s4824_s17 + $0xf58] sm:$0xff]  ;;  %v1366_v49 = vunpack.c.h.s8.bf16 %v618_v37 }
 0x403   : > { %v1878_v28 = vunpack.c.h.s8.bf16 %v874_v20 }
 0x404   : > { %2944 = vmatpush1.bf16.msra.mxu1 %v1329_v44  ;;  %v609_v44 = vld [vmem:[%s4824_s17 + $0x710] sm:$0xff] }
 0x405   : > { %3600 = vmatpush1.bf16.msra.mxu0 %v1841_v30  ;;  %2945 = vmatprep.subr.bf16.mxu1 %v1332_v53  ;;  %v865_v30 = vld [vmem:[%s4824_s17 + $0xf10] sm:$0xff]  ;;  %v1347_v53 = vunpack.c.l.s8.bf16 %v609_v44 }
 0x406   : > { %3601 = vmatprep.subr.bf16.mxu0 %v1844_v59  ;;  %v1859_v59 = vunpack.c.l.s8.bf16 %v865_v30 }
 0x408   : > { %2946 = vmatpush1.bf16.msra.mxu1 %v1331_v46  ;;  %v612_v46 = vld [vmem:[%s4824_s17 + $0x728] sm:$0xff] }
 0x409   : > { %3602 = vmatpush1.bf16.msra.mxu0 %v1843_v47  ;;  %2947 = vmatprep.subr.bf16.mxu1 %v1334_v42  ;;  %v868_v47 = vld [vmem:[%s4824_s17 + $0xf28] sm:$0xff]  ;;  %v1349_v42 = vunpack.c.h.s8.bf16 %v609_v44  ;;  %v1352_v43 = vunpack.c.l.s8.bf16 %v612_v46  ;;  %v1354_v52 = vunpack.c.h.s8.bf16 %v612_v46 }
 0x40a   : > { %3603 = vmatprep.subr.bf16.mxu0 %v1846_v57  ;;  %v1861_v57 = vunpack.c.h.s8.bf16 %v865_v30  ;;  %v1864_v58 = vunpack.c.l.s8.bf16 %v868_v47  ;;  %v1866_v62 = vunpack.c.h.s8.bf16 %v868_v47 }
 0x40c   : > { %2948 = vmatpush1.bf16.msra.mxu1 %v1333_v55  ;;  %v611_v55 = vld [vmem:[%s4824_s17 + $0x720] sm:$0xff] }
 0x40d   : > { %3604 = vmatpush1.bf16.msra.mxu0 %v1845_v1  ;;  %2949 = vmatprep.subr.bf16.mxu1 %v1336_v56  ;;  %v867_v1 = vld [vmem:[%s4824_s17 + $0xf20] sm:$0xff]  ;;  %v1351_v56 = vunpack.c.l.s8.bf16 %v611_v55 }
 0x40e   : > { %3605 = vmatprep.subr.bf16.mxu0 %v1848_v2  ;;  %v1863_v2 = vunpack.c.l.s8.bf16 %v867_v1 }
 0x410   : > { %2950 = vmatpush1.bf16.msra.mxu1 %v1335_v63  ;;  %v614_v63 = vld [vmem:[%s4824_s17 + $0x738] sm:$0xff] }
 0x411   : > { %3606 = vmatpush1.bf16.msra.mxu0 %v1847_v3  ;;  %2951 = vmatprep.subr.bf16.mxu1 %v1338_v0  ;;  %v870_v3 = vld [vmem:[%s4824_s17 + $0xf38] sm:$0xff]  ;;  %v1353_v0 = vunpack.c.h.s8.bf16 %v611_v55  ;;  %v1356_v61 = vunpack.c.l.s8.bf16 %v614_v63  ;;  %v1358_v13 = vunpack.c.h.s8.bf16 %v614_v63 }
 0x412   : > { %3607 = vmatprep.subr.bf16.mxu0 %v1850_v51  ;;  %v1865_v51 = vunpack.c.h.s8.bf16 %v867_v1  ;;  %v1868_v15 = vunpack.c.l.s8.bf16 %v870_v3  ;;  %v1870_v21 = vunpack.c.h.s8.bf16 %v870_v3 }
 0x414   : > { %2952 = vmatpush1.bf16.msra.mxu1 %v1337_v4  ;;  %v613_v4 = vld [vmem:[%s4824_s17 + $0x730] sm:$0xff] }
 0x415   : > { %3608 = vmatpush1.bf16.msra.mxu0 %v1849_v5  ;;  %2953 = vmatprep.subr.bf16.mxu1 %v1340_v10  ;;  %v869_v5 = vld [vmem:[%s4824_s17 + $0xf30] sm:$0xff]  ;;  %v1355_v10 = vunpack.c.l.s8.bf16 %v613_v4 }
 0x416   : > { %3609 = vmatprep.subr.bf16.mxu0 %v1852_v6  ;;  %v1867_v6 = vunpack.c.l.s8.bf16 %v869_v5 }
 0x418   : > { %2954 = vmatpush1.bf16.msra.mxu1 %v1339_v16  ;;  %v1357_v16 = vunpack.c.h.s8.bf16 %v613_v4 }
 0x419   : > { %3610 = vmatpush1.bf16.msra.mxu0 %v1851_v9  ;;  %2955 = vmatprep.subr.bf16.mxu1 %v1342_v11  ;;  %v1869_v9 = vunpack.c.h.s8.bf16 %v869_v5  ;;  %v1360_v11 = vunpack.c.l.s8.bf16 %v616_v7 }
 0x41a   : > { %3611 = vmatprep.subr.bf16.mxu0 %v1854_v12  ;;  %v1872_v12 = vunpack.c.l.s8.bf16 %v872_v8 }
 0x41c   : > { %2956 = vmatpush1.bf16.msra.mxu1 %v1341_v32  ;;  %v1359_v32 = vunpack.c.l.s8.bf16 %v615_v22  ;;  %v2327_v22 = vcombine.high %v5634_v41, %v5634_v41 }
 0x41d   : > { %3612 = vmatpush1.bf16.msra.mxu0 %v1853_v18  ;;  %2966 = vmatprep.subr.bf16.mxu1 %v1344_v23  ;;  %v1871_v18 = vunpack.c.l.s8.bf16 %v871_v14  ;;  %v1362_v23 = vunpack.c.h.s8.bf16 %v616_v7 }
 0x41e   : > { %3622 = vmatprep.subr.bf16.mxu0 %v1856_v19  ;;  %v1874_v19 = vunpack.c.h.s8.bf16 %v872_v8 }
 0x41f   : > { %2958 = vmatmul.mubr.bf16.vlgmr.msra.gmra.mrb[0].mxu1 %v2128_v27  ;;  %v1364_v27 = vunpack.c.l.s8.bf16 %v618_v37 }
 0x420   : > { %3614 = vmatmul.mubr.bf16.vlgmr.msra.gmra.mrb[0].mxu0 %v2324_v25  ;;  %2967 = vmatpush1.bf16.msra.mxu1 %v1343_v33  ;;  %v1876_v25 = vunpack.c.l.s8.bf16 %v874_v20  ;;  %v617_v33 = vld [vmem:[%s4824_s17 + $0x750] sm:$0xff]  ;;  %v628_v20 = vld [vmem:[%s4824_s17 + $0x7a8] sm:$0xff] }
 0x421   : > { %3623 = vmatpush1.bf16.msra.mxu0 %v1855_v54  ;;  %2968 = vmatprep.subr.bf16.mxu1 %v1346_v48  ;;  %v873_v54 = vld [vmem:[%s4824_s17 + $0xf50] sm:$0xff]  ;;  %v1363_v48 = vunpack.c.l.s8.bf16 %v617_v33 }
 0x422   : > { %3624 = vmatprep.subr.bf16.mxu0 %v1858_v26  ;;  %2998 = vmatprep.mubr.bf16.mxu1 %v5631_v31  ;;  %v1875_v26 = vunpack.c.l.s8.bf16 %v873_v54 }
 0x423   : > { %3654 = vmatprep.mubr.bf16.mxu0 %v5634_v41 }
 0x424   : > { %2969 = vmatpush1.bf16.msra.mxu1 %v1345_v34  ;;  %v620_v34 = vld [vmem:[%s4824_s17 + $0x768] sm:$0xff] }
 0x425   : > { %3625 = vmatpush1.bf16.msra.mxu0 %v1857_v29  ;;  %2970 = vmatprep.subr.bf16.mxu1 %v1348_v40  ;;  %v876_v29 = vld [vmem:[%s4824_s17 + $0xf68] sm:$0xff]  ;;  %v1365_v40 = vunpack.c.h.s8.bf16 %v617_v33  ;;  %v1368_v44 = vunpack.c.l.s8.bf16 %v620_v34  ;;  %v1370_v46 = vunpack.c.h.s8.bf16 %v620_v34 }
 0x426   : > { %3626 = vmatprep.subr.bf16.mxu0 %v1860_v60  ;;  %v1877_v60 = vunpack.c.h.s8.bf16 %v873_v54  ;;  %v1880_v30 = vunpack.c.l.s8.bf16 %v876_v29  ;;  %v1882_v47 = vunpack.c.h.s8.bf16 %v876_v29  ;;  %v627_v54 = vld [vmem:[%s4824_s17 + $0x7a0] sm:$0xff]  ;;  %v630_v29 = vld [vmem:[%s4824_s17 + $0x7b8] sm:$0xff] }
 0x428   : > { %2971 = vmatpush1.bf16.msra.mxu1 %v1347_v53  ;;  %v619_v53 = vld [vmem:[%s4824_s17 + $0x760] sm:$0xff] }
 0x429   : > { %3627 = vmatpush1.bf16.msra.mxu0 %v1859_v59  ;;  %2972 = vmatprep.subr.bf16.mxu1 %v1350_v35  ;;  %v875_v59 = vld [vmem:[%s4824_s17 + $0xf60] sm:$0xff]  ;;  %v1367_v35 = vunpack.c.l.s8.bf16 %v619_v53 }
 0x42a   : > { %3628 = vmatprep.subr.bf16.mxu0 %v1862_v36  ;;  %v1879_v36 = vunpack.c.l.s8.bf16 %v875_v59 }
 0x42c   : > { %2973 = vmatpush1.bf16.msra.mxu1 %v1349_v42  ;;  %v622_v42 = vld [vmem:[%s4824_s17 + $0x778] sm:$0xff] }
 0x42d   : > { %3629 = vmatpush1.bf16.msra.mxu0 %v1861_v57  ;;  %2974 = vmatprep.subr.bf16.mxu1 %v1352_v43  ;;  %v878_v57 = vld [vmem:[%s4824_s17 + $0xf78] sm:$0xff]  ;;  %v1369_v43 = vunpack.c.h.s8.bf16 %v619_v53  ;;  %v1372_v55 = vunpack.c.l.s8.bf16 %v622_v42  ;;  %v1374_v63 = vunpack.c.h.s8.bf16 %v622_v42 }
 0x42e   : > { %3630 = vmatprep.subr.bf16.mxu0 %v1864_v58  ;;  %v1881_v58 = vunpack.c.h.s8.bf16 %v875_v59  ;;  %v1884_v1 = vunpack.c.l.s8.bf16 %v878_v57  ;;  %v1886_v3 = vunpack.c.h.s8.bf16 %v878_v57  ;;  %v629_v59 = vld [vmem:[%s4824_s17 + $0x7b0] sm:$0xff]  ;;  %v632_v57 = vld [vmem:[%s4824_s17 + $0x7c8] sm:$0xff] }
 0x430   : > { %2975 = vmatpush1.bf16.msra.mxu1 %v1351_v56  ;;  %v621_v56 = vld [vmem:[%s4824_s17 + $0x770] sm:$0xff] }
 0x431   : > { %3631 = vmatpush1.bf16.msra.mxu0 %v1863_v2  ;;  %2976 = vmatprep.subr.bf16.mxu1 %v1354_v52  ;;  %v877_v2 = vld [vmem:[%s4824_s17 + $0xf70] sm:$0xff]  ;;  %v1371_v52 = vunpack.c.l.s8.bf16 %v621_v56 }
 0x432   : > { %3632 = vmatprep.subr.bf16.mxu0 %v1866_v62  ;;  %v1883_v62 = vunpack.c.l.s8.bf16 %v877_v2 }
 0x434   : > { %2977 = vmatpush1.bf16.msra.mxu1 %v1353_v0  ;;  %v624_v0 = vld [vmem:[%s4824_s17 + $0x788] sm:$0xff] }
 0x435   : > { %3633 = vmatpush1.bf16.msra.mxu0 %v1865_v51  ;;  %2978 = vmatprep.subr.bf16.mxu1 %v1356_v61  ;;  %v880_v51 = vld [vmem:[%s4824_s17 + $0xf88] sm:$0xff]  ;;  %v1373_v61 = vunpack.c.h.s8.bf16 %v621_v56  ;;  %v1376_v4 = vunpack.c.l.s8.bf16 %v624_v0 }
 0x436   : > { %3634 = vmatprep.subr.bf16.mxu0 %v1868_v15  ;;  %v1885_v15 = vunpack.c.h.s8.bf16 %v877_v2  ;;  %v1888_v5 = vunpack.c.l.s8.bf16 %v880_v51  ;;  %v631_v2 = vld [vmem:[%s4824_s17 + $0x7c0] sm:$0xff] }
 0x438   : > { %2979 = vmatpush1.bf16.msra.mxu1 %v1355_v10  ;;  %v623_v10 = vld [vmem:[%s4824_s17 + $0x780] sm:$0xff] }
 0x439   : > { %3635 = vmatpush1.bf16.msra.mxu0 %v1867_v6  ;;  %2980 = vmatprep.subr.bf16.mxu1 %v1358_v13  ;;  %v879_v6 = vld [vmem:[%s4824_s17 + $0xf80] sm:$0xff]  ;;  %v5670_v13 = vrot.slane %v5613_v17, %v4886_v50  ;;  %v1375_v7 = vunpack.c.l.s8.bf16 %v623_v10  ;;  %v2131_v17 = vcombine.high %v5631_v31, %v5631_v31 }
 0x43a   : > { %3636 = vmatprep.subr.bf16.mxu0 %v1870_v21  ;;  %v5674_v21 = vrot.slane %v5616_v45, %v4886_v50  ;;  %v1887_v8 = vunpack.c.l.s8.bf16 %v879_v6  ;;  %v1377_v50 = vunpack.c.h.s8.bf16 %v623_v10  ;;  %v1889_v45 = vunpack.c.h.s8.bf16 %v879_v6  ;;  %v633_v6 = vld [vmem:[%s4824_s17 + $0x7d0] sm:$0xff] }
 0x43c   : > { %2981 = vmatpush1.bf16.msra.mxu1 %v1357_v16  ;;  %v1378_v16 = vunpack.c.h.s8.bf16 %v624_v0 }
 0x43d   : > { %3637 = vmatpush1.bf16.msra.mxu0 %v1869_v9  ;;  %2982 = vmatprep.subr.bf16.mxu1 %v1360_v11  ;;  %v1890_v9 = vunpack.c.h.s8.bf16 %v880_v51  ;;  %v626_v11 = vld [vmem:[%s4824_s17 + $0x798] sm:$0xff] }
 0x43e   : > { %3638 = vmatprep.subr.bf16.mxu0 %v1872_v12  ;;  %v882_v12 = vld [vmem:[%s4824_s17 + $0xf98] sm:$0xff]  ;;  %v1380_v14 = vunpack.c.l.s8.bf16 %v626_v11 }
 0x43f   : > { %v1894_v37 = vunpack.c.h.s8.bf16 %v882_v12  ;;  %v634_v51 = vld [vmem:[%s4824_s17 + $0x7d8] sm:$0xff] }
 0x440   : > { %2983 = vmatpush1.bf16.msra.mxu1 %v1359_v32  ;;  %v1892_v32 = vunpack.c.l.s8.bf16 %v882_v12  ;;  %v636_v12 = vld [vmem:[%s4824_s17 + $0x7e8] sm:$0xff] }
 0x441   : > { %3639 = vmatpush1.bf16.msra.mxu0 %v1871_v18  ;;  %2984 = vmatprep.subr.bf16.mxu1 %v1362_v23  ;;  %v625_v18 = vld [vmem:[%s4824_s17 + $0x790] sm:$0xff] }
 0x442   : > { %3640 = vmatprep.subr.bf16.mxu0 %v1874_v19  ;;  %v881_v23 = vld [vmem:[%s4824_s17 + $0xf90] sm:$0xff]  ;;  %v1379_v31 = vunpack.c.l.s8.bf16 %v625_v18  ;;  %v1382_v19 = vunpack.c.h.s8.bf16 %v626_v11 }
 0x443   : > { %v1891_v41 = vunpack.c.l.s8.bf16 %v881_v23 }
 0x444   : > { %2985 = vmatpush1.bf16.msra.mxu1 %v1361_v39  ;;  %v884_v39 = vld [vmem:[%s4824_s17 + $0xfa8] sm:$0xff] }
 0x445   : > { %3641 = vmatpush1.bf16.msra.mxu0 %v1873_v24  ;;  %2986 = vmatprep.subr.bf16.mxu1 %v1364_v27  ;;  %v1381_v24 = vunpack.c.h.s8.bf16 %v625_v18  ;;  %v1893_v27 = vunpack.c.h.s8.bf16 %v881_v23  ;;  %v1896_v33 = vunpack.c.l.s8.bf16 %v884_v39  ;;  %v1898_v34 = vunpack.c.h.s8.bf16 %v884_v39  ;;  %v891_v18 = vld [vmem:[%s4824_s17 + $0xfe0] sm:$0xff] }
 0x446   : > { %3642 = vmatprep.subr.bf16.mxu0 %v1876_v25  ;;  %v1384_v25 = vunpack.c.l.s8.bf16 %v628_v20 }
 0x448   : > { %2987 = vmatpush1.bf16.msra.mxu1 %v1363_v48  ;;  %v883_v48 = vld [vmem:[%s4824_s17 + $0xfa0] sm:$0xff] }
 0x449   : > { %3643 = vmatpush1.bf16.msra.mxu0 %v1875_v26  ;;  %2988 = vmatprep.subr.bf16.mxu1 %v1366_v49  ;;  %v1383_v26 = vunpack.c.l.s8.bf16 %v627_v54  ;;  %v1895_v49 = vunpack.c.l.s8.bf16 %v883_v48 }
 0x44a   : > { %3644 = vmatprep.subr.bf16.mxu0 %v1878_v28  ;;  %v1386_v28 = vunpack.c.h.s8.bf16 %v628_v20  ;;  %v894_v20 = vld [vmem:[%s4824_s17 + $0xff8] sm:$0xff] }
 0x44c   : > { %2989 = vmatpush1.bf16.msra.mxu1 %v1365_v40  ;;  %v886_v40 = vld [vmem:[%s4824_s17 + $0xfb8] sm:$0xff] }
 0x44d   : > { %3645 = vmatpush1.bf16.msra.mxu0 %v1877_v60  ;;  %2990 = vmatprep.subr.bf16.mxu1 %v1368_v44  ;;  %v1385_v60 = vunpack.c.h.s8.bf16 %v627_v54  ;;  %v1897_v44 = vunpack.c.h.s8.bf16 %v883_v48  ;;  %v1900_v53 = vunpack.c.l.s8.bf16 %v886_v40  ;;  %v1902_v42 = vunpack.c.h.s8.bf16 %v886_v40  ;;  %v893_v54 = vld [vmem:[%s4824_s17 + $0xff0] sm:$0xff] }
 0x44e   : > { %3646 = vmatprep.subr.bf16.mxu0 %v1880_v30  ;;  %v1388_v30 = vunpack.c.l.s8.bf16 %v630_v29  ;;  %v2129_v40 = vcombine.high %v5670_v13, %v5670_v13 }
 0x450   : > { %2991 = vmatpush1.bf16.msra.mxu1 %v1367_v35  ;;  %v885_v35 = vld [vmem:[%s4824_s17 + $0xfb0] sm:$0xff] }
 0x451   : > { %3647 = vmatpush1.bf16.msra.mxu0 %v1879_v36  ;;  %2992 = vmatprep.subr.bf16.mxu1 %v1370_v46  ;;  %v1387_v36 = vunpack.c.l.s8.bf16 %v629_v59  ;;  %v1899_v46 = vunpack.c.l.s8.bf16 %v885_v35 }
 0x452   : > { %3648 = vmatprep.subr.bf16.mxu0 %v1882_v47  ;;  %v1390_v47 = vunpack.c.h.s8.bf16 %v630_v29  ;;  %v1917_v29 = vunpack.c.h.s8.bf16 %v893_v54 }
 0x454   : > { %2993 = vmatpush1.bf16.msra.mxu1 %v1369_v43  ;;  %v888_v43 = vld [vmem:[%s4824_s17 + $0xfc8] sm:$0xff] }
 0x455   : > { %3649 = vmatpush1.bf16.msra.mxu0 %v1881_v58  ;;  %2994 = vmatprep.subr.bf16.mxu1 %v1372_v55  ;;  %v1389_v58 = vunpack.c.h.s8.bf16 %v629_v59  ;;  %v1901_v55 = vunpack.c.h.s8.bf16 %v885_v35  ;;  %v1904_v56 = vunpack.c.l.s8.bf16 %v888_v43  ;;  %v1906_v0 = vunpack.c.h.s8.bf16 %v888_v43 }
 0x456   : > { %3650 = vmatprep.subr.bf16.mxu0 %v1884_v1  ;;  %v1392_v1 = vunpack.c.l.s8.bf16 %v632_v57 }
 0x458   : > { %2995 = vmatpush1.bf16.msra.mxu1 %v1371_v52  ;;  %v887_v52 = vld [vmem:[%s4824_s17 + $0xfc0] sm:$0xff] }
 0x459   : > { %3651 = vmatpush1.bf16.msra.mxu0 %v1883_v62  ;;  %2996 = vmatprep.subr.bf16.mxu1 %v1374_v63  ;;  %v1391_v62 = vunpack.c.l.s8.bf16 %v631_v2  ;;  %v1903_v63 = vunpack.c.l.s8.bf16 %v887_v52 }
 0x45a   : > { %3652 = vmatprep.subr.bf16.mxu0 %v1886_v3  ;;  %v1394_v3 = vunpack.c.h.s8.bf16 %v632_v57 }
 0x45c   : > { %2997 = vmatpush1.bf16.msra.mxu1 %v1373_v61  ;;  %v890_v61 = vld [vmem:[%s4824_s17 + $0xfd8] sm:$0xff] }
 0x45d   : > { %3653 = vmatpush1.bf16.msra.mxu0 %v1885_v15  ;;  %3007 = vmatprep.subr.bf16.mxu1 %v1376_v4  ;;  %v1393_v15 = vunpack.c.h.s8.bf16 %v631_v2  ;;  %v1905_v4 = vunpack.c.h.s8.bf16 %v887_v52  ;;  %v1908_v10 = vunpack.c.l.s8.bf16 %v890_v61  ;;  %v1910_v11 = vunpack.c.h.s8.bf16 %v890_v61  ;;  %v3779_v52 = vld [vmem:[%s4851_s8 + $0x80] sm:$0xff] (!%p4045_p9)  ;;  %v3782_v61 = vld [vmem:[%s4851_s8 + $0x98] sm:$0xff] (!%p4045_p9) }
 0x45e   : > { %3663 = vmatprep.subr.bf16.mxu0 %v1888_v5  ;;  %v1396_v5 = vunpack.c.l.s8.bf16 %v634_v51 }
 0x45f   : > { %2999 = vmatmul.mubr.bf16.vlgmr.msra.gmra.mrb[0].mxu1 %v5670_v13 }
 0x460   : > { %3655 = vmatmul.mubr.bf16.vlgmr.msra.gmra.mrb[0].mxu0 %v5674_v21  ;;  %3008 = vmatpush1.bf16.msra.mxu1 %v1375_v7  ;;  %v889_v7 = vld [vmem:[%s4824_s17 + $0xfd0] sm:$0xff] }
 0x461   : > { %3664 = vmatpush1.bf16.msra.mxu0 %v1887_v8  ;;  %3009 = vmatprep.subr.bf16.mxu1 %v1378_v16  ;;  %v1395_v8 = vunpack.c.l.s8.bf16 %v633_v6  ;;  %v1907_v16 = vunpack.c.l.s8.bf16 %v889_v7 }
 0x462   : > { %3665 = vmatprep.subr.bf16.mxu0 %v1890_v9  ;;  %3039 = vmatprep.mubr.bf16.mxu1 %v2131_v17  ;;  %v1398_v9 = vunpack.c.h.s8.bf16 %v634_v51  ;;  %v892_v17 = vld [vmem:[%s4824_s17 + $0xfe8] sm:$0xff] }
 0x463   : > { %3695 = vmatprep.mubr.bf16.mxu0 %v2327_v22  ;;  %v1397_v22 = vunpack.c.h.s8.bf16 %v633_v6  ;;  %v3781_v51 = vld [vmem:[%s4851_s8 + $0x90] sm:$0xff] (!%p4045_p9)  ;;  %v3783_v6 = vld [vmem:[%s4851_s8 + $0xa0] sm:$0xff] (!%p4045_p9) }
 0x464   : > { %3010 = vmatpush1.bf16.msra.mxu1 %v1377_v50  ;;  %v1909_v50 = vunpack.c.h.s8.bf16 %v889_v7  ;;  %v3784_v7 = vld [vmem:[%s4851_s8 + $0xa8] sm:$0xff] (!%p4045_p9) }
 0x465   : > { %3666 = vmatpush1.bf16.msra.mxu0 %v1889_v45  ;;  %3011 = vmatprep.subr.bf16.mxu1 %v1380_v14  ;;  %v1400_v45 = vunpack.c.l.s8.bf16 %v636_v12  ;;  %v1912_v14 = vunpack.c.l.s8.bf16 %v892_v17 }
 0x466   : > { %3667 = vmatprep.subr.bf16.mxu0 %v1892_v32  ;;  %v635_v32 = vld [vmem:[%s4824_s17 + $0x7e0] sm:$0xff] }
 0x467   : > { %v1399_v23 = vunpack.c.l.s8.bf16 %v635_v32  ;;  %v1401_v39 = vunpack.c.h.s8.bf16 %v635_v32  ;;  %v3730_v32 = vsub.s32 (!%p4045_p9), 1, %v4873_v38 }
 0x468   : > { %3012 = vmatpush1.bf16.msra.mxu1 %v1379_v31  ;;  %v1911_v31 = vunpack.c.l.s8.bf16 %v891_v18 }
 0x469   : > { %3668 = vmatpush1.bf16.msra.mxu0 %v1891_v41  ;;  %3013 = vmatprep.subr.bf16.mxu1 %v1382_v19  ;;  %v1402_v41 = vunpack.c.h.s8.bf16 %v636_v12  ;;  %v1914_v19 = vunpack.c.h.s8.bf16 %v892_v17  ;;  %v3785_v12 = vld [vmem:[%s4851_s8 + $0xb0] sm:$0xff] (!%p4045_p9)  ;;  %v3786_v17 = vld [vmem:[%s4851_s8 + $0xb8] sm:$0xff] (!%p4045_p9) }
 0x46a   : > { %3669 = vmatprep.subr.bf16.mxu0 %v1894_v37  ;;  %v638_v37 = vld [vmem:[%s4824_s17 + $0x7f8] sm:$0xff] }
 0x46c   : > { %3014 = vmatpush1.bf16.msra.mxu1 %v1381_v24  ;;  %v1913_v24 = vunpack.c.h.s8.bf16 %v891_v18  ;;  %v4098_v18 = vpack.c.bf16 (!%p4045_p9), %v3786_v17, %v3785_v12 }
 0x46d   : > { %3670 = vmatpush1.bf16.msra.mxu0 %v1893_v27  ;;  %3015 = vmatprep.subr.bf16.mxu1 %v1384_v25  ;;  %v1404_v27 = vunpack.c.l.s8.bf16 %v638_v37  ;;  %v1916_v25 = vunpack.c.l.s8.bf16 %v894_v20 }
 0x46e   : > { %3671 = vmatprep.subr.bf16.mxu0 %v1896_v33  ;;  %v637_v33 = vld [vmem:[%s4824_s17 + $0x7f0] sm:$0xff] }
 0x46f   : > { %v1403_v48 = vunpack.c.l.s8.bf16 %v637_v33 }
 0x470   : > { %3016 = vmatpush1.bf16.msra.mxu1 %v1383_v26  ;;  %v1915_v26 = vunpack.c.l.s8.bf16 %v893_v54  ;;  %v3789_v54 = vld [vmem:[%s4851_s8 + $0xd0] sm:$0xff] (!%p4045_p9) }
 0x471   : > { %3672 = vmatpush1.bf16.msra.mxu0 %v1895_v49  ;;  %3017 = vmatprep.subr.bf16.mxu1 %v1386_v28  ;;  %v1406_v49 = vunpack.c.h.s8.bf16 %v638_v37  ;;  %v1918_v28 = vunpack.c.h.s8.bf16 %v894_v20  ;;  %v3742_v37 = vld [vmem:[%s314_s30] sm:$0x3] (!%p4045_p9) }
 0x472   : > { %3673 = vmatprep.subr.bf16.mxu0 %v1898_v34  ;;  %v1405_v34 = vunpack.c.h.s8.bf16 %v637_v33  ;;  %v3772_v33 = vld [vmem:[%s4851_s8 + $0x48] sm:$0xff] (!%p4045_p9) }
 0x474   : > { %3018 = vmatpush1.bf16.msra.mxu1 %v1385_v60  ;;  %v2325_v60 = vcombine.high %v5674_v21, %v5674_v21 }
 0x475   : > { %3674 = vmatpush1.bf16.msra.mxu0 %v1897_v44  ;;  %3019 = vmatprep.subr.bf16.mxu1 %v1388_v30  ;;  %v4553_v44 = vmov 1983009808  }
 0x476   : > { %3675 = vmatprep.subr.bf16.mxu0 %v1900_v53  ;;  %v3708_v30 = vunpack.c.l.s4 %v4553_v44  ;;  %v3773_v44 = vld [vmem:[%s4851_s8 + $0x50] sm:$0xff] (!%p4045_p9) }
 0x478   : > { %3020 = vmatpush1.bf16.msra.mxu1 %v1387_v36  ;;  %v3709_v53 = vunpack.c.0.s8 %v3708_v30  ;;  %v3774_v30 = vld [vmem:[%s4851_s8 + $0x58] sm:$0xff] (!%p4045_p9) }
 0x479   : > { %3676 = vmatpush1.bf16.msra.mxu0 %v1899_v46  ;;  %3021 = vmatprep.subr.bf16.mxu1 %v1390_v47 }
 0x47a   : > { %3677 = vmatprep.subr.bf16.mxu0 %v1902_v42  ;;  %v5715_v57 = vsub.s32 %v3709_v53, %v4873_v38  ;;  %v3791_v53 = vld [vmem:[%s4851_s8 + $0xe0] sm:$0xff] (!%p4045_p9) }
 0x47c   : > { %3022 = vmatpush1.bf16.msra.mxu1 %v1389_v58 }
 0x47d   : > { %3678 = vmatpush1.bf16.msra.mxu0 %v1901_v55  ;;  %3023 = vmatprep.subr.bf16.mxu1 %v1392_v1  ;;  %v1919_v1 = vld [vmem:[#allocation2] sm:$0xf] }
 0x47e   : > { %3679 = vmatprep.subr.bf16.mxu0 %v1904_v56 }
 0x480   : > { %3024 = vmatpush1.bf16.msra.mxu1 %v1391_v62  ;;  %v3780_v62 = vld [vmem:[%s4851_s8 + $0x88] sm:$0xff] (!%p4045_p9) }
 0x481   : > { %3680 = vmatpush1.bf16.msra.mxu0 %v1903_v63  ;;  %3025 = vmatprep.subr.bf16.mxu1 %v1394_v3  ;;  %v3763_v63 = vld [vmem:[%s4851_s8] sm:$0xff] (!%p4045_p9)  ;;  %v4086_v3 = vpack.c.bf16 (!%p4045_p9), %v3780_v62, %v3779_v52  ;;  %v3778_v52 = vld [vmem:[%s4851_s8 + $0x78] sm:$0xff] (!%p4045_p9) }
 0x482   : > { %3681 = vmatprep.subr.bf16.mxu0 %v1906_v0  ;;  %v3764_v0 = vld [vmem:[%s4851_s8 + $0x8] sm:$0xff] (!%p4045_p9) }
 0x484   : > { %3026 = vmatpush1.bf16.msra.mxu1 %v1393_v15  ;;  %v4088_v15 = vpack.c.bf16 (!%p4045_p9), %v3764_v0, %v3763_v63 }
 0x485   : > { %3682 = vmatpush1.bf16.msra.mxu0 %v1905_v4  ;;  %3027 = vmatprep.subr.bf16.mxu1 %v1396_v5  ;;  %v4090_v4 = vpack.c.bf16 (!%p4045_p9), %v3782_v61, %v3781_v51  ;;  %v3765_v5 = vld [vmem:[%s4851_s8 + $0x10] sm:$0xff] (!%p4045_p9) }
 0x486   : > { %3683 = vmatprep.subr.bf16.mxu0 %v1908_v10  ;;  %v3766_v10 = vld [vmem:[%s4851_s8 + $0x18] sm:$0xff] (!%p4045_p9) }
 0x488   : > { %3028 = vmatpush1.bf16.msra.mxu1 %v1395_v8  ;;  %v4092_v8 = vpack.c.bf16 (!%p4045_p9), %v3766_v10, %v3765_v5 }
 0x489   : > { %3684 = vmatpush1.bf16.msra.mxu0 %v1907_v16  ;;  %3029 = vmatprep.subr.bf16.mxu1 %v1398_v9  ;;  %v4094_v16 = vpack.c.bf16 (!%p4045_p9), %v3784_v7, %v3783_v6  ;;  %v3767_v9 = vld [vmem:[%s4851_s8 + $0x20] sm:$0xff] (!%p4045_p9) }
 0x48a   : > { %3685 = vmatprep.subr.bf16.mxu0 %v1910_v11  ;;  %v3768_v11 = vld [vmem:[%s4851_s8 + $0x28] sm:$0xff] (!%p4045_p9) }
 0x48c   : > { %3030 = vmatpush1.bf16.msra.mxu1 %v1397_v22  ;;  %v4096_v22 = vpack.c.bf16 (!%p4045_p9), %v3768_v11, %v3767_v9 }
 0x48d   : > { %3686 = vmatpush1.bf16.msra.mxu0 %v1909_v50  ;;  %3031 = vmatprep.subr.bf16.mxu1 %v1400_v45  ;;  %v3769_v50 = vld [vmem:[%s4851_s8 + $0x30] sm:$0xff] (!%p4045_p9)  ;;  %v3770_v45 = vld [vmem:[%s4851_s8 + $0x38] sm:$0xff] (!%p4045_p9) }
 0x48e   : > { %3687 = vmatprep.subr.bf16.mxu0 %v1912_v14  ;;  %v3726_v14 = vsub.s32 (!%p4045_p9), 0, %v4873_v38 }
 0x490   : > { %3032 = vmatpush1.bf16.msra.mxu1 %v1399_v23  ;;  %v3787_v23 = vld [vmem:[%s4851_s8 + $0xc0] sm:$0xff] (!%p4045_p9) }
 0x491   : > { %3688 = vmatpush1.bf16.msra.mxu0 %v1911_v31  ;;  %3033 = vmatprep.subr.bf16.mxu1 %v1402_v41  ;;  %v3788_v31 = vld [vmem:[%s4851_s8 + $0xc8] sm:$0xff] (!%p4045_p9)  ;;  %v4100_v41 = vpack.c.bf16 (!%p4045_p9), %v3770_v45, %v3769_v50 }
 0x492   : > { %3689 = vmatprep.subr.bf16.mxu0 %v1914_v19  ;;  %v3722_v19 = vld [vmem:[%s305_s5] sm:$0x3] (!%p4045_p9)  ;;  %v4102_v38 = vpack.c.bf16 (!%p4045_p9), %v3788_v31, %v3787_v23 }
 0x493   : > { %v3727_v20 = vrot.slane (!%p4045_p9), %v3722_v19, %v3726_v14 }
 0x494   : > { %3034 = vmatpush1.bf16.msra.mxu1 %v1401_v39  ;;  %v3731_v39 = vrot.slane (!%p4045_p9), %v3722_v19, %v3730_v32 }
 0x495   : > { %3690 = vmatpush1.bf16.msra.mxu0 %v1913_v24  ;;  %3035 = vmatprep.subr.bf16.mxu1 %v1404_v27  ;;  %v3747_v24 = vrot.slane (!%p4045_p9), %v3742_v37, %v3726_v14  ;;  %v3751_v27 = vrot.slane (!%p4045_p9), %v3742_v37, %v3730_v32 }
 0x496   : > { %3691 = vmatprep.subr.bf16.mxu0 %v1916_v25  ;;  %v3771_v25 = vld [vmem:[%s4851_s8 + $0x40] sm:$0xff] (!%p4045_p9) }
 0x498   : > { %3036 = vmatpush1.bf16.msra.mxu1 %v1403_v48  ;;  %v3790_v48 = vld [vmem:[%s4851_s8 + $0xd8] sm:$0xff] (!%p4045_p9) }
 0x499   : > { %3692 = vmatpush1.bf16.msra.mxu0 %v1915_v26  ;;  %3037 = vmatprep.subr.bf16.mxu1 %v1406_v49  ;;  %v3732_v26 = vcombine.low (!%p4045_p9), %v3727_v20, %v3731_v39  ;;  %v3752_v49 = vcombine.low (!%p4045_p9), %v3747_v24, %v3751_v27 }
 0x49a   : > { %3693 = vmatprep.subr.bf16.mxu0 %v1918_v28 }
 0x49c   : > { %3038 = vmatpush1.bf16.msra.mxu1 %v1405_v34  ;;  %v4104_v34 = vpack.c.bf16 (!%p4045_p9), %v3772_v33, %v3771_v25 }
 0x49d   : > { %3694 = vmatpush1.bf16.msra.mxu0 %v1917_v29  ;;  %v3739_v29 = vrot.slane (!%p4045_p9), %v3732_v26, %v5715_v57 }
 0x49e   : > { %4087 = vmatprep.subr.bf16.mxu0 (!%p4045_p9), %v4086_v3 }
 0x49f   : > { %3040 = vmatmul.mubr.bf16.vlgmr.msra.gmra.mrb[0].mxu1 %v2129_v40  ;;  %v3759_v40 = vrot.slane (!%p4045_p9), %v3752_v49, %v5715_v57 }
 0x4a0   : > { %3696 = vmatmul.mubr.bf16.vlgmr.msra.gmra.mrb[0].mxu0 %v2325_v60  ;;  %v4106_v60 = vpack.c.bf16 (!%p4045_p9), %v3790_v48, %v3789_v54 }
 0x4a1   : > { %4089 = vmatpush3.bf16.msra.mxu0 (!%p4045_p9), %v4088_v15 }
 0x4a2   : > { %4091 = vmatprep.subr.bf16.mxu0 (!%p4045_p9), %v4090_v4 }
 0x4a5   : > { %4093 = vmatpush3.bf16.msra.mxu0 (!%p4045_p9), %v4092_v8 }
 0x4a6   : > { %4095 = vmatprep.subr.bf16.mxu0 (!%p4045_p9), %v4094_v16 }
 0x4a9   : > { %4097 = vmatpush3.bf16.msra.mxu0 (!%p4045_p9), %v4096_v22 }
 0x4aa   : > { %4099 = vmatprep.subr.bf16.mxu0 (!%p4045_p9), %v4098_v18 }
 0x4ad   : > { %4101 = vmatpush3.bf16.msra.mxu0 (!%p4045_p9), %v4100_v41 }
 0x4ae   : > { %4103 = vmatprep.subr.bf16.mxu0 (!%p4045_p9), %v4102_v38 }
 0x4b1   : > { %4105 = vmatpush3.bf16.msra.mxu0 (!%p4045_p9), %v4104_v34 }
 0x4b2   : > { %4107 = vmatprep.subr.bf16.mxu0 (!%p4045_p9), %v4106_v60 }
 0x572   : > { %v3041_v59 = vpop.f32.mrb[0].mxu1 }
 0x573   : > { %v3697_v35 = vpop.f32.mrb[0].mxu0  ;;  %v3043_v46 = vpop.f32.mrb[1].mxu1 }
 0x574   : > { %v4118_v36 = vadd.f32 %v3697_v35, %v3041_v59  ;;  %v3699_v47 = vpop.f32.mrb[1].mxu0  ;;  %v3045_v13 = vpop.f32.mrb[2].mxu1  ;;  %v3792_v59 = vld [vmem:[%s4851_s8 + $0xe8] sm:$0xff] (!%p4045_p9) }
 0x575   : > { %v4119_v42 = vadd.f32 %v3699_v47, %v3043_v46  ;;  %v3701_v43 = vpop.f32.mrb[2].mxu0  ;;  %v3046_v58 = vpop.f32.mrb[3].mxu1  ;;  %v4110_v47 = vpack.c.bf16 (!%p4045_p9), %v3792_v59, %v3791_v53  ;;  %v3776_v13 = vld [vmem:[%s4851_s8 + $0x68] sm:$0xff] (!%p4045_p9) }
 0x576   : > { %v3702_v21 = vpop.f32.mrb[3].mxu0  ;;  %v3793_v43 = vld [vmem:[%s4851_s8 + $0xf0] sm:$0xff] (!%p4045_p9)  ;;  %v3794_v58 = vld [vmem:[%s4851_s8 + $0xf8] sm:$0xff] (!%p4045_p9) }
 0x577   : > { %v3706_v55 = vcombine.low %v4118_v36, %v4119_v42  ;;  %3720 = sbr.rel (%p4045_p9) target bundleno = 1640 (0x668), region = 60  ;;  %v4108_v36 = vpack.c.bf16 (!%p4045_p9), %v3774_v30, %v3773_v44  ;;  %v3775_v42 = vld [vmem:[%s4851_s8 + $0x60] sm:$0xff] (!%p4045_p9) }
 0x579   : > { %v3713_v56 = vrot.slane %v3706_v55, %v5715_v57  ;;  %4109 = vmatpush3.bf16.msra.mxu0 (!%p4045_p9), %v4108_v36  ;;  %v4112_v55 = vpack.c.bf16 (!%p4045_p9), %v3776_v13, %v3775_v42 }
 0x57a   : > { %4111 = vmatprep.subr.bf16.mxu0 (!%p4045_p9), %v4110_v47 }
 0x57b   : > { %v3715_v2 = vadd.f32 %v3713_v56, %v1919_v1  ;;  %v4114_v56 = vpack.c.bf16 (!%p4045_p9), %v3794_v58, %v3793_v43 }
 0x57d   : > { %3716 = vst [vmem:[#allocation2] sm:$0xf] %v3715_v2  ;;  %v3777_v2 = vld [vmem:[%s4851_s8 + $0x70] sm:$0xff] (!%p4045_p9)  ;;  %4113 = vmatpush3.bf16.msra.mxu0 (!%p4045_p9), %v4112_v55 }
 0x57e   : > { %v4116_v63 = vpack.c.bf16 %v3778_v52, %v3777_v2  ;;  %4115 = vmatprep.subr.bf16.mxu0 %v4114_v56 }
 0x581   : > { %4117 = vmatpush3.bf16.msra.mxu0 %v4116_v63 }
 0x584   : > { %v3721_v28 = vld [vmem:[#allocation2] sm:$0xf] }
 0x585   : > { %v3741_v35 = vmul.f32 %v3739_v29, %v3721_v28 }
 0x587   : > { %v3761_v46 = vadd.f32 %v3759_v40, %v3741_v35 }
 0x589   : > { %v3762_v21 = vmax.f32 %v3761_v46, 0.0 }
 0x58b   : > { %v3802_v1 = vrot.slane %v3762_v21, %v5715_v57 }
 0x58d   : > { %v3803_v62 = vcombine.high %v3802_v1, %v3802_v1 }
 0x58f   : > { %3870 = vmatprep.mubr.f32.mxu0 %v3803_v62 }
 0x590   : > { %3871 = vmatmul.mubr.f32.vlgmr.msra.gmra.mrb[0].mxu0 %v3802_v1 }
 0x663   : > { %v4083_v3 = vpop.f32.mrb[0].mxu0 }
 0x664   : > { %v4084_v0 = vpop.f32.mrb[1].mxu0 }
 0x665   : > { %v4085_v51 = vadd.f32 %v4084_v0, %v4083_v3 }
 0x667   : > { %3877 = vst.msk [vmem:[%s4857_s27] sm:$0x3] %vm3876_vm0, %v4085_v51 }
 0x668 PF: > { %s21_s28 = sadd.s32 1, %s4543_s28   ;;  %s5837_s24 = sld [smem:[#allocation10_spill]] }
 0x669   : > { %p18_p10 = scmp.ge.s32.totalorder %s21_s28, 6   ;;  %s5838_s20 = sld [smem:[#allocation14_spill]] }
 0x66a   : > { %s5839_s25 = sld [smem:[#allocation15_spill]]  ;;  %s5840_s17 = sld [smem:[#allocation11_spill]] }
 0x66b   : > { %s5841_s6 = sld [smem:[#allocation12_spill]]  ;;  %s5842_s27 = sld [smem:[#allocation13_spill]] }
 0x66c   : > { %s5843_s18 = smov %s4507_s19  ;;  %s5845_s21 = smov %s4519_s22 }
 0x66d   : > { %s5846_s22 = smov %s4523_s23  ;;  %20 = sbr.rel (!%p18_p10) target bundleno = 14 (0xe), region = 118 }
 0x66e   : > { %s5844_s19 = smov %s5837_s24  ;;  %s5848_s24 = smov %s4535_s26 }
 0x670   : > { %s5847_s23 = smov %s5839_s25  ;;  %s5849_s25 = smov %s5840_s17 }
 0x671   : > { %s5850_s26 = smov %s5841_s6 }
 0x674   :  { %3897 = vsyncpa [#allocation4], 1 }
 0x675   :  { %3899 = vsyncpa [#allocation4 + $0x1], 1 }
 0x676   :  { %3900 = vsyncpa [#allocation6], 1 }
 0x677   :  { %3902 = vsyncpa [#allocation6 + $0x1], 1 }

// kernel: dqn_forward.2
= control target key start
LH: loop header
LB: loop body
LE: loop exit
PB: predicated region body
PF: predicated region fallthrough
CT: control target
= control target key end

     0   :  { %12 = vsyncpa [#allocation5], 0  ;;  %s9544_s0 = inlined_call_operand.vmem [shape: f32[512,9], index: 0, kind: input, shape index: {}]   ;;  %s9545_s1 = inlined_call_operand.hbm [shape: f32[9,32], index: 1, kind: input, shape index: {}]   ;;  %s9546_s2 = inlined_call_operand.hbm [shape: f32[1,32], index: 2, kind: input, shape index: {}]   ;;  %s9547_s3 = inlined_call_operand.vmem [shape: f32[1152,64], index: 3, kind: input, shape index: {}]   ;;  %s9548_s4 = inlined_call_operand.hbm [shape: f32[1,64], index: 4, kind: input, shape index: {}]   ;;  %s9549_s5 = inlined_call_operand.vmem [shape: f32[1152,64], index: 5, kind: input, shape index: {}]   ;;  %s9550_s6 = inlined_call_operand.hbm [shape: f32[1,64], index: 6, kind: input, shape index: {}]   ;;  %s9551_s7 = inlined_call_operand.vmem [shape: bf16[512,64], index: 7, kind: output, shape index: {}]  }
   0x1   :  { %13 = vsyncpa [#allocation7], 0 }
   0x2   :  { %14 = vsyncpa [#allocation10], 0  ;;  %s7058_s24 = smov 0  }
   0x3 LB: > { %s7009_s25 = smov [#allocation6]   ;;  %s5458_s27 = sadd.s32 4294967295, %s7007_s24   ;;  %s7007_s24 = sphi %s7058_s24, %s20_s24  }
   0x4   : > { %s229_s26 = sshll.u32 %s7009_s25, 4  ;;  %p5460_p0 = scmp.ge.s32.totalorder %s7007_s24, 1  ;;  %s7072_s26 = int_to_ptr.vmem [resolvable:$true] %s229_s26 }
   0x5   : > { %p203_p1 = scmp.lt.s32.totalorder %s7007_s24, 3  ;;  %p7068_p2 = scmp.eq.s32.totalorder %s5458_s27, 0 }
   0x6   : > { %s7010_s30 = smov [#allocation4]   ;;  %s7011_s10 = smov [#allocation8]  }
   0x7   : > { %s9599_s28 = scalar_select %p7068_p2, 1, 0 }
   0x8   : > { %p7074_p3 = pnand %p5460_p0, %p203_p1  ;;  %s215_s8 = sshll.u32 %s7010_s30, 4  ;;  %s7080_s8 = int_to_ptr.vmem [resolvable:$true] %s215_s8 }
   0x9   : > { %s243_s11 = sshll.u32 %s7011_s10, 4  ;;  %s7012_s12 = smov [#allocation9]   ;;  %s7088_s11 = int_to_ptr.vmem [resolvable:$true] %s243_s11 }
   0xa   : > { %s9600_s29 = scalar_select %p7074_p3, 1, 0 }
   0xb   : > { %p6837_p4 = pneg %p7074_p3  ;;  %s7090_s13 = sshll.u32 %s7012_s12, 4  ;;  %s258_s13 = int_to_ptr.vmem [resolvable:$true] %s7090_s13 }
   0xc   : > { %s6877_s16 = scalar_lea.hbm %s9546_s2, 16 }
   0xd   : > { %p7084_p5 = pnand %p7068_p2, %p6837_p4  ;;  %p6878_p6 = scmp.ne.s32.totalorder %s9546_s2, %s6877_s16 }
   0xe   : > { %p6884_p10 = scmp.lt.u32.totalorder %s6877_s16, %s9546_s2 }
   0xf   : > { %p7100_p7 = pneg %p7084_p5 }
  0x11   : > { %p6880_p8 = pnand %p7100_p7, %p6878_p6 }
  0x13   : > { %p6881_p9 = pneg %p6880_p8 }
  0x15   : > { %p6886_p11 = pnand %p6884_p10, %p6881_p9 }
  0x17   : > { %6889 = shalt.err (!%p6886_p11)
}
  0x18   : > { %s6890_s22 = scalar_lea.vmem %s7072_s26, 16  ;;  %s6897_s23 = scalar_lea.vmem %s7072_s26, 32 }
  0x19   : > { %p6891_p12 = scmp.ne.s32.totalorder %s7072_s26, %s6890_s22  ;;  %p6898_p1 = scmp.lt.s32.totalorder %s7072_s26, %s7072_s26 }
  0x1a   : > { %p6899_p4 = scmp.lt.s32.totalorder %s6897_s23, %s6890_s22 }
  0x1b   : > { %p6893_p13 = pnand %p6891_p12, %p7100_p7 }
  0x1c   : > { %p6900_p6 = por %p6899_p4, %p6898_p1 }
  0x1d   : > { %p6894_p0 = pneg %p6893_p13 }
  0x1f   : > { %p6901_p8 = pnand %p6900_p6, %p6894_p0 }
  0x21   : > { %6904 = shalt.err (!%p6901_p8)
}
  0x22   : > { %6843 = dma.hbm_to_vmem [thread:$0]  (!%p7084_p5), %s9546_s2, 16, %s7072_s26, [#allocation7]  }
  0x23   : > { %s6905_s14 = scalar_lea.hbm %s9545_s1, 256 }
  0x24   : > { %p6906_p9 = scmp.ne.s32.totalorder %s9545_s1, %s6905_s14  ;;  %p6912_p12 = scmp.lt.u32.totalorder %s6905_s14, %s9545_s1 }
  0x26   : > { %p6908_p10 = pnand %p6906_p9, %p7100_p7 }
  0x28   : > { %p6909_p11 = pneg %p6908_p10 }
  0x2a   : > { %p6914_p13 = pnand %p6912_p12, %p6909_p11 }
  0x2c   : > { %6917 = shalt.err (!%p6914_p13)
}
  0x2d   : > { %s6918_s26 = scalar_lea.vmem %s7080_s8, 256  ;;  %p6926_p6 = scmp.lt.s32.totalorder %s7080_s8, %s7080_s8 }
  0x2e   : > { %p6919_p0 = scmp.ne.s32.totalorder %s7080_s8, %s6918_s26  ;;  %p6927_p8 = scmp.lt.s32.totalorder %s6918_s26, %s6918_s26 }
  0x30   : > { %p6921_p1 = pnand %p6919_p0, %p7100_p7  ;;  %p6928_p9 = por %p6927_p8, %p6926_p6 }
  0x32   : > { %p6922_p4 = pneg %p6921_p1 }
  0x34   : > { %p6929_p10 = pnand %p6928_p9, %p6922_p4 }
  0x36   : > { %6932 = shalt.err (!%p6929_p10)
}
  0x37   : > { %s7013_s20 = smov 128   ;;  %s7014_s21 = smov 8  }
  0x38   : > { %6840 = dma.hbm_to_vmem [thread:$0]  (!%p7084_p5), %s9545_s1, 256, %s7080_s8, [#allocation5], %s7013_s20, %s7013_s20, %s7014_s21  }
  0x39   : > { %s6933_s10 = scalar_lea.hbm %s9548_s4, 16 }
  0x3a   : > { %p6934_p11 = scmp.ne.s32.totalorder %s9548_s4, %s6933_s10  ;;  %p6940_p0 = scmp.lt.u32.totalorder %s6933_s10, %s9548_s4 }
  0x3c   : > { %p6936_p12 = pnand %p6934_p11, %p7100_p7 }
  0x3e   : > { %p6937_p13 = pneg %p6936_p12 }
  0x40   : > { %p6942_p1 = pnand %p6940_p0, %p6937_p13 }
  0x42   : > { %6945 = shalt.err (!%p6942_p1)
}
  0x43   : > { %s6946_s8 = scalar_lea.vmem %s7088_s11, 16  ;;  %s6953_s17 = scalar_lea.vmem %s7088_s11, 32 }
  0x44   : > { %p6947_p4 = scmp.ne.s32.totalorder %s7088_s11, %s6946_s8  ;;  %p6954_p9 = scmp.lt.s32.totalorder %s7088_s11, %s7088_s11 }
  0x45   : > { %p6955_p10 = scmp.lt.s32.totalorder %s6953_s17, %s6946_s8 }
  0x46   : > { %p6949_p6 = pnand %p6947_p4, %p7100_p7 }
  0x47   : > { %p6956_p11 = por %p6955_p10, %p6954_p9 }
  0x48   : > { %p6950_p8 = pneg %p6949_p6 }
  0x4a   : > { %p6957_p12 = pnand %p6956_p11, %p6950_p8 }
  0x4c   : > { %6960 = shalt.err (!%p6957_p12)
}
  0x4d   : > { %6846 = dma.hbm_to_vmem [thread:$0]  (!%p7084_p5), %s9548_s4, 16, %s7088_s11, [#allocation7]  }
  0x4e   : > { %s6961_s22 = scalar_lea.hbm %s9550_s6, 16 }
  0x4f   : > { %p6962_p13 = scmp.ne.s32.totalorder %s9550_s6, %s6961_s22  ;;  %p6968_p4 = scmp.lt.u32.totalorder %s6961_s22, %s9550_s6 }
  0x51   : > { %p6964_p0 = pnand %p6962_p13, %p7100_p7 }
  0x53   : > { %p6965_p1 = pneg %p6964_p0 }
  0x55   : > { %p6970_p6 = pnand %p6968_p4, %p6965_p1 }
  0x57   : > { %6973 = shalt.err (!%p6970_p6)
}
  0x58   : > { %s6974_s12 = scalar_lea.vmem %s258_s13, 16  ;;  %s6981_s11 = scalar_lea.vmem %s258_s13, 32 }
  0x59   : > { %p6975_p8 = scmp.ne.s32.totalorder %s258_s13, %s6974_s12  ;;  %p6982_p11 = scmp.lt.s32.totalorder %s258_s13, %s258_s13 }
  0x5a   : > { %p6983_p12 = scmp.lt.s32.totalorder %s6981_s11, %s6974_s12 }
  0x5b   : > { %p6977_p9 = pnand %p6975_p8, %p7100_p7 }
  0x5c   : > { %p6984_p2 = por %p6983_p12, %p6982_p11 }
  0x5d   : > { %p6978_p10 = pneg %p6977_p9 }
  0x5f   : > { %p6985_p3 = pnand %p6984_p2, %p6978_p10 }
  0x61   : > { %6988 = shalt.err (!%p6985_p3)
}
  0x62   : > { %6849 = dma.hbm_to_vmem [thread:$0]  (!%p7084_p5), %s9550_s6, 16, %s258_s13, [#allocation10]  }
  0x63   : > { %p9603_p13 = scmp.ne.s32.totalorder %s9600_s29, 0 }
  0x65   : > { %279 = sbr.rel (%p9603_p13) target bundleno = 1699 (0x6a3), region = 48 }
  0x6c   : > { %p9604_p0 = scmp.ne.s32.totalorder %s9599_s28, 0 }
  0x6e   : > { %6994 = dma.done.wait (%p9604_p0), [#allocation5], 256  }
  0x6f   : > { %6996 = vsyncadd (%p9604_p0), [#allocation5], 4294967040 }
  0x70   : > { %6998 = dma.done.wait (%p9604_p0), [#allocation7], 32  }
  0x71   : > { %7000 = vsyncadd (%p9604_p0), [#allocation7], 4294967264 }
  0x72   : > { %7002 = dma.done.wait (%p9604_p0), [#allocation10], 16  }
  0x73   : > { %7004 = vsyncadd (%p9604_p0), [#allocation10], 4294967280  ;;  %s7204_s29 = sshll.u32 %s5458_s27, 5  ;;  %v9555_v0 = vmov 0.0|0.0   ;;  %v7016_v1 = vmov 0.0   ;;  %vm527_vm0 = vcmask 1040384  }
  0x74   : > { %p324_p2 = scmp.lt.s32.totalorder %s7204_s29, 63  ;;  %5925 = vmatprep.subr.bf16.mxu1 %v9555_v0  ;;  %339 = vst [vmem:[#allocation2 + $0x20] sm:$0xff] %v7016_v1  ;;  %340 = vst [vmem:[#allocation2 + $0x28] sm:$0x3] %v7016_v1  ;;  %vm430_vm1 = vcmask 72704   ;;  %vm7017_vm2 = vmmov 1  }
  0x75   : > { %335 = vst [vmem:[#allocation2] sm:$0xff] %v7016_v1  ;;  %336 = vst [vmem:[#allocation2 + $0x8] sm:$0xff] %v7016_v1  ;;  %v421_v2 = vld [vmem:[#allocation4] sm:$0xff]  ;;  %v422_v3 = vld [vmem:[#allocation4 + $0x8] sm:$0x1]  ;;  %vm789_vm4 = vcmask 261120  }
  0x76   : > { %337 = vst [vmem:[#allocation2 + $0x10] sm:$0x3] %v7016_v1  ;;  %338 = vst [vmem:[#allocation2 + $0x18] sm:$0xff] %v7016_v1  ;;  %s9683_s29 = smov (!%p324_p2, %s7204_s29), 63  ;;  %v5919_v5 = vpack.c.bf16 %v422_v3, %v421_v2  ;;  %v1687_v10 = vld [vmem:[%s9547_s3] sm:$0xff]  ;;  %v1688_v11 = vld [vmem:[%s9547_s3 + $0x8] sm:$0xff] }
  0x77   : > { %341 = vst [vmem:[#allocation2 + $0x30] sm:$0xff] %v7016_v1  ;;  %342 = vst [vmem:[#allocation2 + $0x38] sm:$0xff] %v7016_v1  ;;  %s5472_s27 = sshll.u32 %s9683_s29, 3  ;;  %v1689_v12 = vld [vmem:[%s9547_s3 + $0x10] sm:$0xff]  ;;  %v1690_v13 = vld [vmem:[%s9547_s3 + $0x18] sm:$0xff]  ;;  %v5926_v15 = vpack.c.bf16 %v1688_v11, %v1687_v10  ;;  %vm2995_vm5 = vcmask 523264  }
  0x78   : > { %343 = vst [vmem:[#allocation2 + $0x40] sm:$0x3] %v7016_v1  ;;  %344 = vst [vmem:[#allocation2 + $0x48] sm:$0xff] %v7016_v1  ;;  %s7271_s13 = scalar_lea.vmem %s9544_s0, %s5472_s27  ;;  %v5929_v17 = vpack.c.bf16 %v1690_v13, %v1689_v12  ;;  %v1691_v18 = vld [vmem:[%s9547_s3 + $0x20] sm:$0xff]  ;;  %v1692_v19 = vld [vmem:[%s9547_s3 + $0x28] sm:$0xff]  ;;  %s5474_s12 = sshll.u32 %s9683_s29, 2 }
  0x79   : > { %345 = vst [vmem:[#allocation2 + $0x50] sm:$0xff] %v7016_v1  ;;  %346 = vst [vmem:[#allocation2 + $0x58] sm:$0x3] %v7016_v1  ;;  %v389_v4 = vld [vmem:[%s7271_s13] sm:$0xff]  ;;  %v390_v6 = vld [vmem:[%s7271_s13 + $0x8] sm:$0xff]  ;;  %5927 = vmatpush1.bf16.msra.mxu1 %v5926_v15  ;;  %v5932_v22 = vpack.c.bf16 %v1692_v19, %v1691_v18  ;;  %s9414_s15 = scalar_lea.vmem %s9551_s7, %s5474_s12  ;;  %vm5328_vm6 = vcmask 519168  }
  0x7a   : > { %347 = vst [vmem:[#allocation2 + $0x60] sm:$0xff] %v7016_v1  ;;  %348 = vst [vmem:[#allocation2 + $0x68] sm:$0xff] %v7016_v1  ;;  %5711 = vmatprep.mubr.msk.f32.mxu0 %vm430_vm1, %v389_v4  ;;  %v391_v7 = vld [vmem:[%s7271_s13 + $0x10] sm:$0xff]  ;;  %v392_v8 = vld [vmem:[%s7271_s13 + $0x18] sm:$0xff]  ;;  %5928 = vmatprep.subr.bf16.mxu1 %v9555_v0 }
  0x7b   : > { %349 = vst [vmem:[#allocation2 + $0x70] sm:$0x3] %v7016_v1  ;;  %350 = vst [vmem:[#allocation2 + $0x78] sm:$0xff] %v7016_v1  ;;  %v393_v9 = vld [vmem:[%s7271_s13 + $0x20] sm:$0xff]  ;;  %v394_v14 = vld [vmem:[%s7271_s13 + $0x28] sm:$0xff] }
  0x7c   : > { %351 = vst [vmem:[#allocation2 + $0x80] sm:$0xff] %v7016_v1  ;;  %352 = vst [vmem:[#allocation2 + $0x88] sm:$0x3] %v7016_v1  ;;  %v395_v16 = vld [vmem:[%s7271_s13 + $0x30] sm:$0xff]  ;;  %v396_v20 = vld [vmem:[%s7271_s13 + $0x38] sm:$0xff] }
  0x7d   : > { %353 = vst [vmem:[#allocation2 + $0x90] sm:$0xff] %v7016_v1  ;;  %354 = vst [vmem:[#allocation2 + $0x98] sm:$0xff] %v7016_v1  ;;  %v397_v21 = vld [vmem:[%s7271_s13 + $0x40] sm:$0xff]  ;;  %5930 = vmatpush1.bf16.msra.mxu1 %v5929_v17  ;;  %v1693_v24 = vld [vmem:[%s9547_s3 + $0x30] sm:$0xff] }
  0x7e   : > { %355 = vst [vmem:[#allocation2 + $0xa0] sm:$0x3] %v7016_v1  ;;  %356 = vst [vmem:[#allocation2 + $0xa8] sm:$0xff] %v7016_v1  ;;  %v1815_v23 = vld [vmem:[%s9547_s3 + $0x400] sm:$0xff]  ;;  %5931 = vmatprep.subr.bf16.mxu1 %v9555_v0  ;;  %v1694_v25 = vld [vmem:[%s9547_s3 + $0x38] sm:$0xff] }
  0x7f   : > { %357 = vst [vmem:[#allocation2 + $0xb0] sm:$0xff] %v7016_v1  ;;  %358 = vst [vmem:[#allocation2 + $0xb8] sm:$0x3] %v7016_v1  ;;  %v1816_v26 = vld [vmem:[%s9547_s3 + $0x408] sm:$0xff]  ;;  %v1817_v29 = vld [vmem:[%s9547_s3 + $0x410] sm:$0xff]  ;;  %v5935_v33 = vpack.c.bf16 %v1694_v25, %v1693_v24 }
  0x80   : > { %359 = vst [vmem:[#allocation2 + $0xc0] sm:$0xff] %v7016_v1  ;;  %360 = vst [vmem:[#allocation2 + $0xc8] sm:$0xff] %v7016_v1  ;;  %v398_v27 = vld [vmem:[%s7271_s13 + $0x48] sm:$0xff]  ;;  %v6117_v28 = vpack.c.bf16 %v1816_v26, %v1815_v23  ;;  %v1818_v30 = vld [vmem:[%s9547_s3 + $0x418] sm:$0xff] }
  0x81   : > { %361 = vst [vmem:[#allocation2 + $0xd0] sm:$0x3] %v7016_v1  ;;  %362 = vst [vmem:[#allocation2 + $0xd8] sm:$0xff] %v7016_v1  ;;  %v399_v31 = vld [vmem:[%s7271_s13 + $0x50] sm:$0xff]  ;;  %v6121_v32 = vpack.c.bf16 %v1818_v30, %v1817_v29  ;;  %5933 = vmatpush1.bf16.msra.mxu1 %v5932_v22  ;;  %v1819_v34 = vld [vmem:[%s9547_s3 + $0x420] sm:$0xff] }
  0x82   : > { %363 = vst [vmem:[#allocation2 + $0xe0] sm:$0xff] %v7016_v1  ;;  %364 = vst [vmem:[#allocation2 + $0xe8] sm:$0x3] %v7016_v1  ;;  %v1820_v35 = vld [vmem:[%s9547_s3 + $0x428] sm:$0xff]  ;;  %5934 = vmatprep.subr.bf16.mxu1 %v9555_v0  ;;  %v1695_v36 = vld [vmem:[%s9547_s3 + $0x40] sm:$0xff] }
  0x83   : > { %365 = vst [vmem:[#allocation2 + $0xf0] sm:$0xff] %v7016_v1  ;;  %366 = vst [vmem:[#allocation2 + $0xf8] sm:$0xff] %v7016_v1  ;;  %v1696_v37 = vld [vmem:[%s9547_s3 + $0x48] sm:$0xff]  ;;  %v400_v38 = vld [vmem:[%s7271_s13 + $0x58] sm:$0xff]  ;;  %v6125_v40 = vpack.c.bf16 %v1820_v35, %v1819_v34 }
  0x84   : > { %367 = vst [vmem:[#allocation2 + $0x100] sm:$0x3] %v7016_v1  ;;  %368 = vst [vmem:[#allocation2 + $0x108] sm:$0xff] %v7016_v1  ;;  %v401_v39 = vld [vmem:[%s7271_s13 + $0x60] sm:$0xff]  ;;  %v5938_v41 = vpack.c.bf16 %v1696_v37, %v1695_v36  ;;  %v1697_v42 = vld [vmem:[%s9547_s3 + $0x50] sm:$0xff] }
  0x85   : > { %369 = vst [vmem:[#allocation2 + $0x110] sm:$0xff] %v7016_v1  ;;  %370 = vst [vmem:[#allocation2 + $0x118] sm:$0x3] %v7016_v1  ;;  %5936 = vmatpush1.bf16.msra.mxu1 %v5935_v33  ;;  %v1698_v43 = vld [vmem:[%s9547_s3 + $0x58] sm:$0xff]  ;;  %v402_v44 = vld [vmem:[%s7271_s13 + $0x68] sm:$0xff] }
  0x86   : > { %371 = vst [vmem:[#allocation2 + $0x120] sm:$0xff] %v7016_v1  ;;  %372 = vst [vmem:[#allocation2 + $0x128] sm:$0xff] %v7016_v1  ;;  %5937 = vmatprep.subr.bf16.mxu1 %v9555_v0  ;;  %v403_v45 = vld [vmem:[%s7271_s13 + $0x70] sm:$0xff]  ;;  %v5941_v46 = vpack.c.bf16 %v1698_v43, %v1697_v42  ;;  %v1699_v47 = vld [vmem:[%s9547_s3 + $0x60] sm:$0xff] }
  0x87   : > { %373 = vst [vmem:[#allocation2 + $0x130] sm:$0x3] %v7016_v1  ;;  %374 = vst [vmem:[#allocation2 + $0x138] sm:$0xff] %v7016_v1  ;;  %v1700_v48 = vld [vmem:[%s9547_s3 + $0x68] sm:$0xff]  ;;  %v404_v49 = vld [vmem:[%s7271_s13 + $0x78] sm:$0xff] }
  0x88   : > { %375 = vst [vmem:[#allocation2 + $0x140] sm:$0xff] %v7016_v1  ;;  %376 = vst [vmem:[#allocation2 + $0x148] sm:$0x3] %v7016_v1  ;;  %v405_v50 = vld [vmem:[%s7271_s13 + $0x80] sm:$0xff]  ;;  %v5944_v51 = vpack.c.bf16 %v1700_v48, %v1699_v47  ;;  %v1701_v52 = vld [vmem:[%s9547_s3 + $0x70] sm:$0xff] }
  0x89   : > { %377 = vst [vmem:[#allocation2 + $0x150] sm:$0xff] %v7016_v1  ;;  %378 = vst [vmem:[#allocation2 + $0x158] sm:$0xff] %v7016_v1  ;;  %5939 = vmatpush1.bf16.msra.mxu1 %v5938_v41  ;;  %v1702_v53 = vld [vmem:[%s9547_s3 + $0x78] sm:$0xff]  ;;  %v406_v54 = vld [vmem:[%s7271_s13 + $0x88] sm:$0xff] }
  0x8a   : > { %379 = vst [vmem:[#allocation2 + $0x160] sm:$0x3] %v7016_v1  ;;  %380 = vst [vmem:[#allocation2 + $0x168] sm:$0xff] %v7016_v1  ;;  %5940 = vmatprep.subr.bf16.mxu1 %v9555_v0  ;;  %v407_v55 = vld [vmem:[%s7271_s13 + $0x90] sm:$0xff]  ;;  %v5947_v56 = vpack.c.bf16 %v1702_v53, %v1701_v52  ;;  %v1703_v57 = vld [vmem:[%s9547_s3 + $0x80] sm:$0xff] }
  0x8b   : > { %381 = vst [vmem:[#allocation2 + $0x170] sm:$0xff] %v7016_v1  ;;  %382 = vst [vmem:[#allocation2 + $0x178] sm:$0x3] %v7016_v1  ;;  %v1704_v58 = vld [vmem:[%s9547_s3 + $0x88] sm:$0xff]  ;;  %v408_v59 = vld [vmem:[%s7271_s13 + $0x98] sm:$0xff] }
  0x8c   : > { %383 = vst [vmem:[#allocation2 + $0x180] sm:$0xff] %v7016_v1  ;;  %384 = vst [vmem:[#allocation2 + $0x188] sm:$0xff] %v7016_v1  ;;  %v409_v60 = vld [vmem:[%s7271_s13 + $0xa0] sm:$0xff]  ;;  %v5950_v61 = vpack.c.bf16 %v1704_v58, %v1703_v57  ;;  %v1705_v62 = vld [vmem:[%s9547_s3 + $0x90] sm:$0xff] }
  0x8d   : > { %385 = vst [vmem:[#allocation2 + $0x190] sm:$0x3] %v7016_v1  ;;  %386 = vst [vmem:[#allocation2 + $0x198] sm:$0xff] %v7016_v1  ;;  %5942 = vmatpush1.bf16.msra.mxu1 %v5941_v46  ;;  %v1706_v63 = vld [vmem:[%s9547_s3 + $0x98] sm:$0xff]  ;;  %v410_v2 = vld [vmem:[%s7271_s13 + $0xa8] sm:$0xff] }
  0x8e   : > { %387 = vst [vmem:[#allocation2 + $0x1a0] sm:$0xff] %v7016_v1  ;;  %388 = vst [vmem:[#allocation2 + $0x1a8] sm:$0x3] %v7016_v1  ;;  %5943 = vmatprep.subr.bf16.mxu1 %v9555_v0  ;;  %v411_v3 = vld [vmem:[%s7271_s13 + $0xb0] sm:$0xff]  ;;  %v5953_v4 = vpack.c.bf16 %v1706_v63, %v1705_v62  ;;  %v1710_v11 = vld [vmem:[%s9547_s3 + $0xb8] sm:$0xff] }
  0x8f   : > { %vm5920_vm3 = vmpackc.low %vm527_vm0, %vm7017_vm2  ;;  %v1709_v10 = vld [vmem:[%s9547_s3 + $0xb0] sm:$0xff]  ;;  %v414_v12 = vld [vmem:[%s7271_s13 + $0xc8] sm:$0xff] }
  0x90   : > { %5921 = vmatprep.subr.msk.bf16.mxu0 %vm5920_vm3, %v5919_v5  ;;  %v415_v13 = vld [vmem:[%s7271_s13 + $0xd0] sm:$0xff]  ;;  %v1711_v15 = vld [vmem:[%s9547_s3 + $0xc0] sm:$0xff]  ;;  %v416_v17 = vld [vmem:[%s7271_s13 + $0xd8] sm:$0xff] }
  0x91   : > { %5924 = vmatpush3.bf16.msk.msra.mxu0 %vm5920_vm3, %v5919_v5  ;;  %5945 = vmatpush1.bf16.msra.mxu1 %v5944_v51  ;;  %v1707_v5 = vld [vmem:[%s9547_s3 + $0xa0] sm:$0xff]  ;;  %v418_v22 = vld [vmem:[%s7271_s13 + $0xe8] sm:$0xff]  ;;  %v1717_v30 = vld [vmem:[%s9547_s3 + $0xf0] sm:$0xff] }
  0x92   : > { %6118 = vmatprep.subr.bf16.mxu0 %v6117_v28  ;;  %5946 = vmatprep.subr.bf16.mxu1 %v9555_v0  ;;  %v417_v18 = vld [vmem:[%s7271_s13 + $0xe0] sm:$0xff]  ;;  %v1716_v25 = vld [vmem:[%s9547_s3 + $0xe8] sm:$0xff]  ;;  %v1825_v37 = vld [vmem:[%s9547_s3 + $0x450] sm:$0xff] }
  0x93   : > { %v1715_v24 = vld [vmem:[%s9547_s3 + $0xe0] sm:$0xff]  ;;  %v1824_v34 = vld [vmem:[%s9547_s3 + $0x448] sm:$0xff]  ;;  %v1829_v47 = vld [vmem:[%s9547_s3 + $0x470] sm:$0xff] }
  0x94   : > { %5712 = vmatmul.mubr.msk.f32.vlgmr.msra.gmra.mrb[0].mxu0 %vm430_vm1, %v390_v6  ;;  %v1708_v6 = vld [vmem:[%s9547_s3 + $0xa8] sm:$0xff]  ;;  %v5968_v26 = vpack.c.bf16 %v1716_v25, %v1715_v24  ;;  %v1827_v41 = vld [vmem:[%s9547_s3 + $0x460] sm:$0xff]  ;;  %v1830_v48 = vld [vmem:[%s9547_s3 + $0x478] sm:$0xff] }
  0x95   : > { %5714 = vmatprep.mubr.msk.f32.mxu0 %vm430_vm1, %v391_v7  ;;  %6120 = vmatpush3.bf16.msra.mxu0 %v6117_v28  ;;  %v412_v7 = vld [vmem:[%s7271_s13 + $0xb8] sm:$0xff]  ;;  %v886_v36 = vld [vmem:[#allocation2 + $0x1] sm:$0xff]  ;;  %v1725_v57 = vld [vmem:[%s9547_s3 + $0x130] sm:$0xff] }
  0x96   : > { %6122 = vmatprep.subr.bf16.mxu0 %v6121_v32  ;;  %5948 = vmatpush1.bf16.msra.mxu1 %v5947_v56  ;;  %v1822_v28 = vld [vmem:[%s9547_s3 + $0x438] sm:$0xff]  ;;  %v1828_v42 = vld [vmem:[%s9547_s3 + $0x468] sm:$0xff]  ;;  %v1719_v43 = vld [vmem:[%s9547_s3 + $0x100] sm:$0xff] }
  0x97   : > { %5949 = vmatprep.subr.bf16.mxu1 %v9555_v0  ;;  %1902 = vmatprep.mubr.f32.mxu1 %v886_v36  ;;  %v1722_v51 = vld [vmem:[%s9547_s3 + $0x118] sm:$0xff]  ;;  %v1729_v63 = vld [vmem:[%s9547_s3 + $0x150] sm:$0xff] }
  0x98   : > { %5715 = vmatmul.mubr.msk.f32.gmra.mrb[2].mxu0 %vm430_vm1, %v392_v8  ;;  %v413_v8 = vld [vmem:[%s7271_s13 + $0xc0] sm:$0xff]  ;;  %v420_v52 = vld [vmem:[%s7271_s13 + $0xf8] sm:$0xff]  ;;  %v1745_v25 = vld [vmem:[%s9547_s3 + $0x1d0] sm:$0xff] }
  0x99   : > { %5717 = vmatprep.mubr.msk.f32.mxu0 %vm430_vm1, %v393_v9  ;;  %6124 = vmatpush3.bf16.msra.mxu0 %v6121_v32  ;;  %v5956_v9 = vpack.c.bf16 %v1708_v6, %v1707_v5  ;;  %v1823_v32 = vld [vmem:[%s9547_s3 + $0x440] sm:$0xff]  ;;  %v1726_v58 = vld [vmem:[%s9547_s3 + $0x138] sm:$0xff]  ;;  %v1732_v5 = vld [vmem:[%s9547_s3 + $0x168] sm:$0xff] }
  0x9a   : > { %6126 = vmatprep.subr.bf16.mxu0 %v6125_v40  ;;  %5951 = vmatpush1.bf16.msra.mxu1 %v5950_v61  ;;  %v6133_v35 = vpack.c.bf16 %v1824_v34, %v1823_v32  ;;  %v1728_v61 = vld [vmem:[%s9547_s3 + $0x148] sm:$0xff]  ;;  %v1749_v32 = vld [vmem:[%s9547_s3 + $0x1f0] sm:$0xff] }
  0x9b   : > { %5952 = vmatprep.subr.bf16.mxu1 %v9555_v0 }
  0x9c   : > { %5718 = vmatmul.mubr.msk.f32.gmra.mrb[4].mxu0 %vm430_vm1, %v394_v14  ;;  %v5959_v14 = vpack.c.bf16 %v1710_v11, %v1709_v10  ;;  %v1735_v10 = vld [vmem:[%s9547_s3 + $0x180] sm:$0xff]  ;;  %v1736_v11 = vld [vmem:[%s9547_s3 + $0x188] sm:$0xff] }
  0x9d   : > { %5720 = vmatprep.mubr.msk.f32.mxu0 %vm430_vm1, %v395_v16  ;;  %6128 = vmatpush3.bf16.msra.mxu0 %v6125_v40  ;;  %v1712_v16 = vld [vmem:[%s9547_s3 + $0xc8] sm:$0xff] }
  0x9e   : > { %5954 = vmatpush1.bf16.msra.mxu1 %v5953_v4  ;;  %v5962_v19 = vpack.c.bf16 %v1712_v16, %v1711_v15  ;;  %v887_v40 = vld [vmem:[#allocation2 + $0x9] sm:$0xff]  ;;  %v1731_v4 = vld [vmem:[%s9547_s3 + $0x160] sm:$0xff] }
  0x9f   : > { %5955 = vmatprep.subr.bf16.mxu1 %v9555_v0  ;;  %v5992_v6 = vpack.c.bf16 %v1732_v5, %v1731_v4  ;;  %v1739_v16 = vld [vmem:[%s9547_s3 + $0x1a0] sm:$0xff] }
  0xa0   : > { %5721 = vmatmul.mubr.msk.f32.gmra.mrb[6].mxu0 %vm430_vm1, %v396_v20  ;;  %v1713_v20 = vld [vmem:[%s9547_s3 + $0xd0] sm:$0xff] }
  0xa1   : > { %5723 = vmatprep.mubr.msk.f32.mxu0 %vm430_vm1, %v397_v21  ;;  %v1714_v21 = vld [vmem:[%s9547_s3 + $0xd8] sm:$0xff] }
  0xa2   : > { %5957 = vmatpush1.bf16.msra.mxu1 %v5956_v9  ;;  %v5965_v23 = vpack.c.bf16 %v1714_v21, %v1713_v20  ;;  %v1742_v20 = vld [vmem:[%s9547_s3 + $0x1b8] sm:$0xff] }
  0xa3   : > { %5958 = vmatprep.subr.bf16.mxu1 %v9555_v0 }
  0xa4   : > { %5724 = vmatmul.mubr.msk.f32.gmra.mrb[8].mxu0 %vm430_vm1, %v398_v27  ;;  %v1821_v27 = vld [vmem:[%s9547_s3 + $0x430] sm:$0xff] }
  0xa5   : > { %5726 = vmatprep.mubr.msk.f32.mxu0 %vm430_vm1, %v399_v31  ;;  %v6129_v29 = vpack.c.bf16 %v1822_v28, %v1821_v27  ;;  %v1718_v31 = vld [vmem:[%s9547_s3 + $0xf8] sm:$0xff]  ;;  %v1747_v28 = vld [vmem:[%s9547_s3 + $0x1e0] sm:$0xff] }
  0xa6   : > { %5960 = vmatpush1.bf16.msra.mxu1 %v5959_v14  ;;  %v5971_v33 = vpack.c.bf16 %v1718_v31, %v1717_v30  ;;  %v1738_v14 = vld [vmem:[%s9547_s3 + $0x198] sm:$0xff]  ;;  %v7605_v31 = vld [vmem:[#allocation6] ss:$0 sm:$0xff] }
  0xa7   : > { %5961 = vmatprep.subr.bf16.mxu1 %v9555_v0  ;;  %6130 = vmatprep.subr.bf16.mxu0 %v6129_v29 }
  0xa8   : > { %5727 = vmatmul.mubr.msk.f32.gmra.mrb[10].mxu0 %vm430_vm1, %v400_v38  ;;  %v1826_v38 = vld [vmem:[%s9547_s3 + $0x458] sm:$0xff] }
  0xa9   : > { %5729 = vmatprep.mubr.msk.f32.mxu0 %vm430_vm1, %v401_v39  ;;  %6132 = vmatpush3.bf16.msra.mxu0 %v6129_v29  ;;  %v6137_v39 = vpack.c.bf16 %v1826_v38, %v1825_v37  ;;  %v1748_v29 = vld [vmem:[%s9547_s3 + $0x1e8] sm:$0xff] }
  0xaa   : > { %5963 = vmatpush1.bf16.msra.mxu1 %v5962_v19  ;;  %6134 = vmatprep.subr.bf16.mxu0 %v6133_v35  ;;  %v1741_v19 = vld [vmem:[%s9547_s3 + $0x1b0] sm:$0xff]  ;;  %v6016_v30 = vpack.c.bf16 %v1748_v29, %v1747_v28 }
  0xab   : > { %5964 = vmatprep.subr.bf16.mxu1 %v9555_v0  ;;  %v6007_v21 = vpack.c.bf16 %v1742_v20, %v1741_v19 }
  0xac   : > { %5730 = vmatmul.mubr.msk.f32.gmra.mrb[12].mxu0 %vm430_vm1, %v402_v44  ;;  %v1720_v44 = vld [vmem:[%s9547_s3 + $0x108] sm:$0xff] }
  0xad   : > { %5732 = vmatprep.mubr.msk.f32.mxu0 %vm430_vm1, %v403_v45  ;;  %6136 = vmatpush3.bf16.msra.mxu0 %v6133_v35  ;;  %v6141_v45 = vpack.c.bf16 %v1828_v42, %v1827_v41  ;;  %v5974_v46 = vpack.c.bf16 %v1720_v44, %v1719_v43 }
  0xae   : > { %5966 = vmatpush1.bf16.msra.mxu1 %v5965_v23  ;;  %6138 = vmatprep.subr.bf16.mxu0 %v6137_v39  ;;  %v1744_v23 = vld [vmem:[%s9547_s3 + $0x1c8] sm:$0xff] }
  0xaf   : > { %5967 = vmatprep.subr.bf16.mxu1 %v9555_v0 }
  0xb0   : > { %5733 = vmatmul.mubr.msk.f32.gmra.mrb[14].mxu0 %vm430_vm1, %v404_v49  ;;  %v419_v49 = vld [vmem:[%s7271_s13 + $0xf0] sm:$0xff] }
  0xb1   : > { %5735 = vmatprep.mubr.msk.f32.mxu0 %vm430_vm1, %v405_v50  ;;  %6140 = vmatpush3.bf16.msra.mxu0 %v6137_v39  ;;  %v6145_v50 = vpack.c.bf16 %v1830_v48, %v1829_v47 }
  0xb2   : > { %5969 = vmatpush1.bf16.msra.mxu1 %v5968_v26  ;;  %6142 = vmatprep.subr.bf16.mxu0 %v6141_v45  ;;  %v1746_v26 = vld [vmem:[%s9547_s3 + $0x1d8] sm:$0xff] }
  0xb3   : > { %5970 = vmatprep.subr.bf16.mxu1 %v9555_v0  ;;  %v6013_v27 = vpack.c.bf16 %v1746_v26, %v1745_v25 }
  0xb4   : > { %5736 = vmatmul.mubr.msk.f32.gmra.mrb[16].mxu0 %vm430_vm1, %v406_v54  ;;  %v1723_v54 = vld [vmem:[%s9547_s3 + $0x120] sm:$0xff] }
  0xb5   : > { %5738 = vmatprep.mubr.msk.f32.mxu0 %vm430_vm1, %v407_v55  ;;  %6144 = vmatpush3.bf16.msra.mxu0 %v6141_v45  ;;  %v1724_v55 = vld [vmem:[%s9547_s3 + $0x128] sm:$0xff] }
  0xb6   : > { %5972 = vmatpush1.bf16.msra.mxu1 %v5971_v33  ;;  %6146 = vmatprep.subr.bf16.mxu0 %v6145_v50  ;;  %v5980_v56 = vpack.c.bf16 %v1724_v55, %v1723_v54  ;;  %v1750_v33 = vld [vmem:[%s9547_s3 + $0x1f8] sm:$0xff] }
  0xb7   : > { %5973 = vmatprep.subr.bf16.mxu1 %v9555_v0  ;;  %v6019_v35 = vpack.c.bf16 %v1750_v33, %v1749_v32 }
  0xb8   : > { %5739 = vmatmul.mubr.msk.f32.gmra.mrb[18].mxu0 %vm430_vm1, %v408_v59  ;;  %v5983_v59 = vpack.c.bf16 %v1726_v58, %v1725_v57 }
  0xb9   : > { %5741 = vmatprep.mubr.msk.f32.mxu0 %vm430_vm1, %v409_v60  ;;  %1903 = vmatmul.mubr.f32.vlgmr.msra.gmra.mrb[0].mxu1 %v7016_v1  ;;  %v1727_v60 = vld [vmem:[%s9547_s3 + $0x140] sm:$0xff] }
  0xba   : > { %1907 = vmatprep.mubr.f32.mxu1 %v887_v40  ;;  %5975 = vmatpush1.bf16.msra.mxu1 %v5974_v46  ;;  %v5986_v62 = vpack.c.bf16 %v1728_v61, %v1727_v60 }
  0xbb   : > { %5976 = vmatprep.subr.bf16.mxu1 %v9555_v0  ;;  %6148 = vmatpush3.bf16.msra.mxu0 %v6145_v50 }
  0xbc   : > { %5742 = vmatmul.mubr.msk.f32.gmra.mrb[20].mxu0 %vm430_vm1, %v410_v2  ;;  %6149 = vmatprep.subr.bf16.mxu0 %v9555_v0  ;;  %v1730_v2 = vld [vmem:[%s9547_s3 + $0x158] sm:$0xff] }
  0xbd   : > { %5744 = vmatprep.mubr.msk.f32.mxu0 %vm430_vm1, %v411_v3  ;;  %1908 = vmatmul.mubr.f32.gmra.mrb[2].mxu1 %v7016_v1  ;;  %v1721_v1 = vld [vmem:[%s9547_s3 + $0x110] sm:$0xff]  ;;  %v5989_v3 = vpack.c.bf16 %v1730_v2, %v1729_v63 }
  0xbe   : > { %v5977_v53 = vpack.c.bf16 %v1722_v51, %v1721_v1 }
  0xc0   : > { %5745 = vmatmul.mubr.msk.f32.gmra.mrb[22].mxu0 %vm430_vm1, %v412_v7  ;;  %5978 = vmatpush1.bf16.msra.mxu1 %v5977_v53  ;;  %v1733_v7 = vld [vmem:[%s9547_s3 + $0x170] sm:$0xff] }
  0xc1   : > { %5747 = vmatprep.mubr.msk.f32.mxu0 %vm430_vm1, %v413_v8  ;;  %5979 = vmatprep.subr.bf16.mxu1 %v9555_v0  ;;  %v1734_v8 = vld [vmem:[%s9547_s3 + $0x178] sm:$0xff] }
  0xc2   : > { %v5995_v9 = vpack.c.bf16 %v1734_v8, %v1733_v7 }
  0xc4   : > { %5748 = vmatmul.mubr.msk.f32.gmra.mrb[24].mxu0 %vm430_vm1, %v414_v12  ;;  %5981 = vmatpush1.bf16.msra.mxu1 %v5980_v56  ;;  %v5998_v12 = vpack.c.bf16 %v1736_v11, %v1735_v10 }
  0xc5   : > { %5750 = vmatprep.mubr.msk.f32.mxu0 %vm430_vm1, %v415_v13  ;;  %5982 = vmatprep.subr.bf16.mxu1 %v9555_v0  ;;  %v1737_v13 = vld [vmem:[%s9547_s3 + $0x190] sm:$0xff] }
  0xc6   : > { %v6001_v15 = vpack.c.bf16 %v1738_v14, %v1737_v13 }
  0xc8   : > { %5751 = vmatmul.mubr.msk.f32.gmra.mrb[26].mxu0 %vm430_vm1, %v416_v17  ;;  %5984 = vmatpush1.bf16.msra.mxu1 %v5983_v59  ;;  %v1740_v17 = vld [vmem:[%s9547_s3 + $0x1a8] sm:$0xff] }
  0xc9   : > { %5753 = vmatprep.mubr.msk.f32.mxu0 %vm430_vm1, %v417_v18  ;;  %5985 = vmatprep.subr.bf16.mxu1 %v9555_v0  ;;  %v6004_v18 = vpack.c.bf16 %v1740_v17, %v1739_v16 }
  0xcc   : > { %5754 = vmatmul.mubr.msk.f32.gmra.mrb[28].mxu0 %vm430_vm1, %v418_v22  ;;  %5987 = vmatpush1.bf16.msra.mxu1 %v5986_v62  ;;  %v1743_v22 = vld [vmem:[%s9547_s3 + $0x1c0] sm:$0xff] }
  0xcd   : > { %5756 = vmatprep.mubr.msk.f32.mxu0 %vm430_vm1, %v419_v49  ;;  %5988 = vmatprep.subr.bf16.mxu1 %v9555_v0  ;;  %v6010_v24 = vpack.c.bf16 %v1744_v23, %v1743_v22 }
  0xd0   : > { %5757 = vmatmul.mubr.msk.f32.gmra.mrb[30].mxu0 %vm430_vm1, %v420_v52  ;;  %5990 = vmatpush1.bf16.msra.mxu1 %v5989_v3 }
  0xd1   : > { %5991 = vmatprep.subr.bf16.mxu1 %v9555_v0 }
  0xd4   : > { %5993 = vmatpush1.bf16.msra.mxu1 %v5992_v6 }
  0xd5   : > { %5994 = vmatprep.subr.bf16.mxu1 %v9555_v0 }
  0xd8   : > { %5996 = vmatpush1.bf16.msra.mxu1 %v5995_v9 }
  0xd9   : > { %5997 = vmatprep.subr.bf16.mxu1 %v9555_v0 }
  0xdc   : > { %5999 = vmatpush1.bf16.msra.mxu1 %v5998_v12 }
  0xdd   : > { %6000 = vmatprep.subr.bf16.mxu1 %v9555_v0 }
  0xe0   : > { %6002 = vmatpush1.bf16.msra.mxu1 %v6001_v15 }
  0xe1   : > { %6003 = vmatprep.subr.bf16.mxu1 %v9555_v0 }
  0xe4   : > { %6005 = vmatpush1.bf16.msra.mxu1 %v6004_v18 }
  0xe5   : > { %6006 = vmatprep.subr.bf16.mxu1 %v9555_v0 }
  0xe8   : > { %6008 = vmatpush1.bf16.msra.mxu1 %v6007_v21 }
  0xe9   : > { %6009 = vmatprep.subr.bf16.mxu1 %v9555_v0 }
  0xec   : > { %6011 = vmatpush1.bf16.msra.mxu1 %v6010_v24 }
  0xed   : > { %6012 = vmatprep.subr.bf16.mxu1 %v9555_v0 }
  0xf0   : > { %6014 = vmatpush1.bf16.msra.mxu1 %v6013_v27 }
  0xf1   : > { %6015 = vmatprep.subr.bf16.mxu1 %v9555_v0 }
  0xf4   : > { %6017 = vmatpush1.bf16.msra.mxu1 %v6016_v30 }
  0xf5   : > { %6018 = vmatprep.subr.bf16.mxu1 %v9555_v0 }
  0xf8   : > { %6020 = vmatpush1.bf16.msra.mxu1 %v6019_v35 }
  0xf9   : > { %6021 = vmatprep.subr.bf16.mxu1 %v9555_v0 }
 0x167   : > { %v5713_v34 = vpop.f32.mrb[0].mxu0 }
 0x168   : > { %v603_v36 = vadd.f32 %v5713_v34, %v7605_v31  ;;  %v597_v37 = vpop.f32.mrb[1].mxu0 }
 0x169   : > { %v598_v38 = vadd.f32 %v7605_v31, %v597_v37 }
 0x16a   : > { %v757_v39 = vmax.f32 %v603_v36, 0.0 }
 0x16b   : > { %v756_v40 = vmax.f32 %v598_v38, 0.0  ;;  %v5716_v41 = vpop.f32.mrb[2].mxu0 }
 0x16c   : > { %791 = vst.msk [vmem:[#allocation2 + $0x21] sm:$0xff] %vm789_vm4, %v757_v39  ;;  %v613_v42 = vadd.f32 %v5716_v41, %v7605_v31  ;;  %v607_v43 = vpop.f32.mrb[3].mxu0 }
 0x16d   : > { %790 = vst.msk [vmem:[#allocation2 + $0x19] sm:$0xff] %vm789_vm4, %v756_v40  ;;  %v608_v44 = vadd.f32 %v7605_v31, %v607_v43 }
 0x16e   : > { %v759_v45 = vmax.f32 %v613_v42, 0.0 }
 0x16f   : > { %v758_v46 = vmax.f32 %v608_v44, 0.0  ;;  %v5719_v47 = vpop.f32.mrb[4].mxu0 }
 0x170   : > { %793 = vst.msk [vmem:[#allocation2 + $0x39] sm:$0xff] %vm789_vm4, %v759_v45  ;;  %v623_v48 = vadd.f32 %v5719_v47, %v7605_v31  ;;  %v617_v49 = vpop.f32.mrb[5].mxu0 }
 0x171   : > { %792 = vst.msk [vmem:[#allocation2 + $0x31] sm:$0xff] %vm789_vm4, %v758_v46  ;;  %v618_v50 = vadd.f32 %v7605_v31, %v617_v49 }
 0x172   : > { %v761_v1 = vmax.f32 %v623_v48, 0.0 }
 0x173   : > { %v760_v51 = vmax.f32 %v618_v50, 0.0  ;;  %v5722_v52 = vpop.f32.mrb[6].mxu0  ;;  %v889_v58 = vld [vmem:[#allocation2 + $0x21] sm:$0xff] }
 0x174   : > { %795 = vst.msk [vmem:[#allocation2 + $0x51] sm:$0xff] %vm789_vm4, %v761_v1  ;;  %v888_v53 = vld [vmem:[#allocation2 + $0x19] sm:$0xff]  ;;  %v633_v55 = vadd.f32 %v5722_v52, %v7605_v31  ;;  %v627_v56 = vpop.f32.mrb[7].mxu0 }
 0x175   : > { %v7625_v54 = vld [vmem:[#allocation2 + $0x18] sm:$0xff]  ;;  %794 = vst.msk [vmem:[#allocation2 + $0x49] sm:$0xff] %vm789_vm4, %v760_v51  ;;  %1912 = vmatprep.mubr.f32.mxu1 %v888_v53  ;;  %v628_v57 = vadd.f32 %v7605_v31, %v627_v56  ;;  %v7637_v5 = vld [vmem:[#allocation2 + $0x20] sm:$0xff] }
 0x176   : > { %1913 = vmatmul.mubr.f32.gmra.mrb[4].mxu1 %v7625_v54  ;;  %v763_v59 = vmax.f32 %v633_v55, 0.0 }
 0x177   : > { %1917 = vmatprep.mubr.f32.mxu1 %v889_v58  ;;  %v7631_v60 = vld [vmem:[#allocation2 + $0x3a] sm:$0xff]  ;;  %v762_v61 = vmax.f32 %v628_v57, 0.0  ;;  %v5725_v62 = vpop.f32.mrb[8].mxu0 }
 0x178   : > { %v7633_v63 = vld [vmem:[#allocation2 + $0x32] sm:$0xff]  ;;  %797 = vst.msk [vmem:[#allocation2 + $0x69] sm:$0xff] %vm789_vm4, %v763_v59  ;;  %v643_v3 = vadd.f32 %v5725_v62, %v7605_v31  ;;  %v637_v4 = vpop.f32.mrb[9].mxu0 }
 0x179   : > { %v890_v2 = vld [vmem:[#allocation2 + $0x31] sm:$0xff]  ;;  %5791 = vmatprep.mubr.f32.mxu0 %v7633_v63  ;;  %796 = vst.msk [vmem:[#allocation2 + $0x61] sm:$0xff] %vm789_vm4, %v762_v61  ;;  %v638_v6 = vadd.f32 %v7605_v31, %v637_v4  ;;  %v891_v16 = vld [vmem:[#allocation2 + $0x39] sm:$0xff] }
 0x17a   : > { %1918 = vmatmul.mubr.f32.gmra.mrb[6].mxu1 %v7637_v5  ;;  %5792 = vmatmul.mubr.f32.vlgmr.msra.gmra.mrb[32].mxu0 %v7631_v60  ;;  %v765_v7 = vmax.f32 %v643_v3, 0.0  ;;  %v7650_v14 = vld [vmem:[#allocation2 + $0x30] sm:$0xff]  ;;  %v7663_v25 = vld [vmem:[#allocation2 + $0x38] sm:$0xff] }
 0x17b   : > { %1922 = vmatprep.mubr.f32.mxu1 %v890_v2  ;;  %v7644_v8 = vld [vmem:[#allocation2 + $0x52] sm:$0xff]  ;;  %v764_v9 = vmax.f32 %v638_v6, 0.0  ;;  %v5728_v10 = vpop.f32.mrb[10].mxu0 }
 0x17c   : > { %v7646_v11 = vld [vmem:[#allocation2 + $0x4a] sm:$0xff]  ;;  %799 = vst.msk [vmem:[#allocation2 + $0x81] sm:$0xff] %vm789_vm4, %v765_v7  ;;  %v653_v12 = vadd.f32 %v5728_v10, %v7605_v31  ;;  %v647_v13 = vpop.f32.mrb[11].mxu0 }
 0x17d   : > { %5794 = vmatprep.mubr.f32.mxu0 %v7646_v11  ;;  %798 = vst.msk [vmem:[#allocation2 + $0x79] sm:$0xff] %vm789_vm4, %v764_v9  ;;  %v648_v15 = vadd.f32 %v7605_v31, %v647_v13  ;;  %v892_v21 = vld [vmem:[#allocation2 + $0x49] sm:$0xff]  ;;  %v893_v37 = vld [vmem:[#allocation2 + $0x51] sm:$0xff] }
 0x17e   : > { %1923 = vmatmul.mubr.f32.gmra.mrb[8].mxu1 %v7650_v14  ;;  %5795 = vmatmul.mubr.f32.gmra.mrb[34].mxu0 %v7644_v8  ;;  %v767_v17 = vmax.f32 %v653_v12, 0.0  ;;  %v7676_v35 = vld [vmem:[#allocation2 + $0x48] sm:$0xff]  ;;  %v7689_v46 = vld [vmem:[#allocation2 + $0x50] sm:$0xff] }
 0x17f   : > { %1927 = vmatprep.mubr.f32.mxu1 %v891_v16  ;;  %v7657_v18 = vld [vmem:[#allocation2 + $0x6a] sm:$0xff]  ;;  %v766_v19 = vmax.f32 %v648_v15, 0.0  ;;  %v5731_v20 = vpop.f32.mrb[12].mxu0 }
 0x180   : > { %v7659_v22 = vld [vmem:[#allocation2 + $0x62] sm:$0xff]  ;;  %801 = vst.msk [vmem:[#allocation2 + $0x99] sm:$0xff] %vm789_vm4, %v767_v17  ;;  %v663_v23 = vadd.f32 %v5731_v20, %v7605_v31  ;;  %v657_v24 = vpop.f32.mrb[13].mxu0 }
 0x181   : > { %5797 = vmatprep.mubr.f32.mxu0 %v7659_v22  ;;  %800 = vst.msk [vmem:[#allocation2 + $0x91] sm:$0xff] %vm789_vm4, %v766_v19  ;;  %v658_v26 = vadd.f32 %v7605_v31, %v657_v24  ;;  %v894_v42 = vld [vmem:[#allocation2 + $0x61] sm:$0xff]  ;;  %v895_v57 = vld [vmem:[#allocation2 + $0x69] sm:$0xff] }
 0x182   : > { %1928 = vmatmul.mubr.f32.gmra.mrb[10].mxu1 %v7663_v25  ;;  %5798 = vmatmul.mubr.f32.gmra.mrb[36].mxu0 %v7657_v18  ;;  %v769_v27 = vmax.f32 %v663_v23, 0.0  ;;  %v7702_v55 = vld [vmem:[#allocation2 + $0x60] sm:$0xff]  ;;  %v7715_v7 = vld [vmem:[#allocation2 + $0x68] sm:$0xff] }
 0x183   : > { %1932 = vmatprep.mubr.f32.mxu1 %v892_v21  ;;  %v7670_v28 = vld [vmem:[#allocation2 + $0x82] sm:$0xff]  ;;  %v768_v29 = vmax.f32 %v658_v26, 0.0  ;;  %v5734_v30 = vpop.f32.mrb[14].mxu0 }
 0x184   : > { %v7672_v32 = vld [vmem:[#allocation2 + $0x7a] sm:$0xff]  ;;  %803 = vst.msk [vmem:[#allocation2 + $0xb1] sm:$0xff] %vm789_vm4, %v769_v27  ;;  %v673_v33 = vadd.f32 %v5734_v30, %v7605_v31  ;;  %v667_v34 = vpop.f32.mrb[15].mxu0 }
 0x185   : > { %5800 = vmatprep.mubr.f32.mxu0 %v7672_v32  ;;  %802 = vst.msk [vmem:[#allocation2 + $0xa9] sm:$0xff] %vm789_vm4, %v768_v29  ;;  %v668_v36 = vadd.f32 %v7605_v31, %v667_v34  ;;  %v896_v2 = vld [vmem:[#allocation2 + $0x79] sm:$0xff]  ;;  %v897_v23 = vld [vmem:[#allocation2 + $0x81] sm:$0xff] }
 0x186   : > { %1933 = vmatmul.mubr.f32.gmra.mrb[12].mxu1 %v7676_v35  ;;  %5801 = vmatmul.mubr.f32.gmra.mrb[38].mxu0 %v7670_v28  ;;  %v771_v38 = vmax.f32 %v673_v33, 0.0  ;;  %v7728_v20 = vld [vmem:[#allocation2 + $0x78] sm:$0xff] }
 0x187   : > { %1937 = vmatprep.mubr.f32.mxu1 %v893_v37  ;;  %v7683_v39 = vld [vmem:[#allocation2 + $0x9a] sm:$0xff]  ;;  %v770_v40 = vmax.f32 %v668_v36, 0.0  ;;  %v5737_v41 = vpop.f32.mrb[16].mxu0 }
 0x188   : > { %v7685_v43 = vld [vmem:[#allocation2 + $0x92] sm:$0xff]  ;;  %805 = vst.msk [vmem:[#allocation2 + $0xc9] sm:$0xff] %vm789_vm4, %v771_v38  ;;  %v683_v44 = vadd.f32 %v5737_v41, %v7605_v31  ;;  %v677_v45 = vpop.f32.mrb[17].mxu0  ;;  %v7741_v37 = vld [vmem:[#allocation2 + $0x80] sm:$0xff] }
 0x189   : > { %5803 = vmatprep.mubr.f32.mxu0 %v7685_v43  ;;  %804 = vst.msk [vmem:[#allocation2 + $0xc1] sm:$0xff] %vm789_vm4, %v770_v40  ;;  %v678_v47 = vadd.f32 %v7605_v31, %v677_v45  ;;  %v898_v30 = vld [vmem:[#allocation2 + $0x91] sm:$0xff] }
 0x18a   : > { %1938 = vmatmul.mubr.f32.gmra.mrb[14].mxu1 %v7689_v46  ;;  %5804 = vmatmul.mubr.f32.gmra.mrb[40].mxu0 %v7683_v39  ;;  %v773_v48 = vmax.f32 %v683_v44, 0.0 }
 0x18b   : > { %1942 = vmatprep.mubr.f32.mxu1 %v894_v42  ;;  %v7696_v49 = vld [vmem:[#allocation2 + $0xb2] sm:$0xff]  ;;  %v772_v50 = vmax.f32 %v678_v47, 0.0  ;;  %v5740_v1 = vpop.f32.mrb[18].mxu0 }
 0x18c   : > { %v7698_v51 = vld [vmem:[#allocation2 + $0xaa] sm:$0xff]  ;;  %807 = vst.msk [vmem:[#allocation2 + $0xe1] sm:$0xff] %vm789_vm4, %v773_v48  ;;  %v693_v52 = vadd.f32 %v5740_v1, %v7605_v31  ;;  %v687_v53 = vpop.f32.mrb[19].mxu0 }
 0x18d   : > { %5806 = vmatprep.mubr.f32.mxu0 %v7698_v51  ;;  %806 = vst.msk [vmem:[#allocation2 + $0xd9] sm:$0xff] %vm789_vm4, %v772_v50  ;;  %v688_v56 = vadd.f32 %v7605_v31, %v687_v53  ;;  %v7754_v50 = vld [vmem:[#allocation2 + $0x90] sm:$0xff] }
 0x18e   : > { %1943 = vmatmul.mubr.f32.gmra.mrb[16].mxu1 %v7702_v55  ;;  %5807 = vmatmul.mubr.f32.gmra.mrb[42].mxu0 %v7696_v49  ;;  %v775_v58 = vmax.f32 %v693_v52, 0.0  ;;  %v899_v52 = vld [vmem:[#allocation2 + $0x99] sm:$0xff] }
 0x18f   : > { %1947 = vmatprep.mubr.f32.mxu1 %v895_v57  ;;  %v7709_v59 = vld [vmem:[#allocation2 + $0xca] sm:$0xff]  ;;  %v774_v61 = vmax.f32 %v688_v56, 0.0  ;;  %v5743_v62 = vpop.f32.mrb[20].mxu0 }
 0x190   : > { %v7711_v3 = vld [vmem:[#allocation2 + $0xc2] sm:$0xff]  ;;  %809 = vst.msk [vmem:[#allocation2 + $0xf9] sm:$0xff] %vm789_vm4, %v775_v58  ;;  %v703_v4 = vadd.f32 %v5743_v62, %v7605_v31  ;;  %v697_v6 = vpop.f32.mrb[21].mxu0 }
 0x191   : > { %5809 = vmatprep.mubr.f32.mxu0 %v7711_v3  ;;  %808 = vst.msk [vmem:[#allocation2 + $0xf1] sm:$0xff] %vm789_vm4, %v774_v61  ;;  %v698_v9 = vadd.f32 %v7605_v31, %v697_v6  ;;  %v900_v61 = vld [vmem:[#allocation2 + $0xa9] sm:$0xff]  ;;  %v7767_v6 = vld [vmem:[#allocation2 + $0x98] sm:$0xff] }
 0x192   : > { %1948 = vmatmul.mubr.f32.gmra.mrb[18].mxu1 %v7715_v7  ;;  %5810 = vmatmul.mubr.f32.gmra.mrb[44].mxu0 %v7709_v59  ;;  %v777_v10 = vmax.f32 %v703_v4, 0.0 }
 0x193   : > { %1952 = vmatprep.mubr.f32.mxu1 %v896_v2  ;;  %v7722_v12 = vld [vmem:[#allocation2 + $0xe2] sm:$0xff]  ;;  %v776_v13 = vmax.f32 %v698_v9, 0.0  ;;  %v5746_v15 = vpop.f32.mrb[22].mxu0 }
 0x194   : > { %v7724_v16 = vld [vmem:[#allocation2 + $0xda] sm:$0xff]  ;;  %811 = vst.msk [vmem:[#allocation2 + $0x111] sm:$0xff] %vm789_vm4, %v777_v10  ;;  %v713_v17 = vadd.f32 %v5746_v15, %v7605_v31  ;;  %v707_v19 = vpop.f32.mrb[23].mxu0 }
 0x195   : > { %5812 = vmatprep.mubr.f32.mxu0 %v7724_v16  ;;  %810 = vst.msk [vmem:[#allocation2 + $0x109] sm:$0xff] %vm789_vm4, %v776_v13  ;;  %v708_v21 = vadd.f32 %v7605_v31, %v707_v19  ;;  %v7779_v19 = vld [vmem:[#allocation2 + $0xa8] sm:$0xff] }
 0x196   : > { %1953 = vmatmul.mubr.f32.gmra.mrb[20].mxu1 %v7728_v20  ;;  %5813 = vmatmul.mubr.f32.gmra.mrb[46].mxu0 %v7722_v12  ;;  %v779_v24 = vmax.f32 %v713_v17, 0.0 }
 0x197   : > { %1957 = vmatprep.mubr.f32.mxu1 %v897_v23  ;;  %v7735_v26 = vld [vmem:[#allocation2 + $0xfa] sm:$0xff]  ;;  %v778_v27 = vmax.f32 %v708_v21, 0.0  ;;  %v5749_v29 = vpop.f32.mrb[24].mxu0  ;;  %v901_v21 = vld [vmem:[#allocation2 + $0xb1] sm:$0xff] }
 0x198   : > { %v7737_v33 = vld [vmem:[#allocation2 + $0xf2] sm:$0xff]  ;;  %813 = vst.msk [vmem:[#allocation2 + $0x129] sm:$0xff] %vm789_vm4, %v779_v24  ;;  %v723_v34 = vadd.f32 %v5749_v29, %v7605_v31  ;;  %v717_v36 = vpop.f32.mrb[25].mxu0  ;;  %v7787_v24 = vld [vmem:[#allocation2 + $0xc1] sm:$0xff] }
 0x199   : > { %5815 = vmatprep.mubr.f32.mxu0 %v7737_v33  ;;  %812 = vst.msk [vmem:[#allocation2 + $0x121] sm:$0xff] %vm789_vm4, %v778_v27  ;;  %v718_v38 = vadd.f32 %v7605_v31, %v717_v36  ;;  %9606 = vst [vmem:[#allocation15_spill] sm:$0xff] %v7787_v24  ;;  %v7791_v29 = vld [vmem:[#allocation2 + $0xb0] sm:$0xff]  ;;  %v7801_v36 = vld [vmem:[#allocation2 + $0xc0] sm:$0xff] }
 0x19a   : > { %1958 = vmatmul.mubr.f32.gmra.mrb[22].mxu1 %v7741_v37  ;;  %5816 = vmatmul.mubr.f32.gmra.mrb[48].mxu0 %v7735_v26  ;;  %v781_v40 = vmax.f32 %v723_v34, 0.0 }
 0x19b   : > { %1962 = vmatprep.mubr.f32.mxu1 %v898_v30  ;;  %v7748_v41 = vld [vmem:[#allocation2 + $0x112] sm:$0xff]  ;;  %v780_v42 = vmax.f32 %v718_v38, 0.0  ;;  %v5752_v44 = vpop.f32.mrb[26].mxu0  ;;  %v7805_v38 = vld [vmem:[#allocation2 + $0xc9] sm:$0xff] }
 0x19c   : > { %v7750_v45 = vld [vmem:[#allocation2 + $0x10a] sm:$0xff]  ;;  %815 = vst.msk [vmem:[#allocation2 + $0x141] sm:$0xff] %vm789_vm4, %v781_v40  ;;  %v733_v47 = vadd.f32 %v5752_v44, %v7605_v31  ;;  %v727_v48 = vpop.f32.mrb[27].mxu0  ;;  %9609 = vst [vmem:[#allocation18_spill] sm:$0xff] %v7805_v38  ;;  %v7809_v40 = vld [vmem:[#allocation2 + $0xd9] sm:$0xff] }
 0x19d   : > { %5818 = vmatprep.mubr.f32.mxu0 %v7750_v45  ;;  %814 = vst.msk [vmem:[#allocation2 + $0x139] sm:$0xff] %vm789_vm4, %v780_v42  ;;  %v728_v1 = vadd.f32 %v7605_v31, %v727_v48  ;;  %9610 = vst [vmem:[#allocation19_spill] sm:$0xff] %v7809_v40  ;;  %v7811_v42 = vld [vmem:[#allocation2 + $0xc8] sm:$0xff]  ;;  %v7815_v44 = vld [vmem:[#allocation2 + $0xd8] sm:$0xff] }
 0x19e   : > { %1963 = vmatmul.mubr.f32.gmra.mrb[24].mxu1 %v7754_v50  ;;  %5819 = vmatmul.mubr.f32.gmra.mrb[50].mxu0 %v7748_v41  ;;  %v783_v53 = vmax.f32 %v733_v47, 0.0  ;;  %v7818_v47 = vld [vmem:[#allocation2 + $0xe1] sm:$0xff]  ;;  %v7821_v48 = vld [vmem:[#allocation2 + $0xf1] sm:$0xff] }
 0x19f   : > { %1967 = vmatprep.mubr.f32.mxu1 %v899_v52  ;;  %v7761_v56 = vld [vmem:[#allocation2 + $0x12a] sm:$0xff]  ;;  %v782_v57 = vmax.f32 %v728_v1, 0.0  ;;  %v5755_v58 = vpop.f32.mrb[28].mxu0  ;;  %9611 = vst [vmem:[#allocation20_spill] sm:$0xff] %v7818_v47  ;;  %9612 = vst [vmem:[#allocation21_spill] sm:$0xff] %v7821_v48  ;;  %v7823_v1 = vld [vmem:[#allocation2 + $0xe0] sm:$0xff] }
 0x1a0   : > { %v7763_v62 = vld [vmem:[#allocation2 + $0x122] sm:$0xff]  ;;  %817 = vst.msk [vmem:[#allocation2 + $0x159] sm:$0xff] %vm789_vm4, %v783_v53  ;;  %v743_v2 = vadd.f32 %v5755_v58, %v7605_v31  ;;  %v737_v4 = vpop.f32.mrb[29].mxu0  ;;  %v7827_v52 = vld [vmem:[#allocation2 + $0xf0] sm:$0xff]  ;;  %v7830_v53 = vld [vmem:[#allocation2 + $0xf9] sm:$0xff] }
 0x1a1   : > { %5821 = vmatprep.mubr.f32.mxu0 %v7763_v62  ;;  %816 = vst.msk [vmem:[#allocation2 + $0x151] sm:$0xff] %vm789_vm4, %v782_v57  ;;  %v738_v9 = vadd.f32 %v7605_v31, %v737_v4  ;;  %9613 = vst [vmem:[#allocation22_spill] sm:$0xff] %v7830_v53  ;;  %v7833_v57 = vld [vmem:[#allocation2 + $0x109] sm:$0xff]  ;;  %v7835_v58 = vld [vmem:[#allocation2 + $0xf8] sm:$0xff] }
 0x1a2   : > { %1968 = vmatmul.mubr.f32.gmra.mrb[26].mxu1 %v7767_v6  ;;  %5822 = vmatmul.mubr.f32.gmra.mrb[52].mxu0 %v7761_v56  ;;  %v785_v10 = vmax.f32 %v743_v2, 0.0  ;;  %9614 = vst [vmem:[#allocation23_spill] sm:$0xff] %v7833_v57  ;;  %v7842_v2 = vld [vmem:[#allocation2 + $0x111] sm:$0xff]  ;;  %v7845_v4 = vld [vmem:[#allocation2 + $0x121] sm:$0xff] }
 0x1a3   : > { %1972 = vmatprep.mubr.f32.mxu1 %v900_v61  ;;  %v7774_v13 = vld [vmem:[#allocation2 + $0x142] sm:$0xff]  ;;  %v784_v15 = vmax.f32 %v738_v9, 0.0  ;;  %9615 = vst [vmem:[#allocation24_spill] sm:$0xff] %v7842_v2  ;;  %9616 = vst [vmem:[#allocation25_spill] sm:$0xff] %v7845_v4  ;;  %v7847_v9 = vld [vmem:[#allocation2 + $0x110] sm:$0xff] }
 0x1a4   : > { %v7776_v17 = vld [vmem:[#allocation2 + $0x13a] sm:$0xff]  ;;  %819 = vst.msk [vmem:[#allocation2 + $0x171] sm:$0xff] %vm789_vm4, %v785_v10  ;;  %v7839_v61 = vld [vmem:[#allocation2 + $0x108] sm:$0xff]  ;;  %v5758_v10 = vpop.f32.mrb[30].mxu0 }
 0x1a5   : > { %5824 = vmatprep.mubr.f32.mxu0 %v7776_v17  ;;  %818 = vst.msk [vmem:[#allocation2 + $0x169] sm:$0xff] %vm789_vm4, %v784_v15  ;;  %v753_v15 = vadd.f32 %v5758_v10, %v7605_v31  ;;  %v7852_v0 = vld [vmem:[#allocation2 + $0x120] sm:$0xff] }
 0x1a6   : > { %1973 = vmatmul.mubr.f32.gmra.mrb[28].mxu1 %v7779_v19  ;;  %5825 = vmatmul.mubr.f32.gmra.mrb[54].mxu0 %v7774_v13  ;;  %v7870_v10 = vld [vmem:[#allocation2 + $0x141] sm:$0xff] }
 0x1a7   : > { %1977 = vmatprep.mubr.f32.mxu1 %v901_v21  ;;  %v7785_v23 = vld [vmem:[#allocation2 + $0x15a] sm:$0xff]  ;;  %v747_v21 = vpop.f32.mrb[31].mxu0  ;;  %9619 = vst [vmem:[#allocation28_spill] sm:$0xff] %v7870_v10 }
 0x1a8   : > { %9605 = vst [vmem:[#allocation14_spill] sm:$0xff] %v7785_v23  ;;  %v7789_v27 = vld [vmem:[#allocation2 + $0x152] sm:$0xff] }
 0x1a9   : > { %5827 = vmatprep.mubr.f32.mxu0 %v7789_v27 }
 0x1aa   : > { %1978 = vmatmul.mubr.f32.gmra.mrb[30].mxu1 %v7791_v29  ;;  %5828 = vmatmul.mubr.f32.gmra.mrb[56].mxu0 %v7785_v23  ;;  %v9626_v23 = vmov 0.0|0.0  }
 0x1ab   : > { %1982 = vmatprep.mubr.f32.mxu1 %v7787_v24  ;;  %v7797_v30 = vld [vmem:[#allocation2 + $0x172] sm:$0xff] }
 0x1ac   : > { %9607 = vst [vmem:[#allocation16_spill] sm:$0xff] %v7797_v30  ;;  %v7799_v34 = vld [vmem:[#allocation2 + $0x16a] sm:$0xff]  ;;  %v1754_v24 = vld [vmem:[%s9547_s3 + $0x218] sm:$0xff] }
 0x1ad   : > { %9608 = vst [vmem:[#allocation17_spill] sm:$0xff] %v7799_v34  ;;  %5830 = vmatprep.mubr.f32.mxu0 %v7799_v34 }
 0x1ae   : > { %1983 = vmatmul.mubr.f32.gmra.mrb[32].mxu1 %v7801_v36  ;;  %5831 = vmatmul.mubr.f32.gmra.mrb[58].mxu0 %v7797_v30  ;;  %v951_v30 = vld [vmem:[#allocation2 + $0xa] sm:$0xff] }
 0x1af   : > { %1987 = vmatprep.mubr.f32.mxu1 %v7805_v38  ;;  %v7909_v38 = vld [vmem:[#allocation2 + $0x170] sm:$0xff] }
 0x1b2   : > { %1988 = vmatmul.mubr.f32.gmra.mrb[34].mxu1 %v7811_v42 }
 0x1b3   : > { %1992 = vmatprep.mubr.f32.mxu1 %v7809_v40  ;;  %v1751_v40 = vld [vmem:[%s9547_s3 + $0x200] sm:$0xff] }
 0x1b6   : > { %1993 = vmatmul.mubr.f32.gmra.mrb[36].mxu1 %v7815_v44 }
 0x1b7   : > { %1997 = vmatprep.mubr.f32.mxu1 %v7818_v47  ;;  %v7859_v47 = vld [vmem:[#allocation2 + $0x139] sm:$0xff] }
 0x1b8   : > { %9618 = vst [vmem:[#allocation27_spill] sm:$0xff] %v7859_v47 }
 0x1ba   : > { %1998 = vmatmul.mubr.f32.gmra.mrb[38].mxu1 %v7823_v1 }
 0x1bb   : > { %2002 = vmatprep.mubr.f32.mxu1 %v7821_v48 }
 0x1be   : > { %2003 = vmatmul.mubr.f32.gmra.mrb[40].mxu1 %v7827_v52 }
 0x1bf   : > { %2007 = vmatprep.mubr.f32.mxu1 %v7830_v53  ;;  %v7856_v53 = vld [vmem:[#allocation2 + $0x129] sm:$0xff] }
 0x1c0   : > { %9617 = vst [vmem:[#allocation26_spill] sm:$0xff] %v7856_v53 }
 0x1c2   : > { %2008 = vmatmul.mubr.f32.gmra.mrb[42].mxu1 %v7835_v58 }
 0x1c3   : > { %2012 = vmatprep.mubr.f32.mxu1 %v7833_v57  ;;  %v748_v57 = vadd.f32 %v7605_v31, %v747_v21  ;;  %v7867_v31 = vld [vmem:[#allocation2 + $0x138] sm:$0xff]  ;;  %v7885_v21 = vld [vmem:[#allocation2 + $0x169] sm:$0xff] }
 0x1c4   : > { %9622 = vst [vmem:[#allocation31_spill] sm:$0xff] %v7885_v21 }
 0x1c5   : > { %v786_v48 = vmax.f32 %v748_v57, 0.0  ;;  %v7873_v57 = vld [vmem:[#allocation2 + $0x151] sm:$0xff] }
 0x1c6   : > { %2013 = vmatmul.mubr.f32.gmra.mrb[44].mxu1 %v7839_v61  ;;  %9620 = vst [vmem:[#allocation29_spill] sm:$0xff] %v7873_v57 }
 0x1c7   : > { %2017 = vmatprep.mubr.f32.mxu1 %v7842_v2  ;;  %v787_v2 = vmax.f32 %v753_v15, 0.0  ;;  %820 = vst.msk [vmem:[#allocation2 + $0x181] sm:$0xff] %vm789_vm4, %v786_v48  ;;  %v7875_v15 = vld [vmem:[#allocation2 + $0x140] sm:$0xff]  ;;  %v7879_v48 = vld [vmem:[#allocation2 + $0x150] sm:$0xff] }
 0x1c9   : > { %821 = vst.msk [vmem:[#allocation2 + $0x189] sm:$0xff] %vm789_vm4, %v787_v2  ;;  %v7882_v2 = vld [vmem:[#allocation2 + $0x159] sm:$0xff] }
 0x1ca   : > { %2018 = vmatmul.mubr.f32.gmra.mrb[46].mxu1 %v7847_v9  ;;  %9621 = vst [vmem:[#allocation30_spill] sm:$0xff] %v7882_v2 }
 0x1cb   : > { %2022 = vmatprep.mubr.f32.mxu1 %v7845_v4  ;;  %v7862_v4 = vld [vmem:[#allocation2 + $0x128] sm:$0xff] }
 0x1ce   : > { %2023 = vmatmul.mubr.f32.gmra.mrb[48].mxu1 %v7852_v0 }
 0x1cf   : > { %2027 = vmatprep.mubr.f32.mxu1 %v7856_v53 }
 0x1d0   : > { %v7892_v53 = vld [vmem:[#allocation2 + $0x18a] sm:$0xff] }
 0x1d1   : > { %9624 = vst [vmem:[#allocation33_spill] sm:$0xff] %v7892_v53 }
 0x1d2   : > { %2028 = vmatmul.mubr.f32.gmra.mrb[50].mxu1 %v7862_v4 }
 0x1d3   : > { %2032 = vmatprep.mubr.f32.mxu1 %v7859_v47  ;;  %v7887_v47 = vld [vmem:[#allocation2 + $0x158] sm:$0xff] }
 0x1d6   : > { %2033 = vmatmul.mubr.f32.gmra.mrb[52].mxu1 %v7867_v31 }
 0x1d7   : > { %2037 = vmatprep.mubr.f32.mxu1 %v7870_v10  ;;  %v7890_v10 = vld [vmem:[#allocation2 + $0x182] sm:$0xff] }
 0x1d8   : > { %9623 = vst [vmem:[#allocation32_spill] sm:$0xff] %v7890_v10  ;;  %5833 = vmatprep.mubr.f32.mxu0 %v7890_v10 }
 0x1d9   : > { %5834 = vmatmul.mubr.f32.gmra.mrb[60].mxu0 %v7892_v53  ;;  %v950_v53 = vld [vmem:[#allocation2 + $0x2] sm:$0xff] }
 0x1da   : > { %2038 = vmatmul.mubr.f32.gmra.mrb[54].mxu1 %v7875_v15 }
 0x1db   : > { %2042 = vmatprep.mubr.f32.mxu1 %v7873_v57  ;;  %v7897_v57 = vld [vmem:[#allocation2 + $0x168] sm:$0xff] }
 0x1de   : > { %2043 = vmatmul.mubr.f32.gmra.mrb[56].mxu1 %v7879_v48 }
 0x1df   : > { %2047 = vmatprep.mubr.f32.mxu1 %v7882_v2  ;;  %v7900_v2 = vld [vmem:[#allocation2 + $0x171] sm:$0xff] }
 0x1e0   : > { %9625 = vst [vmem:[#allocation34_spill] sm:$0xff] %v7900_v2 }
 0x1e2   : > { %2048 = vmatmul.mubr.f32.gmra.mrb[58].mxu1 %v7887_v47 }
 0x1e3   : > { %2052 = vmatprep.mubr.f32.mxu1 %v7885_v21  ;;  %v1752_v21 = vld [vmem:[%s9547_s3 + $0x208] sm:$0xff] }
 0x1e4   : > { %v6022_v10 = vpack.c.bf16 %v1752_v21, %v1751_v40  ;;  %v1756_v40 = vld [vmem:[%s9547_s3 + $0x228] sm:$0xff]  ;;  %v1761_v21 = vld [vmem:[%s9547_s3 + $0x250] sm:$0xff] }
 0x1e6   : > { %2053 = vmatmul.mubr.f32.gmra.mrb[60].mxu1 %v7897_v57 }
 0x1e7   : > { %2057 = vmatprep.mubr.f32.mxu1 %v7900_v2  ;;  %v1753_v2 = vld [vmem:[%s9547_s3 + $0x210] sm:$0xff] }
 0x1e8   : > { %v6025_v34 = vpack.c.bf16 %v1754_v24, %v1753_v2  ;;  %v1758_v24 = vld [vmem:[%s9547_s3 + $0x238] sm:$0xff]  ;;  %v7946_v2 = vld [vmem:[#allocation2 + $0x22] sm:$0xff] }
 0x1ea   : > { %2058 = vmatmul.mubr.f32.gmra.mrb[62].mxu1 %v7909_v38 }
 0x1eb   : > { %2127 = vmatprep.mubr.f32.mxu1 %v7625_v54  ;;  %v1755_v54 = vld [vmem:[%s9547_s3 + $0x220] sm:$0xff] }
 0x1ee   : > { %2128 = vmatmul.mubr.f32.vlgmr.msra.gmra.mrb[0].mxu1 %v950_v53  ;;  %v6028_v53 = vpack.c.bf16 %v1756_v40, %v1755_v54  ;;  %v1762_v54 = vld [vmem:[%s9547_s3 + $0x258] sm:$0xff] }
 0x1ef   : > { %6023 = vmatpush1.bf16.msra.mxu1 %v6022_v10  ;;  %2132 = vmatprep.mubr.f32.mxu1 %v7637_v5  ;;  %v1757_v5 = vld [vmem:[%s9547_s3 + $0x230] sm:$0xff]  ;;  %v7935_v10 = vld [vmem:[#allocation2 + $0x1a] sm:$0xff]  ;;  %v6037_v40 = vpack.c.bf16 %v1762_v54, %v1761_v21  ;;  %v1780_v54 = vld [vmem:[%s9547_s3 + $0x2e8] sm:$0xff] }
 0x1f0   : > { %6024 = vmatprep.subr.bf16.mxu1 %v9626_v23  ;;  %v1778_v21 = vld [vmem:[%s9547_s3 + $0x2d8] sm:$0xff] }
 0x1f2   : > { %2133 = vmatmul.mubr.f32.gmra.mrb[2].mxu1 %v951_v30  ;;  %v1759_v30 = vld [vmem:[%s9547_s3 + $0x240] sm:$0xff] }
 0x1f3   : > { %2137 = vmatprep.mubr.f32.mxu1 %v7650_v14  ;;  %6026 = vmatpush1.bf16.msra.mxu1 %v6025_v34  ;;  %v6031_v14 = vpack.c.bf16 %v1758_v24, %v1757_v5  ;;  %v1760_v34 = vld [vmem:[%s9547_s3 + $0x248] sm:$0xff]  ;;  %v1766_v5 = vld [vmem:[%s9547_s3 + $0x278] sm:$0xff] }
 0x1f4   : > { %6027 = vmatprep.subr.bf16.mxu1 %v9626_v23  ;;  %v1768_v24 = vld [vmem:[%s9547_s3 + $0x288] sm:$0xff] }
 0x1f6   : > { %2138 = vmatmul.mubr.f32.gmra.mrb[4].mxu1 %v7935_v10 }
 0x1f7   : > { %2142 = vmatprep.mubr.f32.mxu1 %v7663_v25  ;;  %6029 = vmatpush1.bf16.msra.mxu1 %v6028_v53  ;;  %v6034_v25 = vpack.c.bf16 %v1760_v34, %v1759_v30  ;;  %v1764_v53 = vld [vmem:[%s9547_s3 + $0x268] sm:$0xff]  ;;  %v1774_v34 = vld [vmem:[%s9547_s3 + $0x2b8] sm:$0xff] }
 0x1f8   : > { %6030 = vmatprep.subr.bf16.mxu1 %v9626_v23  ;;  %v1772_v30 = vld [vmem:[%s9547_s3 + $0x2a8] sm:$0xff] }
 0x1fa   : > { %2143 = vmatmul.mubr.f32.gmra.mrb[6].mxu1 %v7946_v2 }
 0x1fb   : > { %2147 = vmatprep.mubr.f32.mxu1 %v7676_v35  ;;  %6032 = vmatpush1.bf16.msra.mxu1 %v6031_v14  ;;  %v1763_v35 = vld [vmem:[%s9547_s3 + $0x260] sm:$0xff]  ;;  %v1770_v14 = vld [vmem:[%s9547_s3 + $0x298] sm:$0xff] }
 0x1fc   : > { %6033 = vmatprep.subr.bf16.mxu1 %v9626_v23 }
 0x1fe   : > { %2148 = vmatmul.mubr.f32.gmra.mrb[8].mxu1 %v7633_v63  ;;  %v6040_v63 = vpack.c.bf16 %v1764_v53, %v1763_v35  ;;  %v9629_v35 = vld [vmem:[#allocation16_spill] sm:$0xff] }
 0x1ff   : > { %2152 = vmatprep.mubr.f32.mxu1 %v7689_v46  ;;  %6035 = vmatpush1.bf16.msra.mxu1 %v6034_v25  ;;  %v1765_v46 = vld [vmem:[%s9547_s3 + $0x270] sm:$0xff]  ;;  %v1776_v25 = vld [vmem:[%s9547_s3 + $0x2c8] sm:$0xff] }
 0x200   : > { %6036 = vmatprep.subr.bf16.mxu1 %v9626_v23 }
 0x202   : > { %2153 = vmatmul.mubr.f32.gmra.mrb[10].mxu1 %v7631_v60  ;;  %v6043_v60 = vpack.c.bf16 %v1766_v5, %v1765_v46  ;;  %v1785_v46 = vld [vmem:[%s9547_s3 + $0x310] sm:$0xff]  ;;  %v1786_v5 = vld [vmem:[%s9547_s3 + $0x318] sm:$0xff] }
 0x203   : > { %2157 = vmatprep.mubr.f32.mxu1 %v7702_v55  ;;  %6038 = vmatpush1.bf16.msra.mxu1 %v6037_v40  ;;  %v1767_v55 = vld [vmem:[%s9547_s3 + $0x280] sm:$0xff]  ;;  %v1782_v40 = vld [vmem:[%s9547_s3 + $0x2f8] sm:$0xff] }
 0x204   : > { %6039 = vmatprep.subr.bf16.mxu1 %v9626_v23 }
 0x206   : > { %2158 = vmatmul.mubr.f32.gmra.mrb[12].mxu1 %v7646_v11  ;;  %v6046_v11 = vpack.c.bf16 %v1768_v24, %v1767_v55 }
 0x207   : > { %2162 = vmatprep.mubr.f32.mxu1 %v7715_v7  ;;  %6041 = vmatpush1.bf16.msra.mxu1 %v6040_v63  ;;  %v1769_v7 = vld [vmem:[%s9547_s3 + $0x290] sm:$0xff] }
 0x208   : > { %6042 = vmatprep.subr.bf16.mxu1 %v9626_v23 }
 0x20a   : > { %2163 = vmatmul.mubr.f32.gmra.mrb[14].mxu1 %v7644_v8  ;;  %v6049_v8 = vpack.c.bf16 %v1770_v14, %v1769_v7  ;;  %v1788_v7 = vld [vmem:[%s9547_s3 + $0x328] sm:$0xff] }
 0x20b   : > { %2167 = vmatprep.mubr.f32.mxu1 %v7728_v20  ;;  %6044 = vmatpush1.bf16.msra.mxu1 %v6043_v60  ;;  %v1771_v20 = vld [vmem:[%s9547_s3 + $0x2a0] sm:$0xff] }
 0x20c   : > { %6045 = vmatprep.subr.bf16.mxu1 %v9626_v23  ;;  %v1078_v60 = vld [vmem:[#allocation2 + $0x19] sm:$0xff]  ;;  %v1079_v14 = vld [vmem:[#allocation2 + $0x21] sm:$0xff] }
 0x20e   : > { %2168 = vmatmul.mubr.f32.gmra.mrb[16].mxu1 %v7659_v22  ;;  %v6052_v22 = vpack.c.bf16 %v1772_v30, %v1771_v20  ;;  %v1144_v20 = vld [vmem:[#allocation2 + $0x32] sm:$0xff] }
 0x20f   : > { %2172 = vmatprep.mubr.f32.mxu1 %v7741_v37  ;;  %6047 = vmatpush1.bf16.msra.mxu1 %v6046_v11  ;;  %v1773_v37 = vld [vmem:[%s9547_s3 + $0x2b0] sm:$0xff]  ;;  %v6073_v11 = vpack.c.bf16 %v1786_v5, %v1785_v46 }
 0x210   : > { %6048 = vmatprep.subr.bf16.mxu1 %v9626_v23 }
 0x212   : > { %2173 = vmatmul.mubr.f32.gmra.mrb[18].mxu1 %v7657_v18  ;;  %v6055_v18 = vpack.c.bf16 %v1774_v34, %v1773_v37  ;;  %v1790_v37 = vld [vmem:[%s9547_s3 + $0x338] sm:$0xff] }
 0x213   : > { %2177 = vmatprep.mubr.f32.mxu1 %v7754_v50  ;;  %6050 = vmatpush1.bf16.msra.mxu1 %v6049_v8  ;;  %v1775_v50 = vld [vmem:[%s9547_s3 + $0x2c0] sm:$0xff]  ;;  %v8156_v34 = vld [vmem:[#allocation2 + $0x31] sm:$0xff] }
 0x214   : > { %6051 = vmatprep.subr.bf16.mxu1 %v9626_v23 }
 0x216   : > { %2178 = vmatmul.mubr.f32.gmra.mrb[20].mxu1 %v7672_v32  ;;  %v6058_v32 = vpack.c.bf16 %v1776_v25, %v1775_v50  ;;  %v1145_v50 = vld [vmem:[#allocation2 + $0x3a] sm:$0xff] }
 0x217   : > { %2182 = vmatprep.mubr.f32.mxu1 %v7767_v6  ;;  %6053 = vmatpush1.bf16.msra.mxu1 %v6052_v22  ;;  %v1777_v6 = vld [vmem:[%s9547_s3 + $0x2d0] sm:$0xff] }
 0x218   : > { %6054 = vmatprep.subr.bf16.mxu1 %v9626_v23  ;;  %v1789_v22 = vld [vmem:[%s9547_s3 + $0x330] sm:$0xff] }
 0x21a   : > { %2183 = vmatmul.mubr.f32.gmra.mrb[22].mxu1 %v7670_v28  ;;  %v6061_v28 = vpack.c.bf16 %v1778_v21, %v1777_v6  ;;  %v1791_v6 = vld [vmem:[%s9547_s3 + $0x340] sm:$0xff]  ;;  %v1792_v21 = vld [vmem:[%s9547_s3 + $0x348] sm:$0xff] }
 0x21b   : > { %2187 = vmatprep.mubr.f32.mxu1 %v7779_v19  ;;  %6056 = vmatpush1.bf16.msra.mxu1 %v6055_v18  ;;  %v1779_v19 = vld [vmem:[%s9547_s3 + $0x2e0] sm:$0xff] }
 0x21c   : > { %6057 = vmatprep.subr.bf16.mxu1 %v9626_v23 }
 0x21e   : > { %2188 = vmatmul.mubr.f32.gmra.mrb[24].mxu1 %v7685_v43  ;;  %v6064_v43 = vpack.c.bf16 %v1780_v54, %v1779_v19  ;;  %v1146_v54 = vld [vmem:[#allocation2 + $0x4a] sm:$0xff] }
 0x21f   : > { %2192 = vmatprep.mubr.f32.mxu1 %v7791_v29  ;;  %6059 = vmatpush1.bf16.msra.mxu1 %v6058_v32  ;;  %v1781_v29 = vld [vmem:[%s9547_s3 + $0x2f0] sm:$0xff]  ;;  %v6079_v32 = vpack.c.bf16 %v1790_v37, %v1789_v22  ;;  %v1798_v37 = vld [vmem:[%s9547_s3 + $0x378] sm:$0xff] }
 0x220   : > { %6060 = vmatprep.subr.bf16.mxu1 %v9626_v23  ;;  %v1797_v22 = vld [vmem:[%s9547_s3 + $0x370] sm:$0xff] }
 0x222   : > { %2193 = vmatmul.mubr.f32.gmra.mrb[26].mxu1 %v7683_v39  ;;  %v6067_v39 = vpack.c.bf16 %v1782_v40, %v1781_v29  ;;  %v6082_v29 = vpack.c.bf16 %v1792_v21, %v1791_v6  ;;  %v1793_v40 = vld [vmem:[%s9547_s3 + $0x350] sm:$0xff]  ;;  %v6091_v6 = vpack.c.bf16 %v1798_v37, %v1797_v22  ;;  %v1799_v21 = vld [vmem:[%s9547_s3 + $0x380] sm:$0xff]  ;;  %v1804_v22 = vld [vmem:[%s9547_s3 + $0x3a8] sm:$0xff] }
 0x223   : > { %2197 = vmatprep.mubr.f32.mxu1 %v7801_v36  ;;  %6062 = vmatpush1.bf16.msra.mxu1 %v6061_v28  ;;  %v8170_v28 = vld [vmem:[#allocation2 + $0x39] sm:$0xff]  ;;  %v8242_v37 = vld [vmem:[#allocation2 + $0x81] sm:$0xff] }
 0x224   : > { %6063 = vmatprep.subr.bf16.mxu1 %v9626_v23 }
 0x226   : > { %2198 = vmatmul.mubr.f32.gmra.mrb[28].mxu1 %v7698_v51 }
 0x227   : > { %2202 = vmatprep.mubr.f32.mxu1 %v7811_v42  ;;  %6065 = vmatpush1.bf16.msra.mxu1 %v6064_v43 }
 0x228   : > { %6066 = vmatprep.subr.bf16.mxu1 %v9626_v23 }
 0x22a   : > { %2203 = vmatmul.mubr.f32.gmra.mrb[30].mxu1 %v7696_v49 }
 0x22b   : > { %2207 = vmatprep.mubr.f32.mxu1 %v7815_v44  ;;  %6068 = vmatpush1.bf16.msra.mxu1 %v6067_v39  ;;  %v1794_v39 = vld [vmem:[%s9547_s3 + $0x358] sm:$0xff] }
 0x22c   : > { %6069 = vmatprep.subr.bf16.mxu1 %v9626_v23  ;;  %v6085_v5 = vpack.c.bf16 %v1794_v39, %v1793_v40  ;;  %v1150_v40 = vld [vmem:[#allocation2 + $0x7a] sm:$0xff] }
 0x22e   : > { %2208 = vmatmul.mubr.f32.gmra.mrb[32].mxu1 %v7711_v3 }
 0x22f   : > { %2212 = vmatprep.mubr.f32.mxu1 %v7823_v1 }
 0x232   : > { %2213 = vmatmul.mubr.f32.gmra.mrb[34].mxu1 %v7709_v59 }
 0x233   : > { %2217 = vmatprep.mubr.f32.mxu1 %v7827_v52  ;;  %v8099_v52 = vld [vmem:[#allocation2 + $0x180] sm:$0xff] }
 0x236   : > { %2218 = vmatmul.mubr.f32.gmra.mrb[36].mxu1 %v7724_v16 }
 0x237   : > { %2222 = vmatprep.mubr.f32.mxu1 %v7835_v58 }
 0x23a   : > { %2223 = vmatmul.mubr.f32.gmra.mrb[38].mxu1 %v7722_v12 }
 0x23b   : > { %2227 = vmatprep.mubr.f32.mxu1 %v7839_v61 }
 0x23e   : > { %2228 = vmatmul.mubr.f32.gmra.mrb[40].mxu1 %v7737_v33 }
 0x23f   : > { %2232 = vmatprep.mubr.f32.mxu1 %v7847_v9  ;;  %v9628_v9 = vld [vmem:[#allocation17_spill] sm:$0xff] }
 0x242   : > { %2233 = vmatmul.mubr.f32.gmra.mrb[42].mxu1 %v7735_v26 }
 0x243   : > { %2237 = vmatprep.mubr.f32.mxu1 %v7852_v0 }
 0x246   : > { %2238 = vmatmul.mubr.f32.gmra.mrb[44].mxu1 %v7750_v45 }
 0x247   : > { %2242 = vmatprep.mubr.f32.mxu1 %v7862_v4 }
 0x24a   : > { %2243 = vmatmul.mubr.f32.gmra.mrb[46].mxu1 %v7748_v41 }
 0x24b   : > { %2247 = vmatprep.mubr.f32.mxu1 %v7867_v31  ;;  %v8110_v31 = vld [vmem:[#allocation2 + $0x188] sm:$0xff] }
 0x24d   : > { %v8069_v49 = vpop.f32.mrb[32].mxu0 }
 0x24e   : > { %2248 = vmatmul.mubr.f32.gmra.mrb[48].mxu1 %v7763_v62  ;;  %v8072_v51 = vpop.f32.mrb[33].mxu0 }
 0x24f   : > { %2252 = vmatprep.mubr.f32.mxu1 %v7875_v15  ;;  %v1784_v15 = vld [vmem:[%s9547_s3 + $0x308] sm:$0xff] }
 0x251   : > { %v8075_v59 = vpop.f32.mrb[34].mxu0 }
 0x252   : > { %2253 = vmatmul.mubr.f32.gmra.mrb[50].mxu1 %v7761_v56  ;;  %v8078_v0 = vpop.f32.mrb[35].mxu0 }
 0x253   : > { %2257 = vmatprep.mubr.f32.mxu1 %v7879_v48 }
 0x255   : > { %v8081_v3 = vpop.f32.mrb[36].mxu0 }
 0x256   : > { %2258 = vmatmul.mubr.f32.gmra.mrb[52].mxu1 %v7776_v17  ;;  %v8084_v12 = vpop.f32.mrb[37].mxu0 }
 0x257   : > { %2262 = vmatprep.mubr.f32.mxu1 %v7887_v47  ;;  %v9627_v47 = vld [vmem:[#allocation14_spill] sm:$0xff] }
 0x259   : > { %v8087_v36 = vpop.f32.mrb[38].mxu0 }
 0x25a   : > { %2263 = vmatmul.mubr.f32.gmra.mrb[54].mxu1 %v7774_v13  ;;  %v8090_v42 = vpop.f32.mrb[39].mxu0 }
 0x25b   : > { %2267 = vmatprep.mubr.f32.mxu1 %v7897_v57 }
 0x25d   : > { %v8093_v44 = vpop.f32.mrb[40].mxu0 }
 0x25e   : > { %2268 = vmatmul.mubr.f32.gmra.mrb[56].mxu1 %v7789_v27  ;;  %v8096_v1 = vpop.f32.mrb[41].mxu0 }
 0x25f   : > { %2272 = vmatprep.mubr.f32.mxu1 %v7909_v38  ;;  %v1783_v38 = vld [vmem:[%s9547_s3 + $0x300] sm:$0xff] }
 0x260   : > { %v6070_v63 = vpack.c.bf16 %v1784_v15, %v1783_v38  ;;  %v8184_v38 = vld [vmem:[#allocation2 + $0x49] sm:$0xff] }
 0x261   : > { %v8101_v58 = vpop.f32.mrb[42].mxu0 }
 0x262   : > { %2273 = vmatmul.mubr.f32.gmra.mrb[58].mxu1 %v9627_v47  ;;  %v8104_v61 = vpop.f32.mrb[43].mxu0 }
 0x263   : > { %2277 = vmatprep.mubr.f32.mxu1 %v8099_v52 }
 0x265   : > { %v8107_v4 = vpop.f32.mrb[44].mxu0 }
 0x266   : > { %2278 = vmatmul.mubr.f32.gmra.mrb[60].mxu1 %v9628_v9  ;;  %v8112_v57 = vpop.f32.mrb[45].mxu0 }
 0x267   : > { %2282 = vmatprep.mubr.f32.mxu1 %v8110_v31 }
 0x269   : > { %v8121_v48 = vpop.f32.mrb[46].mxu0 }
 0x26a   : > { %2283 = vmatmul.mubr.f32.gmra.mrb[62].mxu1 %v9629_v35  ;;  %v8124_v53 = vpop.f32.mrb[47].mxu0 }
 0x26b   : > { %2352 = vmatprep.mubr.f32.mxu1 %v7935_v10  ;;  %v1787_v10 = vld [vmem:[%s9547_s3 + $0x320] sm:$0xff] }
 0x26d   : > { %v8133_v55 = vpop.f32.mrb[48].mxu0 }
 0x26e   : > { %2353 = vmatmul.mubr.f32.vlgmr.msra.gmra.mrb[0].mxu1 %v1078_v60  ;;  %v8135_v24 = vpop.f32.mrb[49].mxu0  ;;  %v1795_v60 = vld [vmem:[%s9547_s3 + $0x360] sm:$0xff] }
 0x26f   : > { %6071 = vmatpush1.bf16.msra.mxu1 %v6070_v63  ;;  %2357 = vmatprep.mubr.f32.mxu1 %v7946_v2  ;;  %v6076_v2 = vpack.c.bf16 %v1788_v7, %v1787_v10  ;;  %v1147_v63 = vld [vmem:[#allocation2 + $0x52] sm:$0xff] }
 0x270   : > { %6072 = vmatprep.subr.bf16.mxu1 %v9626_v23  ;;  %v8198_v10 = vld [vmem:[#allocation2 + $0x51] sm:$0xff] }
 0x271   : > { %v8145_v8 = vpop.f32.mrb[50].mxu0 }
 0x272   : > { %2358 = vmatmul.mubr.f32.gmra.mrb[2].mxu1 %v1079_v14  ;;  %v8147_v30 = vpop.f32.mrb[51].mxu0  ;;  %v1148_v14 = vld [vmem:[#allocation2 + $0x62] sm:$0xff] }
 0x273   : > { %2362 = vmatprep.mubr.f32.mxu1 %v1144_v20  ;;  %6074 = vmatpush1.bf16.msra.mxu1 %v6073_v11  ;;  %v1796_v11 = vld [vmem:[%s9547_s3 + $0x368] sm:$0xff] }
 0x274   : > { %6075 = vmatprep.subr.bf16.mxu1 %v9626_v23 }
 0x275   : > { %v8158_v18 = vpop.f32.mrb[52].mxu0 }
 0x276   : > { %2363 = vmatmul.mubr.f32.gmra.mrb[4].mxu1 %v8156_v34  ;;  %v8161_v25 = vpop.f32.mrb[53].mxu0 }
 0x277   : > { %2367 = vmatprep.mubr.f32.mxu1 %v1145_v50  ;;  %6077 = vmatpush1.bf16.msra.mxu1 %v6076_v2  ;;  %v6088_v2 = vpack.c.bf16 %v1796_v11, %v1795_v60  ;;  %v8212_v50 = vld [vmem:[#allocation2 + $0x61] sm:$0xff]  ;;  %v8232_v60 = vld [vmem:[#allocation2 + $0x79] sm:$0xff] }
 0x278   : > { %6078 = vmatprep.subr.bf16.mxu1 %v9626_v23  ;;  %v1151_v11 = vld [vmem:[#allocation2 + $0x82] sm:$0xff] }
 0x279   : > { %v8172_v19 = vpop.f32.mrb[54].mxu0 }
 0x27a   : > { %2368 = vmatmul.mubr.f32.gmra.mrb[6].mxu1 %v8170_v28  ;;  %v8175_v43 = vpop.f32.mrb[55].mxu0 }
 0x27b   : > { %2372 = vmatprep.mubr.f32.mxu1 %v1146_v54  ;;  %6080 = vmatpush1.bf16.msra.mxu1 %v6079_v32  ;;  %v1149_v32 = vld [vmem:[#allocation2 + $0x6a] sm:$0xff] }
 0x27c   : > { %6081 = vmatprep.subr.bf16.mxu1 %v9626_v23  ;;  %v1800_v54 = vld [vmem:[%s9547_s3 + $0x388] sm:$0xff] }
 0x27d   : > { %v8186_v15 = vpop.f32.mrb[56].mxu0  ;;  %v6094_v39 = vpack.c.bf16 %v1800_v54, %v1799_v21  ;;  %v1805_v21 = vld [vmem:[%s9547_s3 + $0x3b0] sm:$0xff]  ;;  %v1806_v54 = vld [vmem:[%s9547_s3 + $0x3b8] sm:$0xff] }
 0x27e   : > { %2373 = vmatmul.mubr.f32.gmra.mrb[8].mxu1 %v8184_v38  ;;  %v8189_v46 = vpop.f32.mrb[57].mxu0 }
 0x27f   : > { %2377 = vmatprep.mubr.f32.mxu1 %v1147_v63  ;;  %6083 = vmatpush1.bf16.msra.mxu1 %v6082_v29  ;;  %v8222_v29 = vld [vmem:[#allocation2 + $0x69] sm:$0xff] }
 0x280   : > { %6084 = vmatprep.subr.bf16.mxu1 %v9626_v23  ;;  %v1801_v63 = vld [vmem:[%s9547_s3 + $0x390] sm:$0xff] }
 0x281   : > { %v8200_v7 = vpop.f32.mrb[58].mxu0 }
 0x282   : > { %9630 = vst [vmem:[#allocation14_spill] sm:$0xff] %v8200_v7  ;;  %2378 = vmatmul.mubr.f32.gmra.mrb[10].mxu1 %v8198_v10  ;;  %v8203_v20 = vpop.f32.mrb[59].mxu0  ;;  %v1157_v7 = vld [vmem:[#allocation2 + $0xca] sm:$0xff] }
 0x283   : > { %9631 = vst [vmem:[#allocation17_spill] sm:$0xff] %v8203_v20  ;;  %2382 = vmatprep.mubr.f32.mxu1 %v1148_v14  ;;  %6086 = vmatpush1.bf16.msra.mxu1 %v6085_v5  ;;  %v1802_v5 = vld [vmem:[%s9547_s3 + $0x398] sm:$0xff] }
 0x284   : > { %6087 = vmatprep.subr.bf16.mxu1 %v9626_v23  ;;  %v6097_v14 = vpack.c.bf16 %v1802_v5, %v1801_v63  ;;  %v6103_v63 = vpack.c.bf16 %v1806_v54, %v1805_v21  ;;  %v1807_v5 = vld [vmem:[%s9547_s3 + $0x3c0] sm:$0xff]  ;;  %v8272_v21 = vld [vmem:[#allocation2 + $0xa9] sm:$0xff]  ;;  %v1155_v54 = vld [vmem:[#allocation2 + $0xb2] sm:$0xff] }
 0x286   : > { %2383 = vmatmul.mubr.f32.gmra.mrb[12].mxu1 %v8212_v50 }
 0x287   : > { %2387 = vmatprep.mubr.f32.mxu1 %v1149_v32  ;;  %6089 = vmatpush1.bf16.msra.mxu1 %v6088_v2  ;;  %v1803_v2 = vld [vmem:[%s9547_s3 + $0x3a0] sm:$0xff]  ;;  %v1152_v32 = vld [vmem:[#allocation2 + $0x92] sm:$0xff] }
 0x288   : > { %6090 = vmatprep.subr.bf16.mxu1 %v9626_v23 }
 0x28a   : > { %2388 = vmatmul.mubr.f32.gmra.mrb[14].mxu1 %v8222_v29 }
 0x28b   : > { %2392 = vmatprep.mubr.f32.mxu1 %v1150_v40  ;;  %6092 = vmatpush1.bf16.msra.mxu1 %v6091_v6  ;;  %v6100_v6 = vpack.c.bf16 %v1804_v22, %v1803_v2  ;;  %v8252_v40 = vld [vmem:[#allocation2 + $0x91] sm:$0xff] }
 0x28c   : > { %6093 = vmatprep.subr.bf16.mxu1 %v9626_v23  ;;  %v1154_v2 = vld [vmem:[#allocation2 + $0xaa] sm:$0xff] }
 0x28e   : > { %2393 = vmatmul.mubr.f32.gmra.mrb[16].mxu1 %v8232_v60 }
 0x28f   : > { %2397 = vmatprep.mubr.f32.mxu1 %v1151_v11  ;;  %6095 = vmatpush1.bf16.msra.mxu1 %v6094_v39  ;;  %v1153_v39 = vld [vmem:[#allocation2 + $0x9a] sm:$0xff]  ;;  %v1808_v11 = vld [vmem:[%s9547_s3 + $0x3c8] sm:$0xff] }
 0x290   : > { %6096 = vmatprep.subr.bf16.mxu1 %v9626_v23  ;;  %v6106_v22 = vpack.c.bf16 %v1808_v11, %v1807_v5  ;;  %v1812_v5 = vld [vmem:[%s9547_s3 + $0x3e8] sm:$0xff]  ;;  %v8282_v11 = vld [vmem:[#allocation2 + $0xb1] sm:$0xff] }
 0x292   : > { %2398 = vmatmul.mubr.f32.gmra.mrb[18].mxu1 %v8242_v37 }
 0x293   : > { %2402 = vmatprep.mubr.f32.mxu1 %v1152_v32  ;;  %6098 = vmatpush1.bf16.msra.mxu1 %v6097_v14  ;;  %v8262_v14 = vld [vmem:[#allocation2 + $0x99] sm:$0xff]  ;;  %v1809_v32 = vld [vmem:[%s9547_s3 + $0x3d0] sm:$0xff] }
 0x294   : > { %6099 = vmatprep.subr.bf16.mxu1 %v9626_v23 }
 0x296   : > { %2403 = vmatmul.mubr.f32.gmra.mrb[20].mxu1 %v8252_v40 }
 0x297   : > { %2407 = vmatprep.mubr.f32.mxu1 %v1153_v39  ;;  %6101 = vmatpush1.bf16.msra.mxu1 %v6100_v6  ;;  %v1810_v6 = vld [vmem:[%s9547_s3 + $0x3d8] sm:$0xff] }
 0x298   : > { %6102 = vmatprep.subr.bf16.mxu1 %v9626_v23  ;;  %v6109_v39 = vpack.c.bf16 %v1810_v6, %v1809_v32  ;;  %v1814_v32 = vld [vmem:[%s9547_s3 + $0x3f8] sm:$0xff]  ;;  %v9632_v6 = vld [vmem:[#allocation15_spill] sm:$0xff] }
 0x29a   : > { %2408 = vmatmul.mubr.f32.gmra.mrb[22].mxu1 %v8262_v14 }
 0x29b   : > { %2412 = vmatprep.mubr.f32.mxu1 %v1154_v2  ;;  %6104 = vmatpush1.bf16.msra.mxu1 %v6103_v63  ;;  %v1811_v63 = vld [vmem:[%s9547_s3 + $0x3e0] sm:$0xff] }
 0x29c   : > { %6105 = vmatprep.subr.bf16.mxu1 %v9626_v23  ;;  %v1156_v2 = vld [vmem:[#allocation2 + $0xc2] sm:$0xff] }
 0x29e   : > { %2413 = vmatmul.mubr.f32.gmra.mrb[24].mxu1 %v8272_v21 }
 0x29f   : > { %2417 = vmatprep.mubr.f32.mxu1 %v1155_v54  ;;  %6107 = vmatpush1.bf16.msra.mxu1 %v6106_v22  ;;  %v6112_v54 = vpack.c.bf16 %v1812_v5, %v1811_v63  ;;  %v1813_v22 = vld [vmem:[%s9547_s3 + $0x3f0] sm:$0xff]  ;;  %v1159_v5 = vld [vmem:[#allocation2 + $0xe2] sm:$0xff] }
 0x2a0   : > { %6108 = vmatprep.subr.bf16.mxu1 %v9626_v23  ;;  %v6115_v20 = vpack.c.bf16 %v1814_v32, %v1813_v22  ;;  %v9634_v63 = vld [vmem:[#allocation19_spill] sm:$0xff]  ;;  %v9637_v22 = vld [vmem:[#allocation22_spill] sm:$0xff] }
 0x2a1   : > { %v9642_v32 = vld [vmem:[#allocation27_spill] sm:$0xff] }
 0x2a2   : > { %2418 = vmatmul.mubr.f32.gmra.mrb[26].mxu1 %v8282_v11 }
 0x2a3   : > { %2422 = vmatprep.mubr.f32.mxu1 %v1156_v2  ;;  %6110 = vmatpush1.bf16.msra.mxu1 %v6109_v39  ;;  %v9633_v39 = vld [vmem:[#allocation18_spill] sm:$0xff]  ;;  %v9635_v2 = vld [vmem:[#allocation20_spill] sm:$0xff] }
 0x2a4   : > { %6111 = vmatprep.subr.bf16.mxu1 %v9626_v23 }
 0x2a6   : > { %2423 = vmatmul.mubr.f32.gmra.mrb[28].mxu1 %v9632_v6  ;;  %v9636_v6 = vld [vmem:[#allocation21_spill] sm:$0xff] }
 0x2a7   : > { %2427 = vmatprep.mubr.f32.mxu1 %v1157_v7  ;;  %6113 = vmatpush1.bf16.msra.mxu1 %v6112_v54 }
 0x2a8   : > { %6114 = vmatprep.subr.bf16.mxu1 %v9626_v23 }
 0x2aa   : > { %2428 = vmatmul.mubr.f32.gmra.mrb[30].mxu1 %v9633_v39  ;;  %v9648_v39 = vld [vmem:[#allocation32_spill] sm:$0xff] }
 0x2ab   : > { %2432 = vmatprep.mubr.f32.mxu1 %v7724_v16  ;;  %6116 = vmatpush1.bf16.msra.mxu1 %v6115_v20  ;;  %v9638_v16 = vld [vmem:[#allocation23_spill] sm:$0xff]  ;;  %v9639_v20 = vld [vmem:[#allocation24_spill] sm:$0xff] }
 0x2ac   : > { %v8301_v7 = vpop.f32.mrb[60].mxu0 }
 0x2ad   : > { %v8303_v54 = vpop.f32.mrb[61].mxu0 }
 0x2ae   : > { %2433 = vmatmul.mubr.f32.gmra.mrb[32].mxu1 %v9634_v63  ;;  %v1366_v63 = vld [vmem:[#allocation2 + $0x1a2] sm:$0xff] }
 0x2af   : > { %2437 = vmatprep.mubr.f32.mxu1 %v1159_v5  ;;  %v9649_v5 = vld [vmem:[#allocation33_spill] sm:$0xff] }
 0x2b2   : > { %2438 = vmatmul.mubr.f32.gmra.mrb[34].mxu1 %v9635_v2  ;;  %v3894_v2 = vld [vmem:[%s9549_s5 + $0x10] sm:$0xff] }
 0x2b3   : > { %2442 = vmatprep.mubr.f32.mxu1 %v7737_v33  ;;  %v9640_v33 = vld [vmem:[#allocation25_spill] sm:$0xff] }
 0x2b6   : > { %2443 = vmatmul.mubr.f32.gmra.mrb[36].mxu1 %v9636_v6 }
 0x2b7   : > { %2447 = vmatprep.mubr.f32.mxu1 %v7735_v26  ;;  %v9641_v26 = vld [vmem:[#allocation26_spill] sm:$0xff] }
 0x2ba   : > { %2448 = vmatmul.mubr.f32.gmra.mrb[38].mxu1 %v9637_v22  ;;  %v3895_v22 = vld [vmem:[%s9549_s5 + $0x18] sm:$0xff] }
 0x2bb   : > { %2452 = vmatprep.mubr.f32.mxu1 %v7750_v45  ;;  %v9643_v45 = vld [vmem:[#allocation28_spill] sm:$0xff] }
 0x2be   : > { %2453 = vmatmul.mubr.f32.gmra.mrb[40].mxu1 %v9638_v16  ;;  %v1207_v16 = vld [vmem:[#allocation2 + $0x30] sm:$0xff] }
 0x2bf   : > { %2457 = vmatprep.mubr.f32.mxu1 %v7748_v41  ;;  %v9644_v41 = vld [vmem:[#allocation29_spill] sm:$0xff] }
 0x2c2   : > { %2458 = vmatmul.mubr.f32.gmra.mrb[42].mxu1 %v9639_v20  ;;  %v6153_v20 = vpack.c.bf16 %v3895_v22, %v3894_v2  ;;  %v1211_v2 = vld [vmem:[#allocation2 + $0x60] sm:$0xff]  ;;  %v3905_v22 = vld [vmem:[%s9549_s5 + $0x68] sm:$0xff] }
 0x2c3   : > { %2462 = vmatprep.mubr.f32.mxu1 %v7763_v62  ;;  %v9645_v62 = vld [vmem:[#allocation30_spill] sm:$0xff] }
 0x2c6   : > { %2463 = vmatmul.mubr.f32.gmra.mrb[44].mxu1 %v9640_v33  ;;  %v3896_v33 = vld [vmem:[%s9549_s5 + $0x20] sm:$0xff] }
 0x2c7   : > { %2467 = vmatprep.mubr.f32.mxu1 %v7761_v56  ;;  %v9646_v56 = vld [vmem:[#allocation31_spill] sm:$0xff] }
 0x2ca   : > { %2468 = vmatmul.mubr.f32.gmra.mrb[46].mxu1 %v9641_v26  ;;  %v3897_v26 = vld [vmem:[%s9549_s5 + $0x28] sm:$0xff] }
 0x2cb   : > { %2472 = vmatprep.mubr.f32.mxu1 %v7776_v17  ;;  %v9647_v17 = vld [vmem:[#allocation34_spill] sm:$0xff] }
 0x2ce   : > { %2473 = vmatmul.mubr.f32.gmra.mrb[48].mxu1 %v9642_v32  ;;  %v6156_v32 = vpack.c.bf16 %v3897_v26, %v3896_v33  ;;  %v3907_v33 = vld [vmem:[%s9549_s5 + $0x78] sm:$0xff] }
 0x2cf   : > { %2477 = vmatprep.mubr.f32.mxu1 %v7774_v13  ;;  %v8327_v13 = vld [vmem:[#allocation2 + $0x181] sm:$0xff]  ;;  %v1213_v26 = vld [vmem:[#allocation2 + $0x78] sm:$0xff] }
 0x2d2   : > { %2478 = vmatmul.mubr.f32.gmra.mrb[50].mxu1 %v9643_v45  ;;  %v3898_v45 = vld [vmem:[%s9549_s5 + $0x30] sm:$0xff] }
 0x2d3   : > { %2482 = vmatprep.mubr.f32.mxu1 %v7789_v27  ;;  %v1365_v27 = vld [vmem:[#allocation2 + $0x19a] sm:$0xff] }
 0x2d4   : > { %5836 = vmatprep.mubr.f32.mxu0 %v1365_v27  ;;  %v3900_v27 = vld [vmem:[%s9549_s5 + $0x40] sm:$0xff] }
 0x2d5   : > { %5837 = vmatmul.mubr.f32.gmra.mrb[62].mxu0 %v1366_v63  ;;  %v1210_v63 = vld [vmem:[#allocation2 + $0x50] sm:$0xff] }
 0x2d6   : > { %2483 = vmatmul.mubr.f32.gmra.mrb[52].mxu1 %v9644_v41  ;;  %v3899_v41 = vld [vmem:[%s9549_s5 + $0x38] sm:$0xff] }
 0x2d7   : > { %2487 = vmatprep.mubr.f32.mxu1 %v9627_v47  ;;  %v8331_v47 = vld [vmem:[#allocation2 + $0x189] sm:$0xff] }
 0x2da   : > { %2488 = vmatmul.mubr.f32.gmra.mrb[54].mxu1 %v9645_v62  ;;  %v4021_v62 = vld [vmem:[%s9549_s5 + $0x408] sm:$0xff] }
 0x2db   : > { %2492 = vmatprep.mubr.f32.mxu1 %v9628_v9  ;;  %v3892_v9 = vld [vmem:[%s9549_s5] sm:$0xff] }
 0x2de   : > { %2493 = vmatmul.mubr.f32.gmra.mrb[56].mxu1 %v9646_v56 }
 0x2df   : > { %2497 = vmatprep.mubr.f32.mxu1 %v9629_v35  ;;  %v3893_v35 = vld [vmem:[%s9549_s5 + $0x8] sm:$0xff] }
 0x2e0   : > { %v6150_v6 = vpack.c.bf16 %v3893_v35, %v3892_v9  ;;  %v3902_v9 = vld [vmem:[%s9549_s5 + $0x50] sm:$0xff]  ;;  %v3903_v35 = vld [vmem:[%s9549_s5 + $0x58] sm:$0xff] }
 0x2e2   : > { %2498 = vmatmul.mubr.f32.gmra.mrb[58].mxu1 %v9647_v17  ;;  %6151 = vmatpush1.bf16.msra.mxu0 %v6150_v6  ;;  %v1209_v17 = vld [vmem:[#allocation2 + $0x48] sm:$0xff]  ;;  %v3904_v6 = vld [vmem:[%s9549_s5 + $0x60] sm:$0xff] }
 0x2e3   : > { %2502 = vmatprep.mubr.f32.mxu1 %v9648_v39  ;;  %6152 = vmatprep.subr.bf16.mxu0 %v9626_v23  ;;  %v6159_v39 = vpack.c.bf16 %v3899_v41, %v3898_v45  ;;  %v1214_v45 = vld [vmem:[#allocation2 + $0x80] sm:$0xff] }
 0x2e6   : > { %2503 = vmatmul.mubr.f32.gmra.mrb[60].mxu1 %v8327_v13  ;;  %6154 = vmatpush1.bf16.msra.mxu0 %v6153_v20  ;;  %v6168_v20 = vpack.c.bf16 %v3905_v22, %v3904_v6  ;;  %v3919_v6 = vld [vmem:[%s9549_s5 + $0xd8] sm:$0xff]  ;;  %v1219_v22 = vld [vmem:[#allocation2 + $0xc0] sm:$0xff] }
 0x2e7   : > { %2507 = vmatprep.mubr.f32.mxu1 %v9649_v5  ;;  %6155 = vmatprep.subr.bf16.mxu0 %v9626_v23 }
 0x2ea   : > { %2508 = vmatmul.mubr.f32.gmra.mrb[62].mxu1 %v8331_v47  ;;  %6157 = vmatpush1.bf16.msra.mxu0 %v6156_v32  ;;  %v3909_v32 = vld [vmem:[%s9549_s5 + $0x88] sm:$0xff] }
 0x2eb   : > { %2577 = vmatprep.mubr.f32.mxu1 %v8156_v34  ;;  %v1208_v34 = vld [vmem:[#allocation2 + $0x38] sm:$0xff]  ;;  %6158 = vmatprep.subr.bf16.mxu0 %v9626_v23 }
 0x2ee   : > { %2578 = vmatmul.mubr.f32.vlgmr.msra.gmra.mrb[0].mxu1 %v1207_v16  ;;  %6160 = vmatpush1.bf16.msra.mxu0 %v6159_v39  ;;  %v1212_v16 = vld [vmem:[#allocation2 + $0x68] sm:$0xff]  ;;  %v1216_v39 = vld [vmem:[#allocation2 + $0x98] sm:$0xff] }
 0x2ef   : > { %2582 = vmatprep.mubr.f32.mxu1 %v8170_v28  ;;  %v4020_v28 = vld [vmem:[%s9549_s5 + $0x400] sm:$0xff]  ;;  %6161 = vmatprep.subr.bf16.mxu0 %v9626_v23 }
 0x2f0   : > { %v6341_v56 = vpack.c.bf16 %v4021_v62, %v4020_v28  ;;  %v3911_v28 = vld [vmem:[%s9549_s5 + $0x98] sm:$0xff]  ;;  %v1215_v62 = vld [vmem:[#allocation2 + $0x90] sm:$0xff] }
 0x2f2   : > { %2583 = vmatmul.mubr.f32.gmra.mrb[2].mxu1 %v1208_v34  ;;  %6342 = vmatprep.subr.bf16.mxu1 %v6341_v56 }
 0x2f3   : > { %2587 = vmatprep.mubr.f32.mxu1 %v8184_v38  ;;  %v3901_v38 = vld [vmem:[%s9549_s5 + $0x48] sm:$0xff]  ;;  %6344 = vmatpush3.bf16.msra.mxu1 %v6341_v56 }
 0x2f4   : > { %v6162_v5 = vpack.c.bf16 %v3901_v38, %v3900_v27  ;;  %v3915_v38 = vld [vmem:[%s9549_s5 + $0xb8] sm:$0xff] }
 0x2f6   : > { %2588 = vmatmul.mubr.f32.gmra.mrb[4].mxu1 %v1209_v17  ;;  %6163 = vmatpush1.bf16.msra.mxu0 %v6162_v5  ;;  %v3913_v17 = vld [vmem:[%s9549_s5 + $0xa8] sm:$0xff] }
 0x2f7   : > { %2592 = vmatprep.mubr.f32.mxu1 %v8198_v10  ;;  %v6165_v10 = vpack.c.bf16 %v3903_v35, %v3902_v9  ;;  %6164 = vmatprep.subr.bf16.mxu0 %v9626_v23  ;;  %v3917_v9 = vld [vmem:[%s9549_s5 + $0xc8] sm:$0xff]  ;;  %v1218_v35 = vld [vmem:[#allocation2 + $0xb0] sm:$0xff] }
 0x2fa   : > { %2593 = vmatmul.mubr.f32.gmra.mrb[6].mxu1 %v1210_v63  ;;  %6166 = vmatpush1.bf16.msra.mxu0 %v6165_v10  ;;  %v1217_v63 = vld [vmem:[#allocation2 + $0xa8] sm:$0xff]  ;;  %v3918_v10 = vld [vmem:[%s9549_s5 + $0xd0] sm:$0xff] }
 0x2fb   : > { %2597 = vmatprep.mubr.f32.mxu1 %v8212_v50  ;;  %6167 = vmatprep.subr.bf16.mxu0 %v9626_v23  ;;  %v3906_v50 = vld [vmem:[%s9549_s5 + $0x70] sm:$0xff] }
 0x2fc   : > { %v6171_v34 = vpack.c.bf16 %v3907_v33, %v3906_v50  ;;  %v1285_v50 = vld [vmem:[#allocation2 + $0xd9] sm:$0xff] }
 0x2fd   : > { %v1221_v33 = vld [vmem:[#allocation2 + $0xd8] sm:$0xff] }
 0x2fe   : > { %2598 = vmatmul.mubr.f32.gmra.mrb[8].mxu1 %v1211_v2  ;;  %6169 = vmatpush1.bf16.msra.mxu0 %v6168_v20  ;;  %v1220_v20 = vld [vmem:[#allocation2 + $0xc8] sm:$0xff] }
 0x2ff   : > { %2602 = vmatprep.mubr.f32.mxu1 %v8222_v29  ;;  %6170 = vmatprep.subr.bf16.mxu0 %v9626_v23  ;;  %v3908_v29 = vld [vmem:[%s9549_s5 + $0x80] sm:$0xff] }
 0x300   : > { %v6174_v41 = vpack.c.bf16 %v3909_v32, %v3908_v29  ;;  %v1287_v29 = vld [vmem:[#allocation2 + $0xf1] sm:$0xff] }
 0x301   : > { %v1223_v32 = vld [vmem:[#allocation2 + $0xf0] sm:$0xff] }
 0x302   : > { %2603 = vmatmul.mubr.f32.gmra.mrb[10].mxu1 %v1212_v16  ;;  %6172 = vmatpush1.bf16.msra.mxu0 %v6171_v34  ;;  %v6189_v16 = vpack.c.bf16 %v3919_v6, %v3918_v10  ;;  %v1222_v34 = vld [vmem:[#allocation2 + $0xe0] sm:$0xff]  ;;  %v3922_v10 = vld [vmem:[%s9549_s5 + $0xf0] sm:$0xff]  ;;  %v3923_v6 = vld [vmem:[%s9549_s5 + $0xf8] sm:$0xff] }
 0x303   : > { %2607 = vmatprep.mubr.f32.mxu1 %v8232_v60  ;;  %6173 = vmatprep.subr.bf16.mxu0 %v9626_v23  ;;  %v3910_v60 = vld [vmem:[%s9549_s5 + $0x90] sm:$0xff] }
 0x304   : > { %v6177_v56 = vpack.c.bf16 %v3911_v28, %v3910_v60  ;;  %v1289_v60 = vld [vmem:[#allocation2 + $0x109] sm:$0xff] }
 0x305   : > { %v1225_v28 = vld [vmem:[#allocation2 + $0x108] sm:$0xff] }
 0x306   : > { %2608 = vmatmul.mubr.f32.gmra.mrb[12].mxu1 %v1213_v26  ;;  %6175 = vmatpush1.bf16.msra.mxu0 %v6174_v41  ;;  %v1286_v26 = vld [vmem:[#allocation2 + $0xe1] sm:$0xff]  ;;  %v1224_v41 = vld [vmem:[#allocation2 + $0xf8] sm:$0xff] }
 0x307   : > { %2612 = vmatprep.mubr.f32.mxu1 %v8242_v37  ;;  %6176 = vmatprep.subr.bf16.mxu0 %v9626_v23  ;;  %v3912_v37 = vld [vmem:[%s9549_s5 + $0xa0] sm:$0xff] }
 0x308   : > { %v6180_v27 = vpack.c.bf16 %v3913_v17, %v3912_v37  ;;  %v1291_v37 = vld [vmem:[#allocation2 + $0x121] sm:$0xff] }
 0x309   : > { %v1227_v17 = vld [vmem:[#allocation2 + $0x120] sm:$0xff] }
 0x30a   : > { %2613 = vmatmul.mubr.f32.gmra.mrb[14].mxu1 %v1214_v45  ;;  %6178 = vmatpush1.bf16.msra.mxu0 %v6177_v56  ;;  %v1288_v45 = vld [vmem:[#allocation2 + $0xf9] sm:$0xff]  ;;  %v1226_v56 = vld [vmem:[#allocation2 + $0x110] sm:$0xff] }
 0x30b   : > { %2617 = vmatprep.mubr.f32.mxu1 %v8252_v40  ;;  %6179 = vmatprep.subr.bf16.mxu0 %v9626_v23  ;;  %v3914_v40 = vld [vmem:[%s9549_s5 + $0xb0] sm:$0xff] }
 0x30c   : > { %v6183_v5 = vpack.c.bf16 %v3915_v38, %v3914_v40  ;;  %v4023_v40 = vld [vmem:[%s9549_s5 + $0x418] sm:$0xff]  ;;  %v3920_v38 = vld [vmem:[%s9549_s5 + $0xe0] sm:$0xff] }
 0x30e   : > { %2618 = vmatmul.mubr.f32.gmra.mrb[16].mxu1 %v1215_v62  ;;  %6181 = vmatpush1.bf16.msra.mxu0 %v6180_v27  ;;  %v1290_v62 = vld [vmem:[#allocation2 + $0x111] sm:$0xff] }
 0x30f   : > { %2622 = vmatprep.mubr.f32.mxu1 %v8262_v14  ;;  %6182 = vmatprep.subr.bf16.mxu0 %v9626_v23  ;;  %v3916_v14 = vld [vmem:[%s9549_s5 + $0xc0] sm:$0xff]  ;;  %v4022_v27 = vld [vmem:[%s9549_s5 + $0x410] sm:$0xff] }
 0x310   : > { %v6186_v2 = vpack.c.bf16 %v3917_v9, %v3916_v14  ;;  %v1228_v14 = vld [vmem:[#allocation2 + $0x128] sm:$0xff] }
 0x312   : > { %2623 = vmatmul.mubr.f32.gmra.mrb[18].mxu1 %v1216_v39  ;;  %6184 = vmatpush1.bf16.msra.mxu0 %v6183_v5  ;;  %v1292_v39 = vld [vmem:[#allocation2 + $0x129] sm:$0xff]  ;;  %v6345_v5 = vpack.c.bf16 %v4023_v40, %v4022_v27 }
 0x313   : > { %2627 = vmatprep.mubr.f32.mxu1 %v8272_v21  ;;  %v1283_v21 = vld [vmem:[#allocation2 + $0xc1] sm:$0xff]  ;;  %6185 = vmatprep.subr.bf16.mxu0 %v9626_v23  ;;  %v4030_v40 = vld [vmem:[%s9549_s5 + $0x450] sm:$0xff] }
 0x314   : > { %6346 = vmatprep.subr.bf16.mxu1 %v6345_v5 }
 0x315   : > { %6348 = vmatpush3.bf16.msra.mxu1 %v6345_v5  ;;  %v1232_v5 = vld [vmem:[#allocation2 + $0x158] sm:$0xff] }
 0x316   : > { %2628 = vmatmul.mubr.f32.gmra.mrb[20].mxu1 %v1217_v63  ;;  %6187 = vmatpush1.bf16.msra.mxu0 %v6186_v2  ;;  %v3921_v63 = vld [vmem:[%s9549_s5 + $0xe8] sm:$0xff]  ;;  %v4024_v2 = vld [vmem:[%s9549_s5 + $0x420] sm:$0xff] }
 0x317   : > { %2632 = vmatprep.mubr.f32.mxu1 %v8282_v11  ;;  %v1284_v11 = vld [vmem:[#allocation2 + $0xc9] sm:$0xff]  ;;  %6188 = vmatprep.subr.bf16.mxu0 %v9626_v23  ;;  %v6192_v9 = vpack.c.bf16 %v3921_v63, %v3920_v38  ;;  %v4031_v38 = vld [vmem:[%s9549_s5 + $0x458] sm:$0xff] }
 0x318   : > { %v6361_v63 = vpack.c.bf16 %v4031_v38, %v4030_v40  ;;  %v3939_v40 = vld [vmem:[%s9549_s5 + $0x178] sm:$0xff] }
 0x31a   : > { %2633 = vmatmul.mubr.f32.gmra.mrb[22].mxu1 %v1218_v35  ;;  %6190 = vmatpush1.bf16.msra.mxu0 %v6189_v16  ;;  %v1293_v35 = vld [vmem:[#allocation2 + $0x139] sm:$0xff] }
 0x31b   : > { %2637 = vmatprep.mubr.f32.mxu1 %v1283_v21  ;;  %6191 = vmatprep.subr.bf16.mxu0 %v9626_v23  ;;  %v4025_v21 = vld [vmem:[%s9549_s5 + $0x428] sm:$0xff]  ;;  %v1229_v16 = vld [vmem:[#allocation2 + $0x138] sm:$0xff] }
 0x31e   : > { %2638 = vmatmul.mubr.f32.gmra.mrb[24].mxu1 %v1219_v22  ;;  %6193 = vmatpush1.bf16.msra.mxu0 %v6192_v9  ;;  %v6349_v22 = vpack.c.bf16 %v4025_v21, %v4024_v2  ;;  %v4032_v9 = vld [vmem:[%s9549_s5 + $0x460] sm:$0xff]  ;;  %v1233_v21 = vld [vmem:[#allocation2 + $0x168] sm:$0xff] }
 0x31f   : > { %2642 = vmatprep.mubr.f32.mxu1 %v1284_v11  ;;  %6194 = vmatprep.subr.bf16.mxu0 %v9626_v23  ;;  %v6195_v11 = vpack.c.bf16 %v3923_v6, %v3922_v10  ;;  %v1298_v10 = vld [vmem:[#allocation2 + $0x171] sm:$0xff] }
 0x320   : > { %6350 = vmatprep.subr.bf16.mxu1 %v6349_v22  ;;  %v4034_v6 = vld [vmem:[%s9549_s5 + $0x470] sm:$0xff] }
 0x321   : > { %6352 = vmatpush3.bf16.msra.mxu1 %v6349_v22  ;;  %v4035_v22 = vld [vmem:[%s9549_s5 + $0x478] sm:$0xff] }
 0x322   : > { %2643 = vmatmul.mubr.f32.gmra.mrb[26].mxu1 %v1220_v20  ;;  %v1294_v20 = vld [vmem:[#allocation2 + $0x141] sm:$0xff]  ;;  %6196 = vmatpush1.bf16.msra.mxu0 %v6195_v11  ;;  %v3927_v11 = vld [vmem:[%s9549_s5 + $0x118] sm:$0xff] }
 0x323   : > { %2647 = vmatprep.mubr.f32.mxu1 %v1285_v50  ;;  %v4026_v50 = vld [vmem:[%s9549_s5 + $0x430] sm:$0xff]  ;;  %6197 = vmatprep.subr.bf16.mxu0 %v9626_v23 }
 0x326   : > { %2648 = vmatmul.mubr.f32.gmra.mrb[28].mxu1 %v1221_v33  ;;  %v4027_v33 = vld [vmem:[%s9549_s5 + $0x438] sm:$0xff] }
 0x327   : > { %2652 = vmatprep.mubr.f32.mxu1 %v1286_v26  ;;  %v3092_v26 = vld [vmem:[#allocation2 + $0x1] sm:$0xff] }
 0x328   : > { %4107 = vmatprep.mubr.f32.mxu0 %v3092_v26  ;;  %v1301_v26 = vld [vmem:[#allocation2 + $0x199] sm:$0xff] }
 0x32a   : > { %2653 = vmatmul.mubr.f32.gmra.mrb[30].mxu1 %v1222_v34  ;;  %v6353_v34 = vpack.c.bf16 %v4027_v33, %v4026_v50  ;;  %v1234_v50 = vld [vmem:[#allocation2 + $0x170] sm:$0xff] }
 0x32b   : > { %2657 = vmatprep.mubr.f32.mxu1 %v1287_v29  ;;  %v1230_v29 = vld [vmem:[#allocation2 + $0x140] sm:$0xff] }
 0x32c   : > { %6354 = vmatprep.subr.bf16.mxu1 %v6353_v34 }
 0x32d   : > { %6356 = vmatpush3.bf16.msra.mxu1 %v6353_v34  ;;  %v3928_v34 = vld [vmem:[%s9549_s5 + $0x120] sm:$0xff] }
 0x32e   : > { %2658 = vmatmul.mubr.f32.gmra.mrb[32].mxu1 %v1223_v32  ;;  %v1295_v32 = vld [vmem:[#allocation2 + $0x151] sm:$0xff] }
 0x32f   : > { %2662 = vmatprep.mubr.f32.mxu1 %v1288_v45  ;;  %v8482_v45 = vld [vmem:[#allocation2] sm:$0xff] }
 0x330   : > { %4108 = vmatmul.mubr.f32.vlgmr.msra.gmra.mrb[64].mxu0 %v8482_v45 }
 0x332   : > { %2663 = vmatmul.mubr.f32.gmra.mrb[34].mxu1 %v1224_v41  ;;  %v4028_v41 = vld [vmem:[%s9549_s5 + $0x440] sm:$0xff] }
 0x333   : > { %2667 = vmatprep.mubr.f32.mxu1 %v1289_v60  ;;  %v4029_v60 = vld [vmem:[%s9549_s5 + $0x448] sm:$0xff] }
 0x336   : > { %2668 = vmatmul.mubr.f32.gmra.mrb[36].mxu1 %v1225_v28  ;;  %v3093_v28 = vld [vmem:[#allocation2 + $0x9] sm:$0xff] }
 0x337   : > { %2672 = vmatprep.mubr.f32.mxu1 %v1290_v62  ;;  %v6357_v62 = vpack.c.bf16 %v4029_v60, %v4028_v41  ;;  %4112 = vmatprep.mubr.f32.mxu0 %v3093_v28  ;;  %v3933_v60 = vld [vmem:[%s9549_s5 + $0x148] sm:$0xff] }
 0x338   : > { %4113 = vmatmul.mubr.f32.gmra.mrb[66].mxu0 %v8482_v45 }
 0x339   : > { %6358 = vmatprep.subr.bf16.mxu1 %v6357_v62 }
 0x33a   : > { %2673 = vmatmul.mubr.f32.gmra.mrb[38].mxu1 %v1226_v56  ;;  %v1231_v56 = vld [vmem:[#allocation2 + $0x150] sm:$0xff] }
 0x33b   : > { %2677 = vmatprep.mubr.f32.mxu1 %v1291_v37  ;;  %v1296_v37 = vld [vmem:[#allocation2 + $0x159] sm:$0xff]  ;;  %6360 = vmatpush3.bf16.msra.mxu1 %v6357_v62  ;;  %v3934_v62 = vld [vmem:[%s9549_s5 + $0x150] sm:$0xff] }
 0x33c   : > { %6362 = vmatprep.subr.bf16.mxu1 %v6361_v63 }
 0x33e   : > { %2678 = vmatmul.mubr.f32.gmra.mrb[40].mxu1 %v1227_v17  ;;  %v3924_v17 = vld [vmem:[%s9549_s5 + $0x100] sm:$0xff] }
 0x33f   : > { %2682 = vmatprep.mubr.f32.mxu1 %v1292_v39  ;;  %v3925_v39 = vld [vmem:[%s9549_s5 + $0x108] sm:$0xff]  ;;  %6364 = vmatpush3.bf16.msra.mxu1 %v6361_v63  ;;  %v3940_v63 = vld [vmem:[%s9549_s5 + $0x180] sm:$0xff] }
 0x340   : > { %v6198_v27 = vpack.c.bf16 %v3925_v39, %v3924_v17  ;;  %v3937_v17 = vld [vmem:[%s9549_s5 + $0x168] sm:$0xff] }
 0x342   : > { %2683 = vmatmul.mubr.f32.gmra.mrb[42].mxu1 %v1228_v14  ;;  %6199 = vmatpush1.bf16.msra.mxu0 %v6198_v27  ;;  %v1297_v14 = vld [vmem:[#allocation2 + $0x169] sm:$0xff] }
 0x343   : > { %2687 = vmatprep.mubr.f32.mxu1 %v1293_v35  ;;  %6200 = vmatprep.subr.bf16.mxu0 %v9626_v23  ;;  %v4033_v35 = vld [vmem:[%s9549_s5 + $0x468] sm:$0xff]  ;;  %v3938_v27 = vld [vmem:[%s9549_s5 + $0x170] sm:$0xff] }
 0x344   : > { %v6365_v2 = vpack.c.bf16 %v4033_v35, %v4032_v9  ;;  %v6219_v38 = vpack.c.bf16 %v3939_v40, %v3938_v27  ;;  %v3942_v9 = vld [vmem:[%s9549_s5 + $0x190] sm:$0xff]  ;;  %v3943_v35 = vld [vmem:[%s9549_s5 + $0x198] sm:$0xff] }
 0x346   : > { %2688 = vmatmul.mubr.f32.gmra.mrb[44].mxu1 %v1229_v16  ;;  %6366 = vmatprep.subr.bf16.mxu1 %v6365_v2  ;;  %v3926_v16 = vld [vmem:[%s9549_s5 + $0x110] sm:$0xff] }
 0x347   : > { %2692 = vmatprep.mubr.f32.mxu1 %v1294_v20  ;;  %6368 = vmatpush3.bf16.msra.mxu1 %v6365_v2  ;;  %v6369_v20 = vpack.c.bf16 %v4035_v22, %v4034_v6  ;;  %v6201_v33 = vpack.c.bf16 %v3927_v11, %v3926_v16  ;;  %v6225_v2 = vpack.c.bf16 %v3943_v35, %v3942_v9  ;;  %v3946_v22 = vld [vmem:[%s9549_s5 + $0x1b0] sm:$0xff]  ;;  %v3947_v16 = vld [vmem:[%s9549_s5 + $0x1b8] sm:$0xff] }
 0x348   : > { %v6231_v11 = vpack.c.bf16 %v3947_v16, %v3946_v22 }
 0x349   : > { %6370 = vmatprep.subr.bf16.mxu1 %v6369_v20  ;;  %6202 = vmatpush1.bf16.msra.mxu0 %v6201_v33 }
 0x34a   : > { %2693 = vmatmul.mubr.f32.gmra.mrb[46].mxu1 %v1230_v29  ;;  %6203 = vmatprep.subr.bf16.mxu0 %v9626_v23  ;;  %v3929_v29 = vld [vmem:[%s9549_s5 + $0x128] sm:$0xff] }
 0x34b   : > { %2697 = vmatprep.mubr.f32.mxu1 %v1295_v32  ;;  %6372 = vmatpush3.bf16.msra.mxu1 %v6369_v20  ;;  %v6204_v32 = vpack.c.bf16 %v3929_v29, %v3928_v34  ;;  %v3948_v20 = vld [vmem:[%s9549_s5 + $0x1c0] sm:$0xff]  ;;  %v3951_v34 = vld [vmem:[%s9549_s5 + $0x1d8] sm:$0xff] }
 0x34d   : > { %6205 = vmatpush1.bf16.msra.mxu0 %v6204_v32 }
 0x34e   : > { %2698 = vmatmul.mubr.f32.gmra.mrb[48].mxu1 %v1231_v56  ;;  %6206 = vmatprep.subr.bf16.mxu0 %v9626_v23 }
 0x34f   : > { %2702 = vmatprep.mubr.f32.mxu1 %v1296_v37  ;;  %v3936_v37 = vld [vmem:[%s9549_s5 + $0x160] sm:$0xff] }
 0x350   : > { %v6216_v39 = vpack.c.bf16 %v3937_v17, %v3936_v37  ;;  %v3955_v37 = vld [vmem:[%s9549_s5 + $0x1f8] sm:$0xff] }
 0x352   : > { %2703 = vmatmul.mubr.f32.gmra.mrb[50].mxu1 %v1232_v5  ;;  %v3941_v5 = vld [vmem:[%s9549_s5 + $0x188] sm:$0xff] }
 0x353   : > { %2707 = vmatprep.mubr.f32.mxu1 %v1297_v14  ;;  %v6222_v14 = vpack.c.bf16 %v3941_v5, %v3940_v63 }
 0x356   : > { %2708 = vmatmul.mubr.f32.gmra.mrb[52].mxu1 %v1233_v21  ;;  %v3944_v21 = vld [vmem:[%s9549_s5 + $0x1a0] sm:$0xff] }
 0x357   : > { %2712 = vmatprep.mubr.f32.mxu1 %v1298_v10  ;;  %v3945_v10 = vld [vmem:[%s9549_s5 + $0x1a8] sm:$0xff] }
 0x358   : > { %v6228_v6 = vpack.c.bf16 %v3945_v10, %v3944_v21 }
 0x35a   : > { %2713 = vmatmul.mubr.f32.gmra.mrb[54].mxu1 %v1234_v50  ;;  %v3949_v50 = vld [vmem:[%s9549_s5 + $0x1c8] sm:$0xff] }
 0x35b   : > { %2717 = vmatprep.mubr.f32.mxu1 %v8327_v13  ;;  %v1302_v13 = vld [vmem:[#allocation2 + $0x1a1] sm:$0xff]  ;;  %v6234_v33 = vpack.c.bf16 %v3949_v50, %v3948_v20 }
 0x35e   : > { %2718 = vmatmul.mubr.f32.gmra.mrb[56].mxu1 %v8099_v52  ;;  %v3930_v52 = vld [vmem:[%s9549_s5 + $0x130] sm:$0xff] }
 0x35f   : > { %2722 = vmatprep.mubr.f32.mxu1 %v8331_v47  ;;  %v3931_v47 = vld [vmem:[%s9549_s5 + $0x138] sm:$0xff] }
 0x360   : > { %v6207_v41 = vpack.c.bf16 %v3931_v47, %v3930_v52  ;;  %v3953_v52 = vld [vmem:[%s9549_s5 + $0x1e8] sm:$0xff] }
 0x362   : > { %2723 = vmatmul.mubr.f32.gmra.mrb[58].mxu1 %v8110_v31  ;;  %6208 = vmatpush1.bf16.msra.mxu0 %v6207_v41  ;;  %v3932_v31 = vld [vmem:[%s9549_s5 + $0x140] sm:$0xff] }
 0x363   : > { %2727 = vmatprep.mubr.f32.mxu1 %v1301_v26  ;;  %6209 = vmatprep.subr.bf16.mxu0 %v9626_v23  ;;  %v6210_v28 = vpack.c.bf16 %v3933_v60, %v3932_v31  ;;  %v3950_v26 = vld [vmem:[%s9549_s5 + $0x1d0] sm:$0xff]  ;;  %v8624_v31 = vld [vmem:[#allocation8] ss:$0 sm:$0xff] }
 0x364   : > { %v6237_v29 = vpack.c.bf16 %v3951_v34, %v3950_v26 }
 0x366   : > { %2728 = vmatmul.mubr.f32.gmra.mrb[60].mxu1 %v8482_v45  ;;  %6211 = vmatpush1.bf16.msra.mxu0 %v6210_v28 }
 0x367   : > { %2732 = vmatprep.mubr.f32.mxu1 %v1302_v13  ;;  %6212 = vmatprep.subr.bf16.mxu0 %v9626_v23  ;;  %v3952_v13 = vld [vmem:[%s9549_s5 + $0x1e0] sm:$0xff] }
 0x368   : > { %v6240_v41 = vpack.c.bf16 %v3953_v52, %v3952_v13 }
 0x36a   : > { %2733 = vmatmul.mubr.f32.gmra.mrb[62].mxu1 %v8482_v45  ;;  %v3935_v45 = vld [vmem:[%s9549_s5 + $0x158] sm:$0xff] }
 0x36b   : > { %v6213_v56 = vpack.c.bf16 %v3935_v45, %v3934_v62 }
 0x36d   : > { %6214 = vmatpush1.bf16.msra.mxu0 %v6213_v56  ;;  %v3954_v56 = vld [vmem:[%s9549_s5 + $0x1f0] sm:$0xff] }
 0x36e   : > { %6215 = vmatprep.subr.bf16.mxu0 %v9626_v23 }
 0x371   : > { %6217 = vmatpush1.bf16.msra.mxu0 %v6216_v39  ;;  %v6243_v39 = vpack.c.bf16 %v3955_v37, %v3954_v56 }
 0x372   : > { %6218 = vmatprep.subr.bf16.mxu0 %v9626_v23 }
 0x375   : > { %6220 = vmatpush1.bf16.msra.mxu0 %v6219_v38 }
 0x376   : > { %6221 = vmatprep.subr.bf16.mxu0 %v9626_v23 }
 0x379   : > { %6223 = vmatpush1.bf16.msra.mxu0 %v6222_v14 }
 0x37a   : > { %6224 = vmatprep.subr.bf16.mxu0 %v9626_v23 }
 0x37d   : > { %6226 = vmatpush1.bf16.msra.mxu0 %v6225_v2 }
 0x37e   : > { %6227 = vmatprep.subr.bf16.mxu0 %v9626_v23 }
 0x381   : > { %6229 = vmatpush1.bf16.msra.mxu0 %v6228_v6 }
 0x382   : > { %6230 = vmatprep.subr.bf16.mxu0 %v9626_v23 }
 0x385   : > { %6232 = vmatpush1.bf16.msra.mxu0 %v6231_v11 }
 0x386   : > { %6233 = vmatprep.subr.bf16.mxu0 %v9626_v23 }
 0x389   : > { %6235 = vmatpush1.bf16.msra.mxu0 %v6234_v33 }
 0x38a   : > { %6236 = vmatprep.subr.bf16.mxu0 %v9626_v23 }
 0x38d   : > { %6238 = vmatpush1.bf16.msra.mxu0 %v6237_v29 }
 0x38e   : > { %6239 = vmatprep.subr.bf16.mxu0 %v9626_v23 }
 0x391   : > { %6241 = vmatpush1.bf16.msra.mxu0 %v6240_v41 }
 0x392   : > { %6242 = vmatprep.subr.bf16.mxu0 %v9626_v23 }
 0x395   : > { %6244 = vmatpush1.bf16.msra.mxu0 %v6243_v39 }
 0x396   : > { %6245 = vmatprep.subr.bf16.mxu0 %v9626_v23 }
 0x3a8   : > { %v8613_v32 = vpop.f32.mrb[62].mxu0 }
 0x3a9   : > { %v8622_v47 = vpop.f32.mrb[63].mxu0 }
 0x3c1   : > { %v2579_v60 = vpop.f32.mrb[0].mxu1 }
 0x3c2   : > { %v6373_v28 = vadd.f32 %v8624_v31, %v2579_v60  ;;  %v2581_v62 = vpop.f32.mrb[1].mxu1 }
 0x3c4   : > { %v2805_v45 = vadd.f32 %v6373_v28, %v8072_v51 }
 0x3c5   : > { %v2584_v17 = vpop.f32.mrb[2].mxu1 }
 0x3c6   : > { %v2963_v27 = vmax.f32 %v2805_v45, 0.0  ;;  %v6374_v40 = vadd.f32 %v8624_v31, %v2584_v17  ;;  %v2586_v38 = vpop.f32.mrb[3].mxu1 }
 0x3c8   : > { %v2810_v63 = vadd.f32 %v6374_v40, %v8069_v49  ;;  %2996 = vst.msk [vmem:[#allocation2 + $0x19] sm:$0xff] %vm2995_vm5, %v2963_v27 }
 0x3c9   : > { %v2589_v51 = vpop.f32.mrb[4].mxu1 }
 0x3ca   : > { %v2964_v5 = vmax.f32 %v2810_v63, 0.0  ;;  %v6375_v14 = vadd.f32 %v8624_v31, %v2589_v51  ;;  %v2591_v9 = vpop.f32.mrb[5].mxu1 }
 0x3cc   : > { %v2815_v35 = vadd.f32 %v6375_v14, %v8078_v0  ;;  %2997 = vst.msk [vmem:[#allocation2 + $0x21] sm:$0xff] %vm2995_vm5, %v2964_v5 }
 0x3cd   : > { %v2594_v2 = vpop.f32.mrb[6].mxu1 }
 0x3ce   : > { %v2965_v21 = vmax.f32 %v2815_v35, 0.0  ;;  %v6376_v10 = vadd.f32 %v8624_v31, %v2594_v2  ;;  %v2596_v6 = vpop.f32.mrb[7].mxu1 }
 0x3cf   : > { %v3094_v22 = vld [vmem:[#allocation2 + $0x19] sm:$0xff] }
 0x3d0   : > { %v8643_v49 = vld [vmem:[#allocation2 + $0x18] sm:$0xff]  ;;  %v2820_v16 = vadd.f32 %v6376_v10, %v8075_v59  ;;  %4117 = vmatprep.mubr.f32.mxu0 %v3094_v22  ;;  %2998 = vst.msk [vmem:[#allocation2 + $0x31] sm:$0xff] %vm2995_vm5, %v2965_v21 }
 0x3d1   : > { %v2599_v11 = vpop.f32.mrb[8].mxu1  ;;  %4118 = vmatmul.mubr.f32.gmra.mrb[68].mxu0 %v8643_v49 }
 0x3d2   : > { %v2966_v20 = vmax.f32 %v2820_v16, 0.0  ;;  %v6377_v0 = vadd.f32 %v8624_v31, %v2599_v11  ;;  %v2601_v50 = vpop.f32.mrb[9].mxu1 }
 0x3d3   : > { %v3095_v33 = vld [vmem:[#allocation2 + $0x21] sm:$0xff] }
 0x3d4   : > { %v8649_v26 = vld [vmem:[#allocation2 + $0x20] sm:$0xff]  ;;  %2999 = vst.msk [vmem:[#allocation2 + $0x39] sm:$0xff] %vm2995_vm5, %v2966_v20  ;;  %v2825_v34 = vadd.f32 %v6377_v0, %v8084_v12  ;;  %4122 = vmatprep.mubr.f32.mxu0 %v3095_v33 }
 0x3d5   : > { %v2604_v29 = vpop.f32.mrb[10].mxu1  ;;  %4123 = vmatmul.mubr.f32.gmra.mrb[70].mxu0 %v8649_v26 }
 0x3d6   : > { %v2967_v59 = vmax.f32 %v2825_v34, 0.0  ;;  %v6378_v13 = vadd.f32 %v8624_v31, %v2604_v29  ;;  %v2606_v52 = vpop.f32.mrb[11].mxu1 }
 0x3d7   : > { %v3096_v41 = vld [vmem:[#allocation2 + $0x31] sm:$0xff] }
 0x3d8   : > { %v8655_v60 = vld [vmem:[#allocation2 + $0x30] sm:$0xff]  ;;  %3000 = vst.msk [vmem:[#allocation2 + $0x49] sm:$0xff] %vm2995_vm5, %v2967_v59  ;;  %v2830_v28 = vadd.f32 %v6378_v13, %v8081_v3  ;;  %4127 = vmatprep.mubr.f32.mxu0 %v3096_v41 }
 0x3d9   : > { %v2609_v62 = vpop.f32.mrb[12].mxu1  ;;  %4128 = vmatmul.mubr.f32.gmra.mrb[72].mxu0 %v8655_v60 }
 0x3da   : > { %v2968_v12 = vmax.f32 %v2830_v28, 0.0  ;;  %v6379_v45 = vadd.f32 %v8624_v31, %v2609_v62  ;;  %v2611_v56 = vpop.f32.mrb[13].mxu1 }
 0x3db   : > { %v3097_v37 = vld [vmem:[#allocation2 + $0x39] sm:$0xff] }
 0x3dc   : > { %v8661_v17 = vld [vmem:[#allocation2 + $0x32] sm:$0xff]  ;;  %3001 = vst.msk [vmem:[#allocation2 + $0x51] sm:$0xff] %vm2995_vm5, %v2968_v12  ;;  %v2835_v27 = vadd.f32 %v6379_v45, %v8090_v42  ;;  %4132 = vmatprep.mubr.f32.mxu0 %v3097_v37  ;;  %v8668_v3 = vld [vmem:[#allocation2 + $0x3a] sm:$0xff] }
 0x3dd   : > { %v8663_v39 = vld [vmem:[#allocation2 + $0x38] sm:$0xff]  ;;  %5871 = vmatprep.mubr.f32.mxu1 %v8661_v17  ;;  %v2614_v40 = vpop.f32.mrb[14].mxu1 }
 0x3de   : > { %4133 = vmatmul.mubr.f32.gmra.mrb[74].mxu0 %v8663_v39  ;;  %5872 = vmatmul.mubr.f32.vlgmr.msra.gmra.mrb[64].mxu1 %v8668_v3  ;;  %v2969_v38 = vmax.f32 %v2835_v27, 0.0  ;;  %v6380_v63 = vadd.f32 %v8624_v31, %v2614_v40  ;;  %v2616_v51 = vpop.f32.mrb[15].mxu1 }
 0x3df   : > { %v3098_v5 = vld [vmem:[#allocation2 + $0x49] sm:$0xff] }
 0x3e0   : > { %v8673_v14 = vld [vmem:[#allocation2 + $0x48] sm:$0xff]  ;;  %3002 = vst.msk [vmem:[#allocation2 + $0x61] sm:$0xff] %vm2995_vm5, %v2969_v38  ;;  %v2840_v42 = vadd.f32 %v6380_v63, %v8087_v36  ;;  %4137 = vmatprep.mubr.f32.mxu0 %v3098_v5 }
 0x3e1   : > { %v2619_v9 = vpop.f32.mrb[16].mxu1 }
 0x3e2   : > { %4138 = vmatmul.mubr.f32.gmra.mrb[76].mxu0 %v8673_v14  ;;  %v2970_v35 = vmax.f32 %v2840_v42, 0.0  ;;  %v6381_v2 = vadd.f32 %v8624_v31, %v2619_v9  ;;  %v2621_v21 = vpop.f32.mrb[17].mxu1 }
 0x3e3   : > { %v3099_v10 = vld [vmem:[#allocation2 + $0x51] sm:$0xff] }
 0x3e4   : > { %v8679_v6 = vld [vmem:[#allocation2 + $0x4a] sm:$0xff]  ;;  %3003 = vst.msk [vmem:[#allocation2 + $0x69] sm:$0xff] %vm2995_vm5, %v2970_v35  ;;  %v2845_v16 = vadd.f32 %v6381_v2, %v8096_v1  ;;  %4142 = vmatprep.mubr.f32.mxu0 %v3099_v10  ;;  %v8686_v36 = vld [vmem:[#allocation2 + $0x52] sm:$0xff] }
 0x3e5   : > { %v8681_v22 = vld [vmem:[#allocation2 + $0x50] sm:$0xff]  ;;  %5874 = vmatprep.mubr.f32.mxu1 %v8679_v6  ;;  %v2624_v11 = vpop.f32.mrb[18].mxu1 }
 0x3e6   : > { %4143 = vmatmul.mubr.f32.gmra.mrb[78].mxu0 %v8681_v22  ;;  %5875 = vmatmul.mubr.f32.gmra.mrb[66].mxu1 %v8686_v36  ;;  %v2971_v20 = vmax.f32 %v2845_v16, 0.0  ;;  %v6382_v0 = vadd.f32 %v8624_v31, %v2624_v11  ;;  %v2626_v50 = vpop.f32.mrb[19].mxu1 }
 0x3e7   : > { %v3100_v33 = vld [vmem:[#allocation2 + $0x61] sm:$0xff] }
 0x3e8   : > { %v8691_v34 = vld [vmem:[#allocation2 + $0x60] sm:$0xff]  ;;  %3004 = vst.msk [vmem:[#allocation2 + $0x79] sm:$0xff] %vm2995_vm5, %v2971_v20  ;;  %v2850_v1 = vadd.f32 %v6382_v0, %v8093_v44  ;;  %4147 = vmatprep.mubr.f32.mxu0 %v3100_v33 }
 0x3e9   : > { %v2629_v29 = vpop.f32.mrb[20].mxu1 }
 0x3ea   : > { %4148 = vmatmul.mubr.f32.gmra.mrb[80].mxu0 %v8691_v34  ;;  %v2972_v59 = vmax.f32 %v2850_v1, 0.0  ;;  %v6383_v13 = vadd.f32 %v8624_v31, %v2629_v29  ;;  %v2631_v52 = vpop.f32.mrb[21].mxu1 }
 0x3eb   : > { %v3101_v41 = vld [vmem:[#allocation2 + $0x69] sm:$0xff] }
 0x3ec   : > { %v8697_v28 = vld [vmem:[#allocation2 + $0x62] sm:$0xff]  ;;  %3005 = vst.msk [vmem:[#allocation2 + $0x81] sm:$0xff] %vm2995_vm5, %v2972_v59  ;;  %v2855_v12 = vadd.f32 %v6383_v13, %v8104_v61  ;;  %4152 = vmatprep.mubr.f32.mxu0 %v3101_v41  ;;  %v8704_v44 = vld [vmem:[#allocation2 + $0x6a] sm:$0xff] }
 0x3ed   : > { %v8699_v62 = vld [vmem:[#allocation2 + $0x68] sm:$0xff]  ;;  %5877 = vmatprep.mubr.f32.mxu1 %v8697_v28  ;;  %v2634_v45 = vpop.f32.mrb[22].mxu1 }
 0x3ee   : > { %4153 = vmatmul.mubr.f32.gmra.mrb[82].mxu0 %v8699_v62  ;;  %5878 = vmatmul.mubr.f32.gmra.mrb[68].mxu1 %v8704_v44  ;;  %v2973_v56 = vmax.f32 %v2855_v12, 0.0  ;;  %v6384_v37 = vadd.f32 %v8624_v31, %v2634_v45  ;;  %v2636_v27 = vpop.f32.mrb[23].mxu1 }
 0x3ef   : > { %v3102_v40 = vld [vmem:[#allocation2 + $0x79] sm:$0xff] }
 0x3f0   : > { %v8709_v38 = vld [vmem:[#allocation2 + $0x78] sm:$0xff]  ;;  %3006 = vst.msk [vmem:[#allocation2 + $0x91] sm:$0xff] %vm2995_vm5, %v2973_v56  ;;  %v2860_v61 = vadd.f32 %v6384_v37, %v8101_v58  ;;  %4157 = vmatprep.mubr.f32.mxu0 %v3102_v40 }
 0x3f1   : > { %v2639_v63 = vpop.f32.mrb[24].mxu1 }
 0x3f2   : > { %4158 = vmatmul.mubr.f32.gmra.mrb[84].mxu0 %v8709_v38  ;;  %v2974_v51 = vmax.f32 %v2860_v61, 0.0  ;;  %v6385_v5 = vadd.f32 %v8624_v31, %v2639_v63  ;;  %v2641_v42 = vpop.f32.mrb[25].mxu1 }
 0x3f3   : > { %v3103_v9 = vld [vmem:[#allocation2 + $0x81] sm:$0xff] }
 0x3f4   : > { %v8715_v35 = vld [vmem:[#allocation2 + $0x7a] sm:$0xff]  ;;  %3007 = vst.msk [vmem:[#allocation2 + $0x99] sm:$0xff] %vm2995_vm5, %v2974_v51  ;;  %v2865_v21 = vadd.f32 %v6385_v5, %v8112_v57  ;;  %4162 = vmatprep.mubr.f32.mxu0 %v3103_v9  ;;  %v8722_v58 = vld [vmem:[#allocation2 + $0x82] sm:$0xff] }
 0x3f5   : > { %v8717_v2 = vld [vmem:[#allocation2 + $0x80] sm:$0xff]  ;;  %5880 = vmatprep.mubr.f32.mxu1 %v8715_v35  ;;  %v2644_v10 = vpop.f32.mrb[26].mxu1 }
 0x3f6   : > { %4163 = vmatmul.mubr.f32.gmra.mrb[86].mxu0 %v8717_v2  ;;  %5881 = vmatmul.mubr.f32.gmra.mrb[70].mxu1 %v8722_v58  ;;  %v2975_v16 = vmax.f32 %v2865_v21, 0.0  ;;  %v6386_v11 = vadd.f32 %v8624_v31, %v2644_v10  ;;  %v2646_v20 = vpop.f32.mrb[27].mxu1 }
 0x3f7   : > { %v3104_v0 = vld [vmem:[#allocation2 + $0x91] sm:$0xff] }
 0x3f8   : > { %v8727_v50 = vld [vmem:[#allocation2 + $0x90] sm:$0xff]  ;;  %3008 = vst.msk [vmem:[#allocation2 + $0xa9] sm:$0xff] %vm2995_vm5, %v2975_v16  ;;  %v2870_v57 = vadd.f32 %v6386_v11, %v8107_v4  ;;  %4167 = vmatprep.mubr.f32.mxu0 %v3104_v0 }
 0x3f9   : > { %v2649_v33 = vpop.f32.mrb[28].mxu1 }
 0x3fa   : > { %4168 = vmatmul.mubr.f32.gmra.mrb[88].mxu0 %v8727_v50  ;;  %v2976_v1 = vmax.f32 %v2870_v57, 0.0  ;;  %v6387_v29 = vadd.f32 %v8624_v31, %v2649_v33  ;;  %v2651_v59 = vpop.f32.mrb[29].mxu1 }
 0x3fb   : > { %v3105_v13 = vld [vmem:[#allocation2 + $0x99] sm:$0xff] }
 0x3fc   : > { %v8733_v52 = vld [vmem:[#allocation2 + $0x92] sm:$0xff]  ;;  %3009 = vst.msk [vmem:[#allocation2 + $0xb1] sm:$0xff] %vm2995_vm5, %v2976_v1  ;;  %v2875_v12 = vadd.f32 %v6387_v29, %v8124_v53  ;;  %4172 = vmatprep.mubr.f32.mxu0 %v3105_v13  ;;  %v8740_v4 = vld [vmem:[#allocation2 + $0x9a] sm:$0xff] }
 0x3fd   : > { %v8735_v41 = vld [vmem:[#allocation2 + $0x98] sm:$0xff]  ;;  %5883 = vmatprep.mubr.f32.mxu1 %v8733_v52  ;;  %v2654_v45 = vpop.f32.mrb[30].mxu1 }
 0x3fe   : > { %4173 = vmatmul.mubr.f32.gmra.mrb[90].mxu0 %v8735_v41  ;;  %5884 = vmatmul.mubr.f32.gmra.mrb[72].mxu1 %v8740_v4  ;;  %v2977_v56 = vmax.f32 %v2875_v12, 0.0  ;;  %v6388_v37 = vadd.f32 %v8624_v31, %v2654_v45  ;;  %v2656_v27 = vpop.f32.mrb[31].mxu1 }
 0x3ff   : > { %v3106_v40 = vld [vmem:[#allocation2 + $0xa9] sm:$0xff] }
 0x400   : > { %v8745_v61 = vld [vmem:[#allocation2 + $0xa8] sm:$0xff]  ;;  %3010 = vst.msk [vmem:[#allocation2 + $0xc1] sm:$0xff] %vm2995_vm5, %v2977_v56  ;;  %v2880_v53 = vadd.f32 %v6388_v37, %v8121_v48  ;;  %4177 = vmatprep.mubr.f32.mxu0 %v3106_v40 }
 0x401   : > { %v2659_v63 = vpop.f32.mrb[32].mxu1 }
 0x402   : > { %4178 = vmatmul.mubr.f32.gmra.mrb[92].mxu0 %v8745_v61  ;;  %v2978_v51 = vmax.f32 %v2880_v53, 0.0  ;;  %v6389_v5 = vadd.f32 %v8624_v31, %v2659_v63  ;;  %v2661_v42 = vpop.f32.mrb[33].mxu1 }
 0x403   : > { %v3107_v9 = vld [vmem:[#allocation2 + $0xb1] sm:$0xff] }
 0x404   : > { %v8751_v21 = vld [vmem:[#allocation2 + $0xaa] sm:$0xff]  ;;  %3011 = vst.msk [vmem:[#allocation2 + $0xc9] sm:$0xff] %vm2995_vm5, %v2978_v51  ;;  %v2885_v16 = vadd.f32 %v6389_v5, %v8135_v24  ;;  %4182 = vmatprep.mubr.f32.mxu0 %v3107_v9  ;;  %v8758_v48 = vld [vmem:[#allocation2 + $0xb2] sm:$0xff] }
 0x405   : > { %v8753_v10 = vld [vmem:[#allocation2 + $0xb0] sm:$0xff]  ;;  %5886 = vmatprep.mubr.f32.mxu1 %v8751_v21  ;;  %v2664_v11 = vpop.f32.mrb[34].mxu1 }
 0x406   : > { %4183 = vmatmul.mubr.f32.gmra.mrb[94].mxu0 %v8753_v10  ;;  %5887 = vmatmul.mubr.f32.gmra.mrb[74].mxu1 %v8758_v48  ;;  %v2979_v20 = vmax.f32 %v2885_v16, 0.0  ;;  %v6390_v0 = vadd.f32 %v8624_v31, %v2664_v11  ;;  %v2666_v57 = vpop.f32.mrb[35].mxu1 }
 0x407   : > { %v3108_v33 = vld [vmem:[#allocation2 + $0xc1] sm:$0xff] }
 0x408   : > { %v8763_v1 = vld [vmem:[#allocation2 + $0xc0] sm:$0xff]  ;;  %3012 = vst.msk [vmem:[#allocation2 + $0xd9] sm:$0xff] %vm2995_vm5, %v2979_v20  ;;  %v2890_v24 = vadd.f32 %v6390_v0, %v8133_v55  ;;  %4187 = vmatprep.mubr.f32.mxu0 %v3108_v33 }
 0x409   : > { %v2669_v29 = vpop.f32.mrb[36].mxu1 }
 0x40a   : > { %4188 = vmatmul.mubr.f32.gmra.mrb[96].mxu0 %v8763_v1  ;;  %v2980_v59 = vmax.f32 %v2890_v24, 0.0  ;;  %v6391_v13 = vadd.f32 %v8624_v31, %v2669_v29  ;;  %v2671_v12 = vpop.f32.mrb[37].mxu1 }
 0x40b   : > { %v3109_v45 = vld [vmem:[#allocation2 + $0xc9] sm:$0xff] }
 0x40c   : > { %v8769_v56 = vld [vmem:[#allocation2 + $0xc2] sm:$0xff]  ;;  %3013 = vst.msk [vmem:[#allocation2 + $0xe1] sm:$0xff] %vm2995_vm5, %v2980_v59  ;;  %v2895_v27 = vadd.f32 %v6391_v13, %v8147_v30  ;;  %4192 = vmatprep.mubr.f32.mxu0 %v3109_v45  ;;  %v8776_v55 = vld [vmem:[#allocation2 + $0xca] sm:$0xff] }
 0x40d   : > { %v8771_v37 = vld [vmem:[#allocation2 + $0xc8] sm:$0xff]  ;;  %5889 = vmatprep.mubr.f32.mxu1 %v8769_v56  ;;  %v2674_v40 = vpop.f32.mrb[38].mxu1 }
 0x40e   : > { %4193 = vmatmul.mubr.f32.gmra.mrb[98].mxu0 %v8771_v37  ;;  %5890 = vmatmul.mubr.f32.gmra.mrb[76].mxu1 %v8776_v55  ;;  %v2981_v53 = vmax.f32 %v2895_v27, 0.0  ;;  %v6392_v63 = vadd.f32 %v8624_v31, %v2674_v40  ;;  %v2676_v51 = vpop.f32.mrb[39].mxu1 }
 0x40f   : > { %v3110_v5 = vld [vmem:[#allocation2 + $0xd9] sm:$0xff] }
 0x410   : > { %v8781_v42 = vld [vmem:[#allocation2 + $0xd8] sm:$0xff]  ;;  %3014 = vst.msk [vmem:[#allocation2 + $0xf1] sm:$0xff] %vm2995_vm5, %v2981_v53  ;;  %v2900_v30 = vadd.f32 %v6392_v63, %v8145_v8  ;;  %4197 = vmatprep.mubr.f32.mxu0 %v3110_v5 }
 0x411   : > { %v2679_v9 = vpop.f32.mrb[40].mxu1 }
 0x412   : > { %4198 = vmatmul.mubr.f32.gmra.mrb[100].mxu0 %v8781_v42  ;;  %v2982_v16 = vmax.f32 %v2900_v30, 0.0  ;;  %v6393_v11 = vadd.f32 %v8624_v31, %v2679_v9  ;;  %v2681_v20 = vpop.f32.mrb[41].mxu1 }
 0x413   : > { %v3111_v0 = vld [vmem:[#allocation2 + $0xe1] sm:$0xff] }
 0x414   : > { %v8787_v57 = vld [vmem:[#allocation2 + $0xda] sm:$0xff]  ;;  %3015 = vst.msk [vmem:[#allocation2 + $0xf9] sm:$0xff] %vm2995_vm5, %v2982_v16  ;;  %v2905_v24 = vadd.f32 %v6393_v11, %v8161_v25  ;;  %4202 = vmatprep.mubr.f32.mxu0 %v3111_v0  ;;  %v8794_v8 = vld [vmem:[#allocation2 + $0xe2] sm:$0xff] }
 0x415   : > { %v8789_v33 = vld [vmem:[#allocation2 + $0xe0] sm:$0xff]  ;;  %5892 = vmatprep.mubr.f32.mxu1 %v8787_v57  ;;  %v2684_v29 = vpop.f32.mrb[42].mxu1 }
 0x416   : > { %4203 = vmatmul.mubr.f32.gmra.mrb[102].mxu0 %v8789_v33  ;;  %5893 = vmatmul.mubr.f32.gmra.mrb[78].mxu1 %v8794_v8  ;;  %v2983_v59 = vmax.f32 %v2905_v24, 0.0  ;;  %v6394_v13 = vadd.f32 %v8624_v31, %v2684_v29  ;;  %v2686_v12 = vpop.f32.mrb[43].mxu1 }
 0x417   : > { %v3112_v45 = vld [vmem:[#allocation2 + $0xf1] sm:$0xff] }
 0x418   : > { %v8799_v27 = vld [vmem:[#allocation2 + $0xf0] sm:$0xff]  ;;  %3016 = vst.msk [vmem:[#allocation2 + $0x109] sm:$0xff] %vm2995_vm5, %v2983_v59  ;;  %v2910_v25 = vadd.f32 %v6394_v13, %v8158_v18  ;;  %4207 = vmatprep.mubr.f32.mxu0 %v3112_v45 }
 0x419   : > { %v2689_v40 = vpop.f32.mrb[44].mxu1 }
 0x41a   : > { %4208 = vmatmul.mubr.f32.gmra.mrb[104].mxu0 %v8799_v27  ;;  %v2984_v53 = vmax.f32 %v2910_v25, 0.0  ;;  %v6395_v63 = vadd.f32 %v8624_v31, %v2689_v40  ;;  %v2691_v51 = vpop.f32.mrb[45].mxu1 }
 0x41b   : > { %v3113_v5 = vld [vmem:[#allocation2 + $0xf9] sm:$0xff] }
 0x41c   : > { %v8805_v30 = vld [vmem:[#allocation2 + $0xf2] sm:$0xff]  ;;  %3017 = vst.msk [vmem:[#allocation2 + $0x111] sm:$0xff] %vm2995_vm5, %v2984_v53  ;;  %v2915_v16 = vadd.f32 %v6395_v63, %v8175_v43  ;;  %4212 = vmatprep.mubr.f32.mxu0 %v3113_v5  ;;  %v8812_v18 = vld [vmem:[#allocation2 + $0xfa] sm:$0xff] }
 0x41d   : > { %v8807_v9 = vld [vmem:[#allocation2 + $0xf8] sm:$0xff]  ;;  %5895 = vmatprep.mubr.f32.mxu1 %v8805_v30  ;;  %v2694_v11 = vpop.f32.mrb[46].mxu1 }
 0x41e   : > { %4213 = vmatmul.mubr.f32.gmra.mrb[106].mxu0 %v8807_v9  ;;  %5896 = vmatmul.mubr.f32.gmra.mrb[80].mxu1 %v8812_v18  ;;  %v2985_v20 = vmax.f32 %v2915_v16, 0.0  ;;  %v6396_v0 = vadd.f32 %v8624_v31, %v2694_v11  ;;  %v2696_v24 = vpop.f32.mrb[47].mxu1 }
 0x41f   : > { %v8817_v29 = vld [vmem:[#allocation2 + $0x109] sm:$0xff] }
 0x420   : > { %9650 = vst [vmem:[#allocation16_spill] sm:$0xff] %v8817_v29  ;;  %v8819_v59 = vld [vmem:[#allocation2 + $0x108] sm:$0xff]  ;;  %3018 = vst.msk [vmem:[#allocation2 + $0x121] sm:$0xff] %vm2995_vm5, %v2985_v20  ;;  %v2920_v43 = vadd.f32 %v6396_v0, %v8172_v19  ;;  %4217 = vmatprep.mubr.f32.mxu0 %v8817_v29 }
 0x421   : > { %v2699_v13 = vpop.f32.mrb[48].mxu1 }
 0x422   : > { %4218 = vmatmul.mubr.f32.gmra.mrb[108].mxu0 %v8819_v59  ;;  %v2986_v12 = vmax.f32 %v2920_v43, 0.0  ;;  %v6397_v45 = vadd.f32 %v8624_v31, %v2699_v13  ;;  %v2701_v25 = vpop.f32.mrb[49].mxu1 }
 0x423   : > { %v8826_v40 = vld [vmem:[#allocation2 + $0x111] sm:$0xff] }
 0x424   : > { %9651 = vst [vmem:[#allocation15_spill] sm:$0xff] %v8826_v40  ;;  %v8828_v53 = vld [vmem:[#allocation2 + $0x10a] sm:$0xff]  ;;  %3019 = vst.msk [vmem:[#allocation2 + $0x129] sm:$0xff] %vm2995_vm5, %v2986_v12  ;;  %v2925_v51 = vadd.f32 %v6397_v45, %v8189_v46  ;;  %4222 = vmatprep.mubr.f32.mxu0 %v8826_v40  ;;  %v8836_v19 = vld [vmem:[#allocation2 + $0x112] sm:$0xff] }
 0x425   : > { %v8830_v63 = vld [vmem:[#allocation2 + $0x110] sm:$0xff]  ;;  %5898 = vmatprep.mubr.f32.mxu1 %v8828_v53  ;;  %v2704_v5 = vpop.f32.mrb[50].mxu1 }
 0x426   : > { %4223 = vmatmul.mubr.f32.gmra.mrb[110].mxu0 %v8830_v63  ;;  %5899 = vmatmul.mubr.f32.gmra.mrb[82].mxu1 %v8836_v19  ;;  %v2987_v16 = vmax.f32 %v2925_v51, 0.0  ;;  %v6398_v11 = vadd.f32 %v8624_v31, %v2704_v5  ;;  %v2706_v20 = vpop.f32.mrb[51].mxu1 }
 0x427   : > { %v8841_v0 = vld [vmem:[#allocation2 + $0x121] sm:$0xff] }
 0x428   : > { %9652 = vst [vmem:[#allocation18_spill] sm:$0xff] %v8841_v0  ;;  %v8843_v24 = vld [vmem:[#allocation2 + $0x120] sm:$0xff]  ;;  %3020 = vst.msk [vmem:[#allocation2 + $0x139] sm:$0xff] %vm2995_vm5, %v2987_v16  ;;  %v2930_v46 = vadd.f32 %v6398_v11, %v8186_v15  ;;  %4227 = vmatprep.mubr.f32.mxu0 %v8841_v0 }
 0x429   : > { %v2709_v43 = vpop.f32.mrb[52].mxu1  ;;  %v9654_v16 = vld [vmem:[#allocation17_spill] sm:$0xff] }
 0x42a   : > { %4228 = vmatmul.mubr.f32.gmra.mrb[112].mxu0 %v8843_v24  ;;  %v2988_v13 = vmax.f32 %v2930_v46, 0.0  ;;  %v6399_v12 = vadd.f32 %v8624_v31, %v2709_v43  ;;  %v2711_v45 = vpop.f32.mrb[53].mxu1 }
 0x42b   : > { %v8850_v25 = vld [vmem:[#allocation2 + $0x129] sm:$0xff] }
 0x42c   : > { %9653 = vst [vmem:[#allocation19_spill] sm:$0xff] %v8850_v25  ;;  %v8852_v51 = vld [vmem:[#allocation2 + $0x122] sm:$0xff]  ;;  %3021 = vst.msk [vmem:[#allocation2 + $0x141] sm:$0xff] %vm2995_vm5, %v2988_v13  ;;  %v2935_v20 = vadd.f32 %v6399_v12, %v9654_v16  ;;  %4232 = vmatprep.mubr.f32.mxu0 %v8850_v25  ;;  %v8860_v15 = vld [vmem:[#allocation2 + $0x12a] sm:$0xff] }
 0x42d   : > { %v8854_v5 = vld [vmem:[#allocation2 + $0x128] sm:$0xff]  ;;  %5901 = vmatprep.mubr.f32.mxu1 %v8852_v51  ;;  %9655 = vst [vmem:[#allocation20_spill] sm:$0xff] %v8860_v15  ;;  %v2714_v11 = vpop.f32.mrb[54].mxu1 }
 0x42e   : > { %4233 = vmatmul.mubr.f32.gmra.mrb[114].mxu0 %v8854_v5  ;;  %5902 = vmatmul.mubr.f32.gmra.mrb[84].mxu1 %v8860_v15  ;;  %v2989_v46 = vmax.f32 %v2935_v20, 0.0  ;;  %v6400_v43 = vadd.f32 %v8624_v31, %v2714_v11  ;;  %v2716_v45 = vpop.f32.mrb[55].mxu1  ;;  %v9657_v12 = vld [vmem:[#allocation14_spill] sm:$0xff] }
 0x42f   : > { %v8865_v0 = vld [vmem:[#allocation2 + $0x139] sm:$0xff] }
 0x430   : > { %9656 = vst [vmem:[#allocation21_spill] sm:$0xff] %v8865_v0  ;;  %v8867_v13 = vld [vmem:[#allocation2 + $0x138] sm:$0xff]  ;;  %3022 = vst.msk [vmem:[#allocation2 + $0x151] sm:$0xff] %vm2995_vm5, %v2989_v46  ;;  %v2940_v16 = vadd.f32 %v6400_v43, %v9657_v12  ;;  %4237 = vmatprep.mubr.f32.mxu0 %v8865_v0 }
 0x431   : > { %v2719_v25 = vpop.f32.mrb[56].mxu1 }
 0x432   : > { %4238 = vmatmul.mubr.f32.gmra.mrb[116].mxu0 %v8867_v13  ;;  %v2990_v40 = vmax.f32 %v2940_v16, 0.0  ;;  %v6401_v29 = vadd.f32 %v8624_v31, %v2719_v25  ;;  %v2721_v20 = vpop.f32.mrb[57].mxu1 }
 0x433   : > { %v8874_v15 = vld [vmem:[#allocation2 + $0x141] sm:$0xff] }
 0x434   : > { %9658 = vst [vmem:[#allocation22_spill] sm:$0xff] %v8874_v15  ;;  %v8876_v11 = vld [vmem:[#allocation2 + $0x13a] sm:$0xff]  ;;  %3023 = vst.msk [vmem:[#allocation2 + $0x159] sm:$0xff] %vm2995_vm5, %v2990_v40  ;;  %v2945_v46 = vadd.f32 %v6401_v29, %v8303_v54  ;;  %4242 = vmatprep.mubr.f32.mxu0 %v8874_v15  ;;  %v8884_v43 = vld [vmem:[#allocation2 + $0x142] sm:$0xff] }
 0x435   : > { %9659 = vst [vmem:[#allocation23_spill] sm:$0xff] %v8876_v11  ;;  %v8878_v45 = vld [vmem:[#allocation2 + $0x140] sm:$0xff]  ;;  %5904 = vmatprep.mubr.f32.mxu1 %v8876_v11  ;;  %9660 = vst [vmem:[#allocation24_spill] sm:$0xff] %v8884_v43  ;;  %v2724_v12 = vpop.f32.mrb[58].mxu1 }
 0x436   : > { %4243 = vmatmul.mubr.f32.gmra.mrb[118].mxu0 %v8878_v45  ;;  %5905 = vmatmul.mubr.f32.gmra.mrb[86].mxu1 %v8884_v43  ;;  %v2991_v25 = vmax.f32 %v2945_v46, 0.0  ;;  %v6402_v16 = vadd.f32 %v8624_v31, %v2724_v12  ;;  %v2726_v20 = vpop.f32.mrb[59].mxu1 }
 0x437   : > { %v8889_v0 = vld [vmem:[#allocation2 + $0x151] sm:$0xff] }
 0x438   : > { %9661 = vst [vmem:[#allocation25_spill] sm:$0xff] %v8889_v0  ;;  %v8891_v40 = vld [vmem:[#allocation2 + $0x150] sm:$0xff]  ;;  %3024 = vst.msk [vmem:[#allocation2 + $0x169] sm:$0xff] %vm2995_vm5, %v2991_v25  ;;  %v2950_v54 = vadd.f32 %v6402_v16, %v8301_v7  ;;  %4247 = vmatprep.mubr.f32.mxu0 %v8889_v0 }
 0x439   : > { %v2729_v29 = vpop.f32.mrb[60].mxu1 }
 0x43a   : > { %4248 = vmatmul.mubr.f32.gmra.mrb[120].mxu0 %v8891_v40  ;;  %v2992_v15 = vmax.f32 %v2950_v54, 0.0  ;;  %v6403_v43 = vadd.f32 %v8624_v31, %v2729_v29  ;;  %v2731_v46 = vpop.f32.mrb[61].mxu1 }
 0x43b   : > { %v8898_v11 = vld [vmem:[#allocation2 + $0x159] sm:$0xff] }
 0x43c   : > { %9662 = vst [vmem:[#allocation26_spill] sm:$0xff] %v8898_v11  ;;  %v8900_v12 = vld [vmem:[#allocation2 + $0x152] sm:$0xff]  ;;  %3025 = vst.msk [vmem:[#allocation2 + $0x171] sm:$0xff] %vm2995_vm5, %v2992_v15  ;;  %v2955_v25 = vadd.f32 %v6403_v43, %v8622_v47  ;;  %4252 = vmatprep.mubr.f32.mxu0 %v8898_v11  ;;  %v8908_v7 = vld [vmem:[#allocation2 + $0x15a] sm:$0xff] }
 0x43d   : > { %v8902_v20 = vld [vmem:[#allocation2 + $0x158] sm:$0xff]  ;;  %5907 = vmatprep.mubr.f32.mxu1 %v8900_v12  ;;  %v2734_v16 = vpop.f32.mrb[62].mxu1 }
 0x43e   : > { %4253 = vmatmul.mubr.f32.gmra.mrb[122].mxu0 %v8902_v20  ;;  %5908 = vmatmul.mubr.f32.gmra.mrb[88].mxu1 %v8908_v7  ;;  %v2993_v54 = vmax.f32 %v2955_v25, 0.0  ;;  %v6404_v29 = vadd.f32 %v8624_v31, %v2734_v16  ;;  %v2736_v46 = vpop.f32.mrb[63].mxu1  ;;  %v3956_v25 = vld [vmem:[%s9549_s5 + $0x200] sm:$0xff]  ;;  %v3957_v31 = vld [vmem:[%s9549_s5 + $0x208] sm:$0xff] }
 0x43f   : > { %v8913_v0 = vld [vmem:[#allocation2 + $0x169] sm:$0xff] }
 0x440   : > { %9663 = vst [vmem:[#allocation27_spill] sm:$0xff] %v8913_v0  ;;  %v8915_v15 = vld [vmem:[#allocation2 + $0x168] sm:$0xff]  ;;  %3026 = vst.msk [vmem:[#allocation2 + $0x181] sm:$0xff] %vm2995_vm5, %v2993_v54  ;;  %v2960_v47 = vadd.f32 %v6404_v29, %v8613_v32  ;;  %4257 = vmatprep.mubr.f32.mxu0 %v8913_v0  ;;  %v3958_v0 = vld [vmem:[%s9549_s5 + $0x210] sm:$0xff] }
 0x441   : > { %v3156_v29 = vld [vmem:[#allocation2 + $0x2] sm:$0xff] }
 0x442   : > { %4258 = vmatmul.mubr.f32.gmra.mrb[124].mxu0 %v8915_v15  ;;  %v2994_v43 = vmax.f32 %v2960_v47, 0.0  ;;  %v6246_v47 = vpack.c.bf16 %v3957_v31, %v3956_v25  ;;  %v3961_v31 = vld [vmem:[%s9549_s5 + $0x228] sm:$0xff] }
 0x443   : > { %v8927_v16 = vld [vmem:[#allocation2 + $0x171] sm:$0xff] }
 0x444   : > { %9664 = vst [vmem:[#allocation28_spill] sm:$0xff] %v8927_v16  ;;  %v8929_v46 = vld [vmem:[#allocation2 + $0x16a] sm:$0xff]  ;;  %3027 = vst.msk [vmem:[#allocation2 + $0x189] sm:$0xff] %vm2995_vm5, %v2994_v43  ;;  %4262 = vmatprep.mubr.f32.mxu0 %v8927_v16  ;;  %v8936_v32 = vld [vmem:[#allocation2 + $0x172] sm:$0xff] }
 0x445   : > { %v8931_v54 = vld [vmem:[#allocation2 + $0x170] sm:$0xff]  ;;  %5910 = vmatprep.mubr.f32.mxu1 %v8929_v46  ;;  %9665 = vst [vmem:[#allocation29_spill] sm:$0xff] %v8936_v32  ;;  %v3959_v43 = vld [vmem:[%s9549_s5 + $0x218] sm:$0xff] }
 0x446   : > { %4263 = vmatmul.mubr.f32.gmra.mrb[126].mxu0 %v8931_v54  ;;  %5911 = vmatmul.mubr.f32.gmra.mrb[90].mxu1 %v8936_v32  ;;  %v3157_v16 = vld [vmem:[#allocation2 + $0xa] sm:$0xff]  ;;  %v6249_v11 = vpack.c.bf16 %v3959_v43, %v3958_v0  ;;  %v8980_v43 = vld [vmem:[#allocation2 + $0x22] sm:$0xff] }
 0x447   : > { %4332 = vmatprep.mubr.f32.mxu0 %v8643_v49  ;;  %v3960_v49 = vld [vmem:[%s9549_s5 + $0x220] sm:$0xff]  ;;  %v3962_v0 = vld [vmem:[%s9549_s5 + $0x230] sm:$0xff] }
 0x44a   : > { %4333 = vmatmul.mubr.f32.vlgmr.msra.gmra.mrb[64].mxu0 %v3156_v29  ;;  %v3963_v29 = vld [vmem:[%s9549_s5 + $0x238] sm:$0xff] }
 0x44b   : > { %6247 = vmatpush1.bf16.msra.mxu0 %v6246_v47  ;;  %4337 = vmatprep.mubr.f32.mxu0 %v8649_v26  ;;  %v8951_v32 = vld [vmem:[#allocation2 + $0x182] sm:$0xff]  ;;  %v8953_v25 = vld [vmem:[#allocation2 + $0x18a] sm:$0xff]  ;;  %v6252_v26 = vpack.c.bf16 %v3961_v31, %v3960_v49  ;;  %v8969_v47 = vld [vmem:[#allocation2 + $0x1a] sm:$0xff] }
 0x44c   : > { %6248 = vmatprep.subr.bf16.mxu0 %v9626_v23  ;;  %5913 = vmatprep.mubr.f32.mxu1 %v8951_v32  ;;  %v3966_v49 = vld [vmem:[%s9549_s5 + $0x250] sm:$0xff]  ;;  %v3967_v31 = vld [vmem:[%s9549_s5 + $0x258] sm:$0xff] }
 0x44d   : > { %5914 = vmatmul.mubr.f32.gmra.mrb[92].mxu1 %v8953_v25 }
 0x44e   : > { %4338 = vmatmul.mubr.f32.gmra.mrb[66].mxu0 %v3157_v16  ;;  %v3965_v16 = vld [vmem:[%s9549_s5 + $0x248] sm:$0xff] }
 0x44f   : > { %4342 = vmatprep.mubr.f32.mxu0 %v8655_v60  ;;  %6250 = vmatpush1.bf16.msra.mxu0 %v6249_v11  ;;  %v6255_v60 = vpack.c.bf16 %v3963_v29, %v3962_v0  ;;  %v3964_v11 = vld [vmem:[%s9549_s5 + $0x240] sm:$0xff]  ;;  %v3969_v0 = vld [vmem:[%s9549_s5 + $0x268] sm:$0xff]  ;;  %v3971_v29 = vld [vmem:[%s9549_s5 + $0x278] sm:$0xff] }
 0x450   : > { %6251 = vmatprep.subr.bf16.mxu0 %v9626_v23 }
 0x452   : > { %4343 = vmatmul.mubr.f32.gmra.mrb[68].mxu0 %v8969_v47 }
 0x453   : > { %4347 = vmatprep.mubr.f32.mxu0 %v8663_v39  ;;  %6253 = vmatpush1.bf16.msra.mxu0 %v6252_v26  ;;  %v6258_v39 = vpack.c.bf16 %v3965_v16, %v3964_v11  ;;  %v6261_v26 = vpack.c.bf16 %v3967_v31, %v3966_v49  ;;  %v3975_v11 = vld [vmem:[%s9549_s5 + $0x298] sm:$0xff]  ;;  %v3977_v16 = vld [vmem:[%s9549_s5 + $0x2a8] sm:$0xff] }
 0x454   : > { %6254 = vmatprep.subr.bf16.mxu0 %v9626_v23  ;;  %v3981_v49 = vld [vmem:[%s9549_s5 + $0x2c8] sm:$0xff]  ;;  %v3983_v31 = vld [vmem:[%s9549_s5 + $0x2d8] sm:$0xff] }
 0x456   : > { %4348 = vmatmul.mubr.f32.gmra.mrb[70].mxu0 %v8980_v43 }
 0x457   : > { %4352 = vmatprep.mubr.f32.mxu0 %v8673_v14  ;;  %6256 = vmatpush1.bf16.msra.mxu0 %v6255_v60  ;;  %v3968_v14 = vld [vmem:[%s9549_s5 + $0x260] sm:$0xff]  ;;  %v3973_v60 = vld [vmem:[%s9549_s5 + $0x288] sm:$0xff] }
 0x458   : > { %6257 = vmatprep.subr.bf16.mxu0 %v9626_v23 }
 0x45a   : > { %4353 = vmatmul.mubr.f32.gmra.mrb[72].mxu0 %v8661_v17  ;;  %v6264_v17 = vpack.c.bf16 %v3969_v0, %v3968_v14  ;;  %v3987_v14 = vld [vmem:[%s9549_s5 + $0x2f8] sm:$0xff]  ;;  %v3285_v0 = vld [vmem:[#allocation2 + $0x21] sm:$0xff] }
 0x45b   : > { %4357 = vmatprep.mubr.f32.mxu0 %v8681_v22  ;;  %6259 = vmatpush1.bf16.msra.mxu0 %v6258_v39  ;;  %v3970_v22 = vld [vmem:[%s9549_s5 + $0x270] sm:$0xff]  ;;  %v3979_v39 = vld [vmem:[%s9549_s5 + $0x2b8] sm:$0xff] }
 0x45c   : > { %6260 = vmatprep.subr.bf16.mxu0 %v9626_v23 }
 0x45e   : > { %4358 = vmatmul.mubr.f32.gmra.mrb[74].mxu0 %v8668_v3  ;;  %v6267_v3 = vpack.c.bf16 %v3971_v29, %v3970_v22  ;;  %v3995_v29 = vld [vmem:[%s9549_s5 + $0x338] sm:$0xff] }
 0x45f   : > { %4362 = vmatprep.mubr.f32.mxu0 %v8691_v34  ;;  %6262 = vmatpush1.bf16.msra.mxu0 %v6261_v26  ;;  %v3972_v34 = vld [vmem:[%s9549_s5 + $0x280] sm:$0xff]  ;;  %v3985_v26 = vld [vmem:[%s9549_s5 + $0x2e8] sm:$0xff] }
 0x460   : > { %6263 = vmatprep.subr.bf16.mxu0 %v9626_v23 }
 0x462   : > { %4363 = vmatmul.mubr.f32.gmra.mrb[76].mxu0 %v8679_v6  ;;  %v6270_v6 = vpack.c.bf16 %v3973_v60, %v3972_v34  ;;  %v9168_v34 = vld [vmem:[#allocation2 + $0x31] sm:$0xff] }
 0x463   : > { %4367 = vmatprep.mubr.f32.mxu0 %v8699_v62  ;;  %6265 = vmatpush1.bf16.msra.mxu0 %v6264_v17  ;;  %v3974_v62 = vld [vmem:[%s9549_s5 + $0x290] sm:$0xff] }
 0x464   : > { %6266 = vmatprep.subr.bf16.mxu0 %v9626_v23  ;;  %v3350_v17 = vld [vmem:[#allocation2 + $0x32] sm:$0xff] }
 0x466   : > { %4368 = vmatmul.mubr.f32.gmra.mrb[78].mxu0 %v8686_v36  ;;  %v6273_v36 = vpack.c.bf16 %v3975_v11, %v3974_v62  ;;  %v3996_v11 = vld [vmem:[%s9549_s5 + $0x340] sm:$0xff] }
 0x467   : > { %4372 = vmatprep.mubr.f32.mxu0 %v8709_v38  ;;  %6268 = vmatpush1.bf16.msra.mxu0 %v6267_v3  ;;  %v3976_v38 = vld [vmem:[%s9549_s5 + $0x2a0] sm:$0xff] }
 0x468   : > { %6269 = vmatprep.subr.bf16.mxu0 %v9626_v23 }
 0x46a   : > { %4373 = vmatmul.mubr.f32.gmra.mrb[80].mxu0 %v8697_v28  ;;  %v6276_v28 = vpack.c.bf16 %v3977_v16, %v3976_v38  ;;  %v9180_v38 = vld [vmem:[#allocation2 + $0x39] sm:$0xff]  ;;  %v3352_v16 = vld [vmem:[#allocation2 + $0x4a] sm:$0xff] }
 0x46b   : > { %4377 = vmatprep.mubr.f32.mxu0 %v8717_v2  ;;  %6271 = vmatpush1.bf16.msra.mxu0 %v6270_v6  ;;  %v3978_v2 = vld [vmem:[%s9549_s5 + $0x2b0] sm:$0xff]  ;;  %v3351_v6 = vld [vmem:[#allocation2 + $0x3a] sm:$0xff] }
 0x46c   : > { %6272 = vmatprep.subr.bf16.mxu0 %v9626_v23 }
 0x46e   : > { %4378 = vmatmul.mubr.f32.gmra.mrb[82].mxu0 %v8704_v44  ;;  %v6279_v44 = vpack.c.bf16 %v3979_v39, %v3978_v2  ;;  %v3998_v2 = vld [vmem:[%s9549_s5 + $0x350] sm:$0xff]  ;;  %v3999_v39 = vld [vmem:[%s9549_s5 + $0x358] sm:$0xff] }
 0x46f   : > { %4382 = vmatprep.mubr.f32.mxu0 %v8727_v50  ;;  %6274 = vmatpush1.bf16.msra.mxu0 %v6273_v36  ;;  %v3980_v50 = vld [vmem:[%s9549_s5 + $0x2c0] sm:$0xff]  ;;  %v3997_v36 = vld [vmem:[%s9549_s5 + $0x348] sm:$0xff] }
 0x470   : > { %6275 = vmatprep.subr.bf16.mxu0 %v9626_v23 }
 0x472   : > { %4383 = vmatmul.mubr.f32.gmra.mrb[84].mxu0 %v8715_v35  ;;  %v6282_v35 = vpack.c.bf16 %v3981_v49, %v3980_v50  ;;  %v9192_v50 = vld [vmem:[#allocation2 + $0x49] sm:$0xff] }
 0x473   : > { %4387 = vmatprep.mubr.f32.mxu0 %v8735_v41  ;;  %6277 = vmatpush1.bf16.msra.mxu0 %v6276_v28  ;;  %v3982_v41 = vld [vmem:[%s9549_s5 + $0x2d0] sm:$0xff]  ;;  %v6306_v28 = vpack.c.bf16 %v3997_v36, %v3996_v11  ;;  %v4008_v11 = vld [vmem:[%s9549_s5 + $0x3a0] sm:$0xff]  ;;  %v4009_v36 = vld [vmem:[%s9549_s5 + $0x3a8] sm:$0xff] }
 0x474   : > { %6278 = vmatprep.subr.bf16.mxu0 %v9626_v23 }
 0x476   : > { %4388 = vmatmul.mubr.f32.gmra.mrb[86].mxu0 %v8722_v58  ;;  %v6285_v58 = vpack.c.bf16 %v3983_v31, %v3982_v41  ;;  %v6309_v41 = vpack.c.bf16 %v3999_v39, %v3998_v2  ;;  %v4000_v31 = vld [vmem:[%s9549_s5 + $0x360] sm:$0xff]  ;;  %v6324_v2 = vpack.c.bf16 %v4009_v36, %v4008_v11  ;;  %v4010_v39 = vld [vmem:[%s9549_s5 + $0x3b0] sm:$0xff]  ;;  %v4017_v36 = vld [vmem:[%s9549_s5 + $0x3e8] sm:$0xff] }
 0x477   : > { %4392 = vmatprep.mubr.f32.mxu0 %v8745_v61  ;;  %6280 = vmatpush1.bf16.msra.mxu0 %v6279_v44  ;;  %v3984_v61 = vld [vmem:[%s9549_s5 + $0x2e0] sm:$0xff] }
 0x478   : > { %6281 = vmatprep.subr.bf16.mxu0 %v9626_v23  ;;  %v4016_v11 = vld [vmem:[%s9549_s5 + $0x3e0] sm:$0xff] }
 0x47a   : > { %4393 = vmatmul.mubr.f32.gmra.mrb[88].mxu0 %v8733_v52  ;;  %v6288_v52 = vpack.c.bf16 %v3985_v26, %v3984_v61  ;;  %v9204_v61 = vld [vmem:[#allocation2 + $0x51] sm:$0xff]  ;;  %v3354_v26 = vld [vmem:[#allocation2 + $0x62] sm:$0xff] }
 0x47b   : > { %4397 = vmatprep.mubr.f32.mxu0 %v8753_v10  ;;  %6283 = vmatpush1.bf16.msra.mxu0 %v6282_v35  ;;  %v3986_v10 = vld [vmem:[%s9549_s5 + $0x2f0] sm:$0xff] }
 0x47c   : > { %6284 = vmatprep.subr.bf16.mxu0 %v9626_v23  ;;  %v3353_v35 = vld [vmem:[#allocation2 + $0x52] sm:$0xff] }
 0x47e   : > { %4398 = vmatmul.mubr.f32.gmra.mrb[90].mxu0 %v8740_v4  ;;  %v6291_v4 = vpack.c.bf16 %v3987_v14, %v3986_v10  ;;  %v4002_v10 = vld [vmem:[%s9549_s5 + $0x370] sm:$0xff]  ;;  %v4003_v14 = vld [vmem:[%s9549_s5 + $0x378] sm:$0xff] }
 0x47f   : > { %4402 = vmatprep.mubr.f32.mxu0 %v8763_v1  ;;  %6286 = vmatpush1.bf16.msra.mxu0 %v6285_v58  ;;  %v9667_v1 = vld [vmem:[#allocation23_spill] sm:$0xff] }
 0x480   : > { %6287 = vmatprep.subr.bf16.mxu0 %v9626_v23  ;;  %v4001_v58 = vld [vmem:[%s9549_s5 + $0x368] sm:$0xff] }
 0x482   : > { %4403 = vmatmul.mubr.f32.gmra.mrb[92].mxu0 %v8751_v21  ;;  %v9666_v21 = vld [vmem:[#allocation20_spill] sm:$0xff] }
 0x483   : > { %4407 = vmatprep.mubr.f32.mxu0 %v8771_v37  ;;  %6289 = vmatpush1.bf16.msra.mxu0 %v6288_v52  ;;  %v9668_v37 = vld [vmem:[#allocation24_spill] sm:$0xff]  ;;  %v6312_v52 = vpack.c.bf16 %v4001_v58, %v4000_v31 }
 0x484   : > { %6290 = vmatprep.subr.bf16.mxu0 %v9626_v23  ;;  %v9264_v31 = vld [vmem:[#allocation2 + $0x91] sm:$0xff] }
 0x486   : > { %4408 = vmatmul.mubr.f32.gmra.mrb[94].mxu0 %v8758_v48 }
 0x487   : > { %4412 = vmatprep.mubr.f32.mxu0 %v8781_v42  ;;  %6292 = vmatpush1.bf16.msra.mxu0 %v6291_v4 }
 0x488   : > { %6293 = vmatprep.subr.bf16.mxu0 %v9626_v23 }
 0x48a   : > { %4413 = vmatmul.mubr.f32.gmra.mrb[96].mxu0 %v8769_v56 }
 0x48b   : > { %4417 = vmatprep.mubr.f32.mxu0 %v8789_v33 }
 0x48e   : > { %4418 = vmatmul.mubr.f32.gmra.mrb[98].mxu0 %v8776_v55 }
 0x48f   : > { %4422 = vmatprep.mubr.f32.mxu0 %v8799_v27  ;;  %v9130_v27 = vld [vmem:[#allocation2 + $0x188] sm:$0xff] }
 0x492   : > { %4423 = vmatmul.mubr.f32.gmra.mrb[100].mxu0 %v8787_v57  ;;  %v9122_v57 = vld [vmem:[#allocation2 + $0x180] sm:$0xff] }
 0x493   : > { %4427 = vmatprep.mubr.f32.mxu0 %v8807_v9  ;;  %v3988_v9 = vld [vmem:[%s9549_s5 + $0x300] sm:$0xff] }
 0x496   : > { %4428 = vmatmul.mubr.f32.gmra.mrb[102].mxu0 %v8794_v8 }
 0x497   : > { %4432 = vmatprep.mubr.f32.mxu0 %v8819_v59  ;;  %v3989_v59 = vld [vmem:[%s9549_s5 + $0x308] sm:$0xff] }
 0x49a   : > { %4433 = vmatmul.mubr.f32.gmra.mrb[104].mxu0 %v8805_v30 }
 0x49b   : > { %4437 = vmatprep.mubr.f32.mxu0 %v8830_v63  ;;  %v9669_v63 = vld [vmem:[#allocation29_spill] sm:$0xff] }
 0x49e   : > { %4438 = vmatmul.mubr.f32.gmra.mrb[106].mxu0 %v8812_v18 }
 0x49f   : > { %4442 = vmatprep.mubr.f32.mxu0 %v8843_v24  ;;  %v6294_v24 = vpack.c.bf16 %v3989_v59, %v3988_v9  ;;  %v9216_v9 = vld [vmem:[#allocation2 + $0x61] sm:$0xff] }
 0x4a2   : > { %4443 = vmatmul.mubr.f32.gmra.mrb[108].mxu0 %v8828_v53 }
 0x4a3   : > { %4447 = vmatprep.mubr.f32.mxu0 %v8854_v5  ;;  %v3990_v5 = vld [vmem:[%s9549_s5 + $0x310] sm:$0xff] }
 0x4a6   : > { %4448 = vmatmul.mubr.f32.gmra.mrb[110].mxu0 %v8836_v19 }
 0x4a7   : > { %4452 = vmatprep.mubr.f32.mxu0 %v8867_v13  ;;  %v3991_v13 = vld [vmem:[%s9549_s5 + $0x318] sm:$0xff] }
 0x4aa   : > { %4453 = vmatmul.mubr.f32.gmra.mrb[112].mxu0 %v8852_v51 }
 0x4ab   : > { %4457 = vmatprep.mubr.f32.mxu0 %v8878_v45 }
 0x4ae   : > { %4458 = vmatmul.mubr.f32.gmra.mrb[114].mxu0 %v9666_v21 }
 0x4af   : > { %4462 = vmatprep.mubr.f32.mxu0 %v8891_v40  ;;  %v3284_v40 = vld [vmem:[#allocation2 + $0x19] sm:$0xff] }
 0x4b1   : > { %v9107_v48 = vpop.f32.mrb[64].mxu1 }
 0x4b2   : > { %4463 = vmatmul.mubr.f32.gmra.mrb[116].mxu0 %v9667_v1  ;;  %v9110_v56 = vpop.f32.mrb[65].mxu1 }
 0x4b3   : > { %4467 = vmatprep.mubr.f32.mxu0 %v8902_v20 }
 0x4b6   : > { %4468 = vmatmul.mubr.f32.gmra.mrb[118].mxu0 %v9668_v37 }
 0x4b7   : > { %4472 = vmatprep.mubr.f32.mxu0 %v8915_v15  ;;  %v6297_v15 = vpack.c.bf16 %v3991_v13, %v3990_v5  ;;  %v6315_v5 = vpack.c.bf16 %v4003_v14, %v4002_v10  ;;  %v4004_v13 = vld [vmem:[%s9549_s5 + $0x380] sm:$0xff]  ;;  %v4013_v14 = vld [vmem:[%s9549_s5 + $0x3c8] sm:$0xff] }
 0x4b8   : > { %v4012_v10 = vld [vmem:[%s9549_s5 + $0x3c0] sm:$0xff] }
 0x4b9   : > { %v9115_v55 = vpop.f32.mrb[66].mxu1 }
 0x4ba   : > { %4473 = vmatmul.mubr.f32.gmra.mrb[120].mxu0 %v8900_v12  ;;  %v9118_v42 = vpop.f32.mrb[67].mxu1 }
 0x4bb   : > { %4477 = vmatprep.mubr.f32.mxu0 %v8931_v54  ;;  %v3992_v54 = vld [vmem:[%s9549_s5 + $0x320] sm:$0xff] }
 0x4be   : > { %4478 = vmatmul.mubr.f32.gmra.mrb[122].mxu0 %v8908_v7 }
 0x4bf   : > { %4482 = vmatprep.mubr.f32.mxu0 %v9122_v57 }
 0x4c1   : > { %v9125_v33 = vpop.f32.mrb[68].mxu1 }
 0x4c2   : > { %4483 = vmatmul.mubr.f32.gmra.mrb[124].mxu0 %v8929_v46  ;;  %v9128_v8 = vpop.f32.mrb[69].mxu1 }
 0x4c3   : > { %4487 = vmatprep.mubr.f32.mxu0 %v9130_v27 }
 0x4c6   : > { %4488 = vmatmul.mubr.f32.gmra.mrb[126].mxu0 %v9669_v63 }
 0x4c7   : > { %4557 = vmatprep.mubr.f32.mxu0 %v8969_v47  ;;  %v3993_v47 = vld [vmem:[%s9549_s5 + $0x328] sm:$0xff] }
 0x4c8   : > { %v6300_v22 = vpack.c.bf16 %v3993_v47, %v3992_v54  ;;  %v3356_v54 = vld [vmem:[#allocation2 + $0x7a] sm:$0xff] }
 0x4c9   : > { %v9147_v45 = vpop.f32.mrb[70].mxu1 }
 0x4ca   : > { %4558 = vmatmul.mubr.f32.vlgmr.msra.gmra.mrb[64].mxu0 %v3284_v40  ;;  %v9149_v20 = vpop.f32.mrb[71].mxu1  ;;  %v4005_v40 = vld [vmem:[%s9549_s5 + $0x388] sm:$0xff] }
 0x4cb   : > { %6295 = vmatpush1.bf16.msra.mxu0 %v6294_v24  ;;  %4562 = vmatprep.mubr.f32.mxu0 %v8980_v43  ;;  %v3994_v43 = vld [vmem:[%s9549_s5 + $0x330] sm:$0xff]  ;;  %v6318_v47 = vpack.c.bf16 %v4005_v40, %v4004_v13  ;;  %v6330_v13 = vpack.c.bf16 %v4013_v14, %v4012_v10  ;;  %v9312_v10 = vld [vmem:[#allocation2 + $0xc1] sm:$0xff] }
 0x4cc   : > { %6296 = vmatprep.subr.bf16.mxu0 %v9626_v23  ;;  %v6303_v62 = vpack.c.bf16 %v3995_v29, %v3994_v43  ;;  %v3355_v24 = vld [vmem:[#allocation2 + $0x6a] sm:$0xff]  ;;  %v9240_v43 = vld [vmem:[#allocation2 + $0x79] sm:$0xff] }
 0x4cd   : > { %v4014_v40 = vld [vmem:[%s9549_s5 + $0x3d0] sm:$0xff] }
 0x4ce   : > { %4563 = vmatmul.mubr.f32.gmra.mrb[66].mxu0 %v3285_v0  ;;  %v4006_v0 = vld [vmem:[%s9549_s5 + $0x390] sm:$0xff] }
 0x4cf   : > { %4567 = vmatprep.mubr.f32.mxu0 %v3350_v17  ;;  %6298 = vmatpush1.bf16.msra.mxu0 %v6297_v15  ;;  %v9228_v15 = vld [vmem:[#allocation2 + $0x69] sm:$0xff]  ;;  %v4007_v17 = vld [vmem:[%s9549_s5 + $0x398] sm:$0xff] }
 0x4d0   : > { %6299 = vmatprep.subr.bf16.mxu0 %v9626_v23 }
 0x4d1   : > { %v9166_v3 = vpop.f32.mrb[72].mxu1 }
 0x4d2   : > { %4568 = vmatmul.mubr.f32.gmra.mrb[68].mxu0 %v9168_v34  ;;  %v9171_v60 = vpop.f32.mrb[73].mxu1 }
 0x4d3   : > { %4572 = vmatprep.mubr.f32.mxu0 %v3351_v6  ;;  %6301 = vmatpush1.bf16.msra.mxu0 %v6300_v22  ;;  %v3357_v6 = vld [vmem:[#allocation2 + $0x82] sm:$0xff] }
 0x4d4   : > { %6302 = vmatprep.subr.bf16.mxu0 %v9626_v23 }
 0x4d6   : > { %4573 = vmatmul.mubr.f32.gmra.mrb[70].mxu0 %v9180_v38 }
 0x4d7   : > { %4577 = vmatprep.mubr.f32.mxu0 %v3352_v16  ;;  %6304 = vmatpush1.bf16.msra.mxu0 %v6303_v62  ;;  %v6321_v62 = vpack.c.bf16 %v4007_v17, %v4006_v0  ;;  %v9252_v16 = vld [vmem:[#allocation2 + $0x81] sm:$0xff]  ;;  %v9288_v0 = vld [vmem:[#allocation2 + $0xa9] sm:$0xff] }
 0x4d8   : > { %6305 = vmatprep.subr.bf16.mxu0 %v9626_v23 }
 0x4d9   : > { %v9190_v44 = vpop.f32.mrb[74].mxu1 }
 0x4da   : > { %4578 = vmatmul.mubr.f32.gmra.mrb[72].mxu0 %v9192_v50  ;;  %v9195_v49 = vpop.f32.mrb[75].mxu1 }
 0x4db   : > { %4582 = vmatprep.mubr.f32.mxu0 %v3353_v35  ;;  %6307 = vmatpush1.bf16.msra.mxu0 %v6306_v28  ;;  %v3358_v28 = vld [vmem:[#allocation2 + $0x92] sm:$0xff] }
 0x4dc   : > { %6308 = vmatprep.subr.bf16.mxu0 %v9626_v23  ;;  %v4011_v35 = vld [vmem:[%s9549_s5 + $0x3b8] sm:$0xff] }
 0x4de   : > { %4583 = vmatmul.mubr.f32.gmra.mrb[74].mxu0 %v9204_v61 }
 0x4df   : > { %4587 = vmatprep.mubr.f32.mxu0 %v3354_v26  ;;  %6310 = vmatpush1.bf16.msra.mxu0 %v6309_v41  ;;  %v3359_v26 = vld [vmem:[#allocation2 + $0x9a] sm:$0xff] }
 0x4e0   : > { %6311 = vmatprep.subr.bf16.mxu0 %v9626_v23 }
 0x4e1   : > { %v9214_v4 = vpop.f32.mrb[76].mxu1 }
 0x4e2   : > { %4588 = vmatmul.mubr.f32.gmra.mrb[76].mxu0 %v9216_v9  ;;  %v9219_v59 = vpop.f32.mrb[77].mxu1 }
 0x4e3   : > { %4592 = vmatprep.mubr.f32.mxu0 %v3355_v24  ;;  %6313 = vmatpush1.bf16.msra.mxu0 %v6312_v52  ;;  %v6327_v52 = vpack.c.bf16 %v4011_v35, %v4010_v39  ;;  %v9276_v24 = vld [vmem:[#allocation2 + $0x99] sm:$0xff]  ;;  %v6336_v39 = vpack.c.bf16 %v4017_v36, %v4016_v11  ;;  %v4018_v35 = vld [vmem:[%s9549_s5 + $0x3f0] sm:$0xff]  ;;  %v3365_v36 = vld [vmem:[#allocation2 + $0xe2] sm:$0xff] }
 0x4e4   : > { %6314 = vmatprep.subr.bf16.mxu0 %v9626_v23 }
 0x4e6   : > { %4593 = vmatmul.mubr.f32.gmra.mrb[78].mxu0 %v9228_v15 }
 0x4e7   : > { %4597 = vmatprep.mubr.f32.mxu0 %v3356_v54  ;;  %6316 = vmatpush1.bf16.msra.mxu0 %v6315_v5  ;;  %v3360_v5 = vld [vmem:[#allocation2 + $0xaa] sm:$0xff]  ;;  %v4015_v54 = vld [vmem:[%s9549_s5 + $0x3d8] sm:$0xff] }
 0x4e8   : > { %6317 = vmatprep.subr.bf16.mxu0 %v9626_v23 }
 0x4e9   : > { %v9238_v22 = vpop.f32.mrb[78].mxu1 }
 0x4ea   : > { %4598 = vmatmul.mubr.f32.gmra.mrb[80].mxu0 %v9240_v43  ;;  %v9243_v29 = vpop.f32.mrb[79].mxu1 }
 0x4eb   : > { %4602 = vmatprep.mubr.f32.mxu0 %v3357_v6  ;;  %6319 = vmatpush1.bf16.msra.mxu0 %v6318_v47  ;;  %v3361_v6 = vld [vmem:[#allocation2 + $0xb2] sm:$0xff] }
 0x4ec   : > { %6320 = vmatprep.subr.bf16.mxu0 %v9626_v23 }
 0x4ee   : > { %4603 = vmatmul.mubr.f32.gmra.mrb[82].mxu0 %v9252_v16 }
 0x4ef   : > { %4607 = vmatprep.mubr.f32.mxu0 %v3358_v28  ;;  %6322 = vmatpush1.bf16.msra.mxu0 %v6321_v62  ;;  %v6333_v62 = vpack.c.bf16 %v4015_v54, %v4014_v40  ;;  %v9300_v28 = vld [vmem:[#allocation2 + $0xb1] sm:$0xff]  ;;  %v9318_v40 = vld [vmem:[#allocation2 + $0xc9] sm:$0xff]  ;;  %v3364_v54 = vld [vmem:[#allocation2 + $0xda] sm:$0xff] }
 0x4f0   : > { %6323 = vmatprep.subr.bf16.mxu0 %v9626_v23 }
 0x4f1   : > { %v9262_v41 = vpop.f32.mrb[80].mxu1 }
 0x4f2   : > { %4608 = vmatmul.mubr.f32.gmra.mrb[84].mxu0 %v9264_v31  ;;  %v9267_v58 = vpop.f32.mrb[81].mxu1 }
 0x4f3   : > { %4612 = vmatprep.mubr.f32.mxu0 %v3359_v26  ;;  %6325 = vmatpush1.bf16.msra.mxu0 %v6324_v2  ;;  %v3362_v2 = vld [vmem:[#allocation2 + $0xc2] sm:$0xff]  ;;  %v4019_v26 = vld [vmem:[%s9549_s5 + $0x3f8] sm:$0xff] }
 0x4f4   : > { %6326 = vmatprep.subr.bf16.mxu0 %v9626_v23 }
 0x4f6   : > { %4613 = vmatmul.mubr.f32.gmra.mrb[86].mxu0 %v9276_v24 }
 0x4f7   : > { %4617 = vmatprep.mubr.f32.mxu0 %v3360_v5  ;;  %6328 = vmatpush1.bf16.msra.mxu0 %v6327_v52  ;;  %v3363_v5 = vld [vmem:[#allocation2 + $0xca] sm:$0xff] }
 0x4f8   : > { %6329 = vmatprep.subr.bf16.mxu0 %v9626_v23 }
 0x4f9   : > { %v9286_v47 = vpop.f32.mrb[82].mxu1 }
 0x4fa   : > { %4618 = vmatmul.mubr.f32.gmra.mrb[88].mxu0 %v9288_v0  ;;  %v9291_v17 = vpop.f32.mrb[83].mxu1 }
 0x4fb   : > { %4622 = vmatprep.mubr.f32.mxu0 %v3361_v6  ;;  %6331 = vmatpush1.bf16.msra.mxu0 %v6330_v13  ;;  %v6339_v13 = vpack.c.bf16 %v4019_v26, %v4018_v35  ;;  %v9340_v26 = vld [vmem:[#allocation2 + $0xf9] sm:$0xff] }
 0x4fc   : > { %6332 = vmatprep.subr.bf16.mxu0 %v9626_v23 }
 0x4fe   : > { %4623 = vmatmul.mubr.f32.gmra.mrb[90].mxu0 %v9300_v28 }
 0x4ff   : > { %4627 = vmatprep.mubr.f32.mxu0 %v3362_v2  ;;  %6334 = vmatpush1.bf16.msra.mxu0 %v6333_v62  ;;  %v9323_v62 = vld [vmem:[#allocation2 + $0xd9] sm:$0xff]  ;;  %v9328_v2 = vld [vmem:[#allocation2 + $0xe1] sm:$0xff] }
 0x500   : > { %6335 = vmatprep.subr.bf16.mxu0 %v9626_v23 }
 0x501   : > { %v9310_v52 = vpop.f32.mrb[84].mxu1 }
 0x502   : > { %4628 = vmatmul.mubr.f32.gmra.mrb[92].mxu0 %v9312_v10  ;;  %v9315_v14 = vpop.f32.mrb[85].mxu1 }
 0x503   : > { %4632 = vmatprep.mubr.f32.mxu0 %v3363_v5  ;;  %6337 = vmatpush1.bf16.msra.mxu0 %v6336_v39  ;;  %v9334_v39 = vld [vmem:[#allocation2 + $0xf1] sm:$0xff] }
 0x504   : > { %6338 = vmatprep.subr.bf16.mxu0 %v9626_v23 }
 0x506   : > { %4633 = vmatmul.mubr.f32.gmra.mrb[94].mxu0 %v9318_v40 }
 0x507   : > { %4637 = vmatprep.mubr.f32.mxu0 %v3364_v54  ;;  %6340 = vmatpush1.bf16.msra.mxu0 %v6339_v13  ;;  %v9671_v13 = vld [vmem:[#allocation16_spill] sm:$0xff]  ;;  %v9672_v54 = vld [vmem:[#allocation15_spill] sm:$0xff] }
 0x509   : > { %v9321_v6 = vpop.f32.mrb[86].mxu1 }
 0x50a   : > { %4638 = vmatmul.mubr.f32.gmra.mrb[96].mxu0 %v9323_v62  ;;  %v9326_v11 = vpop.f32.mrb[87].mxu1 }
 0x50b   : > { %4642 = vmatprep.mubr.f32.mxu0 %v3365_v36 }
 0x50e   : > { %4643 = vmatmul.mubr.f32.gmra.mrb[98].mxu0 %v9328_v2 }
 0x50f   : > { %4647 = vmatprep.mubr.f32.mxu0 %v8805_v30 }
 0x511   : > { %v9332_v23 = vpop.f32.mrb[88].mxu1 }
 0x512   : > { %9670 = vst [vmem:[#allocation30_spill] sm:$0xff] %v9332_v23  ;;  %4648 = vmatmul.mubr.f32.gmra.mrb[100].mxu0 %v9334_v39  ;;  %v9337_v35 = vpop.f32.mrb[89].mxu1 }
 0x513   : > { %4652 = vmatprep.mubr.f32.mxu0 %v8812_v18  ;;  %v9673_v18 = vld [vmem:[#allocation18_spill] sm:$0xff] }
 0x516   : > { %4653 = vmatmul.mubr.f32.gmra.mrb[102].mxu0 %v9340_v26 }
 0x517   : > { %4657 = vmatprep.mubr.f32.mxu0 %v8828_v53  ;;  %v9674_v53 = vld [vmem:[#allocation19_spill] sm:$0xff] }
 0x519   : > { %v9344_v5 = vpop.f32.mrb[90].mxu1 }
 0x51a   : > { %4658 = vmatmul.mubr.f32.gmra.mrb[104].mxu0 %v9671_v13  ;;  %v9347_v30 = vpop.f32.mrb[91].mxu1  ;;  %v9675_v13 = vld [vmem:[#allocation21_spill] sm:$0xff] }
 0x51b   : > { %4662 = vmatprep.mubr.f32.mxu0 %v8836_v19  ;;  %v9676_v19 = vld [vmem:[#allocation22_spill] sm:$0xff] }
 0x51e   : > { %4663 = vmatmul.mubr.f32.gmra.mrb[106].mxu0 %v9672_v54  ;;  %v9678_v54 = vld [vmem:[#allocation26_spill] sm:$0xff] }
 0x51f   : > { %4667 = vmatprep.mubr.f32.mxu0 %v8852_v51  ;;  %v9677_v51 = vld [vmem:[#allocation25_spill] sm:$0xff] }
 0x520   : > { %v9352_v36 = vpop.f32.mrb[92].mxu1 }
 0x521   : > { %v9355_v23 = vpop.f32.mrb[93].mxu1 }
 0x522   : > { %4668 = vmatmul.mubr.f32.gmra.mrb[108].mxu0 %v9673_v18  ;;  %v3571_v18 = vld [vmem:[#allocation2 + $0x1a2] sm:$0xff] }
 0x523   : > { %4672 = vmatprep.mubr.f32.mxu0 %v9666_v21  ;;  %v9679_v21 = vld [vmem:[#allocation27_spill] sm:$0xff] }
 0x526   : > { %4673 = vmatmul.mubr.f32.gmra.mrb[110].mxu0 %v9674_v53  ;;  %v3416_v53 = vld [vmem:[#allocation2 + $0x60] sm:$0xff] }
 0x527   : > { %4677 = vmatprep.mubr.f32.mxu0 %v9667_v1  ;;  %v9680_v1 = vld [vmem:[#allocation28_spill] sm:$0xff] }
 0x52a   : > { %4678 = vmatmul.mubr.f32.gmra.mrb[112].mxu0 %v9675_v13  ;;  %v3494_v13 = vld [vmem:[#allocation2 + $0x109] sm:$0xff] }
 0x52b   : > { %4682 = vmatprep.mubr.f32.mxu0 %v9668_v37  ;;  %v9372_v37 = vld [vmem:[#allocation2 + $0x181] sm:$0xff] }
 0x52e   : > { %4683 = vmatmul.mubr.f32.gmra.mrb[114].mxu0 %v9676_v19  ;;  %v3495_v19 = vld [vmem:[#allocation2 + $0x111] sm:$0xff] }
 0x52f   : > { %4687 = vmatprep.mubr.f32.mxu0 %v8900_v12  ;;  %v3570_v12 = vld [vmem:[#allocation2 + $0x19a] sm:$0xff] }
 0x530   : > { %5916 = vmatprep.mubr.f32.mxu1 %v3570_v12  ;;  %v3435_v12 = vld [vmem:[#allocation2 + $0x140] sm:$0xff] }
 0x531   : > { %5917 = vmatmul.mubr.f32.gmra.mrb[94].mxu1 %v3571_v18  ;;  %v3500_v18 = vld [vmem:[#allocation2 + $0x151] sm:$0xff] }
 0x532   : > { %4688 = vmatmul.mubr.f32.gmra.mrb[116].mxu0 %v9677_v51  ;;  %v3496_v51 = vld [vmem:[#allocation2 + $0x121] sm:$0xff] }
 0x533   : > { %4692 = vmatprep.mubr.f32.mxu0 %v8908_v7  ;;  %v9376_v7 = vld [vmem:[#allocation2 + $0x189] sm:$0xff] }
 0x536   : > { %4693 = vmatmul.mubr.f32.gmra.mrb[118].mxu0 %v9678_v54  ;;  %v3497_v54 = vld [vmem:[#allocation2 + $0x129] sm:$0xff] }
 0x537   : > { %4697 = vmatprep.mubr.f32.mxu0 %v8929_v46  ;;  %v3412_v46 = vld [vmem:[#allocation2 + $0x30] sm:$0xff] }
 0x53a   : > { %4698 = vmatmul.mubr.f32.gmra.mrb[120].mxu0 %v9679_v21  ;;  %v3498_v21 = vld [vmem:[#allocation2 + $0x139] sm:$0xff] }
 0x53b   : > { %4702 = vmatprep.mubr.f32.mxu0 %v9669_v63  ;;  %v3414_v63 = vld [vmem:[#allocation2 + $0x48] sm:$0xff] }
 0x53e   : > { %4703 = vmatmul.mubr.f32.gmra.mrb[122].mxu0 %v9680_v1  ;;  %v3499_v1 = vld [vmem:[#allocation2 + $0x141] sm:$0xff] }
 0x53f   : > { %4707 = vmatprep.mubr.f32.mxu0 %v8951_v32  ;;  %v3413_v32 = vld [vmem:[#allocation2 + $0x38] sm:$0xff] }
 0x542   : > { %4708 = vmatmul.mubr.f32.gmra.mrb[124].mxu0 %v9372_v37 }
 0x543   : > { %4712 = vmatprep.mubr.f32.mxu0 %v8953_v25  ;;  %v3415_v25 = vld [vmem:[#allocation2 + $0x50] sm:$0xff] }
 0x546   : > { %4713 = vmatmul.mubr.f32.gmra.mrb[126].mxu0 %v9376_v7 }
 0x547   : > { %4782 = vmatprep.mubr.f32.mxu0 %v9168_v34  ;;  %v3417_v34 = vld [vmem:[#allocation2 + $0x68] sm:$0xff] }
 0x54a   : > { %4783 = vmatmul.mubr.f32.vlgmr.msra.gmra.mrb[64].mxu0 %v3412_v46  ;;  %v3436_v46 = vld [vmem:[#allocation2 + $0x150] sm:$0xff] }
 0x54b   : > { %4787 = vmatprep.mubr.f32.mxu0 %v9180_v38  ;;  %v3418_v38 = vld [vmem:[#allocation2 + $0x78] sm:$0xff] }
 0x54e   : > { %4788 = vmatmul.mubr.f32.gmra.mrb[66].mxu0 %v3413_v32  ;;  %v3501_v32 = vld [vmem:[#allocation2 + $0x159] sm:$0xff] }
 0x54f   : > { %4792 = vmatprep.mubr.f32.mxu0 %v9192_v50  ;;  %v3419_v50 = vld [vmem:[#allocation2 + $0x80] sm:$0xff] }
 0x552   : > { %4793 = vmatmul.mubr.f32.gmra.mrb[68].mxu0 %v3414_v63  ;;  %v3437_v63 = vld [vmem:[#allocation2 + $0x158] sm:$0xff] }
 0x553   : > { %4797 = vmatprep.mubr.f32.mxu0 %v9204_v61  ;;  %v3420_v61 = vld [vmem:[#allocation2 + $0x90] sm:$0xff] }
 0x556   : > { %4798 = vmatmul.mubr.f32.gmra.mrb[70].mxu0 %v3415_v25  ;;  %v3502_v25 = vld [vmem:[#allocation2 + $0x169] sm:$0xff] }
 0x557   : > { %4802 = vmatprep.mubr.f32.mxu0 %v9216_v9  ;;  %v3421_v9 = vld [vmem:[#allocation2 + $0x98] sm:$0xff] }
 0x55a   : > { %4803 = vmatmul.mubr.f32.gmra.mrb[72].mxu0 %v3416_v53  ;;  %v3438_v53 = vld [vmem:[#allocation2 + $0x168] sm:$0xff] }
 0x55b   : > { %4807 = vmatprep.mubr.f32.mxu0 %v9228_v15  ;;  %v3422_v15 = vld [vmem:[#allocation2 + $0xa8] sm:$0xff] }
 0x55e   : > { %4808 = vmatmul.mubr.f32.gmra.mrb[74].mxu0 %v3417_v34  ;;  %v3503_v34 = vld [vmem:[#allocation2 + $0x171] sm:$0xff] }
 0x55f   : > { %4812 = vmatprep.mubr.f32.mxu0 %v9240_v43  ;;  %v3423_v43 = vld [vmem:[#allocation2 + $0xb0] sm:$0xff] }
 0x562   : > { %4813 = vmatmul.mubr.f32.gmra.mrb[76].mxu0 %v3418_v38  ;;  %v3439_v38 = vld [vmem:[#allocation2 + $0x170] sm:$0xff] }
 0x563   : > { %4817 = vmatprep.mubr.f32.mxu0 %v9252_v16  ;;  %v3424_v16 = vld [vmem:[#allocation2 + $0xc0] sm:$0xff] }
 0x566   : > { %4818 = vmatmul.mubr.f32.gmra.mrb[78].mxu0 %v3419_v50  ;;  %v3506_v50 = vld [vmem:[#allocation2 + $0x199] sm:$0xff] }
 0x567   : > { %4822 = vmatprep.mubr.f32.mxu0 %v9264_v31  ;;  %v3425_v31 = vld [vmem:[#allocation2 + $0xc8] sm:$0xff] }
 0x56a   : > { %4823 = vmatmul.mubr.f32.gmra.mrb[80].mxu0 %v3420_v61  ;;  %v3507_v61 = vld [vmem:[#allocation2 + $0x1a1] sm:$0xff] }
 0x56b   : > { %4827 = vmatprep.mubr.f32.mxu0 %v9276_v24  ;;  %v3426_v24 = vld [vmem:[#allocation2 + $0xd8] sm:$0xff] }
 0x56e   : > { %4828 = vmatmul.mubr.f32.gmra.mrb[82].mxu0 %v3421_v9  ;;  %v6876_v9 = vld [vmem:[#allocation2] sm:$0xff] }
 0x56f   : > { %4832 = vmatprep.mubr.f32.mxu0 %v9288_v0  ;;  %v3427_v0 = vld [vmem:[#allocation2 + $0xe0] sm:$0xff] }
 0x572   : > { %4833 = vmatmul.mubr.f32.gmra.mrb[84].mxu0 %v3422_v15 }
 0x573   : > { %4837 = vmatprep.mubr.f32.mxu0 %v9300_v28  ;;  %v3428_v28 = vld [vmem:[#allocation2 + $0xf0] sm:$0xff] }
 0x576   : > { %4838 = vmatmul.mubr.f32.gmra.mrb[86].mxu0 %v3423_v43 }
 0x577   : > { %4842 = vmatprep.mubr.f32.mxu0 %v9312_v10  ;;  %v3429_v10 = vld [vmem:[#allocation2 + $0xf8] sm:$0xff] }
 0x57a   : > { %4843 = vmatmul.mubr.f32.gmra.mrb[88].mxu0 %v3424_v16  ;;  %v9405_v16 = vld [vmem:[#allocation9] ss:$0 sm:$0xff] }
 0x57b   : > { %4847 = vmatprep.mubr.f32.mxu0 %v9318_v40  ;;  %v3430_v40 = vld [vmem:[#allocation2 + $0x108] sm:$0xff] }
 0x57e   : > { %4848 = vmatmul.mubr.f32.gmra.mrb[90].mxu0 %v3425_v31 }
 0x57f   : > { %4852 = vmatprep.mubr.f32.mxu0 %v9323_v62  ;;  %v3431_v62 = vld [vmem:[#allocation2 + $0x110] sm:$0xff] }
 0x582   : > { %4853 = vmatmul.mubr.f32.gmra.mrb[92].mxu0 %v3426_v24 }
 0x583   : > { %4857 = vmatprep.mubr.f32.mxu0 %v9328_v2  ;;  %v3432_v2 = vld [vmem:[#allocation2 + $0x120] sm:$0xff] }
 0x586   : > { %4858 = vmatmul.mubr.f32.gmra.mrb[94].mxu0 %v3427_v0 }
 0x587   : > { %4862 = vmatprep.mubr.f32.mxu0 %v9334_v39  ;;  %v3433_v39 = vld [vmem:[#allocation2 + $0x128] sm:$0xff] }
 0x58a   : > { %4863 = vmatmul.mubr.f32.gmra.mrb[96].mxu0 %v3428_v28 }
 0x58b   : > { %4867 = vmatprep.mubr.f32.mxu0 %v9340_v26  ;;  %v3434_v26 = vld [vmem:[#allocation2 + $0x138] sm:$0xff] }
 0x58e   : > { %4868 = vmatmul.mubr.f32.gmra.mrb[98].mxu0 %v3429_v10 }
 0x58f   : > { %4872 = vmatprep.mubr.f32.mxu0 %v3494_v13 }
 0x592   : > { %4873 = vmatmul.mubr.f32.gmra.mrb[100].mxu0 %v3430_v40 }
 0x593   : > { %4877 = vmatprep.mubr.f32.mxu0 %v3495_v19 }
 0x596   : > { %4878 = vmatmul.mubr.f32.gmra.mrb[102].mxu0 %v3431_v62 }
 0x597   : > { %4882 = vmatprep.mubr.f32.mxu0 %v3496_v51 }
 0x59a   : > { %4883 = vmatmul.mubr.f32.gmra.mrb[104].mxu0 %v3432_v2 }
 0x59b   : > { %4887 = vmatprep.mubr.f32.mxu0 %v3497_v54 }
 0x59e   : > { %4888 = vmatmul.mubr.f32.gmra.mrb[106].mxu0 %v3433_v39 }
 0x59f   : > { %4892 = vmatprep.mubr.f32.mxu0 %v3498_v21 }
 0x5a2   : > { %4893 = vmatmul.mubr.f32.gmra.mrb[108].mxu0 %v3434_v26 }
 0x5a3   : > { %4897 = vmatprep.mubr.f32.mxu0 %v3499_v1 }
 0x5a6   : > { %4898 = vmatmul.mubr.f32.gmra.mrb[110].mxu0 %v3435_v12 }
 0x5a7   : > { %4902 = vmatprep.mubr.f32.mxu0 %v3500_v18 }
 0x5aa   : > { %4903 = vmatmul.mubr.f32.gmra.mrb[112].mxu0 %v3436_v46 }
 0x5ab   : > { %4907 = vmatprep.mubr.f32.mxu0 %v3501_v32 }
 0x5ae   : > { %4908 = vmatmul.mubr.f32.gmra.mrb[114].mxu0 %v3437_v63 }
 0x5af   : > { %4912 = vmatprep.mubr.f32.mxu0 %v3502_v25 }
 0x5b2   : > { %4913 = vmatmul.mubr.f32.gmra.mrb[116].mxu0 %v3438_v53 }
 0x5b3   : > { %4917 = vmatprep.mubr.f32.mxu0 %v3503_v34 }
 0x5b6   : > { %4918 = vmatmul.mubr.f32.gmra.mrb[118].mxu0 %v3439_v38 }
 0x5b7   : > { %4922 = vmatprep.mubr.f32.mxu0 %v9372_v37 }
 0x5ba   : > { %4923 = vmatmul.mubr.f32.gmra.mrb[120].mxu0 %v9122_v57 }
 0x5bb   : > { %4927 = vmatprep.mubr.f32.mxu0 %v9376_v7 }
 0x5be   : > { %4928 = vmatmul.mubr.f32.gmra.mrb[122].mxu0 %v9130_v27 }
 0x5bf   : > { %4932 = vmatprep.mubr.f32.mxu0 %v3506_v50 }
 0x5c2   : > { %4933 = vmatmul.mubr.f32.gmra.mrb[124].mxu0 %v6876_v9 }
 0x5c3   : > { %4937 = vmatprep.mubr.f32.mxu0 %v3507_v61 }
 0x5c6   : > { %4938 = vmatmul.mubr.f32.gmra.mrb[126].mxu0 %v6876_v9 }
 0x604   : > { %v9401_v15 = vpop.f32.mrb[94].mxu1 }
 0x605   : > { %v9403_v43 = vpop.f32.mrb[95].mxu1 }
 0x61d   : > { %v4784_v37 = vpop.f32.mrb[64].mxu0 }
 0x61e   : > { %v6405_v57 = vadd.f32 %v9405_v16, %v4784_v37  ;;  %v4786_v31 = vpop.f32.mrb[65].mxu0 }
 0x620   : > { %v5010_v7 = vadd.f32 %v6405_v57, %v9110_v56 }
 0x621   : > { %v4789_v27 = vpop.f32.mrb[66].mxu0 }
 0x622   : > { %v5168_v24 = vmax.f32 %v5010_v7, 0.0  ;;  %v6406_v0 = vadd.f32 %v9405_v16, %v4789_v27  ;;  %v4791_v28 = vpop.f32.mrb[67].mxu0 }
 0x624   : > { %v5545_v10 = vpack.c.bf16 %v5168_v24, %v5168_v24  ;;  %v5015_v13 = vadd.f32 %v6406_v0, %v9107_v48 }
 0x625   : > { %v4794_v40 = vpop.f32.mrb[68].mxu0 }
 0x626   : > { %5329 = vst.msk [vmem:[%s9414_s15] sm:$0xf] %vm5328_vm6, %v5545_v10  ;;  %v5169_v56 = vmax.f32 %v5015_v13, 0.0  ;;  %v6407_v19 = vadd.f32 %v9405_v16, %v4794_v40  ;;  %v4796_v62 = vpop.f32.mrb[69].mxu0 }
 0x628   : > { %v5546_v51 = vpack.c.bf16 %v5169_v56, %v5169_v56  ;;  %v5020_v2 = vadd.f32 %v6407_v19, %v9118_v42 }
 0x629   : > { %v4799_v54 = vpop.f32.mrb[70].mxu0 }
 0x62a   : > { %5330 = vst.msk [vmem:[%s9414_s15 + $0x4] sm:$0xf] %vm5328_vm6, %v5546_v51  ;;  %v5170_v39 = vmax.f32 %v5020_v2, 0.0  ;;  %v6408_v21 = vadd.f32 %v9405_v16, %v4799_v54  ;;  %v4801_v26 = vpop.f32.mrb[71].mxu0 }
 0x62c   : > { %v5547_v48 = vpack.c.bf16 %v5170_v39, %v5170_v39  ;;  %v5025_v1 = vadd.f32 %v6408_v21, %v9115_v55 }
 0x62d   : > { %v4804_v12 = vpop.f32.mrb[72].mxu0 }
 0x62e   : > { %5331 = vst.msk [vmem:[%s9414_s15 + $0x8] sm:$0xf] %vm5328_vm6, %v5547_v48  ;;  %v5171_v18 = vmax.f32 %v5025_v1, 0.0  ;;  %v6409_v46 = vadd.f32 %v9405_v16, %v4804_v12  ;;  %v4806_v32 = vpop.f32.mrb[73].mxu0 }
 0x630   : > { %v5548_v42 = vpack.c.bf16 %v5171_v18, %v5171_v18  ;;  %v5030_v63 = vadd.f32 %v6409_v46, %v9128_v8 }
 0x631   : > { %v4809_v25 = vpop.f32.mrb[74].mxu0 }
 0x632   : > { %5332 = vst.msk [vmem:[%s9414_s15 + $0xc] sm:$0xf] %vm5328_vm6, %v5548_v42  ;;  %v5172_v53 = vmax.f32 %v5030_v63, 0.0  ;;  %v6410_v34 = vadd.f32 %v9405_v16, %v4809_v25  ;;  %v4811_v38 = vpop.f32.mrb[75].mxu0 }
 0x634   : > { %v5549_v55 = vpack.c.bf16 %v5172_v53, %v5172_v53  ;;  %v5035_v50 = vadd.f32 %v6410_v34, %v9125_v33 }
 0x635   : > { %v4814_v61 = vpop.f32.mrb[76].mxu0 }
 0x636   : > { %5333 = vst.msk [vmem:[%s9414_s15 + $0x10] sm:$0xf] %vm5328_vm6, %v5549_v55  ;;  %v5173_v9 = vmax.f32 %v5035_v50, 0.0  ;;  %v6411_v37 = vadd.f32 %v9405_v16, %v4814_v61  ;;  %v4816_v57 = vpop.f32.mrb[77].mxu0 }
 0x638   : > { %v5550_v8 = vpack.c.bf16 %v5173_v9, %v5173_v9  ;;  %v5040_v31 = vadd.f32 %v6411_v37, %v9149_v20 }
 0x639   : > { %v4819_v7 = vpop.f32.mrb[78].mxu0 }
 0x63a   : > { %5334 = vst.msk [vmem:[%s9414_s15 + $0x14] sm:$0xf] %vm5328_vm6, %v5550_v8  ;;  %v5174_v27 = vmax.f32 %v5040_v31, 0.0  ;;  %v6412_v24 = vadd.f32 %v9405_v16, %v4819_v7  ;;  %v4821_v0 = vpop.f32.mrb[79].mxu0 }
 0x63c   : > { %v5551_v33 = vpack.c.bf16 %v5174_v27, %v5174_v27  ;;  %v5045_v28 = vadd.f32 %v6412_v24, %v9147_v45 }
 0x63d   : > { %v4824_v10 = vpop.f32.mrb[80].mxu0 }
 0x63e   : > { %5335 = vst.msk [vmem:[%s9414_s15 + $0x18] sm:$0xf] %vm5328_vm6, %v5551_v33  ;;  %v5175_v13 = vmax.f32 %v5045_v28, 0.0  ;;  %v6413_v40 = vadd.f32 %v9405_v16, %v4824_v10  ;;  %v4826_v56 = vpop.f32.mrb[81].mxu0 }
 0x640   : > { %v5552_v20 = vpack.c.bf16 %v5175_v13, %v5175_v13  ;;  %v5050_v19 = vadd.f32 %v6413_v40, %v9171_v60 }
 0x641   : > { %v4829_v62 = vpop.f32.mrb[82].mxu0 }
 0x642   : > { %5336 = vst.msk [vmem:[%s9414_s15 + $0x1c] sm:$0xf] %vm5328_vm6, %v5552_v20  ;;  %v5176_v51 = vmax.f32 %v5050_v19, 0.0  ;;  %v6414_v2 = vadd.f32 %v9405_v16, %v4829_v62  ;;  %v4831_v54 = vpop.f32.mrb[83].mxu0 }
 0x644   : > { %v5553_v45 = vpack.c.bf16 %v5176_v51, %v5176_v51  ;;  %v5055_v39 = vadd.f32 %v6414_v2, %v9166_v3 }
 0x645   : > { %v4834_v21 = vpop.f32.mrb[84].mxu0 }
 0x646   : > { %5337 = vst.msk [vmem:[%s9414_s15 + $0x20] sm:$0xf] %vm5328_vm6, %v5553_v45  ;;  %v5177_v26 = vmax.f32 %v5055_v39, 0.0  ;;  %v6415_v48 = vadd.f32 %v9405_v16, %v4834_v21  ;;  %v4836_v1 = vpop.f32.mrb[85].mxu0 }
 0x648   : > { %v5554_v60 = vpack.c.bf16 %v5177_v26, %v5177_v26  ;;  %v5060_v12 = vadd.f32 %v6415_v48, %v9195_v49 }
 0x649   : > { %v4839_v18 = vpop.f32.mrb[86].mxu0 }
 0x64a   : > { %5338 = vst.msk [vmem:[%s9414_s15 + $0x24] sm:$0xf] %vm5328_vm6, %v5554_v60  ;;  %v5178_v46 = vmax.f32 %v5060_v12, 0.0  ;;  %v6416_v32 = vadd.f32 %v9405_v16, %v4839_v18  ;;  %v4841_v42 = vpop.f32.mrb[87].mxu0 }
 0x64c   : > { %v5555_v3 = vpack.c.bf16 %v5178_v46, %v5178_v46  ;;  %v5065_v63 = vadd.f32 %v6416_v32, %v9190_v44 }
 0x64d   : > { %v4844_v25 = vpop.f32.mrb[88].mxu0 }
 0x64e   : > { %5339 = vst.msk [vmem:[%s9414_s15 + $0x28] sm:$0xf] %vm5328_vm6, %v5555_v3  ;;  %v5179_v53 = vmax.f32 %v5065_v63, 0.0  ;;  %v6417_v34 = vadd.f32 %v9405_v16, %v4844_v25  ;;  %v4846_v38 = vpop.f32.mrb[89].mxu0 }
 0x650   : > { %v5556_v49 = vpack.c.bf16 %v5179_v53, %v5179_v53  ;;  %v5070_v55 = vadd.f32 %v6417_v34, %v9219_v59 }
 0x651   : > { %v4849_v50 = vpop.f32.mrb[90].mxu0 }
 0x652   : > { %5340 = vst.msk [vmem:[%s9414_s15 + $0x2c] sm:$0xf] %vm5328_vm6, %v5556_v49  ;;  %v5180_v61 = vmax.f32 %v5070_v55, 0.0  ;;  %v6418_v9 = vadd.f32 %v9405_v16, %v4849_v50  ;;  %v4851_v37 = vpop.f32.mrb[91].mxu0 }
 0x654   : > { %v5557_v44 = vpack.c.bf16 %v5180_v61, %v5180_v61  ;;  %v5075_v57 = vadd.f32 %v6418_v9, %v9214_v4 }
 0x655   : > { %v4854_v8 = vpop.f32.mrb[92].mxu0 }
 0x656   : > { %5341 = vst.msk [vmem:[%s9414_s15 + $0x30] sm:$0xf] %vm5328_vm6, %v5557_v44  ;;  %v5181_v31 = vmax.f32 %v5075_v57, 0.0  ;;  %v6419_v7 = vadd.f32 %v9405_v16, %v4854_v8  ;;  %v4856_v27 = vpop.f32.mrb[93].mxu0 }
 0x658   : > { %v5558_v59 = vpack.c.bf16 %v5181_v31, %v5181_v31  ;;  %v5080_v24 = vadd.f32 %v6419_v7, %v9243_v29 }
 0x659   : > { %v4859_v0 = vpop.f32.mrb[94].mxu0 }
 0x65a   : > { %5342 = vst.msk [vmem:[%s9414_s15 + $0x34] sm:$0xf] %vm5328_vm6, %v5558_v59  ;;  %v5182_v33 = vmax.f32 %v5080_v24, 0.0  ;;  %v6420_v28 = vadd.f32 %v9405_v16, %v4859_v0  ;;  %v4861_v10 = vpop.f32.mrb[95].mxu0 }
 0x65c   : > { %v5559_v4 = vpack.c.bf16 %v5182_v33, %v5182_v33  ;;  %v5085_v13 = vadd.f32 %v6420_v28, %v9238_v22 }
 0x65d   : > { %v4864_v40 = vpop.f32.mrb[96].mxu0 }
 0x65e   : > { %5343 = vst.msk [vmem:[%s9414_s15 + $0x38] sm:$0xf] %vm5328_vm6, %v5559_v4  ;;  %v5183_v56 = vmax.f32 %v5085_v13, 0.0  ;;  %v6421_v20 = vadd.f32 %v9405_v16, %v4864_v40  ;;  %v4866_v19 = vpop.f32.mrb[97].mxu0 }
 0x65f   : > { %v9681_v19 = vld [vmem:[#allocation30_spill] sm:$0xff] }
 0x660   : > { %v5560_v29 = vpack.c.bf16 %v5183_v56, %v5183_v56  ;;  %v5090_v62 = vadd.f32 %v6421_v20, %v9267_v58 }
 0x661   : > { %v4869_v51 = vpop.f32.mrb[98].mxu0 }
 0x662   : > { %5344 = vst.msk [vmem:[%s9414_s15 + $0x3c] sm:$0xf] %vm5328_vm6, %v5560_v29  ;;  %v5184_v2 = vmax.f32 %v5090_v62, 0.0  ;;  %v6422_v54 = vadd.f32 %v9405_v16, %v4869_v51  ;;  %v4871_v45 = vpop.f32.mrb[99].mxu0 }
 0x664   : > { %v5561_v22 = vpack.c.bf16 %v5184_v2, %v5184_v2  ;;  %v5095_v39 = vadd.f32 %v6422_v54, %v9262_v41 }
 0x665   : > { %v4874_v21 = vpop.f32.mrb[100].mxu0 }
 0x666   : > { %5345 = vst.msk [vmem:[%s9414_s15 + $0x40] sm:$0xf] %vm5328_vm6, %v5561_v22  ;;  %v5185_v26 = vmax.f32 %v5095_v39, 0.0  ;;  %v6423_v48 = vadd.f32 %v9405_v16, %v4874_v21  ;;  %v4876_v1 = vpop.f32.mrb[101].mxu0 }
 0x668   : > { %v5562_v58 = vpack.c.bf16 %v5185_v26, %v5185_v26  ;;  %v5100_v60 = vadd.f32 %v6423_v48, %v9291_v17 }
 0x669   : > { %v4879_v12 = vpop.f32.mrb[102].mxu0 }
 0x66a   : > { %5346 = vst.msk [vmem:[%s9414_s15 + $0x44] sm:$0xf] %vm5328_vm6, %v5562_v58  ;;  %v5186_v18 = vmax.f32 %v5100_v60, 0.0  ;;  %v6424_v46 = vadd.f32 %v9405_v16, %v4879_v12  ;;  %v4881_v32 = vpop.f32.mrb[103].mxu0 }
 0x66c   : > { %v5563_v41 = vpack.c.bf16 %v5186_v18, %v5186_v18  ;;  %v5105_v42 = vadd.f32 %v6424_v46, %v9286_v47 }
 0x66d   : > { %v4884_v3 = vpop.f32.mrb[104].mxu0 }
 0x66e   : > { %5347 = vst.msk [vmem:[%s9414_s15 + $0x48] sm:$0xf] %vm5328_vm6, %v5563_v41  ;;  %v5187_v63 = vmax.f32 %v5105_v42, 0.0  ;;  %v6425_v25 = vadd.f32 %v9405_v16, %v4884_v3  ;;  %v4886_v53 = vpop.f32.mrb[105].mxu0 }
 0x670   : > { %v5564_v17 = vpack.c.bf16 %v5187_v63, %v5187_v63  ;;  %v5110_v34 = vadd.f32 %v6425_v25, %v9315_v14 }
 0x671   : > { %v4889_v38 = vpop.f32.mrb[106].mxu0 }
 0x672   : > { %5348 = vst.msk [vmem:[%s9414_s15 + $0x4c] sm:$0xf] %vm5328_vm6, %v5564_v17  ;;  %v5188_v49 = vmax.f32 %v5110_v34, 0.0  ;;  %v6426_v55 = vadd.f32 %v9405_v16, %v4889_v38  ;;  %v4891_v50 = vpop.f32.mrb[107].mxu0 }
 0x674   : > { %v5565_v47 = vpack.c.bf16 %v5188_v49, %v5188_v49  ;;  %v5115_v61 = vadd.f32 %v6426_v55, %v9310_v52 }
 0x675   : > { %v4894_v9 = vpop.f32.mrb[108].mxu0 }
 0x676   : > { %5349 = vst.msk [vmem:[%s9414_s15 + $0x50] sm:$0xf] %vm5328_vm6, %v5565_v47  ;;  %v5189_v37 = vmax.f32 %v5115_v61, 0.0  ;;  %v6427_v44 = vadd.f32 %v9405_v16, %v4894_v9  ;;  %v4896_v57 = vpop.f32.mrb[109].mxu0 }
 0x678   : > { %v5566_v14 = vpack.c.bf16 %v5189_v37, %v5189_v37  ;;  %v5120_v8 = vadd.f32 %v6427_v44, %v9326_v11 }
 0x679   : > { %v4899_v31 = vpop.f32.mrb[110].mxu0 }
 0x67a   : > { %5350 = vst.msk [vmem:[%s9414_s15 + $0x54] sm:$0xf] %vm5328_vm6, %v5566_v14  ;;  %v5190_v7 = vmax.f32 %v5120_v8, 0.0  ;;  %v6428_v27 = vadd.f32 %v9405_v16, %v4899_v31  ;;  %v4901_v59 = vpop.f32.mrb[111].mxu0 }
 0x67c   : > { %v5567_v52 = vpack.c.bf16 %v5190_v7, %v5190_v7  ;;  %v5125_v24 = vadd.f32 %v6428_v27, %v9321_v6 }
 0x67d   : > { %v4904_v0 = vpop.f32.mrb[112].mxu0 }
 0x67e   : > { %5351 = vst.msk [vmem:[%s9414_s15 + $0x58] sm:$0xf] %vm5328_vm6, %v5567_v52  ;;  %v5191_v33 = vmax.f32 %v5125_v24, 0.0  ;;  %v6429_v28 = vadd.f32 %v9405_v16, %v4904_v0  ;;  %v4906_v10 = vpop.f32.mrb[113].mxu0 }
 0x680   : > { %v5568_v11 = vpack.c.bf16 %v5191_v33, %v5191_v33  ;;  %v5130_v4 = vadd.f32 %v6429_v28, %v9337_v35 }
 0x681   : > { %v4909_v13 = vpop.f32.mrb[114].mxu0 }
 0x682   : > { %5352 = vst.msk [vmem:[%s9414_s15 + $0x5c] sm:$0xf] %vm5328_vm6, %v5568_v11  ;;  %v5192_v40 = vmax.f32 %v5130_v4, 0.0  ;;  %v6430_v56 = vadd.f32 %v9405_v16, %v4909_v13  ;;  %v4911_v20 = vpop.f32.mrb[115].mxu0 }
 0x684   : > { %v5569_v6 = vpack.c.bf16 %v5192_v40, %v5192_v40  ;;  %v5135_v29 = vadd.f32 %v6430_v56, %v9681_v19 }
 0x685   : > { %v4914_v62 = vpop.f32.mrb[116].mxu0 }
 0x686   : > { %5353 = vst.msk [vmem:[%s9414_s15 + $0x60] sm:$0xf] %vm5328_vm6, %v5569_v6  ;;  %v5193_v51 = vmax.f32 %v5135_v29, 0.0  ;;  %v6431_v2 = vadd.f32 %v9405_v16, %v4914_v62  ;;  %v4916_v54 = vpop.f32.mrb[117].mxu0 }
 0x688   : > { %v5570_v35 = vpack.c.bf16 %v5193_v51, %v5193_v51  ;;  %v5140_v45 = vadd.f32 %v6431_v2, %v9347_v30 }
 0x689   : > { %v4919_v22 = vpop.f32.mrb[118].mxu0 }
 0x68a   : > { %5354 = vst.msk [vmem:[%s9414_s15 + $0x64] sm:$0xf] %vm5328_vm6, %v5570_v35  ;;  %v5194_v39 = vmax.f32 %v5140_v45, 0.0  ;;  %v6432_v21 = vadd.f32 %v9405_v16, %v4919_v22  ;;  %v4921_v26 = vpop.f32.mrb[119].mxu0 }
 0x68c   : > { %v5571_v48 = vpack.c.bf16 %v5194_v39, %v5194_v39  ;;  %v5145_v1 = vadd.f32 %v6432_v21, %v9344_v5 }
 0x68d   : > { %v4924_v58 = vpop.f32.mrb[120].mxu0 }
 0x68e   : > { %5355 = vst.msk [vmem:[%s9414_s15 + $0x68] sm:$0xf] %vm5328_vm6, %v5571_v48  ;;  %v5195_v60 = vmax.f32 %v5145_v1, 0.0  ;;  %v6433_v12 = vadd.f32 %v9405_v16, %v4924_v58  ;;  %v4926_v18 = vpop.f32.mrb[121].mxu0 }
 0x690   : > { %v5572_v30 = vpack.c.bf16 %v5195_v60, %v5195_v60  ;;  %v5150_v46 = vadd.f32 %v6433_v12, %v9355_v23 }
 0x691   : > { %v4929_v32 = vpop.f32.mrb[122].mxu0 }
 0x692   : > { %5356 = vst.msk [vmem:[%s9414_s15 + $0x6c] sm:$0xf] %vm5328_vm6, %v5572_v30  ;;  %v5196_v41 = vmax.f32 %v5150_v46, 0.0  ;;  %v6434_v42 = vadd.f32 %v9405_v16, %v4929_v32  ;;  %v4931_v3 = vpop.f32.mrb[123].mxu0 }
 0x694   : > { %v5573_v5 = vpack.c.bf16 %v5196_v41, %v5196_v41  ;;  %v5155_v63 = vadd.f32 %v6434_v42, %v9352_v36 }
 0x695   : > { %v4934_v25 = vpop.f32.mrb[124].mxu0 }
 0x696   : > { %5357 = vst.msk [vmem:[%s9414_s15 + $0x70] sm:$0xf] %vm5328_vm6, %v5573_v5  ;;  %v5197_v53 = vmax.f32 %v5155_v63, 0.0  ;;  %v6435_v17 = vadd.f32 %v9405_v16, %v4934_v25  ;;  %v4936_v23 = vpop.f32.mrb[125].mxu0 }
 0x698   : > { %v5574_v34 = vpack.c.bf16 %v5197_v53, %v5197_v53  ;;  %v5160_v38 = vadd.f32 %v6435_v17, %v9403_v43 }
 0x699   : > { %v4939_v49 = vpop.f32.mrb[126].mxu0 }
 0x69a   : > { %5358 = vst.msk [vmem:[%s9414_s15 + $0x74] sm:$0xf] %vm5328_vm6, %v5574_v34  ;;  %v5198_v55 = vmax.f32 %v5160_v38, 0.0  ;;  %v6436_v50 = vadd.f32 %v9405_v16, %v4939_v49  ;;  %v4941_v47 = vpop.f32.mrb[127].mxu0 }
 0x69c   : > { %v5575_v61 = vpack.c.bf16 %v5198_v55, %v5198_v55  ;;  %v5165_v36 = vadd.f32 %v6436_v50, %v9401_v15 }
 0x69e   : > { %5359 = vst.msk [vmem:[%s9414_s15 + $0x78] sm:$0xf] %vm5328_vm6, %v5575_v61  ;;  %v5199_v9 = vmax.f32 %v5165_v36, 0.0 }
 0x6a0   : > { %v5576_v37 = vpack.c.bf16 %v5199_v9, %v5199_v9 }
 0x6a2   : > { %5360 = vst.msk [vmem:[%s9414_s15 + $0x7c] sm:$0xf] %vm5328_vm6, %v5576_v37 }
 0x6a3 PF: > { %s20_s24 = sadd.s32 1, %s7007_s24  }
 0x6a4   : > { %p17_p3 = scmp.ge.s32.totalorder %s20_s24, 4  }
 0x6a6   :  { %19 = sbr.rel (!%p17_p3) target bundleno = 3 (0x3), region = 97 }
 0x6ad   :  { %5383 = vsyncpa [#allocation5], 1 }
 0x6ae   :  { %5385 = vsyncpa [#allocation5 + $0x1], 1 }
 0x6af   :  { %5386 = vsyncpa [#allocation7], 1 }
 0x6b0   :  { %5387 = vsyncpa [#allocation10], 1 }

</bundles_post_ra>
